<compile_context>
chip_gen: v6e
topology: v6e:2x2x1
jax: 0.10.0
libtpu: 0.0.40
codegen_flags: <defaults>
</compile_context>

<pallas_src>
from functools import partial

import jax
import jax.numpy as jnp
from jax.experimental import pallas as pl
from jax.experimental.pallas import tpu as pltpu

# ----------------------- model configuration (small) ------------------------
CONV_DIM = 16              # conv_input_dim  (128 in the original)
EMBED = CONV_DIM * 8       # = 128, final ConvLayer channels == swin feat dim
SEQ_DIM = 64               # seq_dim         (256 in the original)
HIDDEN = 32                # seq_hidden_dim  (256 in the original)
NUM_LSTM_LAYERS = 3        # seq_layers
VIEWPORTS = 4              # viewport_nums   (6 in the original)
PATCH = 4                  # swin stand-in patch size

TM_MAX = 1024              # max row tile (safe on v7x's 32 MiB scoped VMEM)
VMEM_LIMIT = 32 * 1024 * 1024

_SQRT2 = 1.4142135623730951


# ------------------------------ Pallas kernels ------------------------------
def _gelu_exact(x):
    # torch.nn.GELU() default (erf-based, exact)
    return 0.5 * x * (1.0 + jax.lax.erf(x / _SQRT2))


def _mm_kernel(a_ref, w_ref, b_ref, o_ref, *, act):
    acc = jnp.dot(a_ref[...], w_ref[...], preferred_element_type=jnp.float32)
    acc = acc + b_ref[...]
    if act == "gelu":
        acc = _gelu_exact(acc)
    o_ref[...] = acc.astype(o_ref.dtype)


def _mm_res_kernel(a_ref, w_ref, b_ref, res_ref, o_ref, *, act):
    acc = jnp.dot(a_ref[...], w_ref[...], preferred_element_type=jnp.float32)
    acc = acc + b_ref[...]
    if act == "gelu":
        acc = _gelu_exact(acc)
    # matches PyTorch ResidualBlock:  act(conv3(x)) + shortcut
    o_ref[...] = (acc + res_ref[...].astype(jnp.float32)).astype(o_ref.dtype)


def _full_spec(shape):
    # single-block BlockSpec used for the fused single-step kernels (grid=(1,))
    n = len(shape)
    return pl.BlockSpec(shape, lambda i, _n=n: (0,) * _n)


def _choose_tm(R):
    """Row tile selection: full array for small R; otherwise the largest
    32-multiple divisor of R up to TM_MAX that yields >= 2 grid steps (keeps
    both v7x TensorCores busy and avoids padded final blocks)."""
    if R <= 256:
        return R
    cap = min(TM_MAX, R // 2)
    cap -= cap % 32
    for tm in range(cap, 31, -32):
        if R % tm == 0:
            return tm
    return min(TM_MAX, R)            # fallback (partial last block handled by Pallas)


def matmul_bias(a, w, b2, *, act="none", residual=None, out_dtype=jnp.bfloat16):
    """out = act(a @ w + b) [+ residual], tiled over rows.

    a: (R, K) bf16, w: (K, O) bf16 (pre-packed, true K/O widths, no padding),
    b2: (1, O) f32, residual: (R, O) bf16 or None.  Accumulation is f32.
    """
    R, K = a.shape
    K2, O = w.shape
    assert K == K2
    a = a.astype(jnp.bfloat16)
    tm = _choose_tm(R)
    grid = (pl.cdiv(R, tm),)

    in_specs = [
        pl.BlockSpec((tm, K), lambda i: (i, 0)),     # A row tile
        pl.BlockSpec((K, O), lambda i: (0, 0)),      # full weight, grid-invariant
        pl.BlockSpec((1, O), lambda i: (0, 0)),      # bias
    ]
    args = [a, w, b2]
    if residual is None:
        kernel = partial(_mm_kernel, act=act)
    else:
        in_specs.append(pl.BlockSpec((tm, O), lambda i: (i, 0)))
        args.append(residual.astype(jnp.bfloat16))
        kernel = partial(_mm_res_kernel, act=act)

    return pl.pallas_call(
        kernel,
        grid=grid,
        in_specs=in_specs,
        out_specs=pl.BlockSpec((tm, O), lambda i: (i, 0)),
        out_shape=jax.ShapeDtypeStruct((R, O), out_dtype),
        compiler_params=pltpu.CompilerParams(
            dimension_semantics=("parallel",),
            vmem_limit_bytes=VMEM_LIMIT),
    )(*args)


# ---- fused SeqQA head: x_swin + gelu(fc_conv(x_conv)) -> fc_in -> lstm0_ih ----
def _seq_head_kernel(swin_ref, conv_ref, w1_ref, b1_ref, w2_ref, b2_ref,
                     w3_ref, b3_ref, o_ref):
    t = jnp.dot(conv_ref[...], w1_ref[...],
                preferred_element_type=jnp.float32) + b1_ref[...]
    x = swin_ref[...] + _gelu_exact(t)                               # (R, EMBED) f32
    y = jnp.dot(x.astype(jnp.bfloat16), w2_ref[...],
                preferred_element_type=jnp.float32) + b2_ref[...]    # (R, SEQ_DIM)
    g = jnp.dot(y.astype(jnp.bfloat16), w3_ref[...],
                preferred_element_type=jnp.float32) + b3_ref[...]    # (R, 4H)
    o_ref[...] = g


def seq_head(rows_swin, rows_conv, P):
    R = rows_swin.shape[0]
    w1, b1 = P["fc_conv"]
    w2, b2 = P["fc_in"]
    w3, b3 = P["lstm0_ih"]
    args = (rows_swin.astype(jnp.float32), rows_conv.astype(jnp.bfloat16),
            w1, b1, w2, b2, w3, b3)
    return pl.pallas_call(
        _seq_head_kernel,
        grid=(1,),
        in_specs=[_full_spec(a.shape) for a in args],
        out_specs=_full_spec((R, 4 * HIDDEN)),
        out_shape=jax.ShapeDtypeStruct((R, 4 * HIDDEN), jnp.float32),
        compiler_params=pltpu.CompilerParams(
            dimension_semantics=("arbitrary",),
            vmem_limit_bytes=VMEM_LIMIT),
    )(*args)


# ------------------------------- fused 3-layer LSTM --------------------------
def _lstm_stack_kernel(gx0_ref, whh0_ref, wih1_ref, whh1_ref, b1_ref,
                       wih2_ref, whh2_ref, b2_ref, o_ref,
                       h_scr, c_scr, s_scr, *, mb):
    # gx0_ref : (T*mb, 4H) f32 time-major; layer-0 x-projection + both layer-0
    #           biases, hoisted into the seq_head kernel.
    # wih*/whh*: (H or SEQ, 4H) bf16.   b1/b2: (1, 4H) f32 (b_ih + b_hh).
    # o_ref   : (T*mb, H) top-layer hidden states.
    # h_scr/c_scr: (mb, H)  s_scr: (T*mb, H) inter-layer sequence (VMEM-resident)
    H = h_scr.shape[1]
    T = gx0_ref.shape[0] // mb

    def cell(gates):
        # torch gate order: i, f, g, o  (4H = 128 -> cheap lane slices)
        i = jax.nn.sigmoid(gates[:, 0 * H:1 * H])
        f = jax.nn.sigmoid(gates[:, 1 * H:2 * H])
        g = jnp.tanh(gates[:, 2 * H:3 * H])
        o = jax.nn.sigmoid(gates[:, 3 * H:4 * H])
        c = f * c_scr[...] + i * g
        h = o * jnp.tanh(c)
        c_scr[...] = c
        h_scr[...] = h
        return h

    # ---- layer 0: input projection already hoisted into gx0 ----
    h_scr[...] = jnp.zeros_like(h_scr)
    c_scr[...] = jnp.zeros_like(c_scr)
    for t in range(T):                           # short static trip count -> unrolled
        gates = gx0_ref[t * mb:(t + 1) * mb, :] + jnp.dot(
            h_scr[...].astype(jnp.bfloat16), whh0_ref[...],
            preferred_element_type=jnp.float32)
        s_scr[t * mb:(t + 1) * mb, :] = cell(gates)

    # ---- layers 1, 2: hoist the x @ W_ih projection over all timesteps into
    #      one batched matmul per layer; only h @ W_hh stays in the recurrence.
    for wih_ref, whh_ref, b_ref, dst in ((wih1_ref, whh1_ref, b1_ref, s_scr),
                                         (wih2_ref, whh2_ref, b2_ref, o_ref)):
        gx = jnp.dot(s_scr[...].astype(jnp.bfloat16), wih_ref[...],
                     preferred_element_type=jnp.float32) + b_ref[...]
        h_scr[...] = jnp.zeros_like(h_scr)
        c_scr[...] = jnp.zeros_like(c_scr)
        for t in range(T):
            gates = gx[t * mb:(t + 1) * mb, :] + jnp.dot(
                h_scr[...].astype(jnp.bfloat16), whh_ref[...],
                preferred_element_type=jnp.float32)
            dst[t * mb:(t + 1) * mb, :] = cell(gates)


def lstm_stack(gx0_rows, P, mb):
    rows, H4 = gx0_rows.shape
    H = H4 // 4
    whh0 = P["lstm0_hh"]
    (wih1, whh1, b1), (wih2, whh2, b2) = P["lstm_rest"]
    args = (gx0_rows, whh0, wih1, whh1, b1, wih2, whh2, b2)
    return pl.pallas_call(
        partial(_lstm_stack_kernel, mb=mb),
        grid=(1,),
        in_specs=[_full_spec(a.shape) for a in args],
        out_specs=_full_spec((rows, H)),
        out_shape=jax.ShapeDtypeStruct((rows, H), jnp.float32),
        scratch_shapes=[pltpu.VMEM((mb, H), jnp.float32),
                        pltpu.VMEM((mb, H), jnp.float32),
                        pltpu.VMEM((rows, H), jnp.float32)],
        compiler_params=pltpu.CompilerParams(
            dimension_semantics=("arbitrary",),
            vmem_limit_bytes=VMEM_LIMIT),
    )(*args)


# ------------------------------ conv plumbing -------------------------------
def conv2d_nhwc(x, wmat, bias, *, kh, kw, stride, padding, act="none", residual=None):
    """nn.Conv2d on bf16 NHWC activations: im2col with the TRUE K = kh*kw*Cin
    (no channel padding, channels stay the lane-dense last dim) followed by one
    fused, row-tiled Pallas matmul (bias + GELU + residual epilogue)."""
    Nb, H, W, Cin = x.shape
    K, O = wmat.shape
    assert K == kh * kw * Cin
    xp = jnp.pad(x, ((0, 0), (padding, padding), (padding, padding), (0, 0)))
    Ho = (H + 2 * padding - kh) // stride + 1
    Wo = (W + 2 * padding - kw) // stride + 1
    cols = [xp[:, ki:ki + stride * Ho:stride, kj:kj + stride * Wo:stride, :]
            for ki in range(kh) for kj in range(kw)]
    a = jnp.concatenate(cols, axis=-1).reshape(Nb * Ho * Wo, K)
    res = residual.reshape(Nb * Ho * Wo, O) if residual is not None else None
    y = matmul_bias(a, wmat, bias, act=act, residual=res)
    return y.reshape(Nb, Ho, Wo, O)


def residual_block(x, P, name):
    sc = x
    w1, b1 = P[f"{name}_c1"]
    w2, b2 = P[f"{name}_c2"]
    w3, b3 = P[f"{name}_c3"]
    x = conv2d_nhwc(x, w1, b1, kh=3, kw=3, stride=1, padding=1, act="gelu")
    x = conv2d_nhwc(x, w2, b2, kh=3, kw=3, stride=1, padding=1, act="gelu")
    x = conv2d_nhwc(x, w3, b3, kh=3, kw=3, stride=1, padding=1, act="gelu", residual=sc)
    return x


def conv_layer_forward(x_nhwc, P):
    x = conv2d_nhwc(x_nhwc, *P["shallow"], kh=3, kw=3, stride=1, padding=1)
    x = conv2d_nhwc(x, *P["dsf"], kh=4, kw=4, stride=4, padding=0)
    x = residual_block(x, P, "rb1")
    x = conv2d_nhwc(x, *P["ds1"], kh=3, kw=3, stride=2, padding=1)
    x = residual_block(x, P, "rb2")
    x = conv2d_nhwc(x, *P["ds2"], kh=3, kw=3, stride=2, padding=1)
    x = residual_block(x, P, "rb3")
    x = conv2d_nhwc(x, *P["ds3"], kh=3, kw=3, stride=2, padding=1)
    # AdaptiveAvgPool2d(1) + flatten (f32 accumulation for the mean)
    return jnp.mean(x.astype(jnp.float32), axis=(1, 2))


def swin_standin_forward(x_nhwc, P):
    # TODO(synk): stand-in for the pretrained swin backbone (see header comment).
    w, b = P["swin"]
    feat = conv2d_nhwc(x_nhwc, w, b, kh=PATCH, kw=PATCH, stride=PATCH, padding=0)
    return jnp.mean(feat.astype(jnp.float32), axis=(1, 2))   # avgpool over tokens


# --------------------------------- SeqQA ------------------------------------
def seq_qa_forward(P, x_swin, x_conv):
    # x_swin, x_conv: (B, M, N, EMBED).  The per-batch Python loop of the
    # reference is collapsed into one batched call (identical math, shared weights).
    B, M, N, E = x_swin.shape
    rows_swin = x_swin.reshape(B * M * N, E)
    rows_conv = x_conv.reshape(B * M * N, E)

    # fc_conv + GELU + add + fc_in + LSTM layer-0 x-projection: ONE fused kernel
    gx0 = seq_head(rows_swin, rows_conv, P)                       # (B*M*N, 4H) f32

    Mb, T = B * M, N
    mb_pad = ((Mb + 7) // 8) * 8                                  # pad batch to sublane tile
    gx0 = gx0.reshape(Mb, T, 4 * HIDDEN).transpose(1, 0, 2)       # time-major (T, Mb, 4H)
    gx0 = jnp.pad(gx0, ((0, 0), (0, mb_pad - Mb), (0, 0)))
    gx0 = gx0.reshape(T * mb_pad, 4 * HIDDEN)

    h = lstm_stack(gx0, P, mb_pad)                                # (T*mb_pad, H)
    h = h.reshape(T, mb_pad, HIDDEN)[:, :Mb, :].transpose(1, 0, 2)  # (Mb, T, H)

    # Tiny lane-width-1 tail: leave to XLA (a Pallas launch would cost more than it computes).
    v = jnp.einsum("mth,h->mt", h, P["fc_viewport_w"]) + P["fc_viewport_b"]   # (Mb, T)
    s = v @ P["fc_score_w"] + P["fc_score_b"]                     # (Mb, 1)
    s = s.reshape(B, M)
    return jnp.mean(s, axis=1)                                    # (B,)


# -------------------------------- full model --------------------------------
def vsm_oiqa_forward(P, x):
    # x: (B, M, N, C, H, W) NCHW images (PyTorch convention); one NHWC transpose
    # + bf16 cast here, then all activations stay bf16 NHWC.
    B, M, N, C, H, W = x.shape
    imgs = jnp.transpose(x.reshape(B * M * N, C, H, W), (0, 2, 3, 1))
    imgs = imgs.astype(jnp.bfloat16)
    feat_swin = swin_standin_forward(imgs, P)            # (B*M*N, EMBED) f32
    feat_conv = conv_layer_forward(imgs, P)              # (B*M*N, EMBED) f32
    return seq_qa_forward(P,
                          feat_swin.reshape(B, M, N, EMBED),
                          feat_conv.reshape(B, M, N, EMBED))      # (B,)


# ----------------------------- parameter init -------------------------------
def init_raw_params(key):
    """Random params in PyTorch layouts (conv: (O,Cin,kh,kw), linear: (O,In))."""
    keys = iter(jax.random.split(key, 64))

    def conv_w(out_c, in_c, k):
        fan_in = in_c * k * k
        return jax.random.normal(next(keys), (out_c, in_c, k, k), jnp.float32) / jnp.sqrt(fan_in)

    def lin_w(out_f, in_f):
        return jax.random.normal(next(keys), (out_f, in_f), jnp.float32) / jnp.sqrt(in_f)

    def bias(n):
        return 0.01 * jax.random.normal(next(keys), (n,), jnp.float32)

    p = {}
    p["swin_w"], p["swin_b"] = conv_w(EMBED, 3, PATCH), bias(EMBED)
    p["shallow_w"], p["shallow_b"] = conv_w(CONV_DIM, 3, 3), bias(CONV_DIM)
    p["dsf_w"], p["dsf_b"] = conv_w(CONV_DIM, CONV_DIM, 4), bias(CONV_DIM)
    for prefix, dim in (("rb1", CONV_DIM), ("rb2", CONV_DIM * 2), ("rb3", CONV_DIM * 4)):
        for c in ("c1", "c2", "c3"):
            p[f"{prefix}_{c}_w"], p[f"{prefix}_{c}_b"] = conv_w(dim, dim, 3), bias(dim)
    p["ds1_w"], p["ds1_b"] = conv_w(CONV_DIM * 2, CONV_DIM, 3), bias(CONV_DIM * 2)
    p["ds2_w"], p["ds2_b"] = conv_w(CONV_DIM * 4, CONV_DIM * 2, 3), bias(CONV_DIM * 4)
    p["ds3_w"], p["ds3_b"] = conv_w(CONV_DIM * 8, CONV_DIM * 4, 3), bias(CONV_DIM * 8)
    p["fc_conv_w"], p["fc_conv_b"] = lin_w(EMBED, EMBED), bias(EMBED)
    p["fc_in_w"], p["fc_in_b"] = lin_w(SEQ_DIM, EMBED), bias(SEQ_DIM)
    lstm = []
    for l in range(NUM_LSTM_LAYERS):
        in_f = SEQ_DIM if l == 0 else HIDDEN
        lstm.append((lin_w(4 * HIDDEN, in_f), lin_w(4 * HIDDEN, HIDDEN),
                     bias(4 * HIDDEN), bias(4 * HIDDEN)))
    p["lstm"] = lstm
    p["fc_viewport_w"], p["fc_viewport_b"] = lin_w(1, HIDDEN), bias(1)
    p["fc_score_w"], p["fc_score_b"] = lin_w(1, VIEWPORTS), bias(1)
    return p


def _pack_conv(w, b):
    # torch (O, Cin, kh, kw) -> NHWC im2col matrix (kh*kw*Cin, O) bf16, TRUE widths
    # (no channel padding), bias (1, O) f32.
    O, Cin, kh, kw = w.shape
    wm = jnp.transpose(w, (2, 3, 1, 0)).reshape(kh * kw * Cin, O).astype(jnp.bfloat16)
    bb = b.reshape(1, O).astype(jnp.float32)
    return wm, bb


def _pack_linear(w, b):
    # torch (O, In) -> (In, O) bf16, bias (1, O) f32.
    O, In = w.shape
    return w.T.astype(jnp.bfloat16), b.reshape(1, O).astype(jnp.float32)


def pack_params(raw):
    """One-time weight preprocessing: im2col layout, transposes, bf16 (no padding)."""
    P = {}
    P["swin"] = _pack_conv(raw["swin_w"], raw["swin_b"])
    P["shallow"] = _pack_conv(raw["shallow_w"], raw["shallow_b"])
    P["dsf"] = _pack_conv(raw["dsf_w"], raw["dsf_b"])
    for name in ("rb1", "rb2", "rb3"):
        for c in ("c1", "c2", "c3"):
            P[f"{name}_{c}"] = _pack_conv(raw[f"{name}_{c}_w"], raw[f"{name}_{c}_b"])
    for name in ("ds1", "ds2", "ds3"):
        P[name] = _pack_conv(raw[f"{name}_w"], raw[f"{name}_b"])

    P["fc_conv"] = _pack_linear(raw["fc_conv_w"], raw["fc_conv_b"])   # 128 -> 128
    P["fc_in"] = _pack_linear(raw["fc_in_w"], raw["fc_in_b"])         # 128 -> 64

    # LSTM: layer-0 x-projection weights (hoisted into seq_head); recurrence and
    # layer-1/2 input weights in bf16 (f32 accumulation inside the kernel).
    w_ih0, w_hh0, b_ih0, b_hh0 = raw["lstm"][0]
    P["lstm0_ih"] = _pack_linear(w_ih0, b_ih0 + b_hh0)                # (SEQ, 4H) bf16
    P["lstm0_hh"] = w_hh0.T.astype(jnp.bfloat16)                      # (H, 4H)
    rest = []
    for l in (1, 2):
        w_ih, w_hh, b_ih, b_hh = raw["lstm"][l]
        rest.append((w_ih.T.astype(jnp.bfloat16),                     # (H, 4H)
                     w_hh.T.astype(jnp.bfloat16),                     # (H, 4H)
                     (b_ih + b_hh).reshape(1, 4 * HIDDEN).astype(jnp.float32)))
    P["lstm_rest"] = tuple(rest)

    P["fc_viewport_w"] = raw["fc_viewport_w"].reshape(HIDDEN).astype(jnp.float32)
    P["fc_viewport_b"] = raw["fc_viewport_b"].astype(jnp.float32)
    P["fc_score_w"] = raw["fc_score_w"].reshape(VIEWPORTS, 1).astype(jnp.float32)
    P["fc_score_b"] = raw["fc_score_b"].astype(jnp.float32)
    return P


# ----------------------------------- main ------------------------------------
if __name__ == "__main__":
    key = jax.random.PRNGKey(0)
    k_param, k_x = jax.random.split(key)
    B, M, N, C, H, W = 2, 3, VIEWPORTS, 3, 16, 16
    x = jax.random.normal(k_x, (B, M, N, C, H, W), dtype=jnp.float32)

    params = pack_params(init_raw_params(k_param))
    forward = jax.jit(vsm_oiqa_forward)
    scores = forward(params, x)
    scores = jax.block_until_ready(scores)

    assert scores.shape == (B,), scores.shape
    assert bool(jnp.all(jnp.isfinite(scores)))
    print("KERNEL_OK")
</pallas_src>

<mosaic_0001>
module attributes {stable_mosaic.version = 11 : i64} {
  func.func @_mm_kernel(%arg0: i32, %arg1: memref<1024x27xbf16, #tpu.memory_space<vmem>>, %arg2: memref<27x16xbf16, #tpu.memory_space<vmem>>, %arg3: memref<1x16xf32, #tpu.memory_space<vmem>>, %arg4: memref<1024x16xbf16, #tpu.memory_space<vmem>>) attributes {dimension_semantics = [#tpu.dimension_semantics<parallel>], iteration_bounds = array<i64: 6>, scalar_prefetch = 0 : i64, scratch_operands = 0 : i64, tpu.core_type = #tpu.core_type<tc>, window_params = [{transform_indices = @transform_0, window_bounds = array<i64: 1024, 27>}, {pipeline_mode = #tpu.pipeline_mode<synchronous>, transform_indices = @transform_1, window_bounds = array<i64: 27, 16>}, {pipeline_mode = #tpu.pipeline_mode<synchronous>, transform_indices = @transform_2, window_bounds = array<i64: 1, 16>}, {transform_indices = @transform_3, window_bounds = array<i64: 1024, 16>}]} {
    %c0 = arith.constant 0 : index
    %c0_0 = arith.constant 0 : index
    %0 = vector.load %arg1[%c0, %c0_0] : memref<1024x27xbf16, #tpu.memory_space<vmem>>, vector<1024x27xbf16>
    %c0_1 = arith.constant 0 : index
    %c0_2 = arith.constant 0 : index
    %1 = vector.load %arg2[%c0_1, %c0_2] : memref<27x16xbf16, #tpu.memory_space<vmem>>, vector<27x16xbf16>
    %cst = arith.constant dense<0.000000e+00> : vector<1024x16xf32>
    %2 = tpu.matmul %0, %1, %cst {dimension_numbers = #tpu.dot_dimension_numbers<[1], [0], [0], [1], [0, 0, 1, 1], [], []>} : vector<1024x27xbf16>, vector<27x16xbf16>, vector<1024x16xf32> -> vector<1024x16xf32>
    %c0_3 = arith.constant 0 : index
    %c0_4 = arith.constant 0 : index
    %3 = vector.load %arg3[%c0_3, %c0_4] : memref<1x16xf32, #tpu.memory_space<vmem>>, vector<1x16xf32>
    %4 = vector.broadcast %3 : vector<1x16xf32> to vector<1024x16xf32>
    %5 = arith.addf %2, %4 : vector<1024x16xf32>
    %6 = arith.truncf %5 : vector<1024x16xf32> to vector<1024x16xbf16>
    %c0_5 = arith.constant 0 : index
    %c0_6 = arith.constant 0 : index
    %7 = vector.load %arg4[%c0_5, %c0_6] : memref<1024x16xbf16, #tpu.memory_space<vmem>>, vector<1024x16xbf16>
    tpu.vector_store %arg4[%c0_5, %c0_6], %6 {strides = array<i32>} : memref<1024x16xbf16, #tpu.memory_space<vmem>>, vector<1024x16xbf16>,
    return
  }
  func.func @transform_0(%arg0: i32) -> (i32, i32) {
    %c0_i32 = arith.constant 0 : i32
    %c0_i32_0 = arith.constant 0 : i32
    return %arg0, %c0_i32 : i32, i32
  }
  func.func @transform_1(%arg0: i32) -> (i32, i32) {
    %c0_i32 = arith.constant 0 : i32
    %c0_i32_0 = arith.constant 0 : i32
    %c0_i32_1 = arith.constant 0 : i32
    return %c0_i32, %c0_i32_0 : i32, i32
  }
  func.func @transform_2(%arg0: i32) -> (i32, i32) {
    %c0_i32 = arith.constant 0 : i32
    %c0_i32_0 = arith.constant 0 : i32
    %c0_i32_1 = arith.constant 0 : i32
    return %c0_i32, %c0_i32_0 : i32, i32
  }
  func.func @transform_3(%arg0: i32) -> (i32, i32) {
    %c0_i32 = arith.constant 0 : i32
    %c0_i32_0 = arith.constant 0 : i32
    return %arg0, %c0_i32 : i32, i32
  }
}

module attributes {stable_mosaic.version = 11 : i64} {
  func.func @_mm_kernel(%arg0: i32, %arg1: memref<192x256xbf16, #tpu.memory_space<vmem>>, %arg2: memref<256x16xbf16, #tpu.memory_space<vmem>>, %arg3: memref<1x16xf32, #tpu.memory_space<vmem>>, %arg4: memref<192x16xbf16, #tpu.memory_space<vmem>>) attributes {dimension_semantics = [#tpu.dimension_semantics<parallel>], iteration_bounds = array<i64: 2>, scalar_prefetch = 0 : i64, scratch_operands = 0 : i64, tpu.core_type = #tpu.core_type<tc>, window_params = [{transform_indices = @transform_0, window_bounds = array<i64: 192, 256>}, {pipeline_mode = #tpu.pipeline_mode<synchronous>, transform_indices = @transform_1, window_bounds = array<i64: 256, 16>}, {pipeline_mode = #tpu.pipeline_mode<synchronous>, transform_indices = @transform_2, window_bounds = array<i64: 1, 16>}, {transform_indices = @transform_3, window_bounds = array<i64: 192, 16>}]} {
    %c0 = arith.constant 0 : index
    %c0_0 = arith.constant 0 : index
    %0 = vector.load %arg1[%c0, %c0_0] : memref<192x256xbf16, #tpu.memory_space<vmem>>, vector<192x256xbf16>
    %c0_1 = arith.constant 0 : index
    %c0_2 = arith.constant 0 : index
    %1 = vector.load %arg2[%c0_1, %c0_2] : memref<256x16xbf16, #tpu.memory_space<vmem>>, vector<256x16xbf16>
    %cst = arith.constant dense<0.000000e+00> : vector<192x16xf32>
    %2 = tpu.matmul %0, %1, %cst {dimension_numbers = #tpu.dot_dimension_numbers<[1], [0], [0], [1], [0, 0, 1, 1], [], []>} : vector<192x256xbf16>, vector<256x16xbf16>, vector<192x16xf32> -> vector<192x16xf32>
    %c0_3 = arith.constant 0 : index
    %c0_4 = arith.constant 0 : index
    %3 = vector.load %arg3[%c0_3, %c0_4] : memref<1x16xf32, #tpu.memory_space<vmem>>, vector<1x16xf32>
    %4 = vector.broadcast %3 : vector<1x16xf32> to vector<192x16xf32>
    %5 = arith.addf %2, %4 : vector<192x16xf32>
    %6 = arith.truncf %5 : vector<192x16xf32> to vector<192x16xbf16>
    %c0_5 = arith.constant 0 : index
    %c0_6 = arith.constant 0 : index
    %7 = vector.load %arg4[%c0_5, %c0_6] : memref<192x16xbf16, #tpu.memory_space<vmem>>, vector<192x16xbf16>
    tpu.vector_store %arg4[%c0_5, %c0_6], %6 {strides = array<i32>} : memref<192x16xbf16, #tpu.memory_space<vmem>>, vector<192x16xbf16>,
    return
  }
  func.func @transform_0(%arg0: i32) -> (i32, i32) {
    %c0_i32 = arith.constant 0 : i32
    %c0_i32_0 = arith.constant 0 : i32
    return %arg0, %c0_i32 : i32, i32
  }
  func.func @transform_1(%arg0: i32) -> (i32, i32) {
    %c0_i32 = arith.constant 0 : i32
    %c0_i32_0 = arith.constant 0 : i32
    %c0_i32_1 = arith.constant 0 : i32
    return %c0_i32, %c0_i32_0 : i32, i32
  }
  func.func @transform_2(%arg0: i32) -> (i32, i32) {
    %c0_i32 = arith.constant 0 : i32
    %c0_i32_0 = arith.constant 0 : i32
    %c0_i32_1 = arith.constant 0 : i32
    return %c0_i32, %c0_i32_0 : i32, i32
  }
  func.func @transform_3(%arg0: i32) -> (i32, i32) {
    %c0_i32 = arith.constant 0 : i32
    %c0_i32_0 = arith.constant 0 : i32
    return %arg0, %c0_i32 : i32, i32
  }
}

module attributes {stable_mosaic.version = 11 : i64} {
  func.func @_mm_res_kernel(%arg0: i32, %arg1: memref<192x144xbf16, #tpu.memory_space<vmem>>, %arg2: memref<144x16xbf16, #tpu.memory_space<vmem>>, %arg3: memref<1x16xf32, #tpu.memory_space<vmem>>, %arg4: memref<192x16xbf16, #tpu.memory_space<vmem>>, %arg5: memref<192x16xbf16, #tpu.memory_space<vmem>>) attributes {dimension_semantics = [#tpu.dimension_semantics<parallel>], iteration_bounds = array<i64: 2>, scalar_prefetch = 0 : i64, scratch_operands = 0 : i64, tpu.core_type = #tpu.core_type<tc>, window_params = [{transform_indices = @transform_0, window_bounds = array<i64: 192, 144>}, {pipeline_mode = #tpu.pipeline_mode<synchronous>, transform_indices = @transform_1, window_bounds = array<i64: 144, 16>}, {pipeline_mode = #tpu.pipeline_mode<synchronous>, transform_indices = @transform_2, window_bounds = array<i64: 1, 16>}, {transform_indices = @transform_3, window_bounds = array<i64: 192, 16>}, {transform_indices = @transform_4, window_bounds = array<i64: 192, 16>}]} {
    %c0 = arith.constant 0 : index
    %c0_0 = arith.constant 0 : index
    %0 = vector.load %arg1[%c0, %c0_0] : memref<192x144xbf16, #tpu.memory_space<vmem>>, vector<192x144xbf16>
    %c0_1 = arith.constant 0 : index
    %c0_2 = arith.constant 0 : index
    %1 = vector.load %arg2[%c0_1, %c0_2] : memref<144x16xbf16, #tpu.memory_space<vmem>>, vector<144x16xbf16>
    %cst = arith.constant dense<0.000000e+00> : vector<192x16xf32>
    %2 = tpu.matmul %0, %1, %cst {dimension_numbers = #tpu.dot_dimension_numbers<[1], [0], [0], [1], [0, 0, 1, 1], [], []>} : vector<192x144xbf16>, vector<144x16xbf16>, vector<192x16xf32> -> vector<192x16xf32>
    %c0_3 = arith.constant 0 : index
    %c0_4 = arith.constant 0 : index
    %3 = vector.load %arg3[%c0_3, %c0_4] : memref<1x16xf32, #tpu.memory_space<vmem>>, vector<1x16xf32>
    %4 = vector.broadcast %3 : vector<1x16xf32> to vector<192x16xf32>
    %5 = arith.addf %2, %4 : vector<192x16xf32>
    %cst_5 = arith.constant 5.000000e-01 : f32
    %6 = vector.broadcast %cst_5 : f32 to vector<192x16xf32>
    %7 = arith.mulf %6, %5 : vector<192x16xf32>
    %cst_6 = arith.constant 1.41421354 : f32
    %8 = vector.broadcast %cst_6 : f32 to vector<192x16xf32>
    %9 = arith.divf %5, %8 : vector<192x16xf32>
    %10 = math.erf %9 : vector<192x16xf32>
    %cst_7 = arith.constant 1.000000e+00 : f32
    %11 = vector.broadcast %cst_7 : f32 to vector<192x16xf32>
    %12 = arith.addf %11, %10 : vector<192x16xf32>
    %13 = arith.mulf %7, %12 : vector<192x16xf32>
    %c0_8 = arith.constant 0 : index
    %c0_9 = arith.constant 0 : index
    %14 = vector.load %arg4[%c0_8, %c0_9] : memref<192x16xbf16, #tpu.memory_space<vmem>>, vector<192x16xbf16>
    %15 = arith.extf %14 : vector<192x16xbf16> to vector<192x16xf32>
    %16 = arith.addf %13, %15 : vector<192x16xf32>
    %17 = arith.truncf %16 : vector<192x16xf32> to vector<192x16xbf16>
    %c0_10 = arith.constant 0 : index
    %c0_11 = arith.constant 0 : index
    %18 = vector.load %arg5[%c0_10, %c0_11] : memref<192x16xbf16, #tpu.memory_space<vmem>>, vector<192x16xbf16>
    tpu.vector_store %arg5[%c0_10, %c0_11], %17 {strides = array<i32>} : memref<192x16xbf16, #tpu.memory_space<vmem>>, vector<192x16xbf16>,
    return
  }
  func.func @transform_0(%arg0: i32) -> (i32, i32) {
    %c0_i32 = arith.constant 0 : i32
    %c0_i32_0 = arith.constant 0 : i32
    return %arg0, %c0_i32 : i32, i32
  }
  func.func @transform_1(%arg0: i32) -> (i32, i32) {
    %c0_i32 = arith.constant 0 : i32
    %c0_i32_0 = arith.constant 0 : i32
    %c0_i32_1 = arith.constant 0 : i32
    return %c0_i32, %c0_i32_0 : i32, i32
  }
  func.func @transform_2(%arg0: i32) -> (i32, i32) {
    %c0_i32 = arith.constant 0 : i32
    %c0_i32_0 = arith.constant 0 : i32
    %c0_i32_1 = arith.constant 0 : i32
    return %c0_i32, %c0_i32_0 : i32, i32
  }
  func.func @transform_3(%arg0: i32) -> (i32, i32) {
    %c0_i32 = arith.constant 0 : i32
    %c0_i32_0 = arith.constant 0 : i32
    return %arg0, %c0_i32 : i32, i32
  }
  func.func @transform_4(%arg0: i32) -> (i32, i32) {
    %c0_i32 = arith.constant 0 : i32
    %c0_i32_0 = arith.constant 0 : i32
    return %arg0, %c0_i32 : i32, i32
  }
}

module attributes {stable_mosaic.version = 11 : i64} {
  func.func @_mm_kernel(%arg0: i32, %arg1: memref<192x144xbf16, #tpu.memory_space<vmem>>, %arg2: memref<144x16xbf16, #tpu.memory_space<vmem>>, %arg3: memref<1x16xf32, #tpu.memory_space<vmem>>, %arg4: memref<192x16xbf16, #tpu.memory_space<vmem>>) attributes {dimension_semantics = [#tpu.dimension_semantics<parallel>], iteration_bounds = array<i64: 2>, scalar_prefetch = 0 : i64, scratch_operands = 0 : i64, tpu.core_type = #tpu.core_type<tc>, window_params = [{transform_indices = @transform_0, window_bounds = array<i64: 192, 144>}, {pipeline_mode = #tpu.pipeline_mode<synchronous>, transform_indices = @transform_1, window_bounds = array<i64: 144, 16>}, {pipeline_mode = #tpu.pipeline_mode<synchronous>, transform_indices = @transform_2, window_bounds = array<i64: 1, 16>}, {transform_indices = @transform_3, window_bounds = array<i64: 192, 16>}]} {
    %c0 = arith.constant 0 : index
    %c0_0 = arith.constant 0 : index
    %0 = vector.load %arg1[%c0, %c0_0] : memref<192x144xbf16, #tpu.memory_space<vmem>>, vector<192x144xbf16>
    %c0_1 = arith.constant 0 : index
    %c0_2 = arith.constant 0 : index
    %1 = vector.load %arg2[%c0_1, %c0_2] : memref<144x16xbf16, #tpu.memory_space<vmem>>, vector<144x16xbf16>
    %cst = arith.constant dense<0.000000e+00> : vector<192x16xf32>
    %2 = tpu.matmul %0, %1, %cst {dimension_numbers = #tpu.dot_dimension_numbers<[1], [0], [0], [1], [0, 0, 1, 1], [], []>} : vector<192x144xbf16>, vector<144x16xbf16>, vector<192x16xf32> -> vector<192x16xf32>
    %c0_3 = arith.constant 0 : index
    %c0_4 = arith.constant 0 : index
    %3 = vector.load %arg3[%c0_3, %c0_4] : memref<1x16xf32, #tpu.memory_space<vmem>>, vector<1x16xf32>
    %4 = vector.broadcast %3 : vector<1x16xf32> to vector<192x16xf32>
    %5 = arith.addf %2, %4 : vector<192x16xf32>
    %cst_5 = arith.constant 5.000000e-01 : f32
    %6 = vector.broadcast %cst_5 : f32 to vector<192x16xf32>
    %7 = arith.mulf %6, %5 : vector<192x16xf32>
    %cst_6 = arith.constant 1.41421354 : f32
    %8 = vector.broadcast %cst_6 : f32 to vector<192x16xf32>
    %9 = arith.divf %5, %8 : vector<192x16xf32>
    %10 = math.erf %9 : vector<192x16xf32>
    %cst_7 = arith.constant 1.000000e+00 : f32
    %11 = vector.broadcast %cst_7 : f32 to vector<192x16xf32>
    %12 = arith.addf %11, %10 : vector<192x16xf32>
    %13 = arith.mulf %7, %12 : vector<192x16xf32>
    %14 = arith.truncf %13 : vector<192x16xf32> to vector<192x16xbf16>
    %c0_8 = arith.constant 0 : index
    %c0_9 = arith.constant 0 : index
    %15 = vector.load %arg4[%c0_8, %c0_9] : memref<192x16xbf16, #tpu.memory_space<vmem>>, vector<192x16xbf16>
    tpu.vector_store %arg4[%c0_8, %c0_9], %14 {strides = array<i32>} : memref<192x16xbf16, #tpu.memory_space<vmem>>, vector<192x16xbf16>,
    return
  }
  func.func @transform_0(%arg0: i32) -> (i32, i32) {
    %c0_i32 = arith.constant 0 : i32
    %c0_i32_0 = arith.constant 0 : i32
    return %arg0, %c0_i32 : i32, i32
  }
  func.func @transform_1(%arg0: i32) -> (i32, i32) {
    %c0_i32 = arith.constant 0 : i32
    %c0_i32_0 = arith.constant 0 : i32
    %c0_i32_1 = arith.constant 0 : i32
    return %c0_i32, %c0_i32_0 : i32, i32
  }
  func.func @transform_2(%arg0: i32) -> (i32, i32) {
    %c0_i32 = arith.constant 0 : i32
    %c0_i32_0 = arith.constant 0 : i32
    %c0_i32_1 = arith.constant 0 : i32
    return %c0_i32, %c0_i32_0 : i32, i32
  }
  func.func @transform_3(%arg0: i32) -> (i32, i32) {
    %c0_i32 = arith.constant 0 : i32
    %c0_i32_0 = arith.constant 0 : i32
    return %arg0, %c0_i32 : i32, i32
  }
}

module attributes {stable_mosaic.version = 11 : i64} {
  func.func @_mm_kernel(%arg0: i32, %arg1: memref<96x144xbf16, #tpu.memory_space<vmem>>, %arg2: memref<144x32xbf16, #tpu.memory_space<vmem>>, %arg3: memref<1x32xf32, #tpu.memory_space<vmem>>, %arg4: memref<96x32xbf16, #tpu.memory_space<vmem>>) attributes {dimension_semantics = [#tpu.dimension_semantics<parallel>], iteration_bounds = array<i64: 1>, scalar_prefetch = 0 : i64, scratch_operands = 0 : i64, tpu.core_type = #tpu.core_type<tc>, window_params = [{transform_indices = @transform_0, window_bounds = array<i64: 96, 144>}, {pipeline_mode = #tpu.pipeline_mode<synchronous>, transform_indices = @transform_1, window_bounds = array<i64: 144, 32>}, {pipeline_mode = #tpu.pipeline_mode<synchronous>, transform_indices = @transform_2, window_bounds = array<i64: 1, 32>}, {transform_indices = @transform_3, window_bounds = array<i64: 96, 32>}]} {
    %c0 = arith.constant 0 : index
    %c0_0 = arith.constant 0 : index
    %0 = vector.load %arg1[%c0, %c0_0] : memref<96x144xbf16, #tpu.memory_space<vmem>>, vector<96x144xbf16>
    %c0_1 = arith.constant 0 : index
    %c0_2 = arith.constant 0 : index
    %1 = vector.load %arg2[%c0_1, %c0_2] : memref<144x32xbf16, #tpu.memory_space<vmem>>, vector<144x32xbf16>
    %cst = arith.constant dense<0.000000e+00> : vector<96x32xf32>
    %2 = tpu.matmul %0, %1, %cst {dimension_numbers = #tpu.dot_dimension_numbers<[1], [0], [0], [1], [0, 0, 1, 1], [], []>} : vector<96x144xbf16>, vector<144x32xbf16>, vector<96x32xf32> -> vector<96x32xf32>
    %c0_3 = arith.constant 0 : index
    %c0_4 = arith.constant 0 : index
    %3 = vector.load %arg3[%c0_3, %c0_4] : memref<1x32xf32, #tpu.memory_space<vmem>>, vector<1x32xf32>
    %4 = vector.broadcast %3 : vector<1x32xf32> to vector<96x32xf32>
    %5 = arith.addf %2, %4 : vector<96x32xf32>
    %6 = arith.truncf %5 : vector<96x32xf32> to vector<96x32xbf16>
    %c0_5 = arith.constant 0 : index
    %c0_6 = arith.constant 0 : index
    %7 = vector.load %arg4[%c0_5, %c0_6] : memref<96x32xbf16, #tpu.memory_space<vmem>>, vector<96x32xbf16>
    tpu.vector_store %arg4[%c0_5, %c0_6], %6 {strides = array<i32>} : memref<96x32xbf16, #tpu.memory_space<vmem>>, vector<96x32xbf16>,
    return
  }
  func.func @transform_0(%arg0: i32) -> (i32, i32) {
    %c0_i32 = arith.constant 0 : i32
    %c0_i32_0 = arith.constant 0 : i32
    return %arg0, %c0_i32 : i32, i32
  }
  func.func @transform_1(%arg0: i32) -> (i32, i32) {
    %c0_i32 = arith.constant 0 : i32
    %c0_i32_0 = arith.constant 0 : i32
    %c0_i32_1 = arith.constant 0 : i32
    return %c0_i32, %c0_i32_0 : i32, i32
  }
  func.func @transform_2(%arg0: i32) -> (i32, i32) {
    %c0_i32 = arith.constant 0 : i32
    %c0_i32_0 = arith.constant 0 : i32
    %c0_i32_1 = arith.constant 0 : i32
    return %c0_i32, %c0_i32_0 : i32, i32
  }
  func.func @transform_3(%arg0: i32) -> (i32, i32) {
    %c0_i32 = arith.constant 0 : i32
    %c0_i32_0 = arith.constant 0 : i32
    return %arg0, %c0_i32 : i32, i32
  }
}

module attributes {stable_mosaic.version = 11 : i64} {
  func.func @_mm_kernel(%arg0: i32, %arg1: memref<96x288xbf16, #tpu.memory_space<vmem>>, %arg2: memref<288x32xbf16, #tpu.memory_space<vmem>>, %arg3: memref<1x32xf32, #tpu.memory_space<vmem>>, %arg4: memref<96x32xbf16, #tpu.memory_space<vmem>>) attributes {dimension_semantics = [#tpu.dimension_semantics<parallel>], iteration_bounds = array<i64: 1>, scalar_prefetch = 0 : i64, scratch_operands = 0 : i64, tpu.core_type = #tpu.core_type<tc>, window_params = [{transform_indices = @transform_0, window_bounds = array<i64: 96, 288>}, {pipeline_mode = #tpu.pipeline_mode<synchronous>, transform_indices = @transform_1, window_bounds = array<i64: 288, 32>}, {pipeline_mode = #tpu.pipeline_mode<synchronous>, transform_indices = @transform_2, window_bounds = array<i64: 1, 32>}, {transform_indices = @transform_3, window_bounds = array<i64: 96, 32>}]} {
    %c0 = arith.constant 0 : index
    %c0_0 = arith.constant 0 : index
    %0 = vector.load %arg1[%c0, %c0_0] : memref<96x288xbf16, #tpu.memory_space<vmem>>, vector<96x288xbf16>
    %c0_1 = arith.constant 0 : index
    %c0_2 = arith.constant 0 : index
    %1 = vector.load %arg2[%c0_1, %c0_2] : memref<288x32xbf16, #tpu.memory_space<vmem>>, vector<288x32xbf16>
    %cst = arith.constant dense<0.000000e+00> : vector<96x32xf32>
    %2 = tpu.matmul %0, %1, %cst {dimension_numbers = #tpu.dot_dimension_numbers<[1], [0], [0], [1], [0, 0, 1, 1], [], []>} : vector<96x288xbf16>, vector<288x32xbf16>, vector<96x32xf32> -> vector<96x32xf32>
    %c0_3 = arith.constant 0 : index
    %c0_4 = arith.constant 0 : index
    %3 = vector.load %arg3[%c0_3, %c0_4] : memref<1x32xf32, #tpu.memory_space<vmem>>, vector<1x32xf32>
    %4 = vector.broadcast %3 : vector<1x32xf32> to vector<96x32xf32>
    %5 = arith.addf %2, %4 : vector<96x32xf32>
    %cst_5 = arith.constant 5.000000e-01 : f32
    %6 = vector.broadcast %cst_5 : f32 to vector<96x32xf32>
    %7 = arith.mulf %6, %5 : vector<96x32xf32>
    %cst_6 = arith.constant 1.41421354 : f32
    %8 = vector.broadcast %cst_6 : f32 to vector<96x32xf32>
    %9 = arith.divf %5, %8 : vector<96x32xf32>
    %10 = math.erf %9 : vector<96x32xf32>
    %cst_7 = arith.constant 1.000000e+00 : f32
    %11 = vector.broadcast %cst_7 : f32 to vector<96x32xf32>
    %12 = arith.addf %11, %10 : vector<96x32xf32>
    %13 = arith.mulf %7, %12 : vector<96x32xf32>
    %14 = arith.truncf %13 : vector<96x32xf32> to vector<96x32xbf16>
    %c0_8 = arith.constant 0 : index
    %c0_9 = arith.constant 0 : index
    %15 = vector.load %arg4[%c0_8, %c0_9] : memref<96x32xbf16, #tpu.memory_space<vmem>>, vector<96x32xbf16>
    tpu.vector_store %arg4[%c0_8, %c0_9], %14 {strides = array<i32>} : memref<96x32xbf16, #tpu.memory_space<vmem>>, vector<96x32xbf16>,
    return
  }
  func.func @transform_0(%arg0: i32) -> (i32, i32) {
    %c0_i32 = arith.constant 0 : i32
    %c0_i32_0 = arith.constant 0 : i32
    return %arg0, %c0_i32 : i32, i32
  }
  func.func @transform_1(%arg0: i32) -> (i32, i32) {
    %c0_i32 = arith.constant 0 : i32
    %c0_i32_0 = arith.constant 0 : i32
    %c0_i32_1 = arith.constant 0 : i32
    return %c0_i32, %c0_i32_0 : i32, i32
  }
  func.func @transform_2(%arg0: i32) -> (i32, i32) {
    %c0_i32 = arith.constant 0 : i32
    %c0_i32_0 = arith.constant 0 : i32
    %c0_i32_1 = arith.constant 0 : i32
    return %c0_i32, %c0_i32_0 : i32, i32
  }
  func.func @transform_3(%arg0: i32) -> (i32, i32) {
    %c0_i32 = arith.constant 0 : i32
    %c0_i32_0 = arith.constant 0 : i32
    return %arg0, %c0_i32 : i32, i32
  }
}

module attributes {stable_mosaic.version = 11 : i64} {
  func.func @_mm_res_kernel(%arg0: i32, %arg1: memref<96x288xbf16, #tpu.memory_space<vmem>>, %arg2: memref<288x32xbf16, #tpu.memory_space<vmem>>, %arg3: memref<1x32xf32, #tpu.memory_space<vmem>>, %arg4: memref<96x32xbf16, #tpu.memory_space<vmem>>, %arg5: memref<96x32xbf16, #tpu.memory_space<vmem>>) attributes {dimension_semantics = [#tpu.dimension_semantics<parallel>], iteration_bounds = array<i64: 1>, scalar_prefetch = 0 : i64, scratch_operands = 0 : i64, tpu.core_type = #tpu.core_type<tc>, window_params = [{transform_indices = @transform_0, window_bounds = array<i64: 96, 288>}, {pipeline_mode = #tpu.pipeline_mode<synchronous>, transform_indices = @transform_1, window_bounds = array<i64: 288, 32>}, {pipeline_mode = #tpu.pipeline_mode<synchronous>, transform_indices = @transform_2, window_bounds = array<i64: 1, 32>}, {transform_indices = @transform_3, window_bounds = array<i64: 96, 32>}, {transform_indices = @transform_4, window_bounds = array<i64: 96, 32>}]} {
    %c0 = arith.constant 0 : index
    %c0_0 = arith.constant 0 : index
    %0 = vector.load %arg1[%c0, %c0_0] : memref<96x288xbf16, #tpu.memory_space<vmem>>, vector<96x288xbf16>
    %c0_1 = arith.constant 0 : index
    %c0_2 = arith.constant 0 : index
    %1 = vector.load %arg2[%c0_1, %c0_2] : memref<288x32xbf16, #tpu.memory_space<vmem>>, vector<288x32xbf16>
    %cst = arith.constant dense<0.000000e+00> : vector<96x32xf32>
    %2 = tpu.matmul %0, %1, %cst {dimension_numbers = #tpu.dot_dimension_numbers<[1], [0], [0], [1], [0, 0, 1, 1], [], []>} : vector<96x288xbf16>, vector<288x32xbf16>, vector<96x32xf32> -> vector<96x32xf32>
    %c0_3 = arith.constant 0 : index
    %c0_4 = arith.constant 0 : index
    %3 = vector.load %arg3[%c0_3, %c0_4] : memref<1x32xf32, #tpu.memory_space<vmem>>, vector<1x32xf32>
    %4 = vector.broadcast %3 : vector<1x32xf32> to vector<96x32xf32>
    %5 = arith.addf %2, %4 : vector<96x32xf32>
    %cst_5 = arith.constant 5.000000e-01 : f32
    %6 = vector.broadcast %cst_5 : f32 to vector<96x32xf32>
    %7 = arith.mulf %6, %5 : vector<96x32xf32>
    %cst_6 = arith.constant 1.41421354 : f32
    %8 = vector.broadcast %cst_6 : f32 to vector<96x32xf32>
    %9 = arith.divf %5, %8 : vector<96x32xf32>
    %10 = math.erf %9 : vector<96x32xf32>
    %cst_7 = arith.constant 1.000000e+00 : f32
    %11 = vector.broadcast %cst_7 : f32 to vector<96x32xf32>
    %12 = arith.addf %11, %10 : vector<96x32xf32>
    %13 = arith.mulf %7, %12 : vector<96x32xf32>
    %c0_8 = arith.constant 0 : index
    %c0_9 = arith.constant 0 : index
    %14 = vector.load %arg4[%c0_8, %c0_9] : memref<96x32xbf16, #tpu.memory_space<vmem>>, vector<96x32xbf16>
    %15 = arith.extf %14 : vector<96x32xbf16> to vector<96x32xf32>
    %16 = arith.addf %13, %15 : vector<96x32xf32>
    %17 = arith.truncf %16 : vector<96x32xf32> to vector<96x32xbf16>
    %c0_10 = arith.constant 0 : index
    %c0_11 = arith.constant 0 : index
    %18 = vector.load %arg5[%c0_10, %c0_11] : memref<96x32xbf16, #tpu.memory_space<vmem>>, vector<96x32xbf16>
    tpu.vector_store %arg5[%c0_10, %c0_11], %17 {strides = array<i32>} : memref<96x32xbf16, #tpu.memory_space<vmem>>, vector<96x32xbf16>,
    return
  }
  func.func @transform_0(%arg0: i32) -> (i32, i32) {
    %c0_i32 = arith.constant 0 : i32
    %c0_i32_0 = arith.constant 0 : i32
    return %arg0, %c0_i32 : i32, i32
  }
  func.func @transform_1(%arg0: i32) -> (i32, i32) {
    %c0_i32 = arith.constant 0 : i32
    %c0_i32_0 = arith.constant 0 : i32
    %c0_i32_1 = arith.constant 0 : i32
    return %c0_i32, %c0_i32_0 : i32, i32
  }
  func.func @transform_2(%arg0: i32) -> (i32, i32) {
    %c0_i32 = arith.constant 0 : i32
    %c0_i32_0 = arith.constant 0 : i32
    %c0_i32_1 = arith.constant 0 : i32
    return %c0_i32, %c0_i32_0 : i32, i32
  }
  func.func @transform_3(%arg0: i32) -> (i32, i32) {
    %c0_i32 = arith.constant 0 : i32
    %c0_i32_0 = arith.constant 0 : i32
    return %arg0, %c0_i32 : i32, i32
  }
  func.func @transform_4(%arg0: i32) -> (i32, i32) {
    %c0_i32 = arith.constant 0 : i32
    %c0_i32_0 = arith.constant 0 : i32
    return %arg0, %c0_i32 : i32, i32
  }
}

module attributes {stable_mosaic.version = 11 : i64} {
  func.func @_mm_kernel(%arg0: i32, %arg1: memref<24x288xbf16, #tpu.memory_space<vmem>>, %arg2: memref<288x64xbf16, #tpu.memory_space<vmem>>, %arg3: memref<1x64xf32, #tpu.memory_space<vmem>>, %arg4: memref<24x64xbf16, #tpu.memory_space<vmem>>) attributes {dimension_semantics = [#tpu.dimension_semantics<parallel>], iteration_bounds = array<i64: 1>, scalar_prefetch = 0 : i64, scratch_operands = 0 : i64, tpu.core_type = #tpu.core_type<tc>, window_params = [{transform_indices = @transform_0, window_bounds = array<i64: 24, 288>}, {pipeline_mode = #tpu.pipeline_mode<synchronous>, transform_indices = @transform_1, window_bounds = array<i64: 288, 64>}, {pipeline_mode = #tpu.pipeline_mode<synchronous>, transform_indices = @transform_2, window_bounds = array<i64: 1, 64>}, {transform_indices = @transform_3, window_bounds = array<i64: 24, 64>}]} {
    %c0 = arith.constant 0 : index
    %c0_0 = arith.constant 0 : index
    %0 = vector.load %arg1[%c0, %c0_0] : memref<24x288xbf16, #tpu.memory_space<vmem>>, vector<24x288xbf16>
    %c0_1 = arith.constant 0 : index
    %c0_2 = arith.constant 0 : index
    %1 = vector.load %arg2[%c0_1, %c0_2] : memref<288x64xbf16, #tpu.memory_space<vmem>>, vector<288x64xbf16>
    %cst = arith.constant dense<0.000000e+00> : vector<24x64xf32>
    %2 = tpu.matmul %0, %1, %cst {dimension_numbers = #tpu.dot_dimension_numbers<[1], [0], [0], [1], [0, 0, 1, 1], [], []>} : vector<24x288xbf16>, vector<288x64xbf16>, vector<24x64xf32> -> vector<24x64xf32>
    %c0_3 = arith.constant 0 : index
    %c0_4 = arith.constant 0 : index
    %3 = vector.load %arg3[%c0_3, %c0_4] : memref<1x64xf32, #tpu.memory_space<vmem>>, vector<1x64xf32>
    %4 = vector.broadcast %3 : vector<1x64xf32> to vector<24x64xf32>
    %5 = arith.addf %2, %4 : vector<24x64xf32>
    %6 = arith.truncf %5 : vector<24x64xf32> to vector<24x64xbf16>
    %c0_5 = arith.constant 0 : index
    %c0_6 = arith.constant 0 : index
    %7 = vector.load %arg4[%c0_5, %c0_6] : memref<24x64xbf16, #tpu.memory_space<vmem>>, vector<24x64xbf16>
    tpu.vector_store %arg4[%c0_5, %c0_6], %6 {strides = array<i32>} : memref<24x64xbf16, #tpu.memory_space<vmem>>, vector<24x64xbf16>,
    return
  }
  func.func @transform_0(%arg0: i32) -> (i32, i32) {
    %c0_i32 = arith.constant 0 : i32
    %c0_i32_0 = arith.constant 0 : i32
    return %arg0, %c0_i32 : i32, i32
  }
  func.func @transform_1(%arg0: i32) -> (i32, i32) {
    %c0_i32 = arith.constant 0 : i32
    %c0_i32_0 = arith.constant 0 : i32
    %c0_i32_1 = arith.constant 0 : i32
    return %c0_i32, %c0_i32_0 : i32, i32
  }
  func.func @transform_2(%arg0: i32) -> (i32, i32) {
    %c0_i32 = arith.constant 0 : i32
    %c0_i32_0 = arith.constant 0 : i32
    %c0_i32_1 = arith.constant 0 : i32
    return %c0_i32, %c0_i32_0 : i32, i32
  }
  func.func @transform_3(%arg0: i32) -> (i32, i32) {
    %c0_i32 = arith.constant 0 : i32
    %c0_i32_0 = arith.constant 0 : i32
    return %arg0, %c0_i32 : i32, i32
  }
}

module attributes {stable_mosaic.version = 11 : i64} {
  func.func @_mm_kernel(%arg0: i32, %arg1: memref<24x576xbf16, #tpu.memory_space<vmem>>, %arg2: memref<576x64xbf16, #tpu.memory_space<vmem>>, %arg3: memref<1x64xf32, #tpu.memory_space<vmem>>, %arg4: memref<24x64xbf16, #tpu.memory_space<vmem>>) attributes {dimension_semantics = [#tpu.dimension_semantics<parallel>], iteration_bounds = array<i64: 1>, scalar_prefetch = 0 : i64, scratch_operands = 0 : i64, tpu.core_type = #tpu.core_type<tc>, window_params = [{transform_indices = @transform_0, window_bounds = array<i64: 24, 576>}, {pipeline_mode = #tpu.pipeline_mode<synchronous>, transform_indices = @transform_1, window_bounds = array<i64: 576, 64>}, {pipeline_mode = #tpu.pipeline_mode<synchronous>, transform_indices = @transform_2, window_bounds = array<i64: 1, 64>}, {transform_indices = @transform_3, window_bounds = array<i64: 24, 64>}]} {
    %c0 = arith.constant 0 : index
    %c0_0 = arith.constant 0 : index
    %0 = vector.load %arg1[%c0, %c0_0] : memref<24x576xbf16, #tpu.memory_space<vmem>>, vector<24x576xbf16>
    %c0_1 = arith.constant 0 : index
    %c0_2 = arith.constant 0 : index
    %1 = vector.load %arg2[%c0_1, %c0_2] : memref<576x64xbf16, #tpu.memory_space<vmem>>, vector<576x64xbf16>
    %cst = arith.constant dense<0.000000e+00> : vector<24x64xf32>
    %2 = tpu.matmul %0, %1, %cst {dimension_numbers = #tpu.dot_dimension_numbers<[1], [0], [0], [1], [0, 0, 1, 1], [], []>} : vector<24x576xbf16>, vector<576x64xbf16>, vector<24x64xf32> -> vector<24x64xf32>
    %c0_3 = arith.constant 0 : index
    %c0_4 = arith.constant 0 : index
    %3 = vector.load %arg3[%c0_3, %c0_4] : memref<1x64xf32, #tpu.memory_space<vmem>>, vector<1x64xf32>
    %4 = vector.broadcast %3 : vector<1x64xf32> to vector<24x64xf32>
    %5 = arith.addf %2, %4 : vector<24x64xf32>
    %cst_5 = arith.constant 5.000000e-01 : f32
    %6 = vector.broadcast %cst_5 : f32 to vector<24x64xf32>
    %7 = arith.mulf %6, %5 : vector<24x64xf32>
    %cst_6 = arith.constant 1.41421354 : f32
    %8 = vector.broadcast %cst_6 : f32 to vector<24x64xf32>
    %9 = arith.divf %5, %8 : vector<24x64xf32>
    %10 = math.erf %9 : vector<24x64xf32>
    %cst_7 = arith.constant 1.000000e+00 : f32
    %11 = vector.broadcast %cst_7 : f32 to vector<24x64xf32>
    %12 = arith.addf %11, %10 : vector<24x64xf32>
    %13 = arith.mulf %7, %12 : vector<24x64xf32>
    %14 = arith.truncf %13 : vector<24x64xf32> to vector<24x64xbf16>
    %c0_8 = arith.constant 0 : index
    %c0_9 = arith.constant 0 : index
    %15 = vector.load %arg4[%c0_8, %c0_9] : memref<24x64xbf16, #tpu.memory_space<vmem>>, vector<24x64xbf16>
    tpu.vector_store %arg4[%c0_8, %c0_9], %14 {strides = array<i32>} : memref<24x64xbf16, #tpu.memory_space<vmem>>, vector<24x64xbf16>,
    return
  }
  func.func @transform_0(%arg0: i32) -> (i32, i32) {
    %c0_i32 = arith.constant 0 : i32
    %c0_i32_0 = arith.constant 0 : i32
    return %arg0, %c0_i32 : i32, i32
  }
  func.func @transform_1(%arg0: i32) -> (i32, i32) {
    %c0_i32 = arith.constant 0 : i32
    %c0_i32_0 = arith.constant 0 : i32
    %c0_i32_1 = arith.constant 0 : i32
    return %c0_i32, %c0_i32_0 : i32, i32
  }
  func.func @transform_2(%arg0: i32) -> (i32, i32) {
    %c0_i32 = arith.constant 0 : i32
    %c0_i32_0 = arith.constant 0 : i32
    %c0_i32_1 = arith.constant 0 : i32
    return %c0_i32, %c0_i32_0 : i32, i32
  }
  func.func @transform_3(%arg0: i32) -> (i32, i32) {
    %c0_i32 = arith.constant 0 : i32
    %c0_i32_0 = arith.constant 0 : i32
    return %arg0, %c0_i32 : i32, i32
  }
}

module attributes {stable_mosaic.version = 11 : i64} {
  func.func @_mm_res_kernel(%arg0: i32, %arg1: memref<24x576xbf16, #tpu.memory_space<vmem>>, %arg2: memref<576x64xbf16, #tpu.memory_space<vmem>>, %arg3: memref<1x64xf32, #tpu.memory_space<vmem>>, %arg4: memref<24x64xbf16, #tpu.memory_space<vmem>>, %arg5: memref<24x64xbf16, #tpu.memory_space<vmem>>) attributes {dimension_semantics = [#tpu.dimension_semantics<parallel>], iteration_bounds = array<i64: 1>, scalar_prefetch = 0 : i64, scratch_operands = 0 : i64, tpu.core_type = #tpu.core_type<tc>, window_params = [{transform_indices = @transform_0, window_bounds = array<i64: 24, 576>}, {pipeline_mode = #tpu.pipeline_mode<synchronous>, transform_indices = @transform_1, window_bounds = array<i64: 576, 64>}, {pipeline_mode = #tpu.pipeline_mode<synchronous>, transform_indices = @transform_2, window_bounds = array<i64: 1, 64>}, {transform_indices = @transform_3, window_bounds = array<i64: 24, 64>}, {transform_indices = @transform_4, window_bounds = array<i64: 24, 64>}]} {
    %c0 = arith.constant 0 : index
    %c0_0 = arith.constant 0 : index
    %0 = vector.load %arg1[%c0, %c0_0] : memref<24x576xbf16, #tpu.memory_space<vmem>>, vector<24x576xbf16>
    %c0_1 = arith.constant 0 : index
    %c0_2 = arith.constant 0 : index
    %1 = vector.load %arg2[%c0_1, %c0_2] : memref<576x64xbf16, #tpu.memory_space<vmem>>, vector<576x64xbf16>
    %cst = arith.constant dense<0.000000e+00> : vector<24x64xf32>
    %2 = tpu.matmul %0, %1, %cst {dimension_numbers = #tpu.dot_dimension_numbers<[1], [0], [0], [1], [0, 0, 1, 1], [], []>} : vector<24x576xbf16>, vector<576x64xbf16>, vector<24x64xf32> -> vector<24x64xf32>
    %c0_3 = arith.constant 0 : index
    %c0_4 = arith.constant 0 : index
    %3 = vector.load %arg3[%c0_3, %c0_4] : memref<1x64xf32, #tpu.memory_space<vmem>>, vector<1x64xf32>
    %4 = vector.broadcast %3 : vector<1x64xf32> to vector<24x64xf32>
    %5 = arith.addf %2, %4 : vector<24x64xf32>
    %cst_5 = arith.constant 5.000000e-01 : f32
    %6 = vector.broadcast %cst_5 : f32 to vector<24x64xf32>
    %7 = arith.mulf %6, %5 : vector<24x64xf32>
    %cst_6 = arith.constant 1.41421354 : f32
    %8 = vector.broadcast %cst_6 : f32 to vector<24x64xf32>
    %9 = arith.divf %5, %8 : vector<24x64xf32>
    %10 = math.erf %9 : vector<24x64xf32>
    %cst_7 = arith.constant 1.000000e+00 : f32
    %11 = vector.broadcast %cst_7 : f32 to vector<24x64xf32>
    %12 = arith.addf %11, %10 : vector<24x64xf32>
    %13 = arith.mulf %7, %12 : vector<24x64xf32>
    %c0_8 = arith.constant 0 : index
    %c0_9 = arith.constant 0 : index
    %14 = vector.load %arg4[%c0_8, %c0_9] : memref<24x64xbf16, #tpu.memory_space<vmem>>, vector<24x64xbf16>
    %15 = arith.extf %14 : vector<24x64xbf16> to vector<24x64xf32>
    %16 = arith.addf %13, %15 : vector<24x64xf32>
    %17 = arith.truncf %16 : vector<24x64xf32> to vector<24x64xbf16>
    %c0_10 = arith.constant 0 : index
    %c0_11 = arith.constant 0 : index
    %18 = vector.load %arg5[%c0_10, %c0_11] : memref<24x64xbf16, #tpu.memory_space<vmem>>, vector<24x64xbf16>
    tpu.vector_store %arg5[%c0_10, %c0_11], %17 {strides = array<i32>} : memref<24x64xbf16, #tpu.memory_space<vmem>>, vector<24x64xbf16>,
    return
  }
  func.func @transform_0(%arg0: i32) -> (i32, i32) {
    %c0_i32 = arith.constant 0 : i32
    %c0_i32_0 = arith.constant 0 : i32
    return %arg0, %c0_i32 : i32, i32
  }
  func.func @transform_1(%arg0: i32) -> (i32, i32) {
    %c0_i32 = arith.constant 0 : i32
    %c0_i32_0 = arith.constant 0 : i32
    %c0_i32_1 = arith.constant 0 : i32
    return %c0_i32, %c0_i32_0 : i32, i32
  }
  func.func @transform_2(%arg0: i32) -> (i32, i32) {
    %c0_i32 = arith.constant 0 : i32
    %c0_i32_0 = arith.constant 0 : i32
    %c0_i32_1 = arith.constant 0 : i32
    return %c0_i32, %c0_i32_0 : i32, i32
  }
  func.func @transform_3(%arg0: i32) -> (i32, i32) {
    %c0_i32 = arith.constant 0 : i32
    %c0_i32_0 = arith.constant 0 : i32
    return %arg0, %c0_i32 : i32, i32
  }
  func.func @transform_4(%arg0: i32) -> (i32, i32) {
    %c0_i32 = arith.constant 0 : i32
    %c0_i32_0 = arith.constant 0 : i32
    return %arg0, %c0_i32 : i32, i32
  }
}

module attributes {stable_mosaic.version = 11 : i64} {
  func.func @_mm_kernel(%arg0: i32, %arg1: memref<24x576xbf16, #tpu.memory_space<vmem>>, %arg2: memref<576x128xbf16, #tpu.memory_space<vmem>>, %arg3: memref<1x128xf32, #tpu.memory_space<vmem>>, %arg4: memref<24x128xbf16, #tpu.memory_space<vmem>>) attributes {dimension_semantics = [#tpu.dimension_semantics<parallel>], iteration_bounds = array<i64: 1>, scalar_prefetch = 0 : i64, scratch_operands = 0 : i64, tpu.core_type = #tpu.core_type<tc>, window_params = [{transform_indices = @transform_0, window_bounds = array<i64: 24, 576>}, {pipeline_mode = #tpu.pipeline_mode<synchronous>, transform_indices = @transform_1, window_bounds = array<i64: 576, 128>}, {pipeline_mode = #tpu.pipeline_mode<synchronous>, transform_indices = @transform_2, window_bounds = array<i64: 1, 128>}, {transform_indices = @transform_3, window_bounds = array<i64: 24, 128>}]} {
    %c0 = arith.constant 0 : index
    %c0_0 = arith.constant 0 : index
    %0 = vector.load %arg1[%c0, %c0_0] : memref<24x576xbf16, #tpu.memory_space<vmem>>, vector<24x576xbf16>
    %c0_1 = arith.constant 0 : index
    %c0_2 = arith.constant 0 : index
    %1 = vector.load %arg2[%c0_1, %c0_2] : memref<576x128xbf16, #tpu.memory_space<vmem>>, vector<576x128xbf16>
    %cst = arith.constant dense<0.000000e+00> : vector<24x128xf32>
    %2 = tpu.matmul %0, %1, %cst {dimension_numbers = #tpu.dot_dimension_numbers<[1], [0], [0], [1], [0, 0, 1, 1], [], []>} : vector<24x576xbf16>, vector<576x128xbf16>, vector<24x128xf32> -> vector<24x128xf32>
    %c0_3 = arith.constant 0 : index
    %c0_4 = arith.constant 0 : index
    %3 = vector.load %arg3[%c0_3, %c0_4] : memref<1x128xf32, #tpu.memory_space<vmem>>, vector<1x128xf32>
    %4 = vector.broadcast %3 : vector<1x128xf32> to vector<24x128xf32>
    %5 = arith.addf %2, %4 : vector<24x128xf32>
    %6 = arith.truncf %5 : vector<24x128xf32> to vector<24x128xbf16>
    %c0_5 = arith.constant 0 : index
    %c0_6 = arith.constant 0 : index
    %7 = vector.load %arg4[%c0_5, %c0_6] : memref<24x128xbf16, #tpu.memory_space<vmem>>, vector<24x128xbf16>
    tpu.vector_store %arg4[%c0_5, %c0_6], %6 {strides = array<i32>} : memref<24x128xbf16, #tpu.memory_space<vmem>>, vector<24x128xbf16>,
    return
  }
  func.func @transform_0(%arg0: i32) -> (i32, i32) {
    %c0_i32 = arith.constant 0 : i32
    %c0_i32_0 = arith.constant 0 : i32
    return %arg0, %c0_i32 : i32, i32
  }
  func.func @transform_1(%arg0: i32) -> (i32, i32) {
    %c0_i32 = arith.constant 0 : i32
    %c0_i32_0 = arith.constant 0 : i32
    %c0_i32_1 = arith.constant 0 : i32
    return %c0_i32, %c0_i32_0 : i32, i32
  }
  func.func @transform_2(%arg0: i32) -> (i32, i32) {
    %c0_i32 = arith.constant 0 : i32
    %c0_i32_0 = arith.constant 0 : i32
    %c0_i32_1 = arith.constant 0 : i32
    return %c0_i32, %c0_i32_0 : i32, i32
  }
  func.func @transform_3(%arg0: i32) -> (i32, i32) {
    %c0_i32 = arith.constant 0 : i32
    %c0_i32_0 = arith.constant 0 : i32
    return %arg0, %c0_i32 : i32, i32
  }
}

module attributes {stable_mosaic.version = 11 : i64} {
  func.func @_mm_kernel(%arg0: i32, %arg1: memref<192x48xbf16, #tpu.memory_space<vmem>>, %arg2: memref<48x128xbf16, #tpu.memory_space<vmem>>, %arg3: memref<1x128xf32, #tpu.memory_space<vmem>>, %arg4: memref<192x128xbf16, #tpu.memory_space<vmem>>) attributes {dimension_semantics = [#tpu.dimension_semantics<parallel>], iteration_bounds = array<i64: 2>, scalar_prefetch = 0 : i64, scratch_operands = 0 : i64, tpu.core_type = #tpu.core_type<tc>, window_params = [{transform_indices = @transform_0, window_bounds = array<i64: 192, 48>}, {pipeline_mode = #tpu.pipeline_mode<synchronous>, transform_indices = @transform_1, window_bounds = array<i64: 48, 128>}, {pipeline_mode = #tpu.pipeline_mode<synchronous>, transform_indices = @transform_2, window_bounds = array<i64: 1, 128>}, {transform_indices = @transform_3, window_bounds = array<i64: 192, 128>}]} {
    %c0 = arith.constant 0 : index
    %c0_0 = arith.constant 0 : index
    %0 = vector.load %arg1[%c0, %c0_0] : memref<192x48xbf16, #tpu.memory_space<vmem>>, vector<192x48xbf16>
    %c0_1 = arith.constant 0 : index
    %c0_2 = arith.constant 0 : index
    %1 = vector.load %arg2[%c0_1, %c0_2] : memref<48x128xbf16, #tpu.memory_space<vmem>>, vector<48x128xbf16>
    %cst = arith.constant dense<0.000000e+00> : vector<192x128xf32>
    %2 = tpu.matmul %0, %1, %cst {dimension_numbers = #tpu.dot_dimension_numbers<[1], [0], [0], [1], [0, 0, 1, 1], [], []>} : vector<192x48xbf16>, vector<48x128xbf16>, vector<192x128xf32> -> vector<192x128xf32>
    %c0_3 = arith.constant 0 : index
    %c0_4 = arith.constant 0 : index
    %3 = vector.load %arg3[%c0_3, %c0_4] : memref<1x128xf32, #tpu.memory_space<vmem>>, vector<1x128xf32>
    %4 = vector.broadcast %3 : vector<1x128xf32> to vector<192x128xf32>
    %5 = arith.addf %2, %4 : vector<192x128xf32>
    %6 = arith.truncf %5 : vector<192x128xf32> to vector<192x128xbf16>
    %c0_5 = arith.constant 0 : index
    %c0_6 = arith.constant 0 : index
    %7 = vector.load %arg4[%c0_5, %c0_6] : memref<192x128xbf16, #tpu.memory_space<vmem>>, vector<192x128xbf16>
    tpu.vector_store %arg4[%c0_5, %c0_6], %6 {strides = array<i32>} : memref<192x128xbf16, #tpu.memory_space<vmem>>, vector<192x128xbf16>,
    return
  }
  func.func @transform_0(%arg0: i32) -> (i32, i32) {
    %c0_i32 = arith.constant 0 : i32
    %c0_i32_0 = arith.constant 0 : i32
    return %arg0, %c0_i32 : i32, i32
  }
  func.func @transform_1(%arg0: i32) -> (i32, i32) {
    %c0_i32 = arith.constant 0 : i32
    %c0_i32_0 = arith.constant 0 : i32
    %c0_i32_1 = arith.constant 0 : i32
    return %c0_i32, %c0_i32_0 : i32, i32
  }
  func.func @transform_2(%arg0: i32) -> (i32, i32) {
    %c0_i32 = arith.constant 0 : i32
    %c0_i32_0 = arith.constant 0 : i32
    %c0_i32_1 = arith.constant 0 : i32
    return %c0_i32, %c0_i32_0 : i32, i32
  }
  func.func @transform_3(%arg0: i32) -> (i32, i32) {
    %c0_i32 = arith.constant 0 : i32
    %c0_i32_0 = arith.constant 0 : i32
    return %arg0, %c0_i32 : i32, i32
  }
}

module attributes {stable_mosaic.version = 11 : i64} {
  func.func @_seq_head_kernel(%arg0: i32, %arg1: memref<24x128xf32, #tpu.memory_space<vmem>>, %arg2: memref<24x128xbf16, #tpu.memory_space<vmem>>, %arg3: memref<128x128xbf16, #tpu.memory_space<vmem>>, %arg4: memref<1x128xf32, #tpu.memory_space<vmem>>, %arg5: memref<128x64xbf16, #tpu.memory_space<vmem>>, %arg6: memref<1x64xf32, #tpu.memory_space<vmem>>, %arg7: memref<64x128xbf16, #tpu.memory_space<vmem>>, %arg8: memref<1x128xf32, #tpu.memory_space<vmem>>, %arg9: memref<24x128xf32, #tpu.memory_space<vmem>>) attributes {dimension_semantics = [#tpu.dimension_semantics<arbitrary>], iteration_bounds = array<i64: 1>, scalar_prefetch = 0 : i64, scratch_operands = 0 : i64, tpu.core_type = #tpu.core_type<tc>, window_params = [{pipeline_mode = #tpu.pipeline_mode<synchronous>, transform_indices = @transform_0, window_bounds = array<i64: 24, 128>}, {pipeline_mode = #tpu.pipeline_mode<synchronous>, transform_indices = @transform_1, window_bounds = array<i64: 24, 128>}, {pipeline_mode = #tpu.pipeline_mode<synchronous>, transform_indices = @transform_2, window_bounds = array<i64: 128, 128>}, {pipeline_mode = #tpu.pipeline_mode<synchronous>, transform_indices = @transform_3, window_bounds = array<i64: 1, 128>}, {pipeline_mode = #tpu.pipeline_mode<synchronous>, transform_indices = @transform_4, window_bounds = array<i64: 128, 64>}, {pipeline_mode = #tpu.pipeline_mode<synchronous>, transform_indices = @transform_5, window_bounds = array<i64: 1, 64>}, {pipeline_mode = #tpu.pipeline_mode<synchronous>, transform_indices = @transform_6, window_bounds = array<i64: 64, 128>}, {pipeline_mode = #tpu.pipeline_mode<synchronous>, transform_indices = @transform_7, window_bounds = array<i64: 1, 128>}, {pipeline_mode = #tpu.pipeline_mode<synchronous>, transform_indices = @transform_8, window_bounds = array<i64: 24, 128>}]} {
    %c0 = arith.constant 0 : index
    %c0_0 = arith.constant 0 : index
    %0 = vector.load %arg2[%c0, %c0_0] : memref<24x128xbf16, #tpu.memory_space<vmem>>, vector<24x128xbf16>
    %c0_1 = arith.constant 0 : index
    %c0_2 = arith.constant 0 : index
    %1 = vector.load %arg3[%c0_1, %c0_2] : memref<128x128xbf16, #tpu.memory_space<vmem>>, vector<128x128xbf16>
    %cst = arith.constant dense<0.000000e+00> : vector<24x128xf32>
    %2 = tpu.matmul %0, %1, %cst {dimension_numbers = #tpu.dot_dimension_numbers<[1], [0], [0], [1], [0, 0, 1, 1], [], []>} : vector<24x128xbf16>, vector<128x128xbf16>, vector<24x128xf32> -> vector<24x128xf32>
    %c0_3 = arith.constant 0 : index
    %c0_4 = arith.constant 0 : index
    %3 = vector.load %arg4[%c0_3, %c0_4] : memref<1x128xf32, #tpu.memory_space<vmem>>, vector<1x128xf32>
    %4 = vector.broadcast %3 : vector<1x128xf32> to vector<24x128xf32>
    %5 = arith.addf %2, %4 : vector<24x128xf32>
    %c0_5 = arith.constant 0 : index
    %c0_6 = arith.constant 0 : index
    %6 = vector.load %arg1[%c0_5, %c0_6] : memref<24x128xf32, #tpu.memory_space<vmem>>, vector<24x128xf32>
    %cst_7 = arith.constant 5.000000e-01 : f32
    %7 = vector.broadcast %cst_7 : f32 to vector<24x128xf32>
    %8 = arith.mulf %7, %5 : vector<24x128xf32>
    %cst_8 = arith.constant 1.41421354 : f32
    %9 = vector.broadcast %cst_8 : f32 to vector<24x128xf32>
    %10 = arith.divf %5, %9 : vector<24x128xf32>
    %11 = math.erf %10 : vector<24x128xf32>
    %cst_9 = arith.constant 1.000000e+00 : f32
    %12 = vector.broadcast %cst_9 : f32 to vector<24x128xf32>
    %13 = arith.addf %12, %11 : vector<24x128xf32>
    %14 = arith.mulf %8, %13 : vector<24x128xf32>
    %15 = arith.addf %6, %14 : vector<24x128xf32>
    %16 = arith.truncf %15 : vector<24x128xf32> to vector<24x128xbf16>
    %c0_10 = arith.constant 0 : index
    %c0_11 = arith.constant 0 : index
    %17 = vector.load %arg5[%c0_10, %c0_11] : memref<128x64xbf16, #tpu.memory_space<vmem>>, vector<128x64xbf16>
    %cst_12 = arith.constant dense<0.000000e+00> : vector<24x64xf32>
    %18 = tpu.matmul %16, %17, %cst_12 {dimension_numbers = #tpu.dot_dimension_numbers<[1], [0], [0], [1], [0, 0, 1, 1], [], []>} : vector<24x128xbf16>, vector<128x64xbf16>, vector<24x64xf32> -> vector<24x64xf32>
    %c0_13 = arith.constant 0 : index
    %c0_14 = arith.constant 0 : index
    %19 = vector.load %arg6[%c0_13, %c0_14] : memref<1x64xf32, #tpu.memory_space<vmem>>, vector<1x64xf32>
    %20 = vector.broadcast %19 : vector<1x64xf32> to vector<24x64xf32>
    %21 = arith.addf %18, %20 : vector<24x64xf32>
    %22 = arith.truncf %21 : vector<24x64xf32> to vector<24x64xbf16>
    %c0_15 = arith.constant 0 : index
    %c0_16 = arith.constant 0 : index
    %23 = vector.load %arg7[%c0_15, %c0_16] : memref<64x128xbf16, #tpu.memory_space<vmem>>, vector<64x128xbf16>
    %cst_17 = arith.constant dense<0.000000e+00> : vector<24x128xf32>
    %24 = tpu.matmul %22, %23, %cst_17 {dimension_numbers = #tpu.dot_dimension_numbers<[1], [0], [0], [1], [0, 0, 1, 1], [], []>} : vector<24x64xbf16>, vector<64x128xbf16>, vector<24x128xf32> -> vector<24x128xf32>
    %c0_18 = arith.constant 0 : index
    %c0_19 = arith.constant 0 : index
    %25 = vector.load %arg8[%c0_18, %c0_19] : memref<1x128xf32, #tpu.memory_space<vmem>>, vector<1x128xf32>
    %26 = vector.broadcast %25 : vector<1x128xf32> to vector<24x128xf32>
    %27 = arith.addf %24, %26 : vector<24x128xf32>
    %c0_20 = arith.constant 0 : index
    %c0_21 = arith.constant 0 : index
    %28 = vector.load %arg9[%c0_20, %c0_21] : memref<24x128xf32, #tpu.memory_space<vmem>>, vector<24x128xf32>
    tpu.vector_store %arg9[%c0_20, %c0_21], %27 {strides = array<i32>} : memref<24x128xf32, #tpu.memory_space<vmem>>, vector<24x128xf32>,
    return
  }
  func.func @transform_0(%arg0: i32) -> (i32, i32) {
    %c0_i32 = arith.constant 0 : i32
    %c0_i32_0 = arith.constant 0 : i32
    %c0_i32_1 = arith.constant 0 : i32
    return %c0_i32, %c0_i32_0 : i32, i32
  }
  func.func @transform_1(%arg0: i32) -> (i32, i32) {
    %c0_i32 = arith.constant 0 : i32
    %c0_i32_0 = arith.constant 0 : i32
    %c0_i32_1 = arith.constant 0 : i32
    return %c0_i32, %c0_i32_0 : i32, i32
  }
  func.func @transform_2(%arg0: i32) -> (i32, i32) {
    %c0_i32 = arith.constant 0 : i32
    %c0_i32_0 = arith.constant 0 : i32
    %c0_i32_1 = arith.constant 0 : i32
    return %c0_i32, %c0_i32_0 : i32, i32
  }
  func.func @transform_3(%arg0: i32) -> (i32, i32) {
    %c0_i32 = arith.constant 0 : i32
    %c0_i32_0 = arith.constant 0 : i32
    %c0_i32_1 = arith.constant 0 : i32
    return %c0_i32, %c0_i32_0 : i32, i32
  }
  func.func @transform_4(%arg0: i32) -> (i32, i32) {
    %c0_i32 = arith.constant 0 : i32
    %c0_i32_0 = arith.constant 0 : i32
    %c0_i32_1 = arith.constant 0 : i32
    return %c0_i32, %c0_i32_0 : i32, i32
  }
  func.func @transform_5(%arg0: i32) -> (i32, i32) {
    %c0_i32 = arith.constant 0 : i32
    %c0_i32_0 = arith.constant 0 : i32
    %c0_i32_1 = arith.constant 0 : i32
    return %c0_i32, %c0_i32_0 : i32, i32
  }
  func.func @transform_6(%arg0: i32) -> (i32, i32) {
    %c0_i32 = arith.constant 0 : i32
    %c0_i32_0 = arith.constant 0 : i32
    %c0_i32_1 = arith.constant 0 : i32
    return %c0_i32, %c0_i32_0 : i32, i32
  }
  func.func @transform_7(%arg0: i32) -> (i32, i32) {
    %c0_i32 = arith.constant 0 : i32
    %c0_i32_0 = arith.constant 0 : i32
    %c0_i32_1 = arith.constant 0 : i32
    return %c0_i32, %c0_i32_0 : i32, i32
  }
  func.func @transform_8(%arg0: i32) -> (i32, i32) {
    %c0_i32 = arith.constant 0 : i32
    %c0_i32_0 = arith.constant 0 : i32
    %c0_i32_1 = arith.constant 0 : i32
    return %c0_i32, %c0_i32_0 : i32, i32
  }
}

module attributes {stable_mosaic.version = 11 : i64} {
  func.func @_lstm_stack_kernel(%arg0: i32, %arg1: memref<32x128xf32, #tpu.memory_space<vmem>>, %arg2: memref<32x128xbf16, #tpu.memory_space<vmem>>, %arg3: memref<32x128xbf16, #tpu.memory_space<vmem>>, %arg4: memref<32x128xbf16, #tpu.memory_space<vmem>>, %arg5: memref<1x128xf32, #tpu.memory_space<vmem>>, %arg6: memref<32x128xbf16, #tpu.memory_space<vmem>>, %arg7: memref<32x128xbf16, #tpu.memory_space<vmem>>, %arg8: memref<1x128xf32, #tpu.memory_space<vmem>>, %arg9: memref<32x32xf32, #tpu.memory_space<vmem>>, %arg10: memref<8x32xf32, #tpu.memory_space<vmem>>, %arg11: memref<8x32xf32, #tpu.memory_space<vmem>>, %arg12: memref<32x32xf32, #tpu.memory_space<vmem>>) attributes {dimension_semantics = [#tpu.dimension_semantics<arbitrary>], iteration_bounds = array<i64: 1>, scalar_prefetch = 0 : i64, scratch_operands = 3 : i64, tpu.core_type = #tpu.core_type<tc>, window_params = [{pipeline_mode = #tpu.pipeline_mode<synchronous>, transform_indices = @transform_0, window_bounds = array<i64: 32, 128>}, {pipeline_mode = #tpu.pipeline_mode<synchronous>, transform_indices = @transform_1, window_bounds = array<i64: 32, 128>}, {pipeline_mode = #tpu.pipeline_mode<synchronous>, transform_indices = @transform_2, window_bounds = array<i64: 32, 128>}, {pipeline_mode = #tpu.pipeline_mode<synchronous>, transform_indices = @transform_3, window_bounds = array<i64: 32, 128>}, {pipeline_mode = #tpu.pipeline_mode<synchronous>, transform_indices = @transform_4, window_bounds = array<i64: 1, 128>}, {pipeline_mode = #tpu.pipeline_mode<synchronous>, transform_indices = @transform_5, window_bounds = array<i64: 32, 128>}, {pipeline_mode = #tpu.pipeline_mode<synchronous>, transform_indices = @transform_6, window_bounds = array<i64: 32, 128>}, {pipeline_mode = #tpu.pipeline_mode<synchronous>, transform_indices = @transform_7, window_bounds = array<i64: 1, 128>}, {pipeline_mode = #tpu.pipeline_mode<synchronous>, transform_indices = @transform_8, window_bounds = array<i64: 32, 32>}]} {
    %cst = arith.constant 0.000000e+00 : f32
    %0 = vector.broadcast %cst : f32 to vector<8x32xf32>
    %c0 = arith.constant 0 : index
    %c0_0 = arith.constant 0 : index
    %1 = vector.load %arg10[%c0, %c0_0] : memref<8x32xf32, #tpu.memory_space<vmem>>, vector<8x32xf32>
    tpu.vector_store %arg10[%c0, %c0_0], %0 {strides = array<i32>} : memref<8x32xf32, #tpu.memory_space<vmem>>, vector<8x32xf32>,
    %cst_1 = arith.constant 0.000000e+00 : f32
    %2 = vector.broadcast %cst_1 : f32 to vector<8x32xf32>
    %c0_2 = arith.constant 0 : index
    %c0_3 = arith.constant 0 : index
    %3 = vector.load %arg11[%c0_2, %c0_3] : memref<8x32xf32, #tpu.memory_space<vmem>>, vector<8x32xf32>
    tpu.vector_store %arg11[%c0_2, %c0_3], %2 {strides = array<i32>} : memref<8x32xf32, #tpu.memory_space<vmem>>, vector<8x32xf32>,
    %c0_4 = arith.constant 0 : index
    %c0_5 = arith.constant 0 : index
    %4 = vector.load %arg1[%c0_4, %c0_5] : memref<32x128xf32, #tpu.memory_space<vmem>>, vector<8x128xf32>
    %c0_6 = arith.constant 0 : index
    %c0_7 = arith.constant 0 : index
    %5 = vector.load %arg10[%c0_6, %c0_7] : memref<8x32xf32, #tpu.memory_space<vmem>>, vector<8x32xf32>
    %6 = arith.truncf %5 : vector<8x32xf32> to vector<8x32xbf16>
    %c0_8 = arith.constant 0 : index
    %c0_9 = arith.constant 0 : index
    %7 = vector.load %arg2[%c0_8, %c0_9] : memref<32x128xbf16, #tpu.memory_space<vmem>>, vector<32x128xbf16>
    %cst_10 = arith.constant dense<0.000000e+00> : vector<8x128xf32>
    %8 = tpu.matmul %6, %7, %cst_10 {dimension_numbers = #tpu.dot_dimension_numbers<[1], [0], [0], [1], [0, 0, 1, 1], [], []>} : vector<8x32xbf16>, vector<32x128xbf16>, vector<8x128xf32> -> vector<8x128xf32>
    %9 = arith.addf %4, %8 : vector<8x128xf32>
    %10 = vector.extract_strided_slice %9 {offsets = [0, 0], sizes = [8, 32], strides = [1, 1]} : vector<8x128xf32> to vector<8x32xf32>
    %11 = arith.negf %10 : vector<8x32xf32>
    %12 = math.exp %11 : vector<8x32xf32>
    %cst_11 = arith.constant 1.000000e+00 : f32
    %13 = vector.broadcast %cst_11 : f32 to vector<8x32xf32>
    %14 = arith.addf %13, %12 : vector<8x32xf32>
    %15 = arith.divf %13, %14 : vector<8x32xf32>
    %16 = vector.extract_strided_slice %9 {offsets = [0, 32], sizes = [8, 32], strides = [1, 1]} : vector<8x128xf32> to vector<8x32xf32>
    %17 = arith.negf %16 : vector<8x32xf32>
    %18 = math.exp %17 : vector<8x32xf32>
    %cst_12 = arith.constant 1.000000e+00 : f32
    %19 = vector.broadcast %cst_12 : f32 to vector<8x32xf32>
    %20 = arith.addf %19, %18 : vector<8x32xf32>
    %21 = arith.divf %19, %20 : vector<8x32xf32>
    %22 = vector.extract_strided_slice %9 {offsets = [0, 64], sizes = [8, 32], strides = [1, 1]} : vector<8x128xf32> to vector<8x32xf32>
    %23 = math.tanh %22 : vector<8x32xf32>
    %24 = vector.extract_strided_slice %9 {offsets = [0, 96], sizes = [8, 32], strides = [1, 1]} : vector<8x128xf32> to vector<8x32xf32>
    %25 = arith.negf %24 : vector<8x32xf32>
    %26 = math.exp %25 : vector<8x32xf32>
    %cst_13 = arith.constant 1.000000e+00 : f32
    %27 = vector.broadcast %cst_13 : f32 to vector<8x32xf32>
    %28 = arith.addf %27, %26 : vector<8x32xf32>
    %29 = arith.divf %27, %28 : vector<8x32xf32>
    %c0_14 = arith.constant 0 : index
    %c0_15 = arith.constant 0 : index
    %30 = vector.load %arg11[%c0_14, %c0_15] : memref<8x32xf32, #tpu.memory_space<vmem>>, vector<8x32xf32>
    %31 = arith.mulf %21, %30 : vector<8x32xf32>
    %32 = arith.mulf %15, %23 : vector<8x32xf32>
    %33 = arith.addf %31, %32 : vector<8x32xf32>
    %34 = math.tanh %33 : vector<8x32xf32>
    %35 = arith.mulf %29, %34 : vector<8x32xf32>
    %c0_16 = arith.constant 0 : index
    %c0_17 = arith.constant 0 : index
    %36 = vector.load %arg11[%c0_16, %c0_17] : memref<8x32xf32, #tpu.memory_space<vmem>>, vector<8x32xf32>
    tpu.vector_store %arg11[%c0_16, %c0_17], %33 {strides = array<i32>} : memref<8x32xf32, #tpu.memory_space<vmem>>, vector<8x32xf32>,
    %c0_18 = arith.constant 0 : index
    %c0_19 = arith.constant 0 : index
    %37 = vector.load %arg10[%c0_18, %c0_19] : memref<8x32xf32, #tpu.memory_space<vmem>>, vector<8x32xf32>
    tpu.vector_store %arg10[%c0_18, %c0_19], %35 {strides = array<i32>} : memref<8x32xf32, #tpu.memory_space<vmem>>, vector<8x32xf32>,
    %c0_20 = arith.constant 0 : index
    %c0_21 = arith.constant 0 : index
    %38 = vector.load %arg12[%c0_20, %c0_21] : memref<32x32xf32, #tpu.memory_space<vmem>>, vector<8x32xf32>
    tpu.vector_store %arg12[%c0_20, %c0_21], %35 {strides = array<i32>} : memref<32x32xf32, #tpu.memory_space<vmem>>, vector<8x32xf32>,
    %c8 = arith.constant 8 : index
    %c0_22 = arith.constant 0 : index
    %39 = vector.load %arg1[%c8, %c0_22] : memref<32x128xf32, #tpu.memory_space<vmem>>, vector<8x128xf32>
    %c0_23 = arith.constant 0 : index
    %c0_24 = arith.constant 0 : index
    %40 = vector.load %arg10[%c0_23, %c0_24] : memref<8x32xf32, #tpu.memory_space<vmem>>, vector<8x32xf32>
    %41 = arith.truncf %40 : vector<8x32xf32> to vector<8x32xbf16>
    %c0_25 = arith.constant 0 : index
    %c0_26 = arith.constant 0 : index
    %42 = vector.load %arg2[%c0_25, %c0_26] : memref<32x128xbf16, #tpu.memory_space<vmem>>, vector<32x128xbf16>
    %cst_27 = arith.constant dense<0.000000e+00> : vector<8x128xf32>
    %43 = tpu.matmul %41, %42, %cst_27 {dimension_numbers = #tpu.dot_dimension_numbers<[1], [0], [0], [1], [0, 0, 1, 1], [], []>} : vector<8x32xbf16>, vector<32x128xbf16>, vector<8x128xf32> -> vector<8x128xf32>
    %44 = arith.addf %39, %43 : vector<8x128xf32>
    %45 = vector.extract_strided_slice %44 {offsets = [0, 0], sizes = [8, 32], strides = [1, 1]} : vector<8x128xf32> to vector<8x32xf32>
    %46 = arith.negf %45 : vector<8x32xf32>
    %47 = math.exp %46 : vector<8x32xf32>
    %cst_28 = arith.constant 1.000000e+00 : f32
    %48 = vector.broadcast %cst_28 : f32 to vector<8x32xf32>
    %49 = arith.addf %48, %47 : vector<8x32xf32>
    %50 = arith.divf %48, %49 : vector<8x32xf32>
    %51 = vector.extract_strided_slice %44 {offsets = [0, 32], sizes = [8, 32], strides = [1, 1]} : vector<8x128xf32> to vector<8x32xf32>
    %52 = arith.negf %51 : vector<8x32xf32>
    %53 = math.exp %52 : vector<8x32xf32>
    %cst_29 = arith.constant 1.000000e+00 : f32
    %54 = vector.broadcast %cst_29 : f32 to vector<8x32xf32>
    %55 = arith.addf %54, %53 : vector<8x32xf32>
    %56 = arith.divf %54, %55 : vector<8x32xf32>
    %57 = vector.extract_strided_slice %44 {offsets = [0, 64], sizes = [8, 32], strides = [1, 1]} : vector<8x128xf32> to vector<8x32xf32>
    %58 = math.tanh %57 : vector<8x32xf32>
    %59 = vector.extract_strided_slice %44 {offsets = [0, 96], sizes = [8, 32], strides = [1, 1]} : vector<8x128xf32> to vector<8x32xf32>
    %60 = arith.negf %59 : vector<8x32xf32>
    %61 = math.exp %60 : vector<8x32xf32>
    %cst_30 = arith.constant 1.000000e+00 : f32
    %62 = vector.broadcast %cst_30 : f32 to vector<8x32xf32>
    %63 = arith.addf %62, %61 : vector<8x32xf32>
    %64 = arith.divf %62, %63 : vector<8x32xf32>
    %c0_31 = arith.constant 0 : index
    %c0_32 = arith.constant 0 : index
    %65 = vector.load %arg11[%c0_31, %c0_32] : memref<8x32xf32, #tpu.memory_space<vmem>>, vector<8x32xf32>
    %66 = arith.mulf %56, %65 : vector<8x32xf32>
    %67 = arith.mulf %50, %58 : vector<8x32xf32>
    %68 = arith.addf %66, %67 : vector<8x32xf32>
    %69 = math.tanh %68 : vector<8x32xf32>
    %70 = arith.mulf %64, %69 : vector<8x32xf32>
    %c0_33 = arith.constant 0 : index
    %c0_34 = arith.constant 0 : index
    %71 = vector.load %arg11[%c0_33, %c0_34] : memref<8x32xf32, #tpu.memory_space<vmem>>, vector<8x32xf32>
    tpu.vector_store %arg11[%c0_33, %c0_34], %68 {strides = array<i32>} : memref<8x32xf32, #tpu.memory_space<vmem>>, vector<8x32xf32>,
    %c0_35 = arith.constant 0 : index
    %c0_36 = arith.constant 0 : index
    %72 = vector.load %arg10[%c0_35, %c0_36] : memref<8x32xf32, #tpu.memory_space<vmem>>, vector<8x32xf32>
    tpu.vector_store %arg10[%c0_35, %c0_36], %70 {strides = array<i32>} : memref<8x32xf32, #tpu.memory_space<vmem>>, vector<8x32xf32>,
    %c8_37 = arith.constant 8 : index
    %c0_38 = arith.constant 0 : index
    %73 = vector.load %arg12[%c8_37, %c0_38] : memref<32x32xf32, #tpu.memory_space<vmem>>, vector<8x32xf32>
    tpu.vector_store %arg12[%c8_37, %c0_38], %70 {strides = array<i32>} : memref<32x32xf32, #tpu.memory_space<vmem>>, vector<8x32xf32>,
    %c16 = arith.constant 16 : index
    %c0_39 = arith.constant 0 : index
    %74 = vector.load %arg1[%c16, %c0_39] : memref<32x128xf32, #tpu.memory_space<vmem>>, vector<8x128xf32>
    %c0_40 = arith.constant 0 : index
    %c0_41 = arith.constant 0 : index
    %75 = vector.load %arg10[%c0_40, %c0_41] : memref<8x32xf32, #tpu.memory_space<vmem>>, vector<8x32xf32>
    %76 = arith.truncf %75 : vector<8x32xf32> to vector<8x32xbf16>
    %c0_42 = arith.constant 0 : index
    %c0_43 = arith.constant 0 : index
    %77 = vector.load %arg2[%c0_42, %c0_43] : memref<32x128xbf16, #tpu.memory_space<vmem>>, vector<32x128xbf16>
    %cst_44 = arith.constant dense<0.000000e+00> : vector<8x128xf32>
    %78 = tpu.matmul %76, %77, %cst_44 {dimension_numbers = #tpu.dot_dimension_numbers<[1], [0], [0], [1], [0, 0, 1, 1], [], []>} : vector<8x32xbf16>, vector<32x128xbf16>, vector<8x128xf32> -> vector<8x128xf32>
    %79 = arith.addf %74, %78 : vector<8x128xf32>
    %80 = vector.extract_strided_slice %79 {offsets = [0, 0], sizes = [8, 32], strides = [1, 1]} : vector<8x128xf32> to vector<8x32xf32>
    %81 = arith.negf %80 : vector<8x32xf32>
    %82 = math.exp %81 : vector<8x32xf32>
    %cst_45 = arith.constant 1.000000e+00 : f32
    %83 = vector.broadcast %cst_45 : f32 to vector<8x32xf32>
    %84 = arith.addf %83, %82 : vector<8x32xf32>
    %85 = arith.divf %83, %84 : vector<8x32xf32>
    %86 = vector.extract_strided_slice %79 {offsets = [0, 32], sizes = [8, 32], strides = [1, 1]} : vector<8x128xf32> to vector<8x32xf32>
    %87 = arith.negf %86 : vector<8x32xf32>
    %88 = math.exp %87 : vector<8x32xf32>
    %cst_46 = arith.constant 1.000000e+00 : f32
    %89 = vector.broadcast %cst_46 : f32 to vector<8x32xf32>
    %90 = arith.addf %89, %88 : vector<8x32xf32>
    %91 = arith.divf %89, %90 : vector<8x32xf32>
    %92 = vector.extract_strided_slice %79 {offsets = [0, 64], sizes = [8, 32], strides = [1, 1]} : vector<8x128xf32> to vector<8x32xf32>
    %93 = math.tanh %92 : vector<8x32xf32>
    %94 = vector.extract_strided_slice %79 {offsets = [0, 96], sizes = [8, 32], strides = [1, 1]} : vector<8x128xf32> to vector<8x32xf32>
    %95 = arith.negf %94 : vector<8x32xf32>
    %96 = math.exp %95 : vector<8x32xf32>
    %cst_47 = arith.constant 1.000000e+00 : f32
    %97 = vector.broadcast %cst_47 : f32 to vector<8x32xf32>
    %98 = arith.addf %97, %96 : vector<8x32xf32>
    %99 = arith.divf %97, %98 : vector<8x32xf32>
    %c0_48 = arith.constant 0 : index
    %c0_49 = arith.constant 0 : index
    %100 = vector.load %arg11[%c0_48, %c0_49] : memref<8x32xf32, #tpu.memory_space<vmem>>, vector<8x32xf32>
    %101 = arith.mulf %91, %100 : vector<8x32xf32>
    %102 = arith.mulf %85, %93 : vector<8x32xf32>
    %103 = arith.addf %101, %102 : vector<8x32xf32>
    %104 = math.tanh %103 : vector<8x32xf32>
    %105 = arith.mulf %99, %104 : vector<8x32xf32>
    %c0_50 = arith.constant 0 : index
    %c0_51 = arith.constant 0 : index
    %106 = vector.load %arg11[%c0_50, %c0_51] : memref<8x32xf32, #tpu.memory_space<vmem>>, vector<8x32xf32>
    tpu.vector_store %arg11[%c0_50, %c0_51], %103 {strides = array<i32>} : memref<8x32xf32, #tpu.memory_space<vmem>>, vector<8x32xf32>,
    %c0_52 = arith.constant 0 : index
    %c0_53 = arith.constant 0 : index
    %107 = vector.load %arg10[%c0_52, %c0_53] : memref<8x32xf32, #tpu.memory_space<vmem>>, vector<8x32xf32>
    tpu.vector_store %arg10[%c0_52, %c0_53], %105 {strides = array<i32>} : memref<8x32xf32, #tpu.memory_space<vmem>>, vector<8x32xf32>,
    %c16_54 = arith.constant 16 : index
    %c0_55 = arith.constant 0 : index
    %108 = vector.load %arg12[%c16_54, %c0_55] : memref<32x32xf32, #tpu.memory_space<vmem>>, vector<8x32xf32>
    tpu.vector_store %arg12[%c16_54, %c0_55], %105 {strides = array<i32>} : memref<32x32xf32, #tpu.memory_space<vmem>>, vector<8x32xf32>,
    %c24 = arith.constant 24 : index
    %c0_56 = arith.constant 0 : index
    %109 = vector.load %arg1[%c24, %c0_56] : memref<32x128xf32, #tpu.memory_space<vmem>>, vector<8x128xf32>
    %c0_57 = arith.constant 0 : index
    %c0_58 = arith.constant 0 : index
    %110 = vector.load %arg10[%c0_57, %c0_58] : memref<8x32xf32, #tpu.memory_space<vmem>>, vector<8x32xf32>
    %111 = arith.truncf %110 : vector<8x32xf32> to vector<8x32xbf16>
    %c0_59 = arith.constant 0 : index
    %c0_60 = arith.constant 0 : index
    %112 = vector.load %arg2[%c0_59, %c0_60] : memref<32x128xbf16, #tpu.memory_space<vmem>>, vector<32x128xbf16>
    %cst_61 = arith.constant dense<0.000000e+00> : vector<8x128xf32>
    %113 = tpu.matmul %111, %112, %cst_61 {dimension_numbers = #tpu.dot_dimension_numbers<[1], [0], [0], [1], [0, 0, 1, 1], [], []>} : vector<8x32xbf16>, vector<32x128xbf16>, vector<8x128xf32> -> vector<8x128xf32>
    %114 = arith.addf %109, %113 : vector<8x128xf32>
    %115 = vector.extract_strided_slice %114 {offsets = [0, 0], sizes = [8, 32], strides = [1, 1]} : vector<8x128xf32> to vector<8x32xf32>
    %116 = arith.negf %115 : vector<8x32xf32>
    %117 = math.exp %116 : vector<8x32xf32>
    %cst_62 = arith.constant 1.000000e+00 : f32
    %118 = vector.broadcast %cst_62 : f32 to vector<8x32xf32>
    %119 = arith.addf %118, %117 : vector<8x32xf32>
    %120 = arith.divf %118, %119 : vector<8x32xf32>
    %121 = vector.extract_strided_slice %114 {offsets = [0, 32], sizes = [8, 32], strides = [1, 1]} : vector<8x128xf32> to vector<8x32xf32>
    %122 = arith.negf %121 : vector<8x32xf32>
    %123 = math.exp %122 : vector<8x32xf32>
    %cst_63 = arith.constant 1.000000e+00 : f32
    %124 = vector.broadcast %cst_63 : f32 to vector<8x32xf32>
    %125 = arith.addf %124, %123 : vector<8x32xf32>
    %126 = arith.divf %124, %125 : vector<8x32xf32>
    %127 = vector.extract_strided_slice %114 {offsets = [0, 64], sizes = [8, 32], strides = [1, 1]} : vector<8x128xf32> to vector<8x32xf32>
    %128 = math.tanh %127 : vector<8x32xf32>
    %129 = vector.extract_strided_slice %114 {offsets = [0, 96], sizes = [8, 32], strides = [1, 1]} : vector<8x128xf32> to vector<8x32xf32>
    %130 = arith.negf %129 : vector<8x32xf32>
    %131 = math.exp %130 : vector<8x32xf32>
    %cst_64 = arith.constant 1.000000e+00 : f32
    %132 = vector.broadcast %cst_64 : f32 to vector<8x32xf32>
    %133 = arith.addf %132, %131 : vector<8x32xf32>
    %134 = arith.divf %132, %133 : vector<8x32xf32>
    %c0_65 = arith.constant 0 : index
    %c0_66 = arith.constant 0 : index
    %135 = vector.load %arg11[%c0_65, %c0_66] : memref<8x32xf32, #tpu.memory_space<vmem>>, vector<8x32xf32>
    %136 = arith.mulf %126, %135 : vector<8x32xf32>
    %137 = arith.mulf %120, %128 : vector<8x32xf32>
    %138 = arith.addf %136, %137 : vector<8x32xf32>
    %139 = math.tanh %138 : vector<8x32xf32>
    %140 = arith.mulf %134, %139 : vector<8x32xf32>
    %c0_67 = arith.constant 0 : index
    %c0_68 = arith.constant 0 : index
    %141 = vector.load %arg11[%c0_67, %c0_68] : memref<8x32xf32, #tpu.memory_space<vmem>>, vector<8x32xf32>
    tpu.vector_store %arg11[%c0_67, %c0_68], %138 {strides = array<i32>} : memref<8x32xf32, #tpu.memory_space<vmem>>, vector<8x32xf32>,
    %c0_69 = arith.constant 0 : index
    %c0_70 = arith.constant 0 : index
    %142 = vector.load %arg10[%c0_69, %c0_70] : memref<8x32xf32, #tpu.memory_space<vmem>>, vector<8x32xf32>
    tpu.vector_store %arg10[%c0_69, %c0_70], %140 {strides = array<i32>} : memref<8x32xf32, #tpu.memory_space<vmem>>, vector<8x32xf32>,
    %c24_71 = arith.constant 24 : index
    %c0_72 = arith.constant 0 : index
    %143 = vector.load %arg12[%c24_71, %c0_72] : memref<32x32xf32, #tpu.memory_space<vmem>>, vector<8x32xf32>
    tpu.vector_store %arg12[%c24_71, %c0_72], %140 {strides = array<i32>} : memref<32x32xf32, #tpu.memory_space<vmem>>, vector<8x32xf32>,
    %c0_73 = arith.constant 0 : index
    %c0_74 = arith.constant 0 : index
    %144 = vector.load %arg12[%c0_73, %c0_74] : memref<32x32xf32, #tpu.memory_space<vmem>>, vector<32x32xf32>
    %145 = arith.truncf %144 : vector<32x32xf32> to vector<32x32xbf16>
    %c0_75 = arith.constant 0 : index
    %c0_76 = arith.constant 0 : index
    %146 = vector.load %arg3[%c0_75, %c0_76] : memref<32x128xbf16, #tpu.memory_space<vmem>>, vector<32x128xbf16>
    %cst_77 = arith.constant dense<0.000000e+00> : vector<32x128xf32>
    %147 = tpu.matmul %145, %146, %cst_77 {dimension_numbers = #tpu.dot_dimension_numbers<[1], [0], [0], [1], [0, 0, 1, 1], [], []>} : vector<32x32xbf16>, vector<32x128xbf16>, vector<32x128xf32> -> vector<32x128xf32>
    %c0_78 = arith.constant 0 : index
    %c0_79 = arith.constant 0 : index
    %148 = vector.load %arg5[%c0_78, %c0_79] : memref<1x128xf32, #tpu.memory_space<vmem>>, vector<1x128xf32>
    %149 = vector.broadcast %148 : vector<1x128xf32> to vector<32x128xf32>
    %150 = arith.addf %147, %149 : vector<32x128xf32>
    %cst_80 = arith.constant 0.000000e+00 : f32
    %151 = vector.broadcast %cst_80 : f32 to vector<8x32xf32>
    %c0_81 = arith.constant 0 : index
    %c0_82 = arith.constant 0 : index
    %152 = vector.load %arg10[%c0_81, %c0_82] : memref<8x32xf32, #tpu.memory_space<vmem>>, vector<8x32xf32>
    tpu.vector_store %arg10[%c0_81, %c0_82], %151 {strides = array<i32>} : memref<8x32xf32, #tpu.memory_space<vmem>>, vector<8x32xf32>,
    %cst_83 = arith.constant 0.000000e+00 : f32
    %153 = vector.broadcast %cst_83 : f32 to vector<8x32xf32>
    %c0_84 = arith.constant 0 : index
    %c0_85 = arith.constant 0 : index
    %154 = vector.load %arg11[%c0_84, %c0_85] : memref<8x32xf32, #tpu.memory_space<vmem>>, vector<8x32xf32>
    tpu.vector_store %arg11[%c0_84, %c0_85], %153 {strides = array<i32>} : memref<8x32xf32, #tpu.memory_space<vmem>>, vector<8x32xf32>,
    %155 = vector.extract_strided_slice %150 {offsets = [0, 0], sizes = [8, 128], strides = [1, 1]} : vector<32x128xf32> to vector<8x128xf32>
    %c0_86 = arith.constant 0 : index
    %c0_87 = arith.constant 0 : index
    %156 = vector.load %arg10[%c0_86, %c0_87] : memref<8x32xf32, #tpu.memory_space<vmem>>, vector<8x32xf32>
    %157 = arith.truncf %156 : vector<8x32xf32> to vector<8x32xbf16>
    %c0_88 = arith.constant 0 : index
    %c0_89 = arith.constant 0 : index
    %158 = vector.load %arg4[%c0_88, %c0_89] : memref<32x128xbf16, #tpu.memory_space<vmem>>, vector<32x128xbf16>
    %cst_90 = arith.constant dense<0.000000e+00> : vector<8x128xf32>
    %159 = tpu.matmul %157, %158, %cst_90 {dimension_numbers = #tpu.dot_dimension_numbers<[1], [0], [0], [1], [0, 0, 1, 1], [], []>} : vector<8x32xbf16>, vector<32x128xbf16>, vector<8x128xf32> -> vector<8x128xf32>
    %160 = arith.addf %155, %159 : vector<8x128xf32>
    %161 = vector.extract_strided_slice %160 {offsets = [0, 0], sizes = [8, 32], strides = [1, 1]} : vector<8x128xf32> to vector<8x32xf32>
    %162 = arith.negf %161 : vector<8x32xf32>
    %163 = math.exp %162 : vector<8x32xf32>
    %cst_91 = arith.constant 1.000000e+00 : f32
    %164 = vector.broadcast %cst_91 : f32 to vector<8x32xf32>
    %165 = arith.addf %164, %163 : vector<8x32xf32>
    %166 = arith.divf %164, %165 : vector<8x32xf32>
    %167 = vector.extract_strided_slice %160 {offsets = [0, 32], sizes = [8, 32], strides = [1, 1]} : vector<8x128xf32> to vector<8x32xf32>
    %168 = arith.negf %167 : vector<8x32xf32>
    %169 = math.exp %168 : vector<8x32xf32>
    %cst_92 = arith.constant 1.000000e+00 : f32
    %170 = vector.broadcast %cst_92 : f32 to vector<8x32xf32>
    %171 = arith.addf %170, %169 : vector<8x32xf32>
    %172 = arith.divf %170, %171 : vector<8x32xf32>
    %173 = vector.extract_strided_slice %160 {offsets = [0, 64], sizes = [8, 32], strides = [1, 1]} : vector<8x128xf32> to vector<8x32xf32>
    %174 = math.tanh %173 : vector<8x32xf32>
    %175 = vector.extract_strided_slice %160 {offsets = [0, 96], sizes = [8, 32], strides = [1, 1]} : vector<8x128xf32> to vector<8x32xf32>
    %176 = arith.negf %175 : vector<8x32xf32>
    %177 = math.exp %176 : vector<8x32xf32>
    %cst_93 = arith.constant 1.000000e+00 : f32
    %178 = vector.broadcast %cst_93 : f32 to vector<8x32xf32>
    %179 = arith.addf %178, %177 : vector<8x32xf32>
    %180 = arith.divf %178, %179 : vector<8x32xf32>
    %c0_94 = arith.constant 0 : index
    %c0_95 = arith.constant 0 : index
    %181 = vector.load %arg11[%c0_94, %c0_95] : memref<8x32xf32, #tpu.memory_space<vmem>>, vector<8x32xf32>
    %182 = arith.mulf %172, %181 : vector<8x32xf32>
    %183 = arith.mulf %166, %174 : vector<8x32xf32>
    %184 = arith.addf %182, %183 : vector<8x32xf32>
    %185 = math.tanh %184 : vector<8x32xf32>
    %186 = arith.mulf %180, %185 : vector<8x32xf32>
    %c0_96 = arith.constant 0 : index
    %c0_97 = arith.constant 0 : index
    %187 = vector.load %arg11[%c0_96, %c0_97] : memref<8x32xf32, #tpu.memory_space<vmem>>, vector<8x32xf32>
    tpu.vector_store %arg11[%c0_96, %c0_97], %184 {strides = array<i32>} : memref<8x32xf32, #tpu.memory_space<vmem>>, vector<8x32xf32>,
    %c0_98 = arith.constant 0 : index
    %c0_99 = arith.constant 0 : index
    %188 = vector.load %arg10[%c0_98, %c0_99] : memref<8x32xf32, #tpu.memory_space<vmem>>, vector<8x32xf32>
    tpu.vector_store %arg10[%c0_98, %c0_99], %186 {strides = array<i32>} : memref<8x32xf32, #tpu.memory_space<vmem>>, vector<8x32xf32>,
    %c0_100 = arith.constant 0 : index
    %c0_101 = arith.constant 0 : index
    %189 = vector.load %arg12[%c0_100, %c0_101] : memref<32x32xf32, #tpu.memory_space<vmem>>, vector<8x32xf32>
    tpu.vector_store %arg12[%c0_100, %c0_101], %186 {strides = array<i32>} : memref<32x32xf32, #tpu.memory_space<vmem>>, vector<8x32xf32>,
    %190 = vector.extract_strided_slice %150 {offsets = [8, 0], sizes = [8, 128], strides = [1, 1]} : vector<32x128xf32> to vector<8x128xf32>
    %c0_102 = arith.constant 0 : index
    %c0_103 = arith.constant 0 : index
    %191 = vector.load %arg10[%c0_102, %c0_103] : memref<8x32xf32, #tpu.memory_space<vmem>>, vector<8x32xf32>
    %192 = arith.truncf %191 : vector<8x32xf32> to vector<8x32xbf16>
    %c0_104 = arith.constant 0 : index
    %c0_105 = arith.constant 0 : index
    %193 = vector.load %arg4[%c0_104, %c0_105] : memref<32x128xbf16, #tpu.memory_space<vmem>>, vector<32x128xbf16>
    %cst_106 = arith.constant dense<0.000000e+00> : vector<8x128xf32>
    %194 = tpu.matmul %192, %193, %cst_106 {dimension_numbers = #tpu.dot_dimension_numbers<[1], [0], [0], [1], [0, 0, 1, 1], [], []>} : vector<8x32xbf16>, vector<32x128xbf16>, vector<8x128xf32> -> vector<8x128xf32>
    %195 = arith.addf %190, %194 : vector<8x128xf32>
    %196 = vector.extract_strided_slice %195 {offsets = [0, 0], sizes = [8, 32], strides = [1, 1]} : vector<8x128xf32> to vector<8x32xf32>
    %197 = arith.negf %196 : vector<8x32xf32>
    %198 = math.exp %197 : vector<8x32xf32>
    %cst_107 = arith.constant 1.000000e+00 : f32
    %199 = vector.broadcast %cst_107 : f32 to vector<8x32xf32>
    %200 = arith.addf %199, %198 : vector<8x32xf32>
    %201 = arith.divf %199, %200 : vector<8x32xf32>
    %202 = vector.extract_strided_slice %195 {offsets = [0, 32], sizes = [8, 32], strides = [1, 1]} : vector<8x128xf32> to vector<8x32xf32>
    %203 = arith.negf %202 : vector<8x32xf32>
    %204 = math.exp %203 : vector<8x32xf32>
    %cst_108 = arith.constant 1.000000e+00 : f32
    %205 = vector.broadcast %cst_108 : f32 to vector<8x32xf32>
    %206 = arith.addf %205, %204 : vector<8x32xf32>
    %207 = arith.divf %205, %206 : vector<8x32xf32>
    %208 = vector.extract_strided_slice %195 {offsets = [0, 64], sizes = [8, 32], strides = [1, 1]} : vector<8x128xf32> to vector<8x32xf32>
    %209 = math.tanh %208 : vector<8x32xf32>
    %210 = vector.extract_strided_slice %195 {offsets = [0, 96], sizes = [8, 32], strides = [1, 1]} : vector<8x128xf32> to vector<8x32xf32>
    %211 = arith.negf %210 : vector<8x32xf32>
    %212 = math.exp %211 : vector<8x32xf32>
    %cst_109 = arith.constant 1.000000e+00 : f32
    %213 = vector.broadcast %cst_109 : f32 to vector<8x32xf32>
    %214 = arith.addf %213, %212 : vector<8x32xf32>
    %215 = arith.divf %213, %214 : vector<8x32xf32>
    %c0_110 = arith.constant 0 : index
    %c0_111 = arith.constant 0 : index
    %216 = vector.load %arg11[%c0_110, %c0_111] : memref<8x32xf32, #tpu.memory_space<vmem>>, vector<8x32xf32>
    %217 = arith.mulf %207, %216 : vector<8x32xf32>
    %218 = arith.mulf %201, %209 : vector<8x32xf32>
    %219 = arith.addf %217, %218 : vector<8x32xf32>
    %220 = math.tanh %219 : vector<8x32xf32>
    %221 = arith.mulf %215, %220 : vector<8x32xf32>
    %c0_112 = arith.constant 0 : index
    %c0_113 = arith.constant 0 : index
    %222 = vector.load %arg11[%c0_112, %c0_113] : memref<8x32xf32, #tpu.memory_space<vmem>>, vector<8x32xf32>
    tpu.vector_store %arg11[%c0_112, %c0_113], %219 {strides = array<i32>} : memref<8x32xf32, #tpu.memory_space<vmem>>, vector<8x32xf32>,
    %c0_114 = arith.constant 0 : index
    %c0_115 = arith.constant 0 : index
    %223 = vector.load %arg10[%c0_114, %c0_115] : memref<8x32xf32, #tpu.memory_space<vmem>>, vector<8x32xf32>
    tpu.vector_store %arg10[%c0_114, %c0_115], %221 {strides = array<i32>} : memref<8x32xf32, #tpu.memory_space<vmem>>, vector<8x32xf32>,
    %c8_116 = arith.constant 8 : index
    %c0_117 = arith.constant 0 : index
    %224 = vector.load %arg12[%c8_116, %c0_117] : memref<32x32xf32, #tpu.memory_space<vmem>>, vector<8x32xf32>
    tpu.vector_store %arg12[%c8_116, %c0_117], %221 {strides = array<i32>} : memref<32x32xf32, #tpu.memory_space<vmem>>, vector<8x32xf32>,
    %225 = vector.extract_strided_slice %150 {offsets = [16, 0], sizes = [8, 128], strides = [1, 1]} : vector<32x128xf32> to vector<8x128xf32>
    %c0_118 = arith.constant 0 : index
    %c0_119 = arith.constant 0 : index
    %226 = vector.load %arg10[%c0_118, %c0_119] : memref<8x32xf32, #tpu.memory_space<vmem>>, vector<8x32xf32>
    %227 = arith.truncf %226 : vector<8x32xf32> to vector<8x32xbf16>
    %c0_120 = arith.constant 0 : index
    %c0_121 = arith.constant 0 : index
    %228 = vector.load %arg4[%c0_120, %c0_121] : memref<32x128xbf16, #tpu.memory_space<vmem>>, vector<32x128xbf16>
    %cst_122 = arith.constant dense<0.000000e+00> : vector<8x128xf32>
    %229 = tpu.matmul %227, %228, %cst_122 {dimension_numbers = #tpu.dot_dimension_numbers<[1], [0], [0], [1], [0, 0, 1, 1], [], []>} : vector<8x32xbf16>, vector<32x128xbf16>, vector<8x128xf32> -> vector<8x128xf32>
    %230 = arith.addf %225, %229 : vector<8x128xf32>
    %231 = vector.extract_strided_slice %230 {offsets = [0, 0], sizes = [8, 32], strides = [1, 1]} : vector<8x128xf32> to vector<8x32xf32>
    %232 = arith.negf %231 : vector<8x32xf32>
    %233 = math.exp %232 : vector<8x32xf32>
    %cst_123 = arith.constant 1.000000e+00 : f32
    %234 = vector.broadcast %cst_123 : f32 to vector<8x32xf32>
    %235 = arith.addf %234, %233 : vector<8x32xf32>
    %236 = arith.divf %234, %235 : vector<8x32xf32>
    %237 = vector.extract_strided_slice %230 {offsets = [0, 32], sizes = [8, 32], strides = [1, 1]} : vector<8x128xf32> to vector<8x32xf32>
    %238 = arith.negf %237 : vector<8x32xf32>
    %239 = math.exp %238 : vector<8x32xf32>
    %cst_124 = arith.constant 1.000000e+00 : f32
    %240 = vector.broadcast %cst_124 : f32 to vector<8x32xf32>
    %241 = arith.addf %240, %239 : vector<8x32xf32>
    %242 = arith.divf %240, %241 : vector<8x32xf32>
    %243 = vector.extract_strided_slice %230 {offsets = [0, 64], sizes = [8, 32], strides = [1, 1]} : vector<8x128xf32> to vector<8x32xf32>
    %244 = math.tanh %243 : vector<8x32xf32>
    %245 = vector.extract_strided_slice %230 {offsets = [0, 96], sizes = [8, 32], strides = [1, 1]} : vector<8x128xf32> to vector<8x32xf32>
    %246 = arith.negf %245 : vector<8x32xf32>
    %247 = math.exp %246 : vector<8x32xf32>
    %cst_125 = arith.constant 1.000000e+00 : f32
    %248 = vector.broadcast %cst_125 : f32 to vector<8x32xf32>
    %249 = arith.addf %248, %247 : vector<8x32xf32>
    %250 = arith.divf %248, %249 : vector<8x32xf32>
    %c0_126 = arith.constant 0 : index
    %c0_127 = arith.constant 0 : index
    %251 = vector.load %arg11[%c0_126, %c0_127] : memref<8x32xf32, #tpu.memory_space<vmem>>, vector<8x32xf32>
    %252 = arith.mulf %242, %251 : vector<8x32xf32>
    %253 = arith.mulf %236, %244 : vector<8x32xf32>
    %254 = arith.addf %252, %253 : vector<8x32xf32>
    %255 = math.tanh %254 : vector<8x32xf32>
    %256 = arith.mulf %250, %255 : vector<8x32xf32>
    %c0_128 = arith.constant 0 : index
    %c0_129 = arith.constant 0 : index
    %257 = vector.load %arg11[%c0_128, %c0_129] : memref<8x32xf32, #tpu.memory_space<vmem>>, vector<8x32xf32>
    tpu.vector_store %arg11[%c0_128, %c0_129], %254 {strides = array<i32>} : memref<8x32xf32, #tpu.memory_space<vmem>>, vector<8x32xf32>,
    %c0_130 = arith.constant 0 : index
    %c0_131 = arith.constant 0 : index
    %258 = vector.load %arg10[%c0_130, %c0_131] : memref<8x32xf32, #tpu.memory_space<vmem>>, vector<8x32xf32>
    tpu.vector_store %arg10[%c0_130, %c0_131], %256 {strides = array<i32>} : memref<8x32xf32, #tpu.memory_space<vmem>>, vector<8x32xf32>,
    %c16_132 = arith.constant 16 : index
    %c0_133 = arith.constant 0 : index
    %259 = vector.load %arg12[%c16_132, %c0_133] : memref<32x32xf32, #tpu.memory_space<vmem>>, vector<8x32xf32>
    tpu.vector_store %arg12[%c16_132, %c0_133], %256 {strides = array<i32>} : memref<32x32xf32, #tpu.memory_space<vmem>>, vector<8x32xf32>,
    %260 = vector.extract_strided_slice %150 {offsets = [24, 0], sizes = [8, 128], strides = [1, 1]} : vector<32x128xf32> to vector<8x128xf32>
    %c0_134 = arith.constant 0 : index
    %c0_135 = arith.constant 0 : index
    %261 = vector.load %arg10[%c0_134, %c0_135] : memref<8x32xf32, #tpu.memory_space<vmem>>, vector<8x32xf32>
    %262 = arith.truncf %261 : vector<8x32xf32> to vector<8x32xbf16>
    %c0_136 = arith.constant 0 : index
    %c0_137 = arith.constant 0 : index
    %263 = vector.load %arg4[%c0_136, %c0_137] : memref<32x128xbf16, #tpu.memory_space<vmem>>, vector<32x128xbf16>
    %cst_138 = arith.constant dense<0.000000e+00> : vector<8x128xf32>
    %264 = tpu.matmul %262, %263, %cst_138 {dimension_numbers = #tpu.dot_dimension_numbers<[1], [0], [0], [1], [0, 0, 1, 1], [], []>} : vector<8x32xbf16>, vector<32x128xbf16>, vector<8x128xf32> -> vector<8x128xf32>
    %265 = arith.addf %260, %264 : vector<8x128xf32>
    %266 = vector.extract_strided_slice %265 {offsets = [0, 0], sizes = [8, 32], strides = [1, 1]} : vector<8x128xf32> to vector<8x32xf32>
    %267 = arith.negf %266 : vector<8x32xf32>
    %268 = math.exp %267 : vector<8x32xf32>
    %cst_139 = arith.constant 1.000000e+00 : f32
    %269 = vector.broadcast %cst_139 : f32 to vector<8x32xf32>
    %270 = arith.addf %269, %268 : vector<8x32xf32>
    %271 = arith.divf %269, %270 : vector<8x32xf32>
    %272 = vector.extract_strided_slice %265 {offsets = [0, 32], sizes = [8, 32], strides = [1, 1]} : vector<8x128xf32> to vector<8x32xf32>
    %273 = arith.negf %272 : vector<8x32xf32>
    %274 = math.exp %273 : vector<8x32xf32>
    %cst_140 = arith.constant 1.000000e+00 : f32
    %275 = vector.broadcast %cst_140 : f32 to vector<8x32xf32>
    %276 = arith.addf %275, %274 : vector<8x32xf32>
    %277 = arith.divf %275, %276 : vector<8x32xf32>
    %278 = vector.extract_strided_slice %265 {offsets = [0, 64], sizes = [8, 32], strides = [1, 1]} : vector<8x128xf32> to vector<8x32xf32>
    %279 = math.tanh %278 : vector<8x32xf32>
    %280 = vector.extract_strided_slice %265 {offsets = [0, 96], sizes = [8, 32], strides = [1, 1]} : vector<8x128xf32> to vector<8x32xf32>
    %281 = arith.negf %280 : vector<8x32xf32>
    %282 = math.exp %281 : vector<8x32xf32>
    %cst_141 = arith.constant 1.000000e+00 : f32
    %283 = vector.broadcast %cst_141 : f32 to vector<8x32xf32>
    %284 = arith.addf %283, %282 : vector<8x32xf32>
    %285 = arith.divf %283, %284 : vector<8x32xf32>
    %c0_142 = arith.constant 0 : index
    %c0_143 = arith.constant 0 : index
    %286 = vector.load %arg11[%c0_142, %c0_143] : memref<8x32xf32, #tpu.memory_space<vmem>>, vector<8x32xf32>
    %287 = arith.mulf %277, %286 : vector<8x32xf32>
    %288 = arith.mulf %271, %279 : vector<8x32xf32>
    %289 = arith.addf %287, %288 : vector<8x32xf32>
    %290 = math.tanh %289 : vector<8x32xf32>
    %291 = arith.mulf %285, %290 : vector<8x32xf32>
    %c0_144 = arith.constant 0 : index
    %c0_145 = arith.constant 0 : index
    %292 = vector.load %arg11[%c0_144, %c0_145] : memref<8x32xf32, #tpu.memory_space<vmem>>, vector<8x32xf32>
    tpu.vector_store %arg11[%c0_144, %c0_145], %289 {strides = array<i32>} : memref<8x32xf32, #tpu.memory_space<vmem>>, vector<8x32xf32>,
    %c0_146 = arith.constant 0 : index
    %c0_147 = arith.constant 0 : index
    %293 = vector.load %arg10[%c0_146, %c0_147] : memref<8x32xf32, #tpu.memory_space<vmem>>, vector<8x32xf32>
    tpu.vector_store %arg10[%c0_146, %c0_147], %291 {strides = array<i32>} : memref<8x32xf32, #tpu.memory_space<vmem>>, vector<8x32xf32>,
    %c24_148 = arith.constant 24 : index
    %c0_149 = arith.constant 0 : index
    %294 = vector.load %arg12[%c24_148, %c0_149] : memref<32x32xf32, #tpu.memory_space<vmem>>, vector<8x32xf32>
    tpu.vector_store %arg12[%c24_148, %c0_149], %291 {strides = array<i32>} : memref<32x32xf32, #tpu.memory_space<vmem>>, vector<8x32xf32>,
    %c0_150 = arith.constant 0 : index
    %c0_151 = arith.constant 0 : index
    %295 = vector.load %arg12[%c0_150, %c0_151] : memref<32x32xf32, #tpu.memory_space<vmem>>, vector<32x32xf32>
    %296 = arith.truncf %295 : vector<32x32xf32> to vector<32x32xbf16>
    %c0_152 = arith.constant 0 : index
    %c0_153 = arith.constant 0 : index
    %297 = vector.load %arg6[%c0_152, %c0_153] : memref<32x128xbf16, #tpu.memory_space<vmem>>, vector<32x128xbf16>
    %cst_154 = arith.constant dense<0.000000e+00> : vector<32x128xf32>
    %298 = tpu.matmul %296, %297, %cst_154 {dimension_numbers = #tpu.dot_dimension_numbers<[1], [0], [0], [1], [0, 0, 1, 1], [], []>} : vector<32x32xbf16>, vector<32x128xbf16>, vector<32x128xf32> -> vector<32x128xf32>
    %c0_155 = arith.constant 0 : index
    %c0_156 = arith.constant 0 : index
    %299 = vector.load %arg8[%c0_155, %c0_156] : memref<1x128xf32, #tpu.memory_space<vmem>>, vector<1x128xf32>
    %300 = vector.broadcast %299 : vector<1x128xf32> to vector<32x128xf32>
    %301 = arith.addf %298, %300 : vector<32x128xf32>
    %cst_157 = arith.constant 0.000000e+00 : f32
    %302 = vector.broadcast %cst_157 : f32 to vector<8x32xf32>
    %c0_158 = arith.constant 0 : index
    %c0_159 = arith.constant 0 : index
    %303 = vector.load %arg10[%c0_158, %c0_159] : memref<8x32xf32, #tpu.memory_space<vmem>>, vector<8x32xf32>
    tpu.vector_store %arg10[%c0_158, %c0_159], %302 {strides = array<i32>} : memref<8x32xf32, #tpu.memory_space<vmem>>, vector<8x32xf32>,
    %cst_160 = arith.constant 0.000000e+00 : f32
    %304 = vector.broadcast %cst_160 : f32 to vector<8x32xf32>
    %c0_161 = arith.constant 0 : index
    %c0_162 = arith.constant 0 : index
    %305 = vector.load %arg11[%c0_161, %c0_162] : memref<8x32xf32, #tpu.memory_space<vmem>>, vector<8x32xf32>
    tpu.vector_store %arg11[%c0_161, %c0_162], %304 {strides = array<i32>} : memref<8x32xf32, #tpu.memory_space<vmem>>, vector<8x32xf32>,
    %306 = vector.extract_strided_slice %301 {offsets = [0, 0], sizes = [8, 128], strides = [1, 1]} : vector<32x128xf32> to vector<8x128xf32>
    %c0_163 = arith.constant 0 : index
    %c0_164 = arith.constant 0 : index
    %307 = vector.load %arg10[%c0_163, %c0_164] : memref<8x32xf32, #tpu.memory_space<vmem>>, vector<8x32xf32>
    %308 = arith.truncf %307 : vector<8x32xf32> to vector<8x32xbf16>
    %c0_165 = arith.constant 0 : index
    %c0_166 = arith.constant 0 : index
    %309 = vector.load %arg7[%c0_165, %c0_166] : memref<32x128xbf16, #tpu.memory_space<vmem>>, vector<32x128xbf16>
    %cst_167 = arith.constant dense<0.000000e+00> : vector<8x128xf32>
    %310 = tpu.matmul %308, %309, %cst_167 {dimension_numbers = #tpu.dot_dimension_numbers<[1], [0], [0], [1], [0, 0, 1, 1], [], []>} : vector<8x32xbf16>, vector<32x128xbf16>, vector<8x128xf32> -> vector<8x128xf32>
    %311 = arith.addf %306, %310 : vector<8x128xf32>
    %312 = vector.extract_strided_slice %311 {offsets = [0, 0], sizes = [8, 32], strides = [1, 1]} : vector<8x128xf32> to vector<8x32xf32>
    %313 = arith.negf %312 : vector<8x32xf32>
    %314 = math.exp %313 : vector<8x32xf32>
    %cst_168 = arith.constant 1.000000e+00 : f32
    %315 = vector.broadcast %cst_168 : f32 to vector<8x32xf32>
    %316 = arith.addf %315, %314 : vector<8x32xf32>
    %317 = arith.divf %315, %316 : vector<8x32xf32>
    %318 = vector.extract_strided_slice %311 {offsets = [0, 32], sizes = [8, 32], strides = [1, 1]} : vector<8x128xf32> to vector<8x32xf32>
    %319 = arith.negf %318 : vector<8x32xf32>
    %320 = math.exp %319 : vector<8x32xf32>
    %cst_169 = arith.constant 1.000000e+00 : f32
    %321 = vector.broadcast %cst_169 : f32 to vector<8x32xf32>
    %322 = arith.addf %321, %320 : vector<8x32xf32>
    %323 = arith.divf %321, %322 : vector<8x32xf32>
    %324 = vector.extract_strided_slice %311 {offsets = [0, 64], sizes = [8, 32], strides = [1, 1]} : vector<8x128xf32> to vector<8x32xf32>
    %325 = math.tanh %324 : vector<8x32xf32>
    %326 = vector.extract_strided_slice %311 {offsets = [0, 96], sizes = [8, 32], strides = [1, 1]} : vector<8x128xf32> to vector<8x32xf32>
    %327 = arith.negf %326 : vector<8x32xf32>
    %328 = math.exp %327 : vector<8x32xf32>
    %cst_170 = arith.constant 1.000000e+00 : f32
    %329 = vector.broadcast %cst_170 : f32 to vector<8x32xf32>
    %330 = arith.addf %329, %328 : vector<8x32xf32>
    %331 = arith.divf %329, %330 : vector<8x32xf32>
    %c0_171 = arith.constant 0 : index
    %c0_172 = arith.constant 0 : index
    %332 = vector.load %arg11[%c0_171, %c0_172] : memref<8x32xf32, #tpu.memory_space<vmem>>, vector<8x32xf32>
    %333 = arith.mulf %323, %332 : vector<8x32xf32>
    %334 = arith.mulf %317, %325 : vector<8x32xf32>
    %335 = arith.addf %333, %334 : vector<8x32xf32>
    %336 = math.tanh %335 : vector<8x32xf32>
    %337 = arith.mulf %331, %336 : vector<8x32xf32>
    %c0_173 = arith.constant 0 : index
    %c0_174 = arith.constant 0 : index
    %338 = vector.load %arg11[%c0_173, %c0_174] : memref<8x32xf32, #tpu.memory_space<vmem>>, vector<8x32xf32>
    tpu.vector_store %arg11[%c0_173, %c0_174], %335 {strides = array<i32>} : memref<8x32xf32, #tpu.memory_space<vmem>>, vector<8x32xf32>,
    %c0_175 = arith.constant 0 : index
    %c0_176 = arith.constant 0 : index
    %339 = vector.load %arg10[%c0_175, %c0_176] : memref<8x32xf32, #tpu.memory_space<vmem>>, vector<8x32xf32>
    tpu.vector_store %arg10[%c0_175, %c0_176], %337 {strides = array<i32>} : memref<8x32xf32, #tpu.memory_space<vmem>>, vector<8x32xf32>,
    %c0_177 = arith.constant 0 : index
    %c0_178 = arith.constant 0 : index
    %340 = vector.load %arg9[%c0_177, %c0_178] : memref<32x32xf32, #tpu.memory_space<vmem>>, vector<8x32xf32>
    tpu.vector_store %arg9[%c0_177, %c0_178], %337 {strides = array<i32>} : memref<32x32xf32, #tpu.memory_space<vmem>>, vector<8x32xf32>,
    %341 = vector.extract_strided_slice %301 {offsets = [8, 0], sizes = [8, 128], strides = [1, 1]} : vector<32x128xf32> to vector<8x128xf32>
    %c0_179 = arith.constant 0 : index
    %c0_180 = arith.constant 0 : index
    %342 = vector.load %arg10[%c0_179, %c0_180] : memref<8x32xf32, #tpu.memory_space<vmem>>, vector<8x32xf32>
    %343 = arith.truncf %342 : vector<8x32xf32> to vector<8x32xbf16>
    %c0_181 = arith.constant 0 : index
    %c0_182 = arith.constant 0 : index
    %344 = vector.load %arg7[%c0_181, %c0_182] : memref<32x128xbf16, #tpu.memory_space<vmem>>, vector<32x128xbf16>
    %cst_183 = arith.constant dense<0.000000e+00> : vector<8x128xf32>
    %345 = tpu.matmul %343, %344, %cst_183 {dimension_numbers = #tpu.dot_dimension_numbers<[1], [0], [0], [1], [0, 0, 1, 1], [], []>} : vector<8x32xbf16>, vector<32x128xbf16>, vector<8x128xf32> -> vector<8x128xf32>
    %346 = arith.addf %341, %345 : vector<8x128xf32>
    %347 = vector.extract_strided_slice %346 {offsets = [0, 0], sizes = [8, 32], strides = [1, 1]} : vector<8x128xf32> to vector<8x32xf32>
    %348 = arith.negf %347 : vector<8x32xf32>
    %349 = math.exp %348 : vector<8x32xf32>
    %cst_184 = arith.constant 1.000000e+00 : f32
    %350 = vector.broadcast %cst_184 : f32 to vector<8x32xf32>
    %351 = arith.addf %350, %349 : vector<8x32xf32>
    %352 = arith.divf %350, %351 : vector<8x32xf32>
    %353 = vector.extract_strided_slice %346 {offsets = [0, 32], sizes = [8, 32], strides = [1, 1]} : vector<8x128xf32> to vector<8x32xf32>
    %354 = arith.negf %353 : vector<8x32xf32>
    %355 = math.exp %354 : vector<8x32xf32>
    %cst_185 = arith.constant 1.000000e+00 : f32
    %356 = vector.broadcast %cst_185 : f32 to vector<8x32xf32>
    %357 = arith.addf %356, %355 : vector<8x32xf32>
    %358 = arith.divf %356, %357 : vector<8x32xf32>
    %359 = vector.extract_strided_slice %346 {offsets = [0, 64], sizes = [8, 32], strides = [1, 1]} : vector<8x128xf32> to vector<8x32xf32>
    %360 = math.tanh %359 : vector<8x32xf32>
    %361 = vector.extract_strided_slice %346 {offsets = [0, 96], sizes = [8, 32], strides = [1, 1]} : vector<8x128xf32> to vector<8x32xf32>
    %362 = arith.negf %361 : vector<8x32xf32>
    %363 = math.exp %362 : vector<8x32xf32>
    %cst_186 = arith.constant 1.000000e+00 : f32
    %364 = vector.broadcast %cst_186 : f32 to vector<8x32xf32>
    %365 = arith.addf %364, %363 : vector<8x32xf32>
    %366 = arith.divf %364, %365 : vector<8x32xf32>
    %c0_187 = arith.constant 0 : index
    %c0_188 = arith.constant 0 : index
    %367 = vector.load %arg11[%c0_187, %c0_188] : memref<8x32xf32, #tpu.memory_space<vmem>>, vector<8x32xf32>
    %368 = arith.mulf %358, %367 : vector<8x32xf32>
    %369 = arith.mulf %352, %360 : vector<8x32xf32>
    %370 = arith.addf %368, %369 : vector<8x32xf32>
    %371 = math.tanh %370 : vector<8x32xf32>
    %372 = arith.mulf %366, %371 : vector<8x32xf32>
    %c0_189 = arith.constant 0 : index
    %c0_190 = arith.constant 0 : index
    %373 = vector.load %arg11[%c0_189, %c0_190] : memref<8x32xf32, #tpu.memory_space<vmem>>, vector<8x32xf32>
    tpu.vector_store %arg11[%c0_189, %c0_190], %370 {strides = array<i32>} : memref<8x32xf32, #tpu.memory_space<vmem>>, vector<8x32xf32>,
    %c0_191 = arith.constant 0 : index
    %c0_192 = arith.constant 0 : index
    %374 = vector.load %arg10[%c0_191, %c0_192] : memref<8x32xf32, #tpu.memory_space<vmem>>, vector<8x32xf32>
    tpu.vector_store %arg10[%c0_191, %c0_192], %372 {strides = array<i32>} : memref<8x32xf32, #tpu.memory_space<vmem>>, vector<8x32xf32>,
    %c8_193 = arith.constant 8 : index
    %c0_194 = arith.constant 0 : index
    %375 = vector.load %arg9[%c8_193, %c0_194] : memref<32x32xf32, #tpu.memory_space<vmem>>, vector<8x32xf32>
    tpu.vector_store %arg9[%c8_193, %c0_194], %372 {strides = array<i32>} : memref<32x32xf32, #tpu.memory_space<vmem>>, vector<8x32xf32>,
    %376 = vector.extract_strided_slice %301 {offsets = [16, 0], sizes = [8, 128], strides = [1, 1]} : vector<32x128xf32> to vector<8x128xf32>
    %c0_195 = arith.constant 0 : index
    %c0_196 = arith.constant 0 : index
    %377 = vector.load %arg10[%c0_195, %c0_196] : memref<8x32xf32, #tpu.memory_space<vmem>>, vector<8x32xf32>
    %378 = arith.truncf %377 : vector<8x32xf32> to vector<8x32xbf16>
    %c0_197 = arith.constant 0 : index
    %c0_198 = arith.constant 0 : index
    %379 = vector.load %arg7[%c0_197, %c0_198] : memref<32x128xbf16, #tpu.memory_space<vmem>>, vector<32x128xbf16>
    %cst_199 = arith.constant dense<0.000000e+00> : vector<8x128xf32>
    %380 = tpu.matmul %378, %379, %cst_199 {dimension_numbers = #tpu.dot_dimension_numbers<[1], [0], [0], [1], [0, 0, 1, 1], [], []>} : vector<8x32xbf16>, vector<32x128xbf16>, vector<8x128xf32> -> vector<8x128xf32>
    %381 = arith.addf %376, %380 : vector<8x128xf32>
    %382 = vector.extract_strided_slice %381 {offsets = [0, 0], sizes = [8, 32], strides = [1, 1]} : vector<8x128xf32> to vector<8x32xf32>
    %383 = arith.negf %382 : vector<8x32xf32>
    %384 = math.exp %383 : vector<8x32xf32>
    %cst_200 = arith.constant 1.000000e+00 : f32
    %385 = vector.broadcast %cst_200 : f32 to vector<8x32xf32>
    %386 = arith.addf %385, %384 : vector<8x32xf32>
    %387 = arith.divf %385, %386 : vector<8x32xf32>
    %388 = vector.extract_strided_slice %381 {offsets = [0, 32], sizes = [8, 32], strides = [1, 1]} : vector<8x128xf32> to vector<8x32xf32>
    %389 = arith.negf %388 : vector<8x32xf32>
    %390 = math.exp %389 : vector<8x32xf32>
    %cst_201 = arith.constant 1.000000e+00 : f32
    %391 = vector.broadcast %cst_201 : f32 to vector<8x32xf32>
    %392 = arith.addf %391, %390 : vector<8x32xf32>
    %393 = arith.divf %391, %392 : vector<8x32xf32>
    %394 = vector.extract_strided_slice %381 {offsets = [0, 64], sizes = [8, 32], strides = [1, 1]} : vector<8x128xf32> to vector<8x32xf32>
    %395 = math.tanh %394 : vector<8x32xf32>
    %396 = vector.extract_strided_slice %381 {offsets = [0, 96], sizes = [8, 32], strides = [1, 1]} : vector<8x128xf32> to vector<8x32xf32>
    %397 = arith.negf %396 : vector<8x32xf32>
    %398 = math.exp %397 : vector<8x32xf32>
    %cst_202 = arith.constant 1.000000e+00 : f32
    %399 = vector.broadcast %cst_202 : f32 to vector<8x32xf32>
    %400 = arith.addf %399, %398 : vector<8x32xf32>
    %401 = arith.divf %399, %400 : vector<8x32xf32>
    %c0_203 = arith.constant 0 : index
    %c0_204 = arith.constant 0 : index
    %402 = vector.load %arg11[%c0_203, %c0_204] : memref<8x32xf32, #tpu.memory_space<vmem>>, vector<8x32xf32>
    %403 = arith.mulf %393, %402 : vector<8x32xf32>
    %404 = arith.mulf %387, %395 : vector<8x32xf32>
    %405 = arith.addf %403, %404 : vector<8x32xf32>
    %406 = math.tanh %405 : vector<8x32xf32>
    %407 = arith.mulf %401, %406 : vector<8x32xf32>
    %c0_205 = arith.constant 0 : index
    %c0_206 = arith.constant 0 : index
    %408 = vector.load %arg11[%c0_205, %c0_206] : memref<8x32xf32, #tpu.memory_space<vmem>>, vector<8x32xf32>
    tpu.vector_store %arg11[%c0_205, %c0_206], %405 {strides = array<i32>} : memref<8x32xf32, #tpu.memory_space<vmem>>, vector<8x32xf32>,
    %c0_207 = arith.constant 0 : index
    %c0_208 = arith.constant 0 : index
    %409 = vector.load %arg10[%c0_207, %c0_208] : memref<8x32xf32, #tpu.memory_space<vmem>>, vector<8x32xf32>
    tpu.vector_store %arg10[%c0_207, %c0_208], %407 {strides = array<i32>} : memref<8x32xf32, #tpu.memory_space<vmem>>, vector<8x32xf32>,
    %c16_209 = arith.constant 16 : index
    %c0_210 = arith.constant 0 : index
    %410 = vector.load %arg9[%c16_209, %c0_210] : memref<32x32xf32, #tpu.memory_space<vmem>>, vector<8x32xf32>
    tpu.vector_store %arg9[%c16_209, %c0_210], %407 {strides = array<i32>} : memref<32x32xf32, #tpu.memory_space<vmem>>, vector<8x32xf32>,
    %411 = vector.extract_strided_slice %301 {offsets = [24, 0], sizes = [8, 128], strides = [1, 1]} : vector<32x128xf32> to vector<8x128xf32>
    %c0_211 = arith.constant 0 : index
    %c0_212 = arith.constant 0 : index
    %412 = vector.load %arg10[%c0_211, %c0_212] : memref<8x32xf32, #tpu.memory_space<vmem>>, vector<8x32xf32>
    %413 = arith.truncf %412 : vector<8x32xf32> to vector<8x32xbf16>
    %c0_213 = arith.constant 0 : index
    %c0_214 = arith.constant 0 : index
    %414 = vector.load %arg7[%c0_213, %c0_214] : memref<32x128xbf16, #tpu.memory_space<vmem>>, vector<32x128xbf16>
    %cst_215 = arith.constant dense<0.000000e+00> : vector<8x128xf32>
    %415 = tpu.matmul %413, %414, %cst_215 {dimension_numbers = #tpu.dot_dimension_numbers<[1], [0], [0], [1], [0, 0, 1, 1], [], []>} : vector<8x32xbf16>, vector<32x128xbf16>, vector<8x128xf32> -> vector<8x128xf32>
    %416 = arith.addf %411, %415 : vector<8x128xf32>
    %417 = vector.extract_strided_slice %416 {offsets = [0, 0], sizes = [8, 32], strides = [1, 1]} : vector<8x128xf32> to vector<8x32xf32>
    %418 = arith.negf %417 : vector<8x32xf32>
    %419 = math.exp %418 : vector<8x32xf32>
    %cst_216 = arith.constant 1.000000e+00 : f32
    %420 = vector.broadcast %cst_216 : f32 to vector<8x32xf32>
    %421 = arith.addf %420, %419 : vector<8x32xf32>
    %422 = arith.divf %420, %421 : vector<8x32xf32>
    %423 = vector.extract_strided_slice %416 {offsets = [0, 32], sizes = [8, 32], strides = [1, 1]} : vector<8x128xf32> to vector<8x32xf32>
    %424 = arith.negf %423 : vector<8x32xf32>
    %425 = math.exp %424 : vector<8x32xf32>
    %cst_217 = arith.constant 1.000000e+00 : f32
    %426 = vector.broadcast %cst_217 : f32 to vector<8x32xf32>
    %427 = arith.addf %426, %425 : vector<8x32xf32>
    %428 = arith.divf %426, %427 : vector<8x32xf32>
    %429 = vector.extract_strided_slice %416 {offsets = [0, 64], sizes = [8, 32], strides = [1, 1]} : vector<8x128xf32> to vector<8x32xf32>
    %430 = math.tanh %429 : vector<8x32xf32>
    %431 = vector.extract_strided_slice %416 {offsets = [0, 96], sizes = [8, 32], strides = [1, 1]} : vector<8x128xf32> to vector<8x32xf32>
    %432 = arith.negf %431 : vector<8x32xf32>
    %433 = math.exp %432 : vector<8x32xf32>
    %cst_218 = arith.constant 1.000000e+00 : f32
    %434 = vector.broadcast %cst_218 : f32 to vector<8x32xf32>
    %435 = arith.addf %434, %433 : vector<8x32xf32>
    %436 = arith.divf %434, %435 : vector<8x32xf32>
    %c0_219 = arith.constant 0 : index
    %c0_220 = arith.constant 0 : index
    %437 = vector.load %arg11[%c0_219, %c0_220] : memref<8x32xf32, #tpu.memory_space<vmem>>, vector<8x32xf32>
    %438 = arith.mulf %428, %437 : vector<8x32xf32>
    %439 = arith.mulf %422, %430 : vector<8x32xf32>
    %440 = arith.addf %438, %439 : vector<8x32xf32>
    %441 = math.tanh %440 : vector<8x32xf32>
    %442 = arith.mulf %436, %441 : vector<8x32xf32>
    %c0_221 = arith.constant 0 : index
    %c0_222 = arith.constant 0 : index
    %443 = vector.load %arg11[%c0_221, %c0_222] : memref<8x32xf32, #tpu.memory_space<vmem>>, vector<8x32xf32>
    tpu.vector_store %arg11[%c0_221, %c0_222], %440 {strides = array<i32>} : memref<8x32xf32, #tpu.memory_space<vmem>>, vector<8x32xf32>,
    %c0_223 = arith.constant 0 : index
    %c0_224 = arith.constant 0 : index
    %444 = vector.load %arg10[%c0_223, %c0_224] : memref<8x32xf32, #tpu.memory_space<vmem>>, vector<8x32xf32>
    tpu.vector_store %arg10[%c0_223, %c0_224], %442 {strides = array<i32>} : memref<8x32xf32, #tpu.memory_space<vmem>>, vector<8x32xf32>,
    %c24_225 = arith.constant 24 : index
    %c0_226 = arith.constant 0 : index
    %445 = vector.load %arg9[%c24_225, %c0_226] : memref<32x32xf32, #tpu.memory_space<vmem>>, vector<8x32xf32>
    tpu.vector_store %arg9[%c24_225, %c0_226], %442 {strides = array<i32>} : memref<32x32xf32, #tpu.memory_space<vmem>>, vector<8x32xf32>,
    return
  }
  func.func @transform_0(%arg0: i32) -> (i32, i32) {
    %c0_i32 = arith.constant 0 : i32
    %c0_i32_0 = arith.constant 0 : i32
    %c0_i32_1 = arith.constant 0 : i32
    return %c0_i32, %c0_i32_0 : i32, i32
  }
  func.func @transform_1(%arg0: i32) -> (i32, i32) {
    %c0_i32 = arith.constant 0 : i32
    %c0_i32_0 = arith.constant 0 : i32
    %c0_i32_1 = arith.constant 0 : i32
    return %c0_i32, %c0_i32_0 : i32, i32
  }
  func.func @transform_2(%arg0: i32) -> (i32, i32) {
    %c0_i32 = arith.constant 0 : i32
    %c0_i32_0 = arith.constant 0 : i32
    %c0_i32_1 = arith.constant 0 : i32
    return %c0_i32, %c0_i32_0 : i32, i32
  }
  func.func @transform_3(%arg0: i32) -> (i32, i32) {
    %c0_i32 = arith.constant 0 : i32
    %c0_i32_0 = arith.constant 0 : i32
    %c0_i32_1 = arith.constant 0 : i32
    return %c0_i32, %c0_i32_0 : i32, i32
  }
  func.func @transform_4(%arg0: i32) -> (i32, i32) {
    %c0_i32 = arith.constant 0 : i32
    %c0_i32_0 = arith.constant 0 : i32
    %c0_i32_1 = arith.constant 0 : i32
    return %c0_i32, %c0_i32_0 : i32, i32
  }
  func.func @transform_5(%arg0: i32) -> (i32, i32) {
    %c0_i32 = arith.constant 0 : i32
    %c0_i32_0 = arith.constant 0 : i32
    %c0_i32_1 = arith.constant 0 : i32
    return %c0_i32, %c0_i32_0 : i32, i32
  }
  func.func @transform_6(%arg0: i32) -> (i32, i32) {
    %c0_i32 = arith.constant 0 : i32
    %c0_i32_0 = arith.constant 0 : i32
    %c0_i32_1 = arith.constant 0 : i32
    return %c0_i32, %c0_i32_0 : i32, i32
  }
  func.func @transform_7(%arg0: i32) -> (i32, i32) {
    %c0_i32 = arith.constant 0 : i32
    %c0_i32_0 = arith.constant 0 : i32
    %c0_i32_1 = arith.constant 0 : i32
    return %c0_i32, %c0_i32_0 : i32, i32
  }
  func.func @transform_8(%arg0: i32) -> (i32, i32) {
    %c0_i32 = arith.constant 0 : i32
    %c0_i32_0 = arith.constant 0 : i32
    %c0_i32_1 = arith.constant 0 : i32
    return %c0_i32, %c0_i32_0 : i32, i32
  }
}

</mosaic_0001>

<bundles_post_ra>
// kernel: vsm_oiqa_forward.18
= control target key start
LH: loop header
LB: loop body
LE: loop exit
PB: predicated region body
PF: predicated region fallthrough
CT: control target
= control target key end

     0   :  { %s2791_s12 = smov 0   ;;  %s3342_s0 = inlined_call_operand.vmem [shape: bf16[6144,27], index: 0, kind: input, shape index: {}]   ;;  %s3343_s1 = inlined_call_operand.vmem [shape: bf16[27,16], index: 1, kind: input, shape index: {}]   ;;  %s3344_s2 = inlined_call_operand.vmem [shape: f32[1,16], index: 2, kind: input, shape index: {}]   ;;  %s3345_s3 = inlined_call_operand.vmem [shape: bf16[6144,16], index: 3, kind: output, shape index: {}]  }
   0x1 LB: > { %s2087_s13 = sadd.s32 4294967295, %s2768_s12   ;;  %p2091_p0 = scmp.ge.s32.totalorder %s2768_s12, 1  ;;  %s2768_s12 = sphi %s2791_s12, %s13_s12  }
   0x2   : > { %p138_p1 = scmp.lt.s32.totalorder %s2768_s12, 7 }
   0x4   : > { %p139_p2 = pnand %p2091_p0, %p138_p1 }
   0x5   : > { %s2092_s16 = sshll.u32 (!%p139_p2), %s2087_s13, 7 }
   0x6   : > { %142 = sbr.rel (%p139_p2) target bundleno = 348 (0x15c), region = 32  ;;  %p163_p3 = scmp.lt.s32.totalorder (!%p139_p2), %s2092_s16, 767 }
   0xb   : > { %v2696_v0 = vld [vmem:[%s3343_s1 + $0x8] sm:$0x3f]   ;;  %vm838_vm0 = vcmask 1044480   ;;  %vm839_vm1 = vcmask 1045504   ;;  %v2770_v1 = vmov 65535   ;;  %v2697_v5 = vld [vmem:[%s3343_s1] sm:$0xff]  }
   0xc   : > { %v840_v2 = vsel %vm838_vm0, 4294967295, %v2770_v1  ;;  %s3347_s16 = smov (!%p163_p3, %s2092_s16), 767  ;;  %vm645_vm2 = vcmask 220160   ;;  %vm1902_vm3 = vcmask 125952  }
   0xd   : > { %v841_v3 = vsel %vm839_vm1, %v840_v2, 0  ;;  %s2093_s19 = sshll.u32 %s3347_s16, 2 }
   0xe   : > { %v843_v4 = vand.u32 %v2696_v0, %v841_v3  ;;  %s2813_s22 = scalar_lea.vmem %s3342_s0, %s2093_s19  ;;  %s2955_s27 = scalar_lea.vmem %s3345_s3, %s2093_s19 }
   0xf   : > { %v2698_v6 = vld [vmem:[%s2813_s22] sm:$0xff]   ;;  %v2700_v8 = vld [vmem:[%s2813_s22 + $0x8] sm:$0xff]   ;;  %v2702_v10 = vld [vmem:[%s2813_s22 + $0x10] sm:$0xff]  }
  0x10   : > { %2551 = vmatprep.subr.bf16.mxu0 %v843_v4  ;;  %2683 = vmatprep.subr.bf16.mxu1 %v843_v4  ;;  %v2699_v7 = vld [vmem:[%s2813_s22 + $0x100] sm:$0xff]   ;;  %v2701_v9 = vld [vmem:[%s2813_s22 + $0x108] sm:$0xff]   ;;  %v2703_v11 = vld [vmem:[%s2813_s22 + $0x110] sm:$0xff]  }
  0x11   : > { %2552 = vmatpush3.bf16.msra.mxu0 %v843_v4  ;;  %2685 = vmatpush3.bf16.msra.mxu1 %v843_v4  ;;  %v2704_v12 = vld [vmem:[%s2813_s22 + $0x18] sm:$0xff]   ;;  %v2706_v14 = vld [vmem:[%s2813_s22 + $0x20] sm:$0xff]   ;;  %v2708_v16 = vld [vmem:[%s2813_s22 + $0x28] sm:$0xff]  }
  0x12   : > { %2553 = vmatprep.subr.bf16.mxu0 %v2697_v5  ;;  %2684 = vmatprep.subr.bf16.mxu1 %v2697_v5  ;;  %v2705_v13 = vld [vmem:[%s2813_s22 + $0x118] sm:$0xff]   ;;  %v2707_v15 = vld [vmem:[%s2813_s22 + $0x120] sm:$0xff]   ;;  %v2709_v17 = vld [vmem:[%s2813_s22 + $0x128] sm:$0xff]  }
  0x13   : > { %2555 = vmatprep.mubr.msk.bf16.mxu0 %vm645_vm2, %v2698_v6  ;;  %2619 = vmatprep.mubr.msk.bf16.mxu1 %vm645_vm2, %v2699_v7  ;;  %v2710_v18 = vld [vmem:[%s2813_s22 + $0x30] sm:$0xff]   ;;  %v2712_v20 = vld [vmem:[%s2813_s22 + $0x38] sm:$0xff]   ;;  %v2714_v22 = vld [vmem:[%s2813_s22 + $0x40] sm:$0xff]  }
  0x14   : > { %v2711_v19 = vld [vmem:[%s2813_s22 + $0x130] sm:$0xff]   ;;  %v2713_v21 = vld [vmem:[%s2813_s22 + $0x138] sm:$0xff]   ;;  %v2715_v23 = vld [vmem:[%s2813_s22 + $0x140] sm:$0xff]  }
  0x15   : > { %2554 = vmatpush3.bf16.msra.mxu0 %v2697_v5  ;;  %2686 = vmatpush3.bf16.msra.mxu1 %v2697_v5  ;;  %v2716_v24 = vld [vmem:[%s2813_s22 + $0x48] sm:$0xff]   ;;  %v2718_v26 = vld [vmem:[%s2813_s22 + $0x50] sm:$0xff]   ;;  %v2720_v28 = vld [vmem:[%s2813_s22 + $0x58] sm:$0xff]  }
  0x16   : > { %v2717_v25 = vld [vmem:[%s2813_s22 + $0x148] sm:$0xff]   ;;  %v2719_v27 = vld [vmem:[%s2813_s22 + $0x150] sm:$0xff]   ;;  %v2721_v29 = vld [vmem:[%s2813_s22 + $0x158] sm:$0xff]  }
  0x17   : > { %v2722_v30 = vld [vmem:[%s2813_s22 + $0x60] sm:$0xff]   ;;  %v2724_v32 = vld [vmem:[%s2813_s22 + $0x68] sm:$0xff]   ;;  %v2726_v34 = vld [vmem:[%s2813_s22 + $0x70] sm:$0xff]  }
  0x18   : > { %2556 = vmatmul.mubr.msk.bf16.vlgmr.msra.gmra.mxu0 %vm645_vm2, %v2700_v8  ;;  %2620 = vmatmul.mubr.msk.bf16.vlgmr.msra.gmra.mxu1 %vm645_vm2, %v2701_v9  ;;  %v2723_v31 = vld [vmem:[%s2813_s22 + $0x160] sm:$0xff]   ;;  %v2725_v33 = vld [vmem:[%s2813_s22 + $0x168] sm:$0xff]   ;;  %v2727_v35 = vld [vmem:[%s2813_s22 + $0x170] sm:$0xff]  }
  0x19   : > { %2559 = vmatprep.mubr.msk.bf16.mxu0 %vm645_vm2, %v2702_v10  ;;  %2623 = vmatprep.mubr.msk.bf16.mxu1 %vm645_vm2, %v2703_v11  ;;  %v2728_v36 = vld [vmem:[%s2813_s22 + $0x78] sm:$0xff]   ;;  %v2730_v38 = vld [vmem:[%s2813_s22 + $0x80] sm:$0xff]   ;;  %v2732_v40 = vld [vmem:[%s2813_s22 + $0x88] sm:$0xff]  }
  0x1a   : > { %v2729_v37 = vld [vmem:[%s2813_s22 + $0x178] sm:$0xff]   ;;  %v2731_v39 = vld [vmem:[%s2813_s22 + $0x180] sm:$0xff]   ;;  %v2733_v41 = vld [vmem:[%s2813_s22 + $0x188] sm:$0xff]  }
  0x1b   : > { %v2734_v42 = vld [vmem:[%s2813_s22 + $0x90] sm:$0xff]   ;;  %v2736_v44 = vld [vmem:[%s2813_s22 + $0x98] sm:$0xff]   ;;  %v2738_v46 = vld [vmem:[%s2813_s22 + $0xa0] sm:$0xff]  }
  0x1c   : > { %v2735_v43 = vld [vmem:[%s2813_s22 + $0x190] sm:$0xff]   ;;  %v2737_v45 = vld [vmem:[%s2813_s22 + $0x198] sm:$0xff]   ;;  %v2739_v47 = vld [vmem:[%s2813_s22 + $0x1a0] sm:$0xff]  }
  0x1d   : > { %v2740_v48 = vld [vmem:[%s2813_s22 + $0xa8] sm:$0xff]   ;;  %v2742_v50 = vld [vmem:[%s2813_s22 + $0xb0] sm:$0xff]   ;;  %v2744_v52 = vld [vmem:[%s2813_s22 + $0xb8] sm:$0xff]  }
  0x1e   : > { %v2741_v49 = vld [vmem:[%s2813_s22 + $0x1a8] sm:$0xff]   ;;  %v2743_v51 = vld [vmem:[%s2813_s22 + $0x1b0] sm:$0xff]   ;;  %v2745_v53 = vld [vmem:[%s2813_s22 + $0x1b8] sm:$0xff]  }
  0x1f   : > { %v2746_v54 = vld [vmem:[%s2813_s22 + $0xc0] sm:$0xff]   ;;  %v2748_v56 = vld [vmem:[%s2813_s22 + $0xc8] sm:$0xff]   ;;  %v2750_v58 = vld [vmem:[%s2813_s22 + $0xd0] sm:$0xff]  }
  0x20   : > { %2560 = vmatmul.mubr.msk.bf16.gmra.mxu0 %vm645_vm2, %v2704_v12  ;;  %2624 = vmatmul.mubr.msk.bf16.gmra.mxu1 %vm645_vm2, %v2705_v13  ;;  %v2747_v55 = vld [vmem:[%s2813_s22 + $0x1c0] sm:$0xff]   ;;  %v2749_v57 = vld [vmem:[%s2813_s22 + $0x1c8] sm:$0xff]   ;;  %v2751_v59 = vld [vmem:[%s2813_s22 + $0x1d0] sm:$0xff]  }
  0x21   : > { %2563 = vmatprep.mubr.msk.bf16.mxu0 %vm645_vm2, %v2706_v14  ;;  %2627 = vmatprep.mubr.msk.bf16.mxu1 %vm645_vm2, %v2707_v15  ;;  %v2752_v60 = vld [vmem:[%s2813_s22 + $0xd8] sm:$0xff]   ;;  %v2754_v62 = vld [vmem:[%s2813_s22 + $0xe0] sm:$0xff]   ;;  %v2756_v0 = vld [vmem:[%s2813_s22 + $0xe8] sm:$0xff]  }
  0x22   : > { %v2753_v61 = vld [vmem:[%s2813_s22 + $0x1d8] sm:$0xff]   ;;  %v2755_v63 = vld [vmem:[%s2813_s22 + $0x1e0] sm:$0xff]   ;;  %v2757_v1 = vld [vmem:[%s2813_s22 + $0x1e8] sm:$0xff]  }
  0x23   : > { %v2758_v2 = vld [vmem:[%s2813_s22 + $0xf0] sm:$0xff]   ;;  %v2760_v4 = vld [vmem:[%s2813_s22 + $0xf8] sm:$0xff]   ;;  %v2946_v6 = vld [vmem:[%s3344_s2] ss:$0 sm:$0xff] }
  0x24   : > { %v2759_v3 = vld [vmem:[%s2813_s22 + $0x1f0] sm:$0xff]   ;;  %v2761_v5 = vld [vmem:[%s2813_s22 + $0x1f8] sm:$0xff]  }
  0x28   : > { %2564 = vmatmul.mubr.msk.bf16.gmra.mxu0 %vm645_vm2, %v2708_v16  ;;  %2628 = vmatmul.mubr.msk.bf16.gmra.mxu1 %vm645_vm2, %v2709_v17 }
  0x29   : > { %2567 = vmatprep.mubr.msk.bf16.mxu0 %vm645_vm2, %v2710_v18  ;;  %2631 = vmatprep.mubr.msk.bf16.mxu1 %vm645_vm2, %v2711_v19 }
  0x30   : > { %2568 = vmatmul.mubr.msk.bf16.gmra.mxu0 %vm645_vm2, %v2712_v20  ;;  %2632 = vmatmul.mubr.msk.bf16.gmra.mxu1 %vm645_vm2, %v2713_v21 }
  0x31   : > { %2571 = vmatprep.mubr.msk.bf16.mxu0 %vm645_vm2, %v2714_v22  ;;  %2635 = vmatprep.mubr.msk.bf16.mxu1 %vm645_vm2, %v2715_v23 }
  0x38   : > { %2572 = vmatmul.mubr.msk.bf16.gmra.mxu0 %vm645_vm2, %v2716_v24  ;;  %2636 = vmatmul.mubr.msk.bf16.gmra.mxu1 %vm645_vm2, %v2717_v25 }
  0x39   : > { %2575 = vmatprep.mubr.msk.bf16.mxu0 %vm645_vm2, %v2718_v26  ;;  %2639 = vmatprep.mubr.msk.bf16.mxu1 %vm645_vm2, %v2719_v27 }
  0x40   : > { %2576 = vmatmul.mubr.msk.bf16.gmra.mxu0 %vm645_vm2, %v2720_v28  ;;  %2640 = vmatmul.mubr.msk.bf16.gmra.mxu1 %vm645_vm2, %v2721_v29 }
  0x41   : > { %2579 = vmatprep.mubr.msk.bf16.mxu0 %vm645_vm2, %v2722_v30  ;;  %2643 = vmatprep.mubr.msk.bf16.mxu1 %vm645_vm2, %v2723_v31 }
  0x48   : > { %2580 = vmatmul.mubr.msk.bf16.gmra.mxu0 %vm645_vm2, %v2724_v32  ;;  %2644 = vmatmul.mubr.msk.bf16.gmra.mxu1 %vm645_vm2, %v2725_v33 }
  0x49   : > { %2583 = vmatprep.mubr.msk.bf16.mxu0 %vm645_vm2, %v2726_v34  ;;  %2647 = vmatprep.mubr.msk.bf16.mxu1 %vm645_vm2, %v2727_v35 }
  0x50   : > { %2584 = vmatmul.mubr.msk.bf16.gmra.mxu0 %vm645_vm2, %v2728_v36  ;;  %2648 = vmatmul.mubr.msk.bf16.gmra.mxu1 %vm645_vm2, %v2729_v37 }
  0x51   : > { %2587 = vmatprep.mubr.msk.bf16.mxu0 %vm645_vm2, %v2730_v38  ;;  %2651 = vmatprep.mubr.msk.bf16.mxu1 %vm645_vm2, %v2731_v39 }
  0x58   : > { %2588 = vmatmul.mubr.msk.bf16.gmra.mxu0 %vm645_vm2, %v2732_v40  ;;  %2652 = vmatmul.mubr.msk.bf16.gmra.mxu1 %vm645_vm2, %v2733_v41 }
  0x59   : > { %2591 = vmatprep.mubr.msk.bf16.mxu0 %vm645_vm2, %v2734_v42  ;;  %2655 = vmatprep.mubr.msk.bf16.mxu1 %vm645_vm2, %v2735_v43 }
  0x60   : > { %2592 = vmatmul.mubr.msk.bf16.gmra.mxu0 %vm645_vm2, %v2736_v44  ;;  %2656 = vmatmul.mubr.msk.bf16.gmra.mxu1 %vm645_vm2, %v2737_v45 }
  0x61   : > { %2595 = vmatprep.mubr.msk.bf16.mxu0 %vm645_vm2, %v2738_v46  ;;  %2659 = vmatprep.mubr.msk.bf16.mxu1 %vm645_vm2, %v2739_v47 }
  0x68   : > { %2596 = vmatmul.mubr.msk.bf16.gmra.mxu0 %vm645_vm2, %v2740_v48  ;;  %2660 = vmatmul.mubr.msk.bf16.gmra.mxu1 %vm645_vm2, %v2741_v49 }
  0x69   : > { %2599 = vmatprep.mubr.msk.bf16.mxu0 %vm645_vm2, %v2742_v50  ;;  %2663 = vmatprep.mubr.msk.bf16.mxu1 %vm645_vm2, %v2743_v51 }
  0x70   : > { %2600 = vmatmul.mubr.msk.bf16.gmra.mxu0 %vm645_vm2, %v2744_v52  ;;  %2664 = vmatmul.mubr.msk.bf16.gmra.mxu1 %vm645_vm2, %v2745_v53 }
  0x71   : > { %2603 = vmatprep.mubr.msk.bf16.mxu0 %vm645_vm2, %v2746_v54  ;;  %2667 = vmatprep.mubr.msk.bf16.mxu1 %vm645_vm2, %v2747_v55 }
  0x78   : > { %2604 = vmatmul.mubr.msk.bf16.gmra.mxu0 %vm645_vm2, %v2748_v56  ;;  %2668 = vmatmul.mubr.msk.bf16.gmra.mxu1 %vm645_vm2, %v2749_v57 }
  0x79   : > { %2607 = vmatprep.mubr.msk.bf16.mxu0 %vm645_vm2, %v2750_v58  ;;  %2671 = vmatprep.mubr.msk.bf16.mxu1 %vm645_vm2, %v2751_v59 }
  0x80   : > { %2608 = vmatmul.mubr.msk.bf16.gmra.mxu0 %vm645_vm2, %v2752_v60  ;;  %2672 = vmatmul.mubr.msk.bf16.gmra.mxu1 %vm645_vm2, %v2753_v61 }
  0x81   : > { %2611 = vmatprep.mubr.msk.bf16.mxu0 %vm645_vm2, %v2754_v62  ;;  %2675 = vmatprep.mubr.msk.bf16.mxu1 %vm645_vm2, %v2755_v63 }
  0x88   : > { %2612 = vmatmul.mubr.msk.bf16.gmra.mxu0 %vm645_vm2, %v2756_v0  ;;  %2676 = vmatmul.mubr.msk.bf16.gmra.mxu1 %vm645_vm2, %v2757_v1 }
  0x89   : > { %2615 = vmatprep.mubr.msk.bf16.mxu0 %vm645_vm2, %v2758_v2  ;;  %2679 = vmatprep.mubr.msk.bf16.mxu1 %vm645_vm2, %v2759_v3 }
  0x90   : > { %2616 = vmatmul.mubr.msk.bf16.gmra.mxu0 %vm645_vm2, %v2760_v4  ;;  %2680 = vmatmul.mubr.msk.bf16.gmra.mxu1 %vm645_vm2, %v2761_v5 }
  0xd8   : > { %v2557_v7 = vpop.f32.mrf.mxu0  ;;  %v2621_v8 = vpop.f32.mrf.mxu1 }
  0xd9   : > { %v888_v9 = vadd.f32 %v2557_v7, %v2946_v6  ;;  %v1144_v10 = vadd.f32 %v2621_v8, %v2946_v6 }
  0xda   : > { %v879_v11 = vpop.f32.mrf.mxu0  ;;  %v1135_v12 = vpop.f32.mrf.mxu1 }
  0xdb   : > { %v2359_v13 = vpack.c.bf16 %v888_v9, %v888_v9  ;;  %v2423_v14 = vpack.c.bf16 %v1144_v10, %v1144_v10  ;;  %v880_v15 = vadd.f32 %v2946_v6, %v879_v11  ;;  %v1136_v16 = vadd.f32 %v2946_v6, %v1135_v12 }
  0xdc   : > { %v2558_v17 = vpop.f32.mrf.mxu0  ;;  %v2622_v18 = vpop.f32.mrf.mxu1 }
  0xdd   : > { %1905 = vst.msk [vmem:[%s2955_s27 + $0x8] sm:$0xf] %vm1902_vm3, %v2359_v13  ;;  %1969 = vst.msk [vmem:[%s2955_s27 + $0x108] sm:$0xf] %vm1902_vm3, %v2423_v14  ;;  %v2357_v19 = vpack.c.bf16 %v880_v15, %v880_v15  ;;  %v2421_v20 = vpack.c.bf16 %v1136_v16, %v1136_v16  ;;  %v891_v21 = vadd.f32 %v2558_v17, %v2946_v6 }
  0xde   : > { %v1147_v22 = vadd.f32 %v2622_v18, %v2946_v6  ;;  %v882_v23 = vpop.f32.mrf.mxu0  ;;  %v1138_v24 = vpop.f32.mrf.mxu1 }
  0xdf   : > { %1903 = vst.msk [vmem:[%s2955_s27] sm:$0xf] %vm1902_vm3, %v2357_v19  ;;  %1967 = vst.msk [vmem:[%s2955_s27 + $0x100] sm:$0xf] %vm1902_vm3, %v2421_v20  ;;  %v2360_v25 = vpack.c.bf16 %v891_v21, %v891_v21  ;;  %v883_v27 = vadd.f32 %v2946_v6, %v882_v23  ;;  %v1139_v28 = vadd.f32 %v2946_v6, %v1138_v24 }
  0xe0   : > { %v2424_v26 = vpack.c.bf16 %v1147_v22, %v1147_v22  ;;  %v2561_v29 = vpop.f32.mrf.mxu0  ;;  %v2625_v30 = vpop.f32.mrf.mxu1 }
  0xe1   : > { %1906 = vst.msk [vmem:[%s2955_s27 + $0xc] sm:$0xf] %vm1902_vm3, %v2360_v25  ;;  %v2358_v31 = vpack.c.bf16 %v883_v27, %v883_v27  ;;  %v2422_v32 = vpack.c.bf16 %v1139_v28, %v1139_v28  ;;  %v904_v33 = vadd.f32 %v2561_v29, %v2946_v6  ;;  %v1160_v34 = vadd.f32 %v2625_v30, %v2946_v6 }
  0xe2   : > { %1970 = vst.msk [vmem:[%s2955_s27 + $0x10c] sm:$0xf] %vm1902_vm3, %v2424_v26  ;;  %v895_v35 = vpop.f32.mrf.mxu0  ;;  %v1151_v36 = vpop.f32.mrf.mxu1 }
  0xe3   : > { %1904 = vst.msk [vmem:[%s2955_s27 + $0x4] sm:$0xf] %vm1902_vm3, %v2358_v31  ;;  %1968 = vst.msk [vmem:[%s2955_s27 + $0x104] sm:$0xf] %vm1902_vm3, %v2422_v32  ;;  %v2363_v37 = vpack.c.bf16 %v904_v33, %v904_v33  ;;  %v2427_v38 = vpack.c.bf16 %v1160_v34, %v1160_v34  ;;  %v896_v39 = vadd.f32 %v2946_v6, %v895_v35 }
  0xe4   : > { %v1152_v40 = vadd.f32 %v2946_v6, %v1151_v36  ;;  %v2562_v41 = vpop.f32.mrf.mxu0  ;;  %v2626_v42 = vpop.f32.mrf.mxu1 }
  0xe5   : > { %1909 = vst.msk [vmem:[%s2955_s27 + $0x18] sm:$0xf] %vm1902_vm3, %v2363_v37  ;;  %1973 = vst.msk [vmem:[%s2955_s27 + $0x118] sm:$0xf] %vm1902_vm3, %v2427_v38  ;;  %v2361_v43 = vpack.c.bf16 %v896_v39, %v896_v39  ;;  %v907_v45 = vadd.f32 %v2562_v41, %v2946_v6  ;;  %v1163_v46 = vadd.f32 %v2626_v42, %v2946_v6 }
  0xe6   : > { %v2425_v44 = vpack.c.bf16 %v1152_v40, %v1152_v40  ;;  %v898_v47 = vpop.f32.mrf.mxu0  ;;  %v1154_v48 = vpop.f32.mrf.mxu1 }
  0xe7   : > { %1907 = vst.msk [vmem:[%s2955_s27 + $0x10] sm:$0xf] %vm1902_vm3, %v2361_v43  ;;  %v2364_v49 = vpack.c.bf16 %v907_v45, %v907_v45  ;;  %v2428_v50 = vpack.c.bf16 %v1163_v46, %v1163_v46  ;;  %v899_v51 = vadd.f32 %v2946_v6, %v898_v47  ;;  %v1155_v52 = vadd.f32 %v2946_v6, %v1154_v48 }
  0xe8   : > { %1971 = vst.msk [vmem:[%s2955_s27 + $0x110] sm:$0xf] %vm1902_vm3, %v2425_v44  ;;  %v2565_v53 = vpop.f32.mrf.mxu0  ;;  %v2629_v54 = vpop.f32.mrf.mxu1 }
  0xe9   : > { %1910 = vst.msk [vmem:[%s2955_s27 + $0x1c] sm:$0xf] %vm1902_vm3, %v2364_v49  ;;  %1974 = vst.msk [vmem:[%s2955_s27 + $0x11c] sm:$0xf] %vm1902_vm3, %v2428_v50  ;;  %v2362_v55 = vpack.c.bf16 %v899_v51, %v899_v51  ;;  %v2426_v56 = vpack.c.bf16 %v1155_v52, %v1155_v52  ;;  %v920_v57 = vadd.f32 %v2565_v53, %v2946_v6 }
  0xea   : > { %v1176_v58 = vadd.f32 %v2629_v54, %v2946_v6  ;;  %v911_v59 = vpop.f32.mrf.mxu0  ;;  %v1167_v60 = vpop.f32.mrf.mxu1 }
  0xeb   : > { %1908 = vst.msk [vmem:[%s2955_s27 + $0x14] sm:$0xf] %vm1902_vm3, %v2362_v55  ;;  %1972 = vst.msk [vmem:[%s2955_s27 + $0x114] sm:$0xf] %vm1902_vm3, %v2426_v56  ;;  %v2367_v61 = vpack.c.bf16 %v920_v57, %v920_v57  ;;  %v912_v63 = vadd.f32 %v2946_v6, %v911_v59  ;;  %v1168_v0 = vadd.f32 %v2946_v6, %v1167_v60 }
  0xec   : > { %v2431_v62 = vpack.c.bf16 %v1176_v58, %v1176_v58  ;;  %v2566_v1 = vpop.f32.mrf.mxu0  ;;  %v2630_v2 = vpop.f32.mrf.mxu1 }
  0xed   : > { %1913 = vst.msk [vmem:[%s2955_s27 + $0x28] sm:$0xf] %vm1902_vm3, %v2367_v61  ;;  %v2365_v3 = vpack.c.bf16 %v912_v63, %v912_v63  ;;  %v2429_v4 = vpack.c.bf16 %v1168_v0, %v1168_v0  ;;  %v923_v5 = vadd.f32 %v2566_v1, %v2946_v6  ;;  %v1179_v7 = vadd.f32 %v2630_v2, %v2946_v6 }
  0xee   : > { %1977 = vst.msk [vmem:[%s2955_s27 + $0x128] sm:$0xf] %vm1902_vm3, %v2431_v62  ;;  %v914_v8 = vpop.f32.mrf.mxu0  ;;  %v1170_v9 = vpop.f32.mrf.mxu1 }
  0xef   : > { %1911 = vst.msk [vmem:[%s2955_s27 + $0x20] sm:$0xf] %vm1902_vm3, %v2365_v3  ;;  %1975 = vst.msk [vmem:[%s2955_s27 + $0x120] sm:$0xf] %vm1902_vm3, %v2429_v4  ;;  %v2368_v10 = vpack.c.bf16 %v923_v5, %v923_v5  ;;  %v2432_v11 = vpack.c.bf16 %v1179_v7, %v1179_v7  ;;  %v915_v12 = vadd.f32 %v2946_v6, %v914_v8 }
  0xf0   : > { %v1171_v13 = vadd.f32 %v2946_v6, %v1170_v9  ;;  %v2569_v14 = vpop.f32.mrf.mxu0  ;;  %v2633_v15 = vpop.f32.mrf.mxu1 }
  0xf1   : > { %1914 = vst.msk [vmem:[%s2955_s27 + $0x2c] sm:$0xf] %vm1902_vm3, %v2368_v10  ;;  %1978 = vst.msk [vmem:[%s2955_s27 + $0x12c] sm:$0xf] %vm1902_vm3, %v2432_v11  ;;  %v2366_v16 = vpack.c.bf16 %v915_v12, %v915_v12  ;;  %v936_v18 = vadd.f32 %v2569_v14, %v2946_v6  ;;  %v1192_v19 = vadd.f32 %v2633_v15, %v2946_v6 }
  0xf2   : > { %v2430_v17 = vpack.c.bf16 %v1171_v13, %v1171_v13  ;;  %v927_v20 = vpop.f32.mrf.mxu0  ;;  %v1183_v21 = vpop.f32.mrf.mxu1 }
  0xf3   : > { %1912 = vst.msk [vmem:[%s2955_s27 + $0x24] sm:$0xf] %vm1902_vm3, %v2366_v16  ;;  %v2371_v22 = vpack.c.bf16 %v936_v18, %v936_v18  ;;  %v2435_v23 = vpack.c.bf16 %v1192_v19, %v1192_v19  ;;  %v928_v24 = vadd.f32 %v2946_v6, %v927_v20  ;;  %v1184_v25 = vadd.f32 %v2946_v6, %v1183_v21 }
  0xf4   : > { %1976 = vst.msk [vmem:[%s2955_s27 + $0x124] sm:$0xf] %vm1902_vm3, %v2430_v17  ;;  %v2570_v26 = vpop.f32.mrf.mxu0  ;;  %v2634_v27 = vpop.f32.mrf.mxu1 }
  0xf5   : > { %1917 = vst.msk [vmem:[%s2955_s27 + $0x38] sm:$0xf] %vm1902_vm3, %v2371_v22  ;;  %1981 = vst.msk [vmem:[%s2955_s27 + $0x138] sm:$0xf] %vm1902_vm3, %v2435_v23  ;;  %v2369_v28 = vpack.c.bf16 %v928_v24, %v928_v24  ;;  %v2433_v29 = vpack.c.bf16 %v1184_v25, %v1184_v25  ;;  %v939_v30 = vadd.f32 %v2570_v26, %v2946_v6 }
  0xf6   : > { %v1195_v31 = vadd.f32 %v2634_v27, %v2946_v6  ;;  %v930_v32 = vpop.f32.mrf.mxu0  ;;  %v1186_v33 = vpop.f32.mrf.mxu1 }
  0xf7   : > { %1915 = vst.msk [vmem:[%s2955_s27 + $0x30] sm:$0xf] %vm1902_vm3, %v2369_v28  ;;  %1979 = vst.msk [vmem:[%s2955_s27 + $0x130] sm:$0xf] %vm1902_vm3, %v2433_v29  ;;  %v2372_v34 = vpack.c.bf16 %v939_v30, %v939_v30  ;;  %v931_v36 = vadd.f32 %v2946_v6, %v930_v32  ;;  %v1187_v37 = vadd.f32 %v2946_v6, %v1186_v33 }
  0xf8   : > { %v2436_v35 = vpack.c.bf16 %v1195_v31, %v1195_v31  ;;  %v2573_v38 = vpop.f32.mrf.mxu0  ;;  %v2637_v39 = vpop.f32.mrf.mxu1 }
  0xf9   : > { %1918 = vst.msk [vmem:[%s2955_s27 + $0x3c] sm:$0xf] %vm1902_vm3, %v2372_v34  ;;  %v2370_v40 = vpack.c.bf16 %v931_v36, %v931_v36  ;;  %v2434_v41 = vpack.c.bf16 %v1187_v37, %v1187_v37  ;;  %v952_v42 = vadd.f32 %v2573_v38, %v2946_v6  ;;  %v1208_v43 = vadd.f32 %v2637_v39, %v2946_v6 }
  0xfa   : > { %1982 = vst.msk [vmem:[%s2955_s27 + $0x13c] sm:$0xf] %vm1902_vm3, %v2436_v35  ;;  %v943_v44 = vpop.f32.mrf.mxu0  ;;  %v1199_v45 = vpop.f32.mrf.mxu1 }
  0xfb   : > { %1916 = vst.msk [vmem:[%s2955_s27 + $0x34] sm:$0xf] %vm1902_vm3, %v2370_v40  ;;  %1980 = vst.msk [vmem:[%s2955_s27 + $0x134] sm:$0xf] %vm1902_vm3, %v2434_v41  ;;  %v2375_v46 = vpack.c.bf16 %v952_v42, %v952_v42  ;;  %v2439_v47 = vpack.c.bf16 %v1208_v43, %v1208_v43  ;;  %v944_v48 = vadd.f32 %v2946_v6, %v943_v44 }
  0xfc   : > { %v1200_v49 = vadd.f32 %v2946_v6, %v1199_v45  ;;  %v2574_v50 = vpop.f32.mrf.mxu0  ;;  %v2638_v51 = vpop.f32.mrf.mxu1 }
  0xfd   : > { %1921 = vst.msk [vmem:[%s2955_s27 + $0x48] sm:$0xf] %vm1902_vm3, %v2375_v46  ;;  %1985 = vst.msk [vmem:[%s2955_s27 + $0x148] sm:$0xf] %vm1902_vm3, %v2439_v47  ;;  %v2373_v52 = vpack.c.bf16 %v944_v48, %v944_v48  ;;  %v955_v54 = vadd.f32 %v2574_v50, %v2946_v6  ;;  %v1211_v55 = vadd.f32 %v2638_v51, %v2946_v6 }
  0xfe   : > { %v2437_v53 = vpack.c.bf16 %v1200_v49, %v1200_v49  ;;  %v946_v56 = vpop.f32.mrf.mxu0  ;;  %v1202_v57 = vpop.f32.mrf.mxu1 }
  0xff   : > { %1919 = vst.msk [vmem:[%s2955_s27 + $0x40] sm:$0xf] %vm1902_vm3, %v2373_v52  ;;  %v2376_v58 = vpack.c.bf16 %v955_v54, %v955_v54  ;;  %v2440_v59 = vpack.c.bf16 %v1211_v55, %v1211_v55  ;;  %v947_v60 = vadd.f32 %v2946_v6, %v946_v56  ;;  %v1203_v61 = vadd.f32 %v2946_v6, %v1202_v57 }
 0x100   : > { %1983 = vst.msk [vmem:[%s2955_s27 + $0x140] sm:$0xf] %vm1902_vm3, %v2437_v53  ;;  %v2577_v62 = vpop.f32.mrf.mxu0  ;;  %v2641_v63 = vpop.f32.mrf.mxu1 }
 0x101   : > { %1922 = vst.msk [vmem:[%s2955_s27 + $0x4c] sm:$0xf] %vm1902_vm3, %v2376_v58  ;;  %1986 = vst.msk [vmem:[%s2955_s27 + $0x14c] sm:$0xf] %vm1902_vm3, %v2440_v59  ;;  %v2374_v0 = vpack.c.bf16 %v947_v60, %v947_v60  ;;  %v2438_v1 = vpack.c.bf16 %v1203_v61, %v1203_v61  ;;  %v968_v2 = vadd.f32 %v2577_v62, %v2946_v6 }
 0x102   : > { %v1224_v3 = vadd.f32 %v2641_v63, %v2946_v6  ;;  %v959_v4 = vpop.f32.mrf.mxu0  ;;  %v1215_v5 = vpop.f32.mrf.mxu1 }
 0x103   : > { %1920 = vst.msk [vmem:[%s2955_s27 + $0x44] sm:$0xf] %vm1902_vm3, %v2374_v0  ;;  %1984 = vst.msk [vmem:[%s2955_s27 + $0x144] sm:$0xf] %vm1902_vm3, %v2438_v1  ;;  %v2379_v7 = vpack.c.bf16 %v968_v2, %v968_v2  ;;  %v960_v9 = vadd.f32 %v2946_v6, %v959_v4  ;;  %v1216_v10 = vadd.f32 %v2946_v6, %v1215_v5 }
 0x104   : > { %v2443_v8 = vpack.c.bf16 %v1224_v3, %v1224_v3  ;;  %v2578_v11 = vpop.f32.mrf.mxu0  ;;  %v2642_v12 = vpop.f32.mrf.mxu1 }
 0x105   : > { %1925 = vst.msk [vmem:[%s2955_s27 + $0x58] sm:$0xf] %vm1902_vm3, %v2379_v7  ;;  %v2377_v13 = vpack.c.bf16 %v960_v9, %v960_v9  ;;  %v2441_v14 = vpack.c.bf16 %v1216_v10, %v1216_v10  ;;  %v971_v15 = vadd.f32 %v2578_v11, %v2946_v6  ;;  %v1227_v16 = vadd.f32 %v2642_v12, %v2946_v6 }
 0x106   : > { %1989 = vst.msk [vmem:[%s2955_s27 + $0x158] sm:$0xf] %vm1902_vm3, %v2443_v8  ;;  %v962_v17 = vpop.f32.mrf.mxu0  ;;  %v1218_v18 = vpop.f32.mrf.mxu1 }
 0x107   : > { %1923 = vst.msk [vmem:[%s2955_s27 + $0x50] sm:$0xf] %vm1902_vm3, %v2377_v13  ;;  %1987 = vst.msk [vmem:[%s2955_s27 + $0x150] sm:$0xf] %vm1902_vm3, %v2441_v14  ;;  %v2380_v19 = vpack.c.bf16 %v971_v15, %v971_v15  ;;  %v2444_v20 = vpack.c.bf16 %v1227_v16, %v1227_v16  ;;  %v963_v21 = vadd.f32 %v2946_v6, %v962_v17 }
 0x108   : > { %v1219_v22 = vadd.f32 %v2946_v6, %v1218_v18  ;;  %v2581_v23 = vpop.f32.mrf.mxu0  ;;  %v2645_v24 = vpop.f32.mrf.mxu1 }
 0x109   : > { %1926 = vst.msk [vmem:[%s2955_s27 + $0x5c] sm:$0xf] %vm1902_vm3, %v2380_v19  ;;  %1990 = vst.msk [vmem:[%s2955_s27 + $0x15c] sm:$0xf] %vm1902_vm3, %v2444_v20  ;;  %v2378_v25 = vpack.c.bf16 %v963_v21, %v963_v21  ;;  %v984_v27 = vadd.f32 %v2581_v23, %v2946_v6  ;;  %v1240_v28 = vadd.f32 %v2645_v24, %v2946_v6 }
 0x10a   : > { %v2442_v26 = vpack.c.bf16 %v1219_v22, %v1219_v22  ;;  %v975_v29 = vpop.f32.mrf.mxu0  ;;  %v1231_v30 = vpop.f32.mrf.mxu1 }
 0x10b   : > { %1924 = vst.msk [vmem:[%s2955_s27 + $0x54] sm:$0xf] %vm1902_vm3, %v2378_v25  ;;  %v2383_v31 = vpack.c.bf16 %v984_v27, %v984_v27  ;;  %v2447_v32 = vpack.c.bf16 %v1240_v28, %v1240_v28  ;;  %v976_v33 = vadd.f32 %v2946_v6, %v975_v29  ;;  %v1232_v34 = vadd.f32 %v2946_v6, %v1231_v30 }
 0x10c   : > { %1988 = vst.msk [vmem:[%s2955_s27 + $0x154] sm:$0xf] %vm1902_vm3, %v2442_v26  ;;  %v2582_v35 = vpop.f32.mrf.mxu0  ;;  %v2646_v36 = vpop.f32.mrf.mxu1 }
 0x10d   : > { %1929 = vst.msk [vmem:[%s2955_s27 + $0x68] sm:$0xf] %vm1902_vm3, %v2383_v31  ;;  %1993 = vst.msk [vmem:[%s2955_s27 + $0x168] sm:$0xf] %vm1902_vm3, %v2447_v32  ;;  %v2381_v37 = vpack.c.bf16 %v976_v33, %v976_v33  ;;  %v2445_v38 = vpack.c.bf16 %v1232_v34, %v1232_v34  ;;  %v987_v39 = vadd.f32 %v2582_v35, %v2946_v6 }
 0x10e   : > { %v1243_v40 = vadd.f32 %v2646_v36, %v2946_v6  ;;  %v978_v41 = vpop.f32.mrf.mxu0  ;;  %v1234_v42 = vpop.f32.mrf.mxu1 }
 0x10f   : > { %1927 = vst.msk [vmem:[%s2955_s27 + $0x60] sm:$0xf] %vm1902_vm3, %v2381_v37  ;;  %1991 = vst.msk [vmem:[%s2955_s27 + $0x160] sm:$0xf] %vm1902_vm3, %v2445_v38  ;;  %v2384_v43 = vpack.c.bf16 %v987_v39, %v987_v39  ;;  %v979_v45 = vadd.f32 %v2946_v6, %v978_v41  ;;  %v1235_v46 = vadd.f32 %v2946_v6, %v1234_v42 }
 0x110   : > { %v2448_v44 = vpack.c.bf16 %v1243_v40, %v1243_v40  ;;  %v2585_v47 = vpop.f32.mrf.mxu0  ;;  %v2649_v48 = vpop.f32.mrf.mxu1 }
 0x111   : > { %1930 = vst.msk [vmem:[%s2955_s27 + $0x6c] sm:$0xf] %vm1902_vm3, %v2384_v43  ;;  %v2382_v49 = vpack.c.bf16 %v979_v45, %v979_v45  ;;  %v2446_v50 = vpack.c.bf16 %v1235_v46, %v1235_v46  ;;  %v1000_v51 = vadd.f32 %v2585_v47, %v2946_v6  ;;  %v1256_v52 = vadd.f32 %v2649_v48, %v2946_v6 }
 0x112   : > { %1994 = vst.msk [vmem:[%s2955_s27 + $0x16c] sm:$0xf] %vm1902_vm3, %v2448_v44  ;;  %v991_v53 = vpop.f32.mrf.mxu0  ;;  %v1247_v54 = vpop.f32.mrf.mxu1 }
 0x113   : > { %1928 = vst.msk [vmem:[%s2955_s27 + $0x64] sm:$0xf] %vm1902_vm3, %v2382_v49  ;;  %1992 = vst.msk [vmem:[%s2955_s27 + $0x164] sm:$0xf] %vm1902_vm3, %v2446_v50  ;;  %v2387_v55 = vpack.c.bf16 %v1000_v51, %v1000_v51  ;;  %v2451_v56 = vpack.c.bf16 %v1256_v52, %v1256_v52  ;;  %v992_v57 = vadd.f32 %v2946_v6, %v991_v53 }
 0x114   : > { %v1248_v58 = vadd.f32 %v2946_v6, %v1247_v54  ;;  %v2586_v59 = vpop.f32.mrf.mxu0  ;;  %v2650_v60 = vpop.f32.mrf.mxu1 }
 0x115   : > { %1933 = vst.msk [vmem:[%s2955_s27 + $0x78] sm:$0xf] %vm1902_vm3, %v2387_v55  ;;  %1997 = vst.msk [vmem:[%s2955_s27 + $0x178] sm:$0xf] %vm1902_vm3, %v2451_v56  ;;  %v2385_v61 = vpack.c.bf16 %v992_v57, %v992_v57  ;;  %v1003_v63 = vadd.f32 %v2586_v59, %v2946_v6  ;;  %v1259_v0 = vadd.f32 %v2650_v60, %v2946_v6 }
 0x116   : > { %v2449_v62 = vpack.c.bf16 %v1248_v58, %v1248_v58  ;;  %v994_v1 = vpop.f32.mrf.mxu0  ;;  %v1250_v2 = vpop.f32.mrf.mxu1 }
 0x117   : > { %1931 = vst.msk [vmem:[%s2955_s27 + $0x70] sm:$0xf] %vm1902_vm3, %v2385_v61  ;;  %v2388_v3 = vpack.c.bf16 %v1003_v63, %v1003_v63  ;;  %v2452_v4 = vpack.c.bf16 %v1259_v0, %v1259_v0  ;;  %v995_v5 = vadd.f32 %v2946_v6, %v994_v1  ;;  %v1251_v7 = vadd.f32 %v2946_v6, %v1250_v2 }
 0x118   : > { %1995 = vst.msk [vmem:[%s2955_s27 + $0x170] sm:$0xf] %vm1902_vm3, %v2449_v62  ;;  %v2589_v8 = vpop.f32.mrf.mxu0  ;;  %v2653_v9 = vpop.f32.mrf.mxu1 }
 0x119   : > { %1934 = vst.msk [vmem:[%s2955_s27 + $0x7c] sm:$0xf] %vm1902_vm3, %v2388_v3  ;;  %1998 = vst.msk [vmem:[%s2955_s27 + $0x17c] sm:$0xf] %vm1902_vm3, %v2452_v4  ;;  %v2386_v10 = vpack.c.bf16 %v995_v5, %v995_v5  ;;  %v2450_v11 = vpack.c.bf16 %v1251_v7, %v1251_v7  ;;  %v1016_v12 = vadd.f32 %v2589_v8, %v2946_v6 }
 0x11a   : > { %v1272_v13 = vadd.f32 %v2653_v9, %v2946_v6  ;;  %v1007_v14 = vpop.f32.mrf.mxu0  ;;  %v1263_v15 = vpop.f32.mrf.mxu1 }
 0x11b   : > { %1932 = vst.msk [vmem:[%s2955_s27 + $0x74] sm:$0xf] %vm1902_vm3, %v2386_v10  ;;  %1996 = vst.msk [vmem:[%s2955_s27 + $0x174] sm:$0xf] %vm1902_vm3, %v2450_v11  ;;  %v2391_v16 = vpack.c.bf16 %v1016_v12, %v1016_v12  ;;  %v1008_v18 = vadd.f32 %v2946_v6, %v1007_v14  ;;  %v1264_v19 = vadd.f32 %v2946_v6, %v1263_v15 }
 0x11c   : > { %v2455_v17 = vpack.c.bf16 %v1272_v13, %v1272_v13  ;;  %v2590_v20 = vpop.f32.mrf.mxu0  ;;  %v2654_v21 = vpop.f32.mrf.mxu1 }
 0x11d   : > { %1937 = vst.msk [vmem:[%s2955_s27 + $0x88] sm:$0xf] %vm1902_vm3, %v2391_v16  ;;  %v2389_v22 = vpack.c.bf16 %v1008_v18, %v1008_v18  ;;  %v2453_v23 = vpack.c.bf16 %v1264_v19, %v1264_v19  ;;  %v1019_v24 = vadd.f32 %v2590_v20, %v2946_v6  ;;  %v1275_v25 = vadd.f32 %v2654_v21, %v2946_v6 }
 0x11e   : > { %2001 = vst.msk [vmem:[%s2955_s27 + $0x188] sm:$0xf] %vm1902_vm3, %v2455_v17  ;;  %v1010_v26 = vpop.f32.mrf.mxu0  ;;  %v1266_v27 = vpop.f32.mrf.mxu1 }
 0x11f   : > { %1935 = vst.msk [vmem:[%s2955_s27 + $0x80] sm:$0xf] %vm1902_vm3, %v2389_v22  ;;  %1999 = vst.msk [vmem:[%s2955_s27 + $0x180] sm:$0xf] %vm1902_vm3, %v2453_v23  ;;  %v2392_v28 = vpack.c.bf16 %v1019_v24, %v1019_v24  ;;  %v2456_v29 = vpack.c.bf16 %v1275_v25, %v1275_v25  ;;  %v1011_v30 = vadd.f32 %v2946_v6, %v1010_v26 }
 0x120   : > { %v1267_v31 = vadd.f32 %v2946_v6, %v1266_v27  ;;  %v2593_v32 = vpop.f32.mrf.mxu0  ;;  %v2657_v33 = vpop.f32.mrf.mxu1 }
 0x121   : > { %1938 = vst.msk [vmem:[%s2955_s27 + $0x8c] sm:$0xf] %vm1902_vm3, %v2392_v28  ;;  %2002 = vst.msk [vmem:[%s2955_s27 + $0x18c] sm:$0xf] %vm1902_vm3, %v2456_v29  ;;  %v2390_v34 = vpack.c.bf16 %v1011_v30, %v1011_v30  ;;  %v1032_v36 = vadd.f32 %v2593_v32, %v2946_v6  ;;  %v1288_v37 = vadd.f32 %v2657_v33, %v2946_v6 }
 0x122   : > { %v2454_v35 = vpack.c.bf16 %v1267_v31, %v1267_v31  ;;  %v1023_v38 = vpop.f32.mrf.mxu0  ;;  %v1279_v39 = vpop.f32.mrf.mxu1 }
 0x123   : > { %1936 = vst.msk [vmem:[%s2955_s27 + $0x84] sm:$0xf] %vm1902_vm3, %v2390_v34  ;;  %v2395_v40 = vpack.c.bf16 %v1032_v36, %v1032_v36  ;;  %v2459_v41 = vpack.c.bf16 %v1288_v37, %v1288_v37  ;;  %v1024_v42 = vadd.f32 %v2946_v6, %v1023_v38  ;;  %v1280_v43 = vadd.f32 %v2946_v6, %v1279_v39 }
 0x124   : > { %2000 = vst.msk [vmem:[%s2955_s27 + $0x184] sm:$0xf] %vm1902_vm3, %v2454_v35  ;;  %v2594_v44 = vpop.f32.mrf.mxu0  ;;  %v2658_v45 = vpop.f32.mrf.mxu1 }
 0x125   : > { %1941 = vst.msk [vmem:[%s2955_s27 + $0x98] sm:$0xf] %vm1902_vm3, %v2395_v40  ;;  %2005 = vst.msk [vmem:[%s2955_s27 + $0x198] sm:$0xf] %vm1902_vm3, %v2459_v41  ;;  %v2393_v46 = vpack.c.bf16 %v1024_v42, %v1024_v42  ;;  %v2457_v47 = vpack.c.bf16 %v1280_v43, %v1280_v43  ;;  %v1035_v48 = vadd.f32 %v2594_v44, %v2946_v6 }
 0x126   : > { %v1291_v49 = vadd.f32 %v2658_v45, %v2946_v6  ;;  %v1026_v50 = vpop.f32.mrf.mxu0  ;;  %v1282_v51 = vpop.f32.mrf.mxu1 }
 0x127   : > { %1939 = vst.msk [vmem:[%s2955_s27 + $0x90] sm:$0xf] %vm1902_vm3, %v2393_v46  ;;  %2003 = vst.msk [vmem:[%s2955_s27 + $0x190] sm:$0xf] %vm1902_vm3, %v2457_v47  ;;  %v2396_v52 = vpack.c.bf16 %v1035_v48, %v1035_v48  ;;  %v1027_v54 = vadd.f32 %v2946_v6, %v1026_v50  ;;  %v1283_v55 = vadd.f32 %v2946_v6, %v1282_v51 }
 0x128   : > { %v2460_v53 = vpack.c.bf16 %v1291_v49, %v1291_v49  ;;  %v2597_v56 = vpop.f32.mrf.mxu0  ;;  %v2661_v57 = vpop.f32.mrf.mxu1 }
 0x129   : > { %1942 = vst.msk [vmem:[%s2955_s27 + $0x9c] sm:$0xf] %vm1902_vm3, %v2396_v52  ;;  %v2394_v58 = vpack.c.bf16 %v1027_v54, %v1027_v54  ;;  %v2458_v59 = vpack.c.bf16 %v1283_v55, %v1283_v55  ;;  %v1048_v60 = vadd.f32 %v2597_v56, %v2946_v6  ;;  %v1304_v61 = vadd.f32 %v2661_v57, %v2946_v6 }
 0x12a   : > { %2006 = vst.msk [vmem:[%s2955_s27 + $0x19c] sm:$0xf] %vm1902_vm3, %v2460_v53  ;;  %v1039_v62 = vpop.f32.mrf.mxu0  ;;  %v1295_v63 = vpop.f32.mrf.mxu1 }
 0x12b   : > { %1940 = vst.msk [vmem:[%s2955_s27 + $0x94] sm:$0xf] %vm1902_vm3, %v2394_v58  ;;  %2004 = vst.msk [vmem:[%s2955_s27 + $0x194] sm:$0xf] %vm1902_vm3, %v2458_v59  ;;  %v2399_v0 = vpack.c.bf16 %v1048_v60, %v1048_v60  ;;  %v2463_v1 = vpack.c.bf16 %v1304_v61, %v1304_v61  ;;  %v1040_v2 = vadd.f32 %v2946_v6, %v1039_v62 }
 0x12c   : > { %v1296_v3 = vadd.f32 %v2946_v6, %v1295_v63  ;;  %v2598_v4 = vpop.f32.mrf.mxu0  ;;  %v2662_v5 = vpop.f32.mrf.mxu1 }
 0x12d   : > { %1945 = vst.msk [vmem:[%s2955_s27 + $0xa8] sm:$0xf] %vm1902_vm3, %v2399_v0  ;;  %2009 = vst.msk [vmem:[%s2955_s27 + $0x1a8] sm:$0xf] %vm1902_vm3, %v2463_v1  ;;  %v2397_v7 = vpack.c.bf16 %v1040_v2, %v1040_v2  ;;  %v1051_v9 = vadd.f32 %v2598_v4, %v2946_v6  ;;  %v1307_v10 = vadd.f32 %v2662_v5, %v2946_v6 }
 0x12e   : > { %v2461_v8 = vpack.c.bf16 %v1296_v3, %v1296_v3  ;;  %v1042_v11 = vpop.f32.mrf.mxu0  ;;  %v1298_v12 = vpop.f32.mrf.mxu1 }
 0x12f   : > { %1943 = vst.msk [vmem:[%s2955_s27 + $0xa0] sm:$0xf] %vm1902_vm3, %v2397_v7  ;;  %v2400_v13 = vpack.c.bf16 %v1051_v9, %v1051_v9  ;;  %v2464_v14 = vpack.c.bf16 %v1307_v10, %v1307_v10  ;;  %v1043_v15 = vadd.f32 %v2946_v6, %v1042_v11  ;;  %v1299_v16 = vadd.f32 %v2946_v6, %v1298_v12 }
 0x130   : > { %2007 = vst.msk [vmem:[%s2955_s27 + $0x1a0] sm:$0xf] %vm1902_vm3, %v2461_v8  ;;  %v2601_v17 = vpop.f32.mrf.mxu0  ;;  %v2665_v18 = vpop.f32.mrf.mxu1 }
 0x131   : > { %1946 = vst.msk [vmem:[%s2955_s27 + $0xac] sm:$0xf] %vm1902_vm3, %v2400_v13  ;;  %2010 = vst.msk [vmem:[%s2955_s27 + $0x1ac] sm:$0xf] %vm1902_vm3, %v2464_v14  ;;  %v2398_v19 = vpack.c.bf16 %v1043_v15, %v1043_v15  ;;  %v2462_v20 = vpack.c.bf16 %v1299_v16, %v1299_v16  ;;  %v1064_v21 = vadd.f32 %v2601_v17, %v2946_v6 }
 0x132   : > { %v1320_v22 = vadd.f32 %v2665_v18, %v2946_v6  ;;  %v1055_v23 = vpop.f32.mrf.mxu0  ;;  %v1311_v24 = vpop.f32.mrf.mxu1 }
 0x133   : > { %1944 = vst.msk [vmem:[%s2955_s27 + $0xa4] sm:$0xf] %vm1902_vm3, %v2398_v19  ;;  %2008 = vst.msk [vmem:[%s2955_s27 + $0x1a4] sm:$0xf] %vm1902_vm3, %v2462_v20  ;;  %v2403_v25 = vpack.c.bf16 %v1064_v21, %v1064_v21  ;;  %v1056_v27 = vadd.f32 %v2946_v6, %v1055_v23  ;;  %v1312_v28 = vadd.f32 %v2946_v6, %v1311_v24 }
 0x134   : > { %v2467_v26 = vpack.c.bf16 %v1320_v22, %v1320_v22  ;;  %v2602_v29 = vpop.f32.mrf.mxu0  ;;  %v2666_v30 = vpop.f32.mrf.mxu1 }
 0x135   : > { %1949 = vst.msk [vmem:[%s2955_s27 + $0xb8] sm:$0xf] %vm1902_vm3, %v2403_v25  ;;  %v2401_v31 = vpack.c.bf16 %v1056_v27, %v1056_v27  ;;  %v2465_v32 = vpack.c.bf16 %v1312_v28, %v1312_v28  ;;  %v1067_v33 = vadd.f32 %v2602_v29, %v2946_v6  ;;  %v1323_v34 = vadd.f32 %v2666_v30, %v2946_v6 }
 0x136   : > { %2013 = vst.msk [vmem:[%s2955_s27 + $0x1b8] sm:$0xf] %vm1902_vm3, %v2467_v26  ;;  %v1058_v35 = vpop.f32.mrf.mxu0  ;;  %v1314_v36 = vpop.f32.mrf.mxu1 }
 0x137   : > { %1947 = vst.msk [vmem:[%s2955_s27 + $0xb0] sm:$0xf] %vm1902_vm3, %v2401_v31  ;;  %2011 = vst.msk [vmem:[%s2955_s27 + $0x1b0] sm:$0xf] %vm1902_vm3, %v2465_v32  ;;  %v2404_v37 = vpack.c.bf16 %v1067_v33, %v1067_v33  ;;  %v2468_v38 = vpack.c.bf16 %v1323_v34, %v1323_v34  ;;  %v1059_v39 = vadd.f32 %v2946_v6, %v1058_v35 }
 0x138   : > { %v1315_v40 = vadd.f32 %v2946_v6, %v1314_v36  ;;  %v2605_v41 = vpop.f32.mrf.mxu0  ;;  %v2669_v42 = vpop.f32.mrf.mxu1 }
 0x139   : > { %1950 = vst.msk [vmem:[%s2955_s27 + $0xbc] sm:$0xf] %vm1902_vm3, %v2404_v37  ;;  %2014 = vst.msk [vmem:[%s2955_s27 + $0x1bc] sm:$0xf] %vm1902_vm3, %v2468_v38  ;;  %v2402_v43 = vpack.c.bf16 %v1059_v39, %v1059_v39  ;;  %v1080_v45 = vadd.f32 %v2605_v41, %v2946_v6  ;;  %v1336_v46 = vadd.f32 %v2669_v42, %v2946_v6 }
 0x13a   : > { %v2466_v44 = vpack.c.bf16 %v1315_v40, %v1315_v40  ;;  %v1071_v47 = vpop.f32.mrf.mxu0  ;;  %v1327_v48 = vpop.f32.mrf.mxu1 }
 0x13b   : > { %1948 = vst.msk [vmem:[%s2955_s27 + $0xb4] sm:$0xf] %vm1902_vm3, %v2402_v43  ;;  %v2407_v49 = vpack.c.bf16 %v1080_v45, %v1080_v45  ;;  %v2471_v50 = vpack.c.bf16 %v1336_v46, %v1336_v46  ;;  %v1072_v51 = vadd.f32 %v2946_v6, %v1071_v47  ;;  %v1328_v52 = vadd.f32 %v2946_v6, %v1327_v48 }
 0x13c   : > { %2012 = vst.msk [vmem:[%s2955_s27 + $0x1b4] sm:$0xf] %vm1902_vm3, %v2466_v44  ;;  %v2606_v53 = vpop.f32.mrf.mxu0  ;;  %v2670_v54 = vpop.f32.mrf.mxu1 }
 0x13d   : > { %1953 = vst.msk [vmem:[%s2955_s27 + $0xc8] sm:$0xf] %vm1902_vm3, %v2407_v49  ;;  %2017 = vst.msk [vmem:[%s2955_s27 + $0x1c8] sm:$0xf] %vm1902_vm3, %v2471_v50  ;;  %v2405_v55 = vpack.c.bf16 %v1072_v51, %v1072_v51  ;;  %v2469_v56 = vpack.c.bf16 %v1328_v52, %v1328_v52  ;;  %v1083_v57 = vadd.f32 %v2606_v53, %v2946_v6 }
 0x13e   : > { %v1339_v58 = vadd.f32 %v2670_v54, %v2946_v6  ;;  %v1074_v59 = vpop.f32.mrf.mxu0  ;;  %v1330_v60 = vpop.f32.mrf.mxu1 }
 0x13f   : > { %1951 = vst.msk [vmem:[%s2955_s27 + $0xc0] sm:$0xf] %vm1902_vm3, %v2405_v55  ;;  %2015 = vst.msk [vmem:[%s2955_s27 + $0x1c0] sm:$0xf] %vm1902_vm3, %v2469_v56  ;;  %v2408_v61 = vpack.c.bf16 %v1083_v57, %v1083_v57  ;;  %v1075_v63 = vadd.f32 %v2946_v6, %v1074_v59  ;;  %v1331_v0 = vadd.f32 %v2946_v6, %v1330_v60 }
 0x140   : > { %v2472_v62 = vpack.c.bf16 %v1339_v58, %v1339_v58  ;;  %v2609_v1 = vpop.f32.mrf.mxu0  ;;  %v2673_v2 = vpop.f32.mrf.mxu1 }
 0x141   : > { %1954 = vst.msk [vmem:[%s2955_s27 + $0xcc] sm:$0xf] %vm1902_vm3, %v2408_v61  ;;  %v2406_v3 = vpack.c.bf16 %v1075_v63, %v1075_v63  ;;  %v2470_v4 = vpack.c.bf16 %v1331_v0, %v1331_v0  ;;  %v1096_v5 = vadd.f32 %v2609_v1, %v2946_v6  ;;  %v1352_v7 = vadd.f32 %v2673_v2, %v2946_v6 }
 0x142   : > { %2018 = vst.msk [vmem:[%s2955_s27 + $0x1cc] sm:$0xf] %vm1902_vm3, %v2472_v62  ;;  %v1087_v8 = vpop.f32.mrf.mxu0  ;;  %v1343_v9 = vpop.f32.mrf.mxu1 }
 0x143   : > { %1952 = vst.msk [vmem:[%s2955_s27 + $0xc4] sm:$0xf] %vm1902_vm3, %v2406_v3  ;;  %2016 = vst.msk [vmem:[%s2955_s27 + $0x1c4] sm:$0xf] %vm1902_vm3, %v2470_v4  ;;  %v2411_v10 = vpack.c.bf16 %v1096_v5, %v1096_v5  ;;  %v2475_v11 = vpack.c.bf16 %v1352_v7, %v1352_v7  ;;  %v1088_v12 = vadd.f32 %v2946_v6, %v1087_v8 }
 0x144   : > { %v1344_v13 = vadd.f32 %v2946_v6, %v1343_v9  ;;  %v2610_v14 = vpop.f32.mrf.mxu0  ;;  %v2674_v15 = vpop.f32.mrf.mxu1 }
 0x145   : > { %1957 = vst.msk [vmem:[%s2955_s27 + $0xd8] sm:$0xf] %vm1902_vm3, %v2411_v10  ;;  %2021 = vst.msk [vmem:[%s2955_s27 + $0x1d8] sm:$0xf] %vm1902_vm3, %v2475_v11  ;;  %v2409_v16 = vpack.c.bf16 %v1088_v12, %v1088_v12  ;;  %v1099_v18 = vadd.f32 %v2610_v14, %v2946_v6  ;;  %v1355_v19 = vadd.f32 %v2674_v15, %v2946_v6 }
 0x146   : > { %v2473_v17 = vpack.c.bf16 %v1344_v13, %v1344_v13  ;;  %v1090_v20 = vpop.f32.mrf.mxu0  ;;  %v1346_v21 = vpop.f32.mrf.mxu1 }
 0x147   : > { %1955 = vst.msk [vmem:[%s2955_s27 + $0xd0] sm:$0xf] %vm1902_vm3, %v2409_v16  ;;  %v2412_v22 = vpack.c.bf16 %v1099_v18, %v1099_v18  ;;  %v2476_v23 = vpack.c.bf16 %v1355_v19, %v1355_v19  ;;  %v1091_v24 = vadd.f32 %v2946_v6, %v1090_v20  ;;  %v1347_v25 = vadd.f32 %v2946_v6, %v1346_v21 }
 0x148   : > { %2019 = vst.msk [vmem:[%s2955_s27 + $0x1d0] sm:$0xf] %vm1902_vm3, %v2473_v17  ;;  %v2613_v26 = vpop.f32.mrf.mxu0  ;;  %v2677_v27 = vpop.f32.mrf.mxu1 }
 0x149   : > { %1958 = vst.msk [vmem:[%s2955_s27 + $0xdc] sm:$0xf] %vm1902_vm3, %v2412_v22  ;;  %2022 = vst.msk [vmem:[%s2955_s27 + $0x1dc] sm:$0xf] %vm1902_vm3, %v2476_v23  ;;  %v2410_v28 = vpack.c.bf16 %v1091_v24, %v1091_v24  ;;  %v2474_v29 = vpack.c.bf16 %v1347_v25, %v1347_v25  ;;  %v1112_v30 = vadd.f32 %v2613_v26, %v2946_v6 }
 0x14a   : > { %v1368_v31 = vadd.f32 %v2677_v27, %v2946_v6  ;;  %v1103_v32 = vpop.f32.mrf.mxu0  ;;  %v1359_v33 = vpop.f32.mrf.mxu1 }
 0x14b   : > { %1956 = vst.msk [vmem:[%s2955_s27 + $0xd4] sm:$0xf] %vm1902_vm3, %v2410_v28  ;;  %2020 = vst.msk [vmem:[%s2955_s27 + $0x1d4] sm:$0xf] %vm1902_vm3, %v2474_v29  ;;  %v2415_v34 = vpack.c.bf16 %v1112_v30, %v1112_v30  ;;  %v1104_v36 = vadd.f32 %v2946_v6, %v1103_v32  ;;  %v1360_v37 = vadd.f32 %v2946_v6, %v1359_v33 }
 0x14c   : > { %v2479_v35 = vpack.c.bf16 %v1368_v31, %v1368_v31  ;;  %v2614_v38 = vpop.f32.mrf.mxu0  ;;  %v2678_v39 = vpop.f32.mrf.mxu1 }
 0x14d   : > { %1961 = vst.msk [vmem:[%s2955_s27 + $0xe8] sm:$0xf] %vm1902_vm3, %v2415_v34  ;;  %v2413_v40 = vpack.c.bf16 %v1104_v36, %v1104_v36  ;;  %v2477_v41 = vpack.c.bf16 %v1360_v37, %v1360_v37  ;;  %v1115_v42 = vadd.f32 %v2614_v38, %v2946_v6  ;;  %v1371_v43 = vadd.f32 %v2678_v39, %v2946_v6 }
 0x14e   : > { %2025 = vst.msk [vmem:[%s2955_s27 + $0x1e8] sm:$0xf] %vm1902_vm3, %v2479_v35  ;;  %v1106_v44 = vpop.f32.mrf.mxu0  ;;  %v1362_v45 = vpop.f32.mrf.mxu1 }
 0x14f   : > { %1959 = vst.msk [vmem:[%s2955_s27 + $0xe0] sm:$0xf] %vm1902_vm3, %v2413_v40  ;;  %2023 = vst.msk [vmem:[%s2955_s27 + $0x1e0] sm:$0xf] %vm1902_vm3, %v2477_v41  ;;  %v2416_v46 = vpack.c.bf16 %v1115_v42, %v1115_v42  ;;  %v2480_v47 = vpack.c.bf16 %v1371_v43, %v1371_v43  ;;  %v1107_v48 = vadd.f32 %v2946_v6, %v1106_v44 }
 0x150   : > { %v1363_v49 = vadd.f32 %v2946_v6, %v1362_v45  ;;  %v2617_v50 = vpop.f32.mrf.mxu0  ;;  %v2681_v51 = vpop.f32.mrf.mxu1 }
 0x151   : > { %1962 = vst.msk [vmem:[%s2955_s27 + $0xec] sm:$0xf] %vm1902_vm3, %v2416_v46  ;;  %2026 = vst.msk [vmem:[%s2955_s27 + $0x1ec] sm:$0xf] %vm1902_vm3, %v2480_v47  ;;  %v2414_v52 = vpack.c.bf16 %v1107_v48, %v1107_v48  ;;  %v1128_v54 = vadd.f32 %v2617_v50, %v2946_v6  ;;  %v1384_v55 = vadd.f32 %v2681_v51, %v2946_v6 }
 0x152   : > { %v2478_v53 = vpack.c.bf16 %v1363_v49, %v1363_v49  ;;  %v1119_v56 = vpop.f32.mrf.mxu0  ;;  %v1375_v57 = vpop.f32.mrf.mxu1 }
 0x153   : > { %1960 = vst.msk [vmem:[%s2955_s27 + $0xe4] sm:$0xf] %vm1902_vm3, %v2414_v52  ;;  %v2419_v58 = vpack.c.bf16 %v1128_v54, %v1128_v54  ;;  %v2483_v59 = vpack.c.bf16 %v1384_v55, %v1384_v55  ;;  %v1120_v60 = vadd.f32 %v2946_v6, %v1119_v56  ;;  %v1376_v61 = vadd.f32 %v2946_v6, %v1375_v57 }
 0x154   : > { %2024 = vst.msk [vmem:[%s2955_s27 + $0x1e4] sm:$0xf] %vm1902_vm3, %v2478_v53  ;;  %v2618_v62 = vpop.f32.mrf.mxu0  ;;  %v2682_v63 = vpop.f32.mrf.mxu1 }
 0x155   : > { %1965 = vst.msk [vmem:[%s2955_s27 + $0xf8] sm:$0xf] %vm1902_vm3, %v2419_v58  ;;  %2029 = vst.msk [vmem:[%s2955_s27 + $0x1f8] sm:$0xf] %vm1902_vm3, %v2483_v59  ;;  %v2417_v0 = vpack.c.bf16 %v1120_v60, %v1120_v60  ;;  %v2481_v1 = vpack.c.bf16 %v1376_v61, %v1376_v61  ;;  %v1131_v2 = vadd.f32 %v2618_v62, %v2946_v6 }
 0x156   : > { %v1387_v3 = vadd.f32 %v2682_v63, %v2946_v6  ;;  %v1122_v4 = vpop.f32.mrf.mxu0  ;;  %v1378_v5 = vpop.f32.mrf.mxu1 }
 0x157   : > { %1963 = vst.msk [vmem:[%s2955_s27 + $0xf0] sm:$0xf] %vm1902_vm3, %v2417_v0  ;;  %2027 = vst.msk [vmem:[%s2955_s27 + $0x1f0] sm:$0xf] %vm1902_vm3, %v2481_v1  ;;  %v2420_v7 = vpack.c.bf16 %v1131_v2, %v1131_v2  ;;  %v1123_v9 = vadd.f32 %v2946_v6, %v1122_v4  ;;  %v1379_v10 = vadd.f32 %v2946_v6, %v1378_v5 }
 0x158   : > { %v2484_v8 = vpack.c.bf16 %v1387_v3, %v1387_v3 }
 0x159   : > { %1966 = vst.msk [vmem:[%s2955_s27 + $0xfc] sm:$0xf] %vm1902_vm3, %v2420_v7  ;;  %v2418_v11 = vpack.c.bf16 %v1123_v9, %v1123_v9  ;;  %v2482_v12 = vpack.c.bf16 %v1379_v10, %v1379_v10 }
 0x15a   : > { %2030 = vst.msk [vmem:[%s2955_s27 + $0x1fc] sm:$0xf] %vm1902_vm3, %v2484_v8 }
 0x15b   : > { %1964 = vst.msk [vmem:[%s2955_s27 + $0xf4] sm:$0xf] %vm1902_vm3, %v2418_v11  ;;  %2028 = vst.msk [vmem:[%s2955_s27 + $0x1f4] sm:$0xf] %vm1902_vm3, %v2482_v12 }
 0x15c PF: > { %s13_s12 = sadd.s32 1, %s2768_s12  }
 0x15d   : > { %p10_p4 = scmp.ge.s32.totalorder %s13_s12, 8  }
 0x15f   :  { %12 = sbr.rel (!%p10_p4) target bundleno = 1 (0x1), region = 62 }

// kernel: vsm_oiqa_forward.19
= control target key start
LH: loop header
LB: loop body
LE: loop exit
PB: predicated region body
PF: predicated region fallthrough
CT: control target
= control target key end

     0   :  { %s1055_s12 = smov 0   ;;  %s1229_s0 = inlined_call_operand.vmem [shape: bf16[384,256], index: 0, kind: input, shape index: {}]   ;;  %s1230_s1 = inlined_call_operand.vmem [shape: bf16[256,16], index: 1, kind: input, shape index: {}]   ;;  %s1231_s2 = inlined_call_operand.vmem [shape: f32[1,16], index: 2, kind: input, shape index: {}]   ;;  %s1232_s3 = inlined_call_operand.vmem [shape: bf16[384,16], index: 3, kind: output, shape index: {}]  }
   0x1 LB: > { %s763_s13 = sadd.s32 4294967295, %s1033_s12   ;;  %p767_p0 = scmp.ge.s32.totalorder %s1033_s12, 1  ;;  %s1033_s12 = sphi %s1055_s12, %s13_s12  }
   0x2   : > { %p139_p1 = scmp.lt.s32.totalorder %s1033_s12, 3 }
   0x4   : > { %p140_p2 = pnand %p767_p0, %p139_p1 }
   0x5   : > { %s164_s16 = smul.u32 (!%p140_p2), 24, %s763_s13 }
   0x6   : > { %143 = sbr.rel (%p140_p2) target bundleno = 290 (0x122), region = 32 }
   0x7   : > { %p165_p3 = scmp.lt.s32.totalorder (!%p140_p2), %s164_s16, 47 }
   0xb   : > { %v975_v0 = vld [vmem:[%s1230_s1 + $0x78] sm:$0xff]   ;;  %v977_v2 = vld [vmem:[%s1230_s1 + $0x70] sm:$0xff]   ;;  %v979_v4 = vld [vmem:[%s1230_s1 + $0x68] sm:$0xff]   ;;  %s1234_s16 = smov (!%p165_p3, %s164_s16), 47  ;;  %vm682_vm0 = vcmask 125952  }
   0xc   : > { %v976_v1 = vld [vmem:[%s1230_s1 + $0x38] sm:$0xff]   ;;  %863 = vmatprep.subr.bf16.mxu0 %v975_v0  ;;  %951 = vmatprep.subr.bf16.mxu1 %v975_v0  ;;  %v978_v3 = vld [vmem:[%s1230_s1 + $0x30] sm:$0xff]   ;;  %v980_v5 = vld [vmem:[%s1230_s1 + $0x28] sm:$0xff]   ;;  %s838_s4 = sshll.u32 %s1234_s16, 3  ;;  %s770_s28 = sshll.u32 %s1234_s16, 2 }
   0xd   : > { %864 = vmatpush3.bf16.msra.mxu0 %v976_v1  ;;  %959 = vmatpush3.bf16.msra.mxu1 %v976_v1  ;;  %v981_v6 = vld [vmem:[%s1230_s1 + $0x60] sm:$0xff]   ;;  %v983_v8 = vld [vmem:[%s1230_s1 + $0x58] sm:$0xff]   ;;  %s1096_s9 = scalar_lea.vmem %s1229_s0, %s838_s4  ;;  %v985_v10 = vld [vmem:[%s1230_s1 + $0x50] sm:$0xff]   ;;  %s1154_s4 = scalar_lea.vmem %s1232_s3, %s770_s28 }
   0xe   : > { %865 = vmatprep.subr.bf16.mxu0 %v977_v2  ;;  %952 = vmatprep.subr.bf16.mxu1 %v977_v2  ;;  %v982_v7 = vld [vmem:[%s1230_s1 + $0x20] sm:$0xff]   ;;  %v984_v9 = vld [vmem:[%s1230_s1 + $0x18] sm:$0xff]   ;;  %v986_v13 = vld [vmem:[%s1230_s1 + $0x10] sm:$0xff]  }
   0xf   : > { %v993_v11 = vld [vmem:[%s1096_s9 + $0x4] ss:$8 sps:$4 sm:$0xff]   ;;  %v991_v18 = vld [vmem:[%s1096_s9] ss:$8 sps:$4 sm:$0xff]   ;;  %v997_v20 = vld [vmem:[%s1096_s9 + $0x14] ss:$8 sps:$4 sm:$0xff]  }
  0x10   : > { %v996_v12 = vld [vmem:[%s1096_s9 + $0x64] ss:$8 sps:$4 sm:$0xff]   ;;  %489 = vmatprep.mubr.bf16.mxu0 %v993_v11  ;;  %v994_v19 = vld [vmem:[%s1096_s9 + $0x60] ss:$8 sps:$4 sm:$0xff]   ;;  %v999_v21 = vld [vmem:[%s1096_s9 + $0x74] ss:$8 sps:$4 sm:$0xff]  }
  0x11   : > { %866 = vmatpush3.bf16.msra.mxu0 %v978_v3  ;;  %960 = vmatpush3.bf16.msra.mxu1 %v978_v3  ;;  %v987_v14 = vld [vmem:[%s1230_s1 + $0x48] sm:$0xff]   ;;  %v989_v16 = vld [vmem:[%s1230_s1 + $0x40] sm:$0xff]   ;;  %v1001_v22 = vld [vmem:[%s1096_s9 + $0x10] ss:$8 sps:$4 sm:$0xff]  }
  0x12   : > { %867 = vmatprep.subr.bf16.mxu0 %v979_v4  ;;  %953 = vmatprep.subr.bf16.mxu1 %v979_v4  ;;  %v988_v15 = vld [vmem:[%s1230_s1 + $0x8] sm:$0xff]   ;;  %v990_v17 = vld [vmem:[%s1230_s1] sm:$0xff]   ;;  %v1002_v23 = vld [vmem:[%s1096_s9 + $0x70] ss:$8 sps:$4 sm:$0xff]  }
  0x13   : > { %537 = vmatprep.mubr.bf16.mxu1 %v996_v12  ;;  %v1003_v24 = vld [vmem:[%s1096_s9 + $0x24] ss:$8 sps:$4 sm:$0xff]   ;;  %v1007_v26 = vld [vmem:[%s1096_s9 + $0x20] ss:$8 sps:$4 sm:$0xff]   ;;  %v1009_v28 = vld [vmem:[%s1096_s9 + $0x34] ss:$8 sps:$4 sm:$0xff]  }
  0x14   : > { %v1005_v25 = vld [vmem:[%s1096_s9 + $0x84] ss:$8 sps:$4 sm:$0xff]   ;;  %v1008_v27 = vld [vmem:[%s1096_s9 + $0x80] ss:$8 sps:$4 sm:$0xff]   ;;  %v1011_v29 = vld [vmem:[%s1096_s9 + $0x94] ss:$8 sps:$4 sm:$0xff]  }
  0x15   : > { %868 = vmatpush3.bf16.msra.mxu0 %v980_v5  ;;  %961 = vmatpush3.bf16.msra.mxu1 %v980_v5  ;;  %v1013_v30 = vld [vmem:[%s1096_s9 + $0x30] ss:$8 sps:$4 sm:$0xff]   ;;  %v1015_v32 = vld [vmem:[%s1096_s9 + $0x44] ss:$8 sps:$4 sm:$0xff]   ;;  %v1019_v34 = vld [vmem:[%s1096_s9 + $0x40] ss:$8 sps:$4 sm:$0xff]  }
  0x16   : > { %869 = vmatprep.subr.bf16.mxu0 %v981_v6  ;;  %954 = vmatprep.subr.bf16.mxu1 %v981_v6  ;;  %v1014_v31 = vld [vmem:[%s1096_s9 + $0x90] ss:$8 sps:$4 sm:$0xff]   ;;  %v1017_v33 = vld [vmem:[%s1096_s9 + $0xa4] ss:$8 sps:$4 sm:$0xff]   ;;  %v1020_v35 = vld [vmem:[%s1096_s9 + $0xa0] ss:$8 sps:$4 sm:$0xff]  }
  0x17   : > { %v1021_v36 = vld [vmem:[%s1096_s9 + $0x54] ss:$8 sps:$4 sm:$0xff]   ;;  %v1025_v38 = vld [vmem:[%s1096_s9 + $0x50] ss:$8 sps:$4 sm:$0xff]   ;;  %v1146_v42 = vld [vmem:[%s1231_s2] ss:$0 sm:$0xff] }
  0x18   : > { %v1023_v37 = vld [vmem:[%s1096_s9 + $0xb4] ss:$8 sps:$4 sm:$0xff]   ;;  %v1026_v39 = vld [vmem:[%s1096_s9 + $0xb0] ss:$8 sps:$4 sm:$0xff]  }
  0x19   : > { %870 = vmatpush3.bf16.msra.mxu0 %v982_v7  ;;  %962 = vmatpush3.bf16.msra.mxu1 %v982_v7 }
  0x1a   : > { %871 = vmatprep.subr.bf16.mxu0 %v983_v8  ;;  %955 = vmatprep.subr.bf16.mxu1 %v983_v8 }
  0x1d   : > { %872 = vmatpush3.bf16.msra.mxu0 %v984_v9  ;;  %963 = vmatpush3.bf16.msra.mxu1 %v984_v9 }
  0x1e   : > { %873 = vmatprep.subr.bf16.mxu0 %v985_v10  ;;  %956 = vmatprep.subr.bf16.mxu1 %v985_v10 }
  0x21   : > { %874 = vmatpush3.bf16.msra.mxu0 %v986_v13  ;;  %964 = vmatpush3.bf16.msra.mxu1 %v986_v13 }
  0x22   : > { %875 = vmatprep.subr.bf16.mxu0 %v987_v14  ;;  %957 = vmatprep.subr.bf16.mxu1 %v987_v14 }
  0x25   : > { %876 = vmatpush3.bf16.msra.mxu0 %v988_v15  ;;  %965 = vmatpush3.bf16.msra.mxu1 %v988_v15 }
  0x26   : > { %877 = vmatprep.subr.bf16.mxu0 %v989_v16  ;;  %958 = vmatprep.subr.bf16.mxu1 %v989_v16 }
  0x29   : > { %878 = vmatpush3.bf16.msra.mxu0 %v990_v17  ;;  %966 = vmatpush3.bf16.msra.mxu1 %v990_v17 }
  0x2c   : > { %490 = vmatmul.mubr.bf16.vlgmr.msra.gmra.mxu0 %v991_v18  ;;  %538 = vmatmul.mubr.bf16.vlgmr.msra.gmra.mxu1 %v994_v19 }
  0x2d   : > { %497 = vmatprep.mubr.bf16.mxu0 %v997_v20  ;;  %545 = vmatprep.mubr.bf16.mxu1 %v999_v21 }
  0x34   : > { %498 = vmatmul.mubr.bf16.gmra.mxu0 %v1001_v22  ;;  %546 = vmatmul.mubr.bf16.gmra.mxu1 %v1002_v23 }
  0x35   : > { %505 = vmatprep.mubr.bf16.mxu0 %v1003_v24  ;;  %553 = vmatprep.mubr.bf16.mxu1 %v1005_v25 }
  0x3c   : > { %506 = vmatmul.mubr.bf16.gmra.mxu0 %v1007_v26  ;;  %554 = vmatmul.mubr.bf16.gmra.mxu1 %v1008_v27 }
  0x3d   : > { %513 = vmatprep.mubr.bf16.mxu0 %v1009_v28  ;;  %561 = vmatprep.mubr.bf16.mxu1 %v1011_v29 }
  0x44   : > { %514 = vmatmul.mubr.bf16.gmra.mxu0 %v1013_v30  ;;  %562 = vmatmul.mubr.bf16.gmra.mxu1 %v1014_v31 }
  0x45   : > { %521 = vmatprep.mubr.bf16.mxu0 %v1015_v32  ;;  %569 = vmatprep.mubr.bf16.mxu1 %v1017_v33 }
  0x4c   : > { %522 = vmatmul.mubr.bf16.gmra.mxu0 %v1019_v34  ;;  %570 = vmatmul.mubr.bf16.gmra.mxu1 %v1020_v35 }
  0x4d   : > { %529 = vmatprep.mubr.bf16.mxu0 %v1021_v36  ;;  %577 = vmatprep.mubr.bf16.mxu1 %v1023_v37 }
  0x54   : > { %530 = vmatmul.mubr.bf16.gmra.mxu0 %v1025_v38  ;;  %578 = vmatmul.mubr.bf16.gmra.mxu1 %v1026_v39 }
  0xec   : > { %v879_v40 = vpop.f32.mrf.mxu0  ;;  %v915_v41 = vpop.f32.mrf.mxu1 }
  0xee   : > { %v880_v43 = vpop.f32.mrf.mxu0  ;;  %v916_v44 = vpop.f32.mrf.mxu1 }
  0xef   : > { %v881_v45 = vadd.f32 %v880_v43, %v879_v40  ;;  %v917_v46 = vadd.f32 %v916_v44, %v915_v41 }
  0xf0   : > { %v882_v47 = vpop.f32.mrf.mxu0  ;;  %v918_v48 = vpop.f32.mrf.mxu1 }
  0xf1   : > { %v492_v49 = vadd.f32 %v881_v45, %v1146_v42  ;;  %v540_v50 = vadd.f32 %v917_v46, %v1146_v42 }
  0xf2   : > { %v883_v51 = vpop.f32.mrf.mxu0  ;;  %v919_v52 = vpop.f32.mrf.mxu1 }
  0xf3   : > { %v839_v53 = vpack.c.bf16 %v492_v49, %v492_v49  ;;  %v851_v54 = vpack.c.bf16 %v540_v50, %v540_v50  ;;  %v884_v55 = vadd.f32 %v883_v51, %v882_v47  ;;  %v920_v56 = vadd.f32 %v919_v52, %v918_v48 }
  0xf4   : > { %v885_v57 = vpop.f32.mrf.mxu0  ;;  %v921_v58 = vpop.f32.mrf.mxu1 }
  0xf5   : > { %683 = vst.msk [vmem:[%s1154_s4] sm:$0xf] %vm682_vm0, %v839_v53  ;;  %695 = vst.msk [vmem:[%s1154_s4 + $0x30] sm:$0xf] %vm682_vm0, %v851_v54  ;;  %v495_v59 = vadd.f32 %v884_v55, %v1146_v42  ;;  %v543_v60 = vadd.f32 %v920_v56, %v1146_v42 }
  0xf6   : > { %v886_v61 = vpop.f32.mrf.mxu0  ;;  %v922_v62 = vpop.f32.mrf.mxu1 }
  0xf7   : > { %v840_v63 = vpack.c.bf16 %v495_v59, %v495_v59  ;;  %v852_v0 = vpack.c.bf16 %v543_v60, %v543_v60  ;;  %v887_v1 = vadd.f32 %v886_v61, %v885_v57  ;;  %v923_v2 = vadd.f32 %v922_v62, %v921_v58 }
  0xf8   : > { %v888_v3 = vpop.f32.mrf.mxu0  ;;  %v924_v4 = vpop.f32.mrf.mxu1 }
  0xf9   : > { %684 = vst.msk [vmem:[%s1154_s4 + $0x4] sm:$0xf] %vm682_vm0, %v840_v63  ;;  %696 = vst.msk [vmem:[%s1154_s4 + $0x34] sm:$0xf] %vm682_vm0, %v852_v0  ;;  %v500_v5 = vadd.f32 %v887_v1, %v1146_v42  ;;  %v548_v6 = vadd.f32 %v923_v2, %v1146_v42 }
  0xfa   : > { %v889_v7 = vpop.f32.mrf.mxu0  ;;  %v925_v8 = vpop.f32.mrf.mxu1 }
  0xfb   : > { %v841_v9 = vpack.c.bf16 %v500_v5, %v500_v5  ;;  %v853_v10 = vpack.c.bf16 %v548_v6, %v548_v6  ;;  %v890_v11 = vadd.f32 %v889_v7, %v888_v3  ;;  %v926_v12 = vadd.f32 %v925_v8, %v924_v4 }
  0xfc   : > { %v891_v13 = vpop.f32.mrf.mxu0  ;;  %v927_v14 = vpop.f32.mrf.mxu1 }
  0xfd   : > { %685 = vst.msk [vmem:[%s1154_s4 + $0x8] sm:$0xf] %vm682_vm0, %v841_v9  ;;  %697 = vst.msk [vmem:[%s1154_s4 + $0x38] sm:$0xf] %vm682_vm0, %v853_v10  ;;  %v503_v15 = vadd.f32 %v890_v11, %v1146_v42  ;;  %v551_v16 = vadd.f32 %v926_v12, %v1146_v42 }
  0xfe   : > { %v892_v17 = vpop.f32.mrf.mxu0  ;;  %v928_v18 = vpop.f32.mrf.mxu1 }
  0xff   : > { %v842_v19 = vpack.c.bf16 %v503_v15, %v503_v15  ;;  %v854_v20 = vpack.c.bf16 %v551_v16, %v551_v16  ;;  %v893_v21 = vadd.f32 %v892_v17, %v891_v13  ;;  %v929_v22 = vadd.f32 %v928_v18, %v927_v14 }
 0x100   : > { %v894_v23 = vpop.f32.mrf.mxu0  ;;  %v930_v24 = vpop.f32.mrf.mxu1 }
 0x101   : > { %686 = vst.msk [vmem:[%s1154_s4 + $0xc] sm:$0xf] %vm682_vm0, %v842_v19  ;;  %698 = vst.msk [vmem:[%s1154_s4 + $0x3c] sm:$0xf] %vm682_vm0, %v854_v20  ;;  %v508_v25 = vadd.f32 %v893_v21, %v1146_v42  ;;  %v556_v26 = vadd.f32 %v929_v22, %v1146_v42 }
 0x102   : > { %v895_v27 = vpop.f32.mrf.mxu0  ;;  %v931_v28 = vpop.f32.mrf.mxu1 }
 0x103   : > { %v843_v29 = vpack.c.bf16 %v508_v25, %v508_v25  ;;  %v855_v30 = vpack.c.bf16 %v556_v26, %v556_v26  ;;  %v896_v31 = vadd.f32 %v895_v27, %v894_v23  ;;  %v932_v32 = vadd.f32 %v931_v28, %v930_v24 }
 0x104   : > { %v897_v33 = vpop.f32.mrf.mxu0  ;;  %v933_v34 = vpop.f32.mrf.mxu1 }
 0x105   : > { %687 = vst.msk [vmem:[%s1154_s4 + $0x10] sm:$0xf] %vm682_vm0, %v843_v29  ;;  %699 = vst.msk [vmem:[%s1154_s4 + $0x40] sm:$0xf] %vm682_vm0, %v855_v30  ;;  %v511_v35 = vadd.f32 %v896_v31, %v1146_v42  ;;  %v559_v36 = vadd.f32 %v932_v32, %v1146_v42 }
 0x106   : > { %v898_v37 = vpop.f32.mrf.mxu0  ;;  %v934_v38 = vpop.f32.mrf.mxu1 }
 0x107   : > { %v844_v39 = vpack.c.bf16 %v511_v35, %v511_v35  ;;  %v856_v40 = vpack.c.bf16 %v559_v36, %v559_v36  ;;  %v899_v41 = vadd.f32 %v898_v37, %v897_v33  ;;  %v935_v43 = vadd.f32 %v934_v38, %v933_v34 }
 0x108   : > { %v900_v44 = vpop.f32.mrf.mxu0  ;;  %v936_v45 = vpop.f32.mrf.mxu1 }
 0x109   : > { %688 = vst.msk [vmem:[%s1154_s4 + $0x14] sm:$0xf] %vm682_vm0, %v844_v39  ;;  %700 = vst.msk [vmem:[%s1154_s4 + $0x44] sm:$0xf] %vm682_vm0, %v856_v40  ;;  %v516_v46 = vadd.f32 %v899_v41, %v1146_v42  ;;  %v564_v47 = vadd.f32 %v935_v43, %v1146_v42 }
 0x10a   : > { %v901_v48 = vpop.f32.mrf.mxu0  ;;  %v937_v49 = vpop.f32.mrf.mxu1 }
 0x10b   : > { %v845_v50 = vpack.c.bf16 %v516_v46, %v516_v46  ;;  %v857_v51 = vpack.c.bf16 %v564_v47, %v564_v47  ;;  %v902_v52 = vadd.f32 %v901_v48, %v900_v44  ;;  %v938_v53 = vadd.f32 %v937_v49, %v936_v45 }
 0x10c   : > { %v903_v54 = vpop.f32.mrf.mxu0  ;;  %v939_v55 = vpop.f32.mrf.mxu1 }
 0x10d   : > { %689 = vst.msk [vmem:[%s1154_s4 + $0x18] sm:$0xf] %vm682_vm0, %v845_v50  ;;  %701 = vst.msk [vmem:[%s1154_s4 + $0x48] sm:$0xf] %vm682_vm0, %v857_v51  ;;  %v519_v56 = vadd.f32 %v902_v52, %v1146_v42  ;;  %v567_v57 = vadd.f32 %v938_v53, %v1146_v42 }
 0x10e   : > { %v904_v58 = vpop.f32.mrf.mxu0  ;;  %v940_v59 = vpop.f32.mrf.mxu1 }
 0x10f   : > { %v846_v60 = vpack.c.bf16 %v519_v56, %v519_v56  ;;  %v858_v61 = vpack.c.bf16 %v567_v57, %v567_v57  ;;  %v905_v62 = vadd.f32 %v904_v58, %v903_v54  ;;  %v941_v63 = vadd.f32 %v940_v59, %v939_v55 }
 0x110   : > { %v906_v0 = vpop.f32.mrf.mxu0  ;;  %v942_v1 = vpop.f32.mrf.mxu1 }
 0x111   : > { %690 = vst.msk [vmem:[%s1154_s4 + $0x1c] sm:$0xf] %vm682_vm0, %v846_v60  ;;  %702 = vst.msk [vmem:[%s1154_s4 + $0x4c] sm:$0xf] %vm682_vm0, %v858_v61  ;;  %v524_v2 = vadd.f32 %v905_v62, %v1146_v42  ;;  %v572_v3 = vadd.f32 %v941_v63, %v1146_v42 }
 0x112   : > { %v907_v4 = vpop.f32.mrf.mxu0  ;;  %v943_v5 = vpop.f32.mrf.mxu1 }
 0x113   : > { %v847_v6 = vpack.c.bf16 %v524_v2, %v524_v2  ;;  %v859_v7 = vpack.c.bf16 %v572_v3, %v572_v3  ;;  %v908_v8 = vadd.f32 %v907_v4, %v906_v0  ;;  %v944_v9 = vadd.f32 %v943_v5, %v942_v1 }
 0x114   : > { %v909_v10 = vpop.f32.mrf.mxu0  ;;  %v945_v11 = vpop.f32.mrf.mxu1 }
 0x115   : > { %691 = vst.msk [vmem:[%s1154_s4 + $0x20] sm:$0xf] %vm682_vm0, %v847_v6  ;;  %703 = vst.msk [vmem:[%s1154_s4 + $0x50] sm:$0xf] %vm682_vm0, %v859_v7  ;;  %v527_v12 = vadd.f32 %v908_v8, %v1146_v42  ;;  %v575_v13 = vadd.f32 %v944_v9, %v1146_v42 }
 0x116   : > { %v910_v14 = vpop.f32.mrf.mxu0  ;;  %v946_v15 = vpop.f32.mrf.mxu1 }
 0x117   : > { %v848_v16 = vpack.c.bf16 %v527_v12, %v527_v12  ;;  %v860_v17 = vpack.c.bf16 %v575_v13, %v575_v13  ;;  %v911_v18 = vadd.f32 %v910_v14, %v909_v10  ;;  %v947_v19 = vadd.f32 %v946_v15, %v945_v11 }
 0x118   : > { %v912_v20 = vpop.f32.mrf.mxu0  ;;  %v948_v21 = vpop.f32.mrf.mxu1 }
 0x119   : > { %692 = vst.msk [vmem:[%s1154_s4 + $0x24] sm:$0xf] %vm682_vm0, %v848_v16  ;;  %704 = vst.msk [vmem:[%s1154_s4 + $0x54] sm:$0xf] %vm682_vm0, %v860_v17  ;;  %v532_v22 = vadd.f32 %v911_v18, %v1146_v42  ;;  %v580_v23 = vadd.f32 %v947_v19, %v1146_v42 }
 0x11a   : > { %v913_v24 = vpop.f32.mrf.mxu0  ;;  %v949_v25 = vpop.f32.mrf.mxu1 }
 0x11b   : > { %v849_v26 = vpack.c.bf16 %v532_v22, %v532_v22  ;;  %v861_v27 = vpack.c.bf16 %v580_v23, %v580_v23  ;;  %v914_v28 = vadd.f32 %v913_v24, %v912_v20  ;;  %v950_v29 = vadd.f32 %v949_v25, %v948_v21 }
 0x11d   : > { %693 = vst.msk [vmem:[%s1154_s4 + $0x28] sm:$0xf] %vm682_vm0, %v849_v26  ;;  %705 = vst.msk [vmem:[%s1154_s4 + $0x58] sm:$0xf] %vm682_vm0, %v861_v27  ;;  %v535_v30 = vadd.f32 %v914_v28, %v1146_v42  ;;  %v583_v31 = vadd.f32 %v950_v29, %v1146_v42 }
 0x11f   : > { %v850_v32 = vpack.c.bf16 %v535_v30, %v535_v30  ;;  %v862_v33 = vpack.c.bf16 %v583_v31, %v583_v31 }
 0x121   : > { %694 = vst.msk [vmem:[%s1154_s4 + $0x2c] sm:$0xf] %vm682_vm0, %v850_v32  ;;  %706 = vst.msk [vmem:[%s1154_s4 + $0x5c] sm:$0xf] %vm682_vm0, %v862_v33 }
 0x122 PF: > { %s13_s12 = sadd.s32 1, %s1033_s12  }
 0x123   : > { %p10_p4 = scmp.ge.s32.totalorder %s13_s12, 4  }
 0x125   :  { %12 = sbr.rel (!%p10_p4) target bundleno = 1 (0x1), region = 62 }

// kernel: vsm_oiqa_forward.20
= control target key start
LH: loop header
LB: loop body
LE: loop exit
PB: predicated region body
PF: predicated region fallthrough
CT: control target
= control target key end

     0   :  { %s1107_s12 = smov 0   ;;  %s1348_s0 = inlined_call_operand.vmem [shape: bf16[384,144], index: 0, kind: input, shape index: {}]   ;;  %s1349_s1 = inlined_call_operand.vmem [shape: bf16[144,16], index: 1, kind: input, shape index: {}]   ;;  %s1350_s2 = inlined_call_operand.vmem [shape: f32[1,16], index: 2, kind: input, shape index: {}]   ;;  %s1351_s3 = inlined_call_operand.vmem [shape: bf16[384,16], index: 3, kind: output, shape index: {}]  }
   0x1 LB: > { %s853_s13 = sadd.s32 4294967295, %s1084_s12   ;;  %p857_p0 = scmp.ge.s32.totalorder %s1084_s12, 1  ;;  %s1084_s12 = sphi %s1107_s12, %s13_s12  }
   0x2   : > { %p139_p1 = scmp.lt.s32.totalorder %s1084_s12, 3 }
   0x4   : > { %p140_p2 = pnand %p857_p0, %p139_p1 }
   0x5   : > { %s164_s16 = smul.u32 (!%p140_p2), 24, %s853_s13 }
   0x6   : > { %143 = sbr.rel (%p140_p2) target bundleno = 311 (0x137), region = 32 }
   0x7   : > { %p165_p3 = scmp.lt.s32.totalorder (!%p140_p2), %s164_s16, 47 }
   0xb   : > { %v985_v0 = vld [vmem:[%s1349_s1 + $0x38] sm:$0xff]   ;;  %v1086_v1 = vmov 0   ;;  %v986_v2 = vld [vmem:[%s1349_s1 + $0x30] sm:$0xff]   ;;  %s1353_s16 = smov (!%p165_p3, %s164_s16), 47  ;;  %v987_v3 = vld [vmem:[%s1349_s1 + $0x28] sm:$0xff]   ;;  %vm389_vm0 = vcmask 130048  }
   0xc   : > { %426 = vmatprep.subr.bf16.mxu0 %v1086_v1  ;;  %958 = vmatprep.subr.bf16.mxu1 %v1086_v1  ;;  %s933_s21 = sshll.u32 %s1353_s16, 3  ;;  %v988_v4 = vld [vmem:[%s1349_s1 + $0x20] sm:$0xff]   ;;  %v989_v7 = vld [vmem:[%s1349_s1 + $0x18] sm:$0xff]   ;;  %v990_v8 = vld [vmem:[%s1349_s1 + $0x10] sm:$0xff]   ;;  %s860_s13 = sshll.u32 %s1353_s16, 2  ;;  %vm772_vm1 = vcmask 125952  }
   0xd   : > { %427 = vmatpush1.bf16.msra.mxu0 %v985_v0  ;;  %967 = vmatpush1.bf16.msra.mxu1 %v985_v0  ;;  %s1130_s24 = scalar_lea.vmem %s1348_s0, %s933_s21  ;;  %v991_v9 = vld [vmem:[%s1349_s1 + $0x8] sm:$0xff]   ;;  %v992_v10 = vld [vmem:[%s1349_s1] sm:$0xff]   ;;  %s1229_s16 = scalar_lea.vmem %s1351_s3, %s860_s13 }
   0xe   : > { %428 = vmatprep.subr.bf16.mxu0 %v1086_v1  ;;  %959 = vmatprep.subr.bf16.mxu1 %v1086_v1  ;;  %v996_v5 = vld [vmem:[%s1130_s24 + $0x4] ss:$8 sps:$4 sm:$0xff]   ;;  %v994_v12 = vld [vmem:[%s1130_s24] ss:$8 sps:$4 sm:$0xff]   ;;  %v1000_v14 = vld [vmem:[%s1130_s24 + $0x14] ss:$8 sps:$4 sm:$0xff]  }
   0xf   : > { %v999_v6 = vld [vmem:[%s1130_s24 + $0x64] ss:$8 sps:$4 sm:$0xff]   ;;  %895 = vmatprep.mubr.msk.bf16.mxu0 %vm389_vm0, %v996_v5  ;;  %v997_v13 = vld [vmem:[%s1130_s24 + $0x60] ss:$8 sps:$4 sm:$0xff]   ;;  %v1002_v15 = vld [vmem:[%s1130_s24 + $0x74] ss:$8 sps:$4 sm:$0xff]  }
  0x10   : > { %901 = vmatprep.mubr.msk.bf16.mxu1 %vm389_vm0, %v999_v6  ;;  %v993_v11 = vld [vmem:[%s1349_s1 + $0x40] sm:$0xff]   ;;  %v1004_v16 = vld [vmem:[%s1130_s24 + $0x10] ss:$8 sps:$4 sm:$0xff]   ;;  %v1012_v22 = vld [vmem:[%s1130_s24 + $0x34] ss:$8 sps:$4 sm:$0xff]  }
  0x11   : > { %429 = vmatpush1.bf16.msra.mxu0 %v986_v2  ;;  %968 = vmatpush1.bf16.msra.mxu1 %v986_v2  ;;  %v1005_v17 = vld [vmem:[%s1130_s24 + $0x70] ss:$8 sps:$4 sm:$0xff]   ;;  %v1006_v18 = vld [vmem:[%s1130_s24 + $0x24] ss:$8 sps:$4 sm:$0xff]   ;;  %v1010_v20 = vld [vmem:[%s1130_s24 + $0x20] ss:$8 sps:$4 sm:$0xff]  }
  0x12   : > { %430 = vmatprep.subr.bf16.mxu0 %v1086_v1  ;;  %960 = vmatprep.subr.bf16.mxu1 %v1086_v1  ;;  %v1008_v19 = vld [vmem:[%s1130_s24 + $0x84] ss:$8 sps:$4 sm:$0xff]   ;;  %v1011_v21 = vld [vmem:[%s1130_s24 + $0x80] ss:$8 sps:$4 sm:$0xff]   ;;  %v1014_v23 = vld [vmem:[%s1130_s24 + $0x94] ss:$8 sps:$4 sm:$0xff]  }
  0x13   : > { %v1016_v24 = vld [vmem:[%s1130_s24 + $0x30] ss:$8 sps:$4 sm:$0xff]   ;;  %v1018_v26 = vld [vmem:[%s1130_s24 + $0x44] ss:$8 sps:$4 sm:$0xff]   ;;  %v1022_v28 = vld [vmem:[%s1130_s24 + $0x40] ss:$8 sps:$4 sm:$0xff]  }
  0x14   : > { %v1017_v25 = vld [vmem:[%s1130_s24 + $0x90] ss:$8 sps:$4 sm:$0xff]   ;;  %v1020_v27 = vld [vmem:[%s1130_s24 + $0xa4] ss:$8 sps:$4 sm:$0xff]   ;;  %v1023_v29 = vld [vmem:[%s1130_s24 + $0xa0] ss:$8 sps:$4 sm:$0xff]  }
  0x15   : > { %431 = vmatpush1.bf16.msra.mxu0 %v987_v3  ;;  %969 = vmatpush1.bf16.msra.mxu1 %v987_v3  ;;  %v1024_v30 = vld [vmem:[%s1130_s24 + $0x54] ss:$8 sps:$4 sm:$0xff]   ;;  %v1028_v32 = vld [vmem:[%s1130_s24 + $0x50] ss:$8 sps:$4 sm:$0xff]   ;;  %v1189_v34 = vld [vmem:[%s1350_s2] ss:$0 sm:$0xff] }
  0x16   : > { %432 = vmatprep.subr.bf16.mxu0 %v1086_v1  ;;  %961 = vmatprep.subr.bf16.mxu1 %v1086_v1  ;;  %v1026_v31 = vld [vmem:[%s1130_s24 + $0xb4] ss:$8 sps:$4 sm:$0xff]   ;;  %v1029_v33 = vld [vmem:[%s1130_s24 + $0xb0] ss:$8 sps:$4 sm:$0xff]  }
  0x19   : > { %433 = vmatpush1.bf16.msra.mxu0 %v988_v4  ;;  %970 = vmatpush1.bf16.msra.mxu1 %v988_v4 }
  0x1a   : > { %434 = vmatprep.subr.bf16.mxu0 %v1086_v1  ;;  %962 = vmatprep.subr.bf16.mxu1 %v1086_v1 }
  0x1d   : > { %435 = vmatpush1.bf16.msra.mxu0 %v989_v7  ;;  %971 = vmatpush1.bf16.msra.mxu1 %v989_v7 }
  0x1e   : > { %436 = vmatprep.subr.bf16.mxu0 %v1086_v1  ;;  %963 = vmatprep.subr.bf16.mxu1 %v1086_v1 }
  0x21   : > { %437 = vmatpush1.bf16.msra.mxu0 %v990_v8  ;;  %972 = vmatpush1.bf16.msra.mxu1 %v990_v8 }
  0x22   : > { %438 = vmatprep.subr.bf16.mxu0 %v1086_v1  ;;  %964 = vmatprep.subr.bf16.mxu1 %v1086_v1 }
  0x25   : > { %439 = vmatpush1.bf16.msra.mxu0 %v991_v9  ;;  %973 = vmatpush1.bf16.msra.mxu1 %v991_v9 }
  0x26   : > { %440 = vmatprep.subr.bf16.mxu0 %v1086_v1  ;;  %965 = vmatprep.subr.bf16.mxu1 %v1086_v1 }
  0x29   : > { %441 = vmatpush1.bf16.msra.mxu0 %v992_v10  ;;  %974 = vmatpush1.bf16.msra.mxu1 %v992_v10 }
  0x2a   : > { %456 = vmatprep.subr.bf16.mxu0 %v1086_v1  ;;  %966 = vmatprep.subr.bf16.mxu1 %v1086_v1 }
  0x2d   : > { %457 = vmatpush2.bf16.msra.mxu0 %v993_v11  ;;  %975 = vmatpush2.bf16.msra.mxu1 %v993_v11 }
  0x30   : > { %459 = vmatmul.mubr.bf16.vlgmr.msra.gmra.mxu0 %v994_v12  ;;  %507 = vmatmul.mubr.bf16.vlgmr.msra.gmra.mxu1 %v997_v13 }
  0x31   : > { %896 = vmatprep.mubr.msk.bf16.mxu0 %vm389_vm0, %v1000_v14  ;;  %902 = vmatprep.mubr.msk.bf16.mxu1 %vm389_vm0, %v1002_v15 }
  0x38   : > { %467 = vmatmul.mubr.bf16.gmra.mxu0 %v1004_v16  ;;  %515 = vmatmul.mubr.bf16.gmra.mxu1 %v1005_v17 }
  0x39   : > { %897 = vmatprep.mubr.msk.bf16.mxu0 %vm389_vm0, %v1006_v18  ;;  %903 = vmatprep.mubr.msk.bf16.mxu1 %vm389_vm0, %v1008_v19 }
  0x40   : > { %475 = vmatmul.mubr.bf16.gmra.mxu0 %v1010_v20  ;;  %523 = vmatmul.mubr.bf16.gmra.mxu1 %v1011_v21 }
  0x41   : > { %898 = vmatprep.mubr.msk.bf16.mxu0 %vm389_vm0, %v1012_v22  ;;  %904 = vmatprep.mubr.msk.bf16.mxu1 %vm389_vm0, %v1014_v23 }
  0x48   : > { %483 = vmatmul.mubr.bf16.gmra.mxu0 %v1016_v24  ;;  %531 = vmatmul.mubr.bf16.gmra.mxu1 %v1017_v25 }
  0x49   : > { %899 = vmatprep.mubr.msk.bf16.mxu0 %vm389_vm0, %v1018_v26  ;;  %905 = vmatprep.mubr.msk.bf16.mxu1 %vm389_vm0, %v1020_v27 }
  0x50   : > { %491 = vmatmul.mubr.bf16.gmra.mxu0 %v1022_v28  ;;  %539 = vmatmul.mubr.bf16.gmra.mxu1 %v1023_v29 }
  0x51   : > { %900 = vmatprep.mubr.msk.bf16.mxu0 %vm389_vm0, %v1024_v30  ;;  %906 = vmatprep.mubr.msk.bf16.mxu1 %vm389_vm0, %v1026_v31 }
  0x58   : > { %499 = vmatmul.mubr.bf16.gmra.mxu0 %v1028_v32  ;;  %547 = vmatmul.mubr.bf16.gmra.mxu1 %v1029_v33 }
  0xf0   : > { %v460_v35 = vpop.f32.mrf.mxu0  ;;  %v508_v36 = vpop.f32.mrf.mxu1 }
  0xf1   : > { %v461_v37 = vadd.f32 %v1189_v34, %v460_v35  ;;  %v509_v38 = vadd.f32 %v1189_v34, %v508_v36 }
  0xf2   : > { %v462_v39 = vpop.f32.mrf.mxu0  ;;  %v510_v40 = vpop.f32.mrf.mxu1 }
  0xf3   : > { %v580_v41 = vmul.f32 0.70710677, %v461_v37  ;;  %v592_v42 = vmul.f32 0.70710677, %v509_v38  ;;  %v555_v11 = vmul.f32 0.5, %v461_v37  ;;  %v567_v14 = vmul.f32 0.5, %v509_v38 }
  0xf4   : > { %v463_v43 = vpop.f32.mrf.mxu0  ;;  %v511_v44 = vpop.f32.mrf.mxu1 }
  0xf5   : > { %1030 = verf.f32 %v580_v41  ;;  %v464_v45 = vadd.f32 %v1189_v34, %v463_v43  ;;  %v512_v46 = vadd.f32 %v1189_v34, %v511_v44 }
  0xf6   : > { %1032 = verf.f32 %v592_v42  ;;  %v465_v47 = vpop.f32.mrf.mxu0  ;;  %v513_v48 = vpop.f32.mrf.mxu1 }
  0xf7   : > { %v581_v49 = vmul.f32 0.70710677, %v464_v45  ;;  %v593_v50 = vmul.f32 0.70710677, %v512_v46  ;;  %v556_v28 = vmul.f32 0.5, %v464_v45  ;;  %v568_v32 = vmul.f32 0.5, %v512_v46 }
  0xf8   : > { %v468_v51 = vpop.f32.mrf.mxu0  ;;  %v516_v52 = vpop.f32.mrf.mxu1 }
  0xf9   : > { %1034 = verf.f32 %v581_v49  ;;  %v1196_v53 = vadd.f32 %v1189_v34, %v468_v51  ;;  %v1199_v54 = vadd.f32 %v1189_v34, %v516_v52 }
  0xfa   : > { %1036 = verf.f32 %v593_v50  ;;  %v470_v55 = vpop.f32.mrf.mxu0  ;;  %v518_v56 = vpop.f32.mrf.mxu1 }
  0xfb   : > { %v582_v57 = vmul.f32 0.70710677, %v1196_v53  ;;  %v594_v58 = vmul.f32 0.70710677, %v1199_v54  ;;  %v557_v47 = vmul.f32 0.5, %v1196_v53  ;;  %v569_v51 = vmul.f32 0.5, %v1199_v54 }
  0xfc   : > { %v471_v59 = vpop.f32.mrf.mxu0  ;;  %v519_v60 = vpop.f32.mrf.mxu1 }
  0xfd   : > { %1038 = verf.f32 %v582_v57  ;;  %v1204_v61 = vadd.f32 %v1189_v34, %v471_v59  ;;  %v1207_v62 = vadd.f32 %v1189_v34, %v519_v60 }
  0xfe   : > { %1040 = verf.f32 %v594_v58  ;;  %v473_v63 = vpop.f32.mrf.mxu0  ;;  %v521_v0 = vpop.f32.mrf.mxu1 }
  0xff   : > { %v583_v1 = vmul.f32 0.70710677, %v1204_v61  ;;  %v595_v2 = vmul.f32 0.70710677, %v1207_v62 }
 0x100   : > { %v476_v3 = vpop.f32.mrf.mxu0  ;;  %v524_v4 = vpop.f32.mrf.mxu1 }
 0x101   : > { %1042 = verf.f32 %v583_v1  ;;  %v1212_v5 = vadd.f32 %v1189_v34, %v476_v3  ;;  %v1215_v6 = vadd.f32 %v1189_v34, %v524_v4  ;;  %v558_v3 = vmul.f32 0.5, %v1204_v61 }
 0x102   : > { %v1031_v7 = vpop.eup %1030  ;;  %1044 = verf.f32 %v595_v2  ;;  %v478_v8 = vpop.f32.mrf.mxu0 }
 0x103   : > { %v526_v9 = vpop.f32.mrf.mxu1  ;;  %v1033_v10 = vpop.eup %1032  ;;  %v628_v12 = vadd.f32 1.0, %v1031_v7  ;;  %v584_v13 = vmul.f32 0.70710677, %v1212_v5  ;;  %v596_v16 = vmul.f32 0.70710677, %v1215_v6 }
 0x104   : > { %v640_v15 = vadd.f32 1.0, %v1033_v10  ;;  %v479_v17 = vpop.f32.mrf.mxu0  ;;  %v570_v9 = vmul.f32 0.5, %v1207_v62 }
 0x105   : > { %v527_v18 = vpop.f32.mrf.mxu1  ;;  %v652_v19 = vmul.f32 %v628_v12, %v555_v11  ;;  %1046 = verf.f32 %v584_v13  ;;  %v1221_v20 = vadd.f32 %v1189_v34, %v479_v17 }
 0x106   : > { %v1224_v21 = vadd.f32 %v1189_v34, %v527_v18  ;;  %v1035_v22 = vpop.eup %1034  ;;  %v664_v23 = vmul.f32 %v640_v15, %v567_v14  ;;  %1048 = verf.f32 %v596_v16  ;;  %v481_v24 = vpop.f32.mrf.mxu0 }
 0x107   : > { %v529_v25 = vpop.f32.mrf.mxu1  ;;  %v1037_v26 = vpop.eup %1036  ;;  %v934_v27 = vpack.c.bf16 %v652_v19, %v652_v19  ;;  %v629_v29 = vadd.f32 1.0, %v1035_v22  ;;  %v585_v30 = vmul.f32 0.70710677, %v1221_v20 }
 0x108   : > { %v946_v31 = vpack.c.bf16 %v664_v23, %v664_v23  ;;  %v641_v33 = vadd.f32 1.0, %v1037_v26  ;;  %v597_v35 = vmul.f32 0.70710677, %v1224_v21  ;;  %v484_v36 = vpop.f32.mrf.mxu0  ;;  %v559_v23 = vmul.f32 0.5, %v1212_v5 }
 0x109   : > { %v532_v37 = vpop.f32.mrf.mxu1  ;;  %773 = vst.msk [vmem:[%s1229_s16] sm:$0xf] %vm772_vm1, %v934_v27  ;;  %v653_v38 = vmul.f32 %v629_v29, %v556_v28  ;;  %1050 = verf.f32 %v585_v30  ;;  %v1236_v39 = vadd.f32 %v1189_v34, %v484_v36  ;;  %v571_v27 = vmul.f32 0.5, %v1215_v6 }
 0x10a   : > { %v1239_v40 = vadd.f32 %v1189_v34, %v532_v37  ;;  %v1039_v41 = vpop.eup %1038  ;;  %785 = vst.msk [vmem:[%s1229_s16 + $0x30] sm:$0xf] %vm772_vm1, %v946_v31  ;;  %v665_v42 = vmul.f32 %v641_v33, %v568_v32  ;;  %1052 = verf.f32 %v597_v35  ;;  %v486_v43 = vpop.f32.mrf.mxu0 }
 0x10b   : > { %v534_v44 = vpop.f32.mrf.mxu1  ;;  %v1041_v45 = vpop.eup %1040  ;;  %v935_v46 = vpack.c.bf16 %v653_v38, %v653_v38  ;;  %v630_v48 = vadd.f32 1.0, %v1039_v41  ;;  %v586_v49 = vmul.f32 0.70710677, %v1236_v39 }
 0x10c   : > { %v947_v50 = vpack.c.bf16 %v665_v42, %v665_v42  ;;  %v642_v52 = vadd.f32 1.0, %v1041_v45  ;;  %v598_v55 = vmul.f32 0.70710677, %v1239_v40  ;;  %v487_v56 = vpop.f32.mrf.mxu0  ;;  %v560_v42 = vmul.f32 0.5, %v1221_v20 }
 0x10d   : > { %v535_v57 = vpop.f32.mrf.mxu1  ;;  %774 = vst.msk [vmem:[%s1229_s16 + $0x4] sm:$0xf] %vm772_vm1, %v935_v46  ;;  %v654_v58 = vmul.f32 %v630_v48, %v557_v47  ;;  %1054 = verf.f32 %v586_v49  ;;  %v1250_v59 = vadd.f32 %v1189_v34, %v487_v56  ;;  %v572_v46 = vmul.f32 0.5, %v1224_v21 }
 0x10e   : > { %v1253_v53 = vadd.f32 %v1189_v34, %v535_v57  ;;  %v1043_v60 = vpop.eup %1042  ;;  %786 = vst.msk [vmem:[%s1229_s16 + $0x34] sm:$0xf] %vm772_vm1, %v947_v50  ;;  %v666_v54 = vmul.f32 %v642_v52, %v569_v51  ;;  %1056 = verf.f32 %v598_v55  ;;  %v489_v63 = vpop.f32.mrf.mxu0 }
 0x10f   : > { %v537_v0 = vpop.f32.mrf.mxu1  ;;  %v1045_v1 = vpop.eup %1044  ;;  %v936_v2 = vpack.c.bf16 %v654_v58, %v654_v58  ;;  %v631_v4 = vadd.f32 1.0, %v1043_v60  ;;  %v587_v7 = vmul.f32 0.70710677, %v1250_v59 }
 0x110   : > { %v948_v8 = vpack.c.bf16 %v666_v54, %v666_v54  ;;  %v643_v10 = vadd.f32 1.0, %v1045_v1  ;;  %v599_v11 = vmul.f32 0.70710677, %v1253_v53  ;;  %v492_v12 = vpop.f32.mrf.mxu0  ;;  %v561_v54 = vmul.f32 0.5, %v1236_v39 }
 0x111   : > { %v540_v13 = vpop.f32.mrf.mxu1  ;;  %775 = vst.msk [vmem:[%s1229_s16 + $0x8] sm:$0xf] %vm772_vm1, %v936_v2  ;;  %v655_v14 = vmul.f32 %v631_v4, %v558_v3  ;;  %1058 = verf.f32 %v587_v7  ;;  %v1264_v15 = vadd.f32 %v1189_v34, %v492_v12  ;;  %v573_v2 = vmul.f32 0.5, %v1239_v40 }
 0x112   : > { %v1267_v61 = vadd.f32 %v1189_v34, %v540_v13  ;;  %v1047_v16 = vpop.eup %1046  ;;  %787 = vst.msk [vmem:[%s1229_s16 + $0x38] sm:$0xf] %vm772_vm1, %v948_v8  ;;  %v667_v62 = vmul.f32 %v643_v10, %v570_v9  ;;  %1060 = verf.f32 %v599_v11  ;;  %v494_v17 = vpop.f32.mrf.mxu0 }
 0x113   : > { %v542_v18 = vpop.f32.mrf.mxu1  ;;  %v1049_v19 = vpop.eup %1048  ;;  %v937_v22 = vpack.c.bf16 %v655_v14, %v655_v14  ;;  %v632_v24 = vadd.f32 1.0, %v1047_v16  ;;  %v588_v25 = vmul.f32 0.70710677, %v1264_v15 }
 0x114   : > { %v949_v26 = vpack.c.bf16 %v667_v62, %v667_v62  ;;  %v644_v28 = vadd.f32 1.0, %v1049_v19  ;;  %v600_v29 = vmul.f32 0.70710677, %v1267_v61  ;;  %v495_v30 = vpop.f32.mrf.mxu0  ;;  %v562_v62 = vmul.f32 0.5, %v1250_v59 }
 0x115   : > { %v543_v31 = vpop.f32.mrf.mxu1  ;;  %776 = vst.msk [vmem:[%s1229_s16 + $0xc] sm:$0xf] %vm772_vm1, %v937_v22  ;;  %v656_v32 = vmul.f32 %v632_v24, %v559_v23  ;;  %1062 = verf.f32 %v588_v25  ;;  %v1278_v33 = vadd.f32 %v1189_v34, %v495_v30  ;;  %v574_v22 = vmul.f32 0.5, %v1253_v53 }
 0x116   : > { %v1281_v5 = vadd.f32 %v1189_v34, %v543_v31  ;;  %v1051_v35 = vpop.eup %1050  ;;  %788 = vst.msk [vmem:[%s1229_s16 + $0x3c] sm:$0xf] %vm772_vm1, %v949_v26  ;;  %v668_v6 = vmul.f32 %v644_v28, %v571_v27  ;;  %1064 = verf.f32 %v600_v29  ;;  %v497_v36 = vpop.f32.mrf.mxu0  ;;  %v563_v28 = vmul.f32 0.5, %v1264_v15 }
 0x117   : > { %v545_v37 = vpop.f32.mrf.mxu1  ;;  %v1053_v38 = vpop.eup %1052  ;;  %v938_v41 = vpack.c.bf16 %v656_v32, %v656_v32  ;;  %v633_v43 = vadd.f32 1.0, %v1051_v35  ;;  %v589_v44 = vmul.f32 0.70710677, %v1278_v33  ;;  %v575_v30 = vmul.f32 0.5, %v1267_v61 }
 0x118   : > { %v950_v45 = vpack.c.bf16 %v668_v6, %v668_v6  ;;  %v645_v47 = vadd.f32 1.0, %v1053_v38  ;;  %v601_v48 = vmul.f32 0.70710677, %v1281_v5  ;;  %v500_v49 = vpop.f32.mrf.mxu0  ;;  %v564_v38 = vmul.f32 0.5, %v1278_v33 }
 0x119   : > { %v548_v50 = vpop.f32.mrf.mxu1  ;;  %777 = vst.msk [vmem:[%s1229_s16 + $0x10] sm:$0xf] %vm772_vm1, %v938_v41  ;;  %v657_v51 = vmul.f32 %v633_v43, %v560_v42  ;;  %1066 = verf.f32 %v589_v44  ;;  %v1292_v52 = vadd.f32 %v1189_v34, %v500_v49  ;;  %v576_v42 = vmul.f32 0.5, %v1281_v5 }
 0x11a   : > { %v1295_v20 = vadd.f32 %v1189_v34, %v548_v50  ;;  %v1055_v55 = vpop.eup %1054  ;;  %789 = vst.msk [vmem:[%s1229_s16 + $0x40] sm:$0xf] %vm772_vm1, %v950_v45  ;;  %v669_v21 = vmul.f32 %v645_v47, %v572_v46  ;;  %1068 = verf.f32 %v601_v48  ;;  %v502_v56 = vpop.f32.mrf.mxu0 }
 0x11b   : > { %v550_v57 = vpop.f32.mrf.mxu1  ;;  %v1057_v58 = vpop.eup %1056  ;;  %v939_v60 = vpack.c.bf16 %v657_v51, %v657_v51  ;;  %v634_v63 = vadd.f32 1.0, %v1055_v55  ;;  %v590_v0 = vmul.f32 0.70710677, %v1292_v52  ;;  %v565_v48 = vmul.f32 0.5, %v1292_v52 }
 0x11c   : > { %v951_v1 = vpack.c.bf16 %v669_v21, %v669_v21  ;;  %v646_v3 = vadd.f32 1.0, %v1057_v58  ;;  %v602_v4 = vmul.f32 0.70710677, %v1295_v20  ;;  %v503_v7 = vpop.f32.mrf.mxu0  ;;  %v577_v50 = vmul.f32 0.5, %v1295_v20 }
 0x11d   : > { %v551_v8 = vpop.f32.mrf.mxu1  ;;  %778 = vst.msk [vmem:[%s1229_s16 + $0x14] sm:$0xf] %vm772_vm1, %v939_v60  ;;  %v658_v9 = vmul.f32 %v634_v63, %v561_v54  ;;  %1070 = verf.f32 %v590_v0  ;;  %v504_v10 = vadd.f32 %v1189_v34, %v503_v7 }
 0x11e   : > { %v1307_v11 = vadd.f32 %v1189_v34, %v551_v8  ;;  %v1059_v39 = vpop.eup %1058  ;;  %790 = vst.msk [vmem:[%s1229_s16 + $0x44] sm:$0xf] %vm772_vm1, %v951_v1  ;;  %v670_v12 = vmul.f32 %v646_v3, %v573_v2  ;;  %1072 = verf.f32 %v602_v4  ;;  %v505_v40 = vpop.f32.mrf.mxu0 }
 0x11f   : > { %v553_v13 = vpop.f32.mrf.mxu1  ;;  %v1061_v14 = vpop.eup %1060  ;;  %v940_v16 = vpack.c.bf16 %v658_v9, %v658_v9  ;;  %v635_v17 = vadd.f32 1.0, %v1059_v39  ;;  %v591_v18 = vmul.f32 0.70710677, %v504_v10  ;;  %v566_v58 = vmul.f32 0.5, %v504_v10 }
 0x120   : > { %v952_v19 = vpack.c.bf16 %v670_v12, %v670_v12  ;;  %v647_v34 = vadd.f32 1.0, %v1061_v14  ;;  %v603_v23 = vmul.f32 0.70710677, %v1307_v11  ;;  %v578_v54 = vmul.f32 0.5, %v1307_v11 }
 0x121   : > { %779 = vst.msk [vmem:[%s1229_s16 + $0x18] sm:$0xf] %vm772_vm1, %v940_v16  ;;  %v659_v24 = vmul.f32 %v635_v17, %v562_v62  ;;  %1074 = verf.f32 %v591_v18 }
 0x122   : > { %v1063_v25 = vpop.eup %1062  ;;  %791 = vst.msk [vmem:[%s1229_s16 + $0x48] sm:$0xf] %vm772_vm1, %v952_v19  ;;  %v671_v26 = vmul.f32 %v647_v34, %v574_v22  ;;  %1076 = verf.f32 %v603_v23 }
 0x123   : > { %v1065_v59 = vpop.eup %1064  ;;  %v941_v27 = vpack.c.bf16 %v659_v24, %v659_v24  ;;  %v636_v29 = vadd.f32 1.0, %v1063_v25 }
 0x124   : > { %v953_v53 = vpack.c.bf16 %v671_v26, %v671_v26  ;;  %v648_v31 = vadd.f32 1.0, %v1065_v59 }
 0x125   : > { %780 = vst.msk [vmem:[%s1229_s16 + $0x1c] sm:$0xf] %vm772_vm1, %v941_v27  ;;  %v660_v32 = vmul.f32 %v636_v29, %v563_v28 }
 0x126   : > { %v1067_v35 = vpop.eup %1066  ;;  %792 = vst.msk [vmem:[%s1229_s16 + $0x4c] sm:$0xf] %vm772_vm1, %v953_v53  ;;  %v672_v6 = vmul.f32 %v648_v31, %v575_v30 }
 0x127   : > { %v1069_v36 = vpop.eup %1068  ;;  %v942_v37 = vpack.c.bf16 %v660_v32, %v660_v32  ;;  %v637_v41 = vadd.f32 1.0, %v1067_v35 }
 0x128   : > { %v954_v15 = vpack.c.bf16 %v672_v6, %v672_v6  ;;  %v649_v43 = vadd.f32 1.0, %v1069_v36 }
 0x129   : > { %781 = vst.msk [vmem:[%s1229_s16 + $0x20] sm:$0xf] %vm772_vm1, %v942_v37  ;;  %v661_v61 = vmul.f32 %v637_v41, %v564_v38 }
 0x12a   : > { %v1071_v44 = vpop.eup %1070  ;;  %793 = vst.msk [vmem:[%s1229_s16 + $0x50] sm:$0xf] %vm772_vm1, %v954_v15  ;;  %v673_v45 = vmul.f32 %v649_v43, %v576_v42 }
 0x12b   : > { %v1073_v46 = vpop.eup %1072  ;;  %v943_v47 = vpack.c.bf16 %v661_v61, %v661_v61  ;;  %v638_v49 = vadd.f32 1.0, %v1071_v44 }
 0x12c   : > { %v955_v33 = vpack.c.bf16 %v673_v45, %v673_v45  ;;  %v650_v5 = vadd.f32 1.0, %v1073_v46 }
 0x12d   : > { %782 = vst.msk [vmem:[%s1229_s16 + $0x24] sm:$0xf] %vm772_vm1, %v943_v47  ;;  %v662_v51 = vmul.f32 %v638_v49, %v565_v48 }
 0x12e   : > { %v1075_v55 = vpop.eup %1074  ;;  %794 = vst.msk [vmem:[%s1229_s16 + $0x54] sm:$0xf] %vm772_vm1, %v955_v33  ;;  %v674_v21 = vmul.f32 %v650_v5, %v577_v50 }
 0x12f   : > { %v1077_v56 = vpop.eup %1076  ;;  %v944_v57 = vpack.c.bf16 %v662_v51, %v662_v51  ;;  %v639_v52 = vadd.f32 1.0, %v1075_v55 }
 0x130   : > { %v956_v60 = vpack.c.bf16 %v674_v21, %v674_v21  ;;  %v651_v63 = vadd.f32 1.0, %v1077_v56 }
 0x131   : > { %783 = vst.msk [vmem:[%s1229_s16 + $0x28] sm:$0xf] %vm772_vm1, %v944_v57  ;;  %v663_v20 = vmul.f32 %v639_v52, %v566_v58 }
 0x132   : > { %795 = vst.msk [vmem:[%s1229_s16 + $0x58] sm:$0xf] %vm772_vm1, %v956_v60  ;;  %v675_v0 = vmul.f32 %v651_v63, %v578_v54 }
 0x133   : > { %v945_v1 = vpack.c.bf16 %v663_v20, %v663_v20 }
 0x134   : > { %v957_v2 = vpack.c.bf16 %v675_v0, %v675_v0 }
 0x135   : > { %784 = vst.msk [vmem:[%s1229_s16 + $0x2c] sm:$0xf] %vm772_vm1, %v945_v1 }
 0x136   : > { %796 = vst.msk [vmem:[%s1229_s16 + $0x5c] sm:$0xf] %vm772_vm1, %v957_v2 }
 0x137 PF: > { %s13_s12 = sadd.s32 1, %s1084_s12  }
 0x138   : > { %p10_p4 = scmp.ge.s32.totalorder %s13_s12, 4  }
 0x13a   :  { %12 = sbr.rel (!%p10_p4) target bundleno = 1 (0x1), region = 62 }

// kernel: vsm_oiqa_forward.22
= control target key start
LH: loop header
LB: loop body
LE: loop exit
PB: predicated region body
PF: predicated region fallthrough
CT: control target
= control target key end

     0   :  { %s1305_s15 = smov 0   ;;  %s1647_s0 = inlined_call_operand.vmem [shape: bf16[384,144], index: 0, kind: input, shape index: {}]   ;;  %s1648_s1 = inlined_call_operand.vmem [shape: bf16[144,16], index: 1, kind: input, shape index: {}]   ;;  %s1649_s2 = inlined_call_operand.vmem [shape: f32[1,16], index: 2, kind: input, shape index: {}]   ;;  %s1650_s3 = inlined_call_operand.vmem [shape: bf16[384,16], index: 3, kind: input, shape index: {}]   ;;  %s1651_s4 = inlined_call_operand.vmem [shape: bf16[384,16], index: 4, kind: output, shape index: {}]  }
   0x1 LB: > { %s986_s16 = sadd.s32 4294967295, %s1277_s15   ;;  %p990_p0 = scmp.ge.s32.totalorder %s1277_s15, 1  ;;  %s1277_s15 = sphi %s1305_s15, %s14_s15  }
   0x2   : > { %p175_p1 = scmp.lt.s32.totalorder %s1277_s15, 3 }
   0x4   : > { %p176_p2 = pnand %p990_p0, %p175_p1 }
   0x5   : > { %s207_s19 = smul.u32 (!%p176_p2), 24, %s986_s16 }
   0x6   : > { %179 = sbr.rel (%p176_p2) target bundleno = 313 (0x139), region = 36 }
   0x7   : > { %p208_p3 = scmp.lt.s32.totalorder (!%p176_p2), %s207_s19, 47 }
   0xb   : > { %v1178_v0 = vld [vmem:[%s1648_s1 + $0x38] sm:$0xff]   ;;  %v1279_v1 = vmov 0   ;;  %v1179_v2 = vld [vmem:[%s1648_s1 + $0x30] sm:$0xff]   ;;  %s1653_s19 = smov (!%p208_p3, %s207_s19), 47  ;;  %v1180_v3 = vld [vmem:[%s1648_s1 + $0x28] sm:$0xff]   ;;  %vm438_vm0 = vcmask 130048  }
   0xc   : > { %475 = vmatprep.subr.bf16.mxu0 %v1279_v1  ;;  %1151 = vmatprep.subr.bf16.mxu1 %v1279_v1  ;;  %s1067_s24 = sshll.u32 %s1653_s19, 3  ;;  %v1181_v4 = vld [vmem:[%s1648_s1 + $0x20] sm:$0xff]   ;;  %v1182_v7 = vld [vmem:[%s1648_s1 + $0x18] sm:$0xff]   ;;  %v1183_v8 = vld [vmem:[%s1648_s1 + $0x10] sm:$0xff]   ;;  %s993_s17 = sshll.u32 %s1653_s19, 2  ;;  %vm893_vm1 = vcmask 125952  }
   0xd   : > { %476 = vmatpush1.bf16.msra.mxu0 %v1178_v0  ;;  %1160 = vmatpush1.bf16.msra.mxu1 %v1178_v0  ;;  %s1328_s27 = scalar_lea.vmem %s1647_s0, %s1067_s24  ;;  %v1184_v9 = vld [vmem:[%s1648_s1 + $0x8] sm:$0xff]   ;;  %v1185_v10 = vld [vmem:[%s1648_s1] sm:$0xff]   ;;  %s1411_s21 = scalar_lea.vmem %s1650_s3, %s993_s17 }
   0xe   : > { %477 = vmatprep.subr.bf16.mxu0 %v1279_v1  ;;  %1152 = vmatprep.subr.bf16.mxu1 %v1279_v1  ;;  %v1189_v5 = vld [vmem:[%s1328_s27 + $0x4] ss:$8 sps:$4 sm:$0xff]   ;;  %v1187_v12 = vld [vmem:[%s1328_s27] ss:$8 sps:$4 sm:$0xff]   ;;  %v1193_v14 = vld [vmem:[%s1328_s27 + $0x14] ss:$8 sps:$4 sm:$0xff]   ;;  %s1492_s24 = scalar_lea.vmem %s1651_s4, %s993_s17 }
   0xf   : > { %v1192_v6 = vld [vmem:[%s1328_s27 + $0x64] ss:$8 sps:$4 sm:$0xff]   ;;  %1029 = vmatprep.mubr.msk.bf16.mxu0 %vm438_vm0, %v1189_v5  ;;  %v1190_v13 = vld [vmem:[%s1328_s27 + $0x60] ss:$8 sps:$4 sm:$0xff]   ;;  %v1195_v15 = vld [vmem:[%s1328_s27 + $0x74] ss:$8 sps:$4 sm:$0xff]  }
  0x10   : > { %1035 = vmatprep.mubr.msk.bf16.mxu1 %vm438_vm0, %v1192_v6  ;;  %v1186_v11 = vld [vmem:[%s1648_s1 + $0x40] sm:$0xff]   ;;  %v1197_v16 = vld [vmem:[%s1328_s27 + $0x10] ss:$8 sps:$4 sm:$0xff]   ;;  %v1205_v22 = vld [vmem:[%s1328_s27 + $0x34] ss:$8 sps:$4 sm:$0xff]  }
  0x11   : > { %478 = vmatpush1.bf16.msra.mxu0 %v1179_v2  ;;  %1161 = vmatpush1.bf16.msra.mxu1 %v1179_v2  ;;  %v1198_v17 = vld [vmem:[%s1328_s27 + $0x70] ss:$8 sps:$4 sm:$0xff]   ;;  %v1199_v18 = vld [vmem:[%s1328_s27 + $0x24] ss:$8 sps:$4 sm:$0xff]   ;;  %v1203_v20 = vld [vmem:[%s1328_s27 + $0x20] ss:$8 sps:$4 sm:$0xff]  }
  0x12   : > { %479 = vmatprep.subr.bf16.mxu0 %v1279_v1  ;;  %1153 = vmatprep.subr.bf16.mxu1 %v1279_v1  ;;  %v1201_v19 = vld [vmem:[%s1328_s27 + $0x84] ss:$8 sps:$4 sm:$0xff]   ;;  %v1204_v21 = vld [vmem:[%s1328_s27 + $0x80] ss:$8 sps:$4 sm:$0xff]   ;;  %v1207_v23 = vld [vmem:[%s1328_s27 + $0x94] ss:$8 sps:$4 sm:$0xff]  }
  0x13   : > { %v1209_v24 = vld [vmem:[%s1328_s27 + $0x30] ss:$8 sps:$4 sm:$0xff]   ;;  %v1211_v26 = vld [vmem:[%s1328_s27 + $0x44] ss:$8 sps:$4 sm:$0xff]   ;;  %v1215_v28 = vld [vmem:[%s1328_s27 + $0x40] ss:$8 sps:$4 sm:$0xff]  }
  0x14   : > { %v1210_v25 = vld [vmem:[%s1328_s27 + $0x90] ss:$8 sps:$4 sm:$0xff]   ;;  %v1213_v27 = vld [vmem:[%s1328_s27 + $0xa4] ss:$8 sps:$4 sm:$0xff]   ;;  %v1216_v29 = vld [vmem:[%s1328_s27 + $0xa0] ss:$8 sps:$4 sm:$0xff]  }
  0x15   : > { %480 = vmatpush1.bf16.msra.mxu0 %v1180_v3  ;;  %1162 = vmatpush1.bf16.msra.mxu1 %v1180_v3  ;;  %v1217_v30 = vld [vmem:[%s1328_s27 + $0x54] ss:$8 sps:$4 sm:$0xff]   ;;  %v1221_v32 = vld [vmem:[%s1328_s27 + $0x50] ss:$8 sps:$4 sm:$0xff]   ;;  %v1387_v34 = vld [vmem:[%s1649_s2] ss:$0 sm:$0xff] }
  0x16   : > { %481 = vmatprep.subr.bf16.mxu0 %v1279_v1  ;;  %1154 = vmatprep.subr.bf16.mxu1 %v1279_v1  ;;  %v1219_v31 = vld [vmem:[%s1328_s27 + $0xb4] ss:$8 sps:$4 sm:$0xff]   ;;  %v1222_v33 = vld [vmem:[%s1328_s27 + $0xb0] ss:$8 sps:$4 sm:$0xff]   ;;  %v1420_v57 = vld [vmem:[%s1411_s21] sm:$0xff]  }
  0x17   : > { %v1423_v58 = vld [vmem:[%s1411_s21 + $0x30] sm:$0xff]   ;;  %v1428_v63 = vld [vmem:[%s1411_s21 + $0x8] sm:$0xff]   ;;  %v1431_v0 = vld [vmem:[%s1411_s21 + $0x38] sm:$0xff]   ;;  %v1094_v3 = vunpack.c.l.bf16 %v1420_v57 }
  0x19   : > { %482 = vmatpush1.bf16.msra.mxu0 %v1181_v4  ;;  %1163 = vmatpush1.bf16.msra.mxu1 %v1181_v4  ;;  %v1118_v4 = vunpack.c.l.bf16 %v1423_v58 }
  0x1a   : > { %483 = vmatprep.subr.bf16.mxu0 %v1279_v1  ;;  %1155 = vmatprep.subr.bf16.mxu1 %v1279_v1 }
  0x1d   : > { %484 = vmatpush1.bf16.msra.mxu0 %v1182_v7  ;;  %1164 = vmatpush1.bf16.msra.mxu1 %v1182_v7  ;;  %v1442_v7 = vld [vmem:[%s1411_s21 + $0x10] sm:$0xff]  }
  0x1e   : > { %485 = vmatprep.subr.bf16.mxu0 %v1279_v1  ;;  %1156 = vmatprep.subr.bf16.mxu1 %v1279_v1 }
  0x21   : > { %486 = vmatpush1.bf16.msra.mxu0 %v1183_v8  ;;  %1165 = vmatpush1.bf16.msra.mxu1 %v1183_v8  ;;  %v1095_v8 = vunpack.c.h.bf16 %v1420_v57 }
  0x22   : > { %487 = vmatprep.subr.bf16.mxu0 %v1279_v1  ;;  %1157 = vmatprep.subr.bf16.mxu1 %v1279_v1 }
  0x25   : > { %488 = vmatpush1.bf16.msra.mxu0 %v1184_v9  ;;  %1166 = vmatpush1.bf16.msra.mxu1 %v1184_v9  ;;  %v1119_v9 = vunpack.c.h.bf16 %v1423_v58 }
  0x26   : > { %489 = vmatprep.subr.bf16.mxu0 %v1279_v1  ;;  %1158 = vmatprep.subr.bf16.mxu1 %v1279_v1 }
  0x29   : > { %490 = vmatpush1.bf16.msra.mxu0 %v1185_v10  ;;  %1167 = vmatpush1.bf16.msra.mxu1 %v1185_v10 }
  0x2a   : > { %505 = vmatprep.subr.bf16.mxu0 %v1279_v1  ;;  %1159 = vmatprep.subr.bf16.mxu1 %v1279_v1 }
  0x2d   : > { %506 = vmatpush2.bf16.msra.mxu0 %v1186_v11  ;;  %1168 = vmatpush2.bf16.msra.mxu1 %v1186_v11 }
  0x30   : > { %508 = vmatmul.mubr.bf16.vlgmr.msra.gmra.mxu0 %v1187_v12  ;;  %556 = vmatmul.mubr.bf16.vlgmr.msra.gmra.mxu1 %v1190_v13  ;;  %v1449_v12 = vld [vmem:[%s1411_s21 + $0x40] sm:$0xff]   ;;  %v1098_v13 = vunpack.c.l.bf16 %v1428_v63 }
  0x31   : > { %1030 = vmatprep.mubr.msk.bf16.mxu0 %vm438_vm0, %v1193_v14  ;;  %1036 = vmatprep.mubr.msk.bf16.mxu1 %vm438_vm0, %v1195_v15  ;;  %v1122_v14 = vunpack.c.l.bf16 %v1431_v0  ;;  %v1099_v15 = vunpack.c.h.bf16 %v1428_v63 }
  0x38   : > { %516 = vmatmul.mubr.bf16.gmra.mxu0 %v1197_v16  ;;  %564 = vmatmul.mubr.bf16.gmra.mxu1 %v1198_v17  ;;  %v1123_v16 = vunpack.c.h.bf16 %v1431_v0 }
  0x39   : > { %1031 = vmatprep.mubr.msk.bf16.mxu0 %vm438_vm0, %v1199_v18  ;;  %1037 = vmatprep.mubr.msk.bf16.mxu1 %vm438_vm0, %v1201_v19  ;;  %v1456_v19 = vld [vmem:[%s1411_s21 + $0x18] sm:$0xff]  }
  0x40   : > { %524 = vmatmul.mubr.bf16.gmra.mxu0 %v1203_v20  ;;  %572 = vmatmul.mubr.bf16.gmra.mxu1 %v1204_v21  ;;  %v1102_v21 = vunpack.c.l.bf16 %v1442_v7 }
  0x41   : > { %1032 = vmatprep.mubr.msk.bf16.mxu0 %vm438_vm0, %v1205_v22  ;;  %1038 = vmatprep.mubr.msk.bf16.mxu1 %vm438_vm0, %v1207_v23  ;;  %v1466_v23 = vld [vmem:[%s1411_s21 + $0x48] sm:$0xff]  }
  0x48   : > { %532 = vmatmul.mubr.bf16.gmra.mxu0 %v1209_v24  ;;  %580 = vmatmul.mubr.bf16.gmra.mxu1 %v1210_v25  ;;  %v1126_v25 = vunpack.c.l.bf16 %v1449_v12 }
  0x49   : > { %1033 = vmatprep.mubr.msk.bf16.mxu0 %vm438_vm0, %v1211_v26  ;;  %1039 = vmatprep.mubr.msk.bf16.mxu1 %vm438_vm0, %v1213_v27 }
  0x50   : > { %540 = vmatmul.mubr.bf16.gmra.mxu0 %v1215_v28  ;;  %588 = vmatmul.mubr.bf16.gmra.mxu1 %v1216_v29  ;;  %v1103_v28 = vunpack.c.h.bf16 %v1442_v7  ;;  %v1127_v29 = vunpack.c.h.bf16 %v1449_v12 }
  0x51   : > { %1034 = vmatprep.mubr.msk.bf16.mxu0 %vm438_vm0, %v1217_v30  ;;  %1040 = vmatprep.mubr.msk.bf16.mxu1 %vm438_vm0, %v1219_v31 }
  0x58   : > { %548 = vmatmul.mubr.bf16.gmra.mxu0 %v1221_v32  ;;  %596 = vmatmul.mubr.bf16.gmra.mxu1 %v1222_v33 }
  0xf0   : > { %v509_v35 = vpop.f32.mrf.mxu0  ;;  %v557_v36 = vpop.f32.mrf.mxu1 }
  0xf1   : > { %v1390_v37 = vadd.f32 %v1387_v34, %v509_v35  ;;  %v1393_v38 = vadd.f32 %v1387_v34, %v557_v36  ;;  %v1106_v35 = vunpack.c.l.bf16 %v1456_v19 }
  0xf2   : > { %v511_v39 = vpop.f32.mrf.mxu0  ;;  %v559_v40 = vpop.f32.mrf.mxu1 }
  0xf3   : > { %v629_v41 = vmul.f32 0.70710677, %v1390_v37  ;;  %v641_v42 = vmul.f32 0.70710677, %v1393_v38  ;;  %v604_v31 = vmul.f32 0.5, %v1390_v37  ;;  %v616_v36 = vmul.f32 0.5, %v1393_v38 }
  0xf4   : > { %v512_v43 = vpop.f32.mrf.mxu0  ;;  %v560_v44 = vpop.f32.mrf.mxu1 }
  0xf5   : > { %1223 = verf.f32 %v629_v41  ;;  %v1399_v45 = vadd.f32 %v1387_v34, %v512_v43  ;;  %v1402_v46 = vadd.f32 %v1387_v34, %v560_v44  ;;  %v1130_v43 = vunpack.c.l.bf16 %v1466_v23 }
  0xf6   : > { %1225 = verf.f32 %v641_v42  ;;  %v514_v47 = vpop.f32.mrf.mxu0  ;;  %v562_v48 = vpop.f32.mrf.mxu1 }
  0xf7   : > { %v630_v49 = vmul.f32 0.70710677, %v1399_v45  ;;  %v642_v50 = vmul.f32 0.70710677, %v1402_v46 }
  0xf8   : > { %v517_v51 = vpop.f32.mrf.mxu0  ;;  %v565_v52 = vpop.f32.mrf.mxu1 }
  0xf9   : > { %1227 = verf.f32 %v630_v49  ;;  %v1414_v53 = vadd.f32 %v1387_v34, %v517_v51  ;;  %v1417_v54 = vadd.f32 %v1387_v34, %v565_v52  ;;  %v1107_v51 = vunpack.c.h.bf16 %v1456_v19 }
  0xfa   : > { %1229 = verf.f32 %v642_v50  ;;  %v519_v55 = vpop.f32.mrf.mxu0  ;;  %v567_v56 = vpop.f32.mrf.mxu1  ;;  %v1131_v52 = vunpack.c.h.bf16 %v1466_v23 }
  0xfb   : > { %v631_v59 = vmul.f32 0.70710677, %v1414_v53  ;;  %v643_v60 = vmul.f32 0.70710677, %v1417_v54 }
  0xfc   : > { %v520_v61 = vpop.f32.mrf.mxu0  ;;  %v568_v62 = vpop.f32.mrf.mxu1 }
  0xfd   : > { %1231 = verf.f32 %v631_v59  ;;  %v1434_v1 = vadd.f32 %v1387_v34, %v520_v61  ;;  %v1437_v2 = vadd.f32 %v1387_v34, %v568_v62  ;;  %v605_v59 = vmul.f32 0.5, %v1399_v45 }
  0xfe   : > { %1233 = verf.f32 %v643_v60  ;;  %v522_v5 = vpop.f32.mrf.mxu0  ;;  %v570_v6 = vpop.f32.mrf.mxu1 }
  0xff   : > { %v632_v10 = vmul.f32 0.70710677, %v1434_v1  ;;  %v644_v11 = vmul.f32 0.70710677, %v1437_v2  ;;  %v617_v5 = vmul.f32 0.5, %v1402_v46 }
 0x100   : > { %v525_v17 = vpop.f32.mrf.mxu0  ;;  %v573_v18 = vpop.f32.mrf.mxu1 }
 0x101   : > { %1235 = verf.f32 %v632_v10  ;;  %v1459_v20 = vadd.f32 %v1387_v34, %v525_v17  ;;  %v1463_v22 = vadd.f32 %v1387_v34, %v573_v18 }
 0x102   : > { %v1224_v24 = vpop.eup %1223  ;;  %1237 = verf.f32 %v644_v11  ;;  %v527_v26 = vpop.f32.mrf.mxu0 }
 0x103   : > { %v575_v27 = vpop.f32.mrf.mxu1  ;;  %v1226_v30 = vpop.eup %1225  ;;  %v677_v32 = vadd.f32 1.0, %v1224_v24  ;;  %v633_v33 = vmul.f32 0.70710677, %v1459_v20  ;;  %v645_v40 = vmul.f32 0.70710677, %v1463_v22 }
 0x104   : > { %v689_v39 = vadd.f32 1.0, %v1226_v30  ;;  %v528_v41 = vpop.f32.mrf.mxu0 }
 0x105   : > { %v576_v42 = vpop.f32.mrf.mxu1  ;;  %v701_v44 = vmul.f32 %v677_v32, %v604_v31  ;;  %1239 = verf.f32 %v633_v33  ;;  %v1478_v47 = vadd.f32 %v1387_v34, %v528_v41  ;;  %v606_v33 = vmul.f32 0.5, %v1414_v53 }
 0x106   : > { %v1481_v37 = vadd.f32 %v1387_v34, %v576_v42  ;;  %v1228_v48 = vpop.eup %1227  ;;  %v713_v49 = vmul.f32 %v689_v39, %v616_v36  ;;  %1241 = verf.f32 %v645_v40  ;;  %v530_v38 = vpop.f32.mrf.mxu0  ;;  %v618_v41 = vmul.f32 0.5, %v1417_v54 }
 0x107   : > { %v578_v50 = vpop.f32.mrf.mxu1  ;;  %v1230_v55 = vpop.eup %1229  ;;  %v773_v56 = vadd.f32 %v1094_v3, %v701_v44  ;;  %v678_v60 = vadd.f32 1.0, %v1228_v48  ;;  %v634_v61 = vmul.f32 0.70710677, %v1478_v47 }
 0x108   : > { %v785_v62 = vadd.f32 %v1118_v4, %v713_v49  ;;  %v690_v6 = vadd.f32 1.0, %v1230_v55  ;;  %v646_v10 = vmul.f32 0.70710677, %v1481_v37  ;;  %v533_v11 = vpop.f32.mrf.mxu0 }
 0x109   : > { %v581_v3 = vpop.f32.mrf.mxu1  ;;  %v1068_v17 = vpack.c.bf16 %v773_v56, %v773_v56  ;;  %v702_v45 = vmul.f32 %v678_v60, %v605_v59  ;;  %1243 = verf.f32 %v634_v61  ;;  %v1497_v18 = vadd.f32 %v1387_v34, %v533_v11 }
 0x10a   : > { %v1232_v24 = vpop.eup %1231  ;;  %v1080_v26 = vpack.c.bf16 %v785_v62, %v785_v62  ;;  %v714_v27 = vmul.f32 %v690_v6, %v617_v5  ;;  %1245 = verf.f32 %v646_v10  ;;  %v1500_v4 = vadd.f32 %v1387_v34, %v581_v3  ;;  %v535_v46 = vpop.f32.mrf.mxu0 }
 0x10b   : > { %v583_v30 = vpop.f32.mrf.mxu1  ;;  %v1234_v31 = vpop.eup %1233  ;;  %894 = vst.msk [vmem:[%s1492_s24] sm:$0xf] %vm893_vm1, %v1068_v17  ;;  %v774_v32 = vadd.f32 %v1095_v8, %v702_v45  ;;  %v679_v36 = vadd.f32 1.0, %v1232_v24  ;;  %v635_v39 = vmul.f32 0.70710677, %v1497_v18  ;;  %v607_v60 = vmul.f32 0.5, %v1434_v1 }
 0x10c   : > { %906 = vst.msk [vmem:[%s1492_s24 + $0x30] sm:$0xf] %vm893_vm1, %v1080_v26  ;;  %v786_v40 = vadd.f32 %v1119_v9, %v714_v27  ;;  %v691_v42 = vadd.f32 1.0, %v1234_v31  ;;  %v647_v44 = vmul.f32 0.70710677, %v1500_v4  ;;  %v536_v48 = vpop.f32.mrf.mxu0  ;;  %v619_v6 = vmul.f32 0.5, %v1437_v2 }
 0x10d   : > { %v584_v49 = vpop.f32.mrf.mxu1  ;;  %v1069_v57 = vpack.c.bf16 %v774_v32, %v774_v32  ;;  %v703_v8 = vmul.f32 %v679_v36, %v606_v33  ;;  %1247 = verf.f32 %v635_v39  ;;  %v1515_v53 = vadd.f32 %v1387_v34, %v536_v48 }
 0x10e   : > { %v1236_v38 = vpop.eup %1235  ;;  %v1081_v50 = vpack.c.bf16 %v786_v40, %v786_v40  ;;  %v715_v55 = vmul.f32 %v691_v42, %v618_v41  ;;  %1249 = verf.f32 %v647_v44  ;;  %v1518_v58 = vadd.f32 %v1387_v34, %v584_v49  ;;  %v538_v54 = vpop.f32.mrf.mxu0 }
 0x10f   : > { %v586_v9 = vpop.f32.mrf.mxu1  ;;  %v1238_v56 = vpop.eup %1237  ;;  %895 = vst.msk [vmem:[%s1492_s24 + $0x4] sm:$0xf] %vm893_vm1, %v1069_v57  ;;  %v775_v59 = vadd.f32 %v1098_v13, %v703_v8  ;;  %v680_v61 = vadd.f32 1.0, %v1236_v38  ;;  %v636_v62 = vmul.f32 0.70710677, %v1515_v53  ;;  %v608_v32 = vmul.f32 0.5, %v1459_v20 }
 0x110   : > { %907 = vst.msk [vmem:[%s1492_s24 + $0x34] sm:$0xf] %vm893_vm1, %v1081_v50  ;;  %v787_v5 = vadd.f32 %v1122_v14, %v715_v55  ;;  %v692_v10 = vadd.f32 1.0, %v1238_v56  ;;  %v648_v11 = vmul.f32 0.70710677, %v1518_v58  ;;  %v541_v3 = vpop.f32.mrf.mxu0  ;;  %v620_v40 = vmul.f32 0.5, %v1463_v22 }
 0x111   : > { %v589_v17 = vpop.f32.mrf.mxu1  ;;  %v1070_v45 = vpack.c.bf16 %v775_v59, %v775_v59  ;;  %v704_v13 = vmul.f32 %v680_v61, %v607_v60  ;;  %1251 = verf.f32 %v636_v62  ;;  %v1533_v1 = vadd.f32 %v1387_v34, %v541_v3 }
 0x112   : > { %v1240_v24 = vpop.eup %1239  ;;  %v1082_v26 = vpack.c.bf16 %v787_v5, %v787_v5  ;;  %v716_v27 = vmul.f32 %v692_v10, %v619_v6  ;;  %1253 = verf.f32 %v648_v11  ;;  %v1536_v14 = vadd.f32 %v1387_v34, %v589_v17  ;;  %v543_v2 = vpop.f32.mrf.mxu0 }
 0x113   : > { %v591_v46 = vpop.f32.mrf.mxu1  ;;  %v1242_v30 = vpop.eup %1241  ;;  %896 = vst.msk [vmem:[%s1492_s24 + $0x8] sm:$0xf] %vm893_vm1, %v1070_v45  ;;  %v776_v31 = vadd.f32 %v1099_v15, %v704_v13  ;;  %v681_v33 = vadd.f32 1.0, %v1240_v24  ;;  %v637_v36 = vmul.f32 0.70710677, %v1533_v1  ;;  %v609_v55 = vmul.f32 0.5, %v1478_v47 }
 0x114   : > { %908 = vst.msk [vmem:[%s1492_s24 + $0x38] sm:$0xf] %vm893_vm1, %v1082_v26  ;;  %v788_v39 = vadd.f32 %v1123_v16, %v716_v27  ;;  %v693_v41 = vadd.f32 1.0, %v1242_v30  ;;  %v649_v42 = vmul.f32 0.70710677, %v1536_v14  ;;  %v544_v44 = vpop.f32.mrf.mxu0  ;;  %v621_v59 = vmul.f32 0.5, %v1481_v37 }
 0x115   : > { %v592_v48 = vpop.f32.mrf.mxu1  ;;  %v1071_v63 = vpack.c.bf16 %v776_v31, %v776_v31  ;;  %v705_v15 = vmul.f32 %v681_v33, %v608_v32  ;;  %1255 = verf.f32 %v637_v36  ;;  %v1551_v20 = vadd.f32 %v1387_v34, %v544_v44 }
 0x116   : > { %v1244_v49 = vpop.eup %1243  ;;  %v1083_v57 = vpack.c.bf16 %v788_v39, %v788_v39  ;;  %v717_v8 = vmul.f32 %v693_v41, %v620_v40  ;;  %1257 = verf.f32 %v649_v42  ;;  %v1554_v0 = vadd.f32 %v1387_v34, %v592_v48  ;;  %v546_v16 = vpop.f32.mrf.mxu0 }
 0x117   : > { %v594_v22 = vpop.f32.mrf.mxu1  ;;  %v1246_v38 = vpop.eup %1245  ;;  %897 = vst.msk [vmem:[%s1492_s24 + $0xc] sm:$0xf] %vm893_vm1, %v1071_v63  ;;  %v777_v50 = vadd.f32 %v1102_v21, %v705_v15  ;;  %v682_v54 = vadd.f32 1.0, %v1244_v49  ;;  %v638_v9 = vmul.f32 0.70710677, %v1551_v20  ;;  %v610_v24 = vmul.f32 0.5, %v1497_v18 }
 0x118   : > { %909 = vst.msk [vmem:[%s1492_s24 + $0x3c] sm:$0xf] %vm893_vm1, %v1083_v57  ;;  %v789_v56 = vadd.f32 %v1126_v25, %v717_v8  ;;  %v694_v60 = vadd.f32 1.0, %v1246_v38  ;;  %v650_v61 = vmul.f32 0.70710677, %v1554_v0  ;;  %v549_v62 = vpop.f32.mrf.mxu0  ;;  %v622_v46 = vmul.f32 0.5, %v1500_v4 }
 0x119   : > { %v597_v5 = vpop.f32.mrf.mxu1  ;;  %v1072_v6 = vpack.c.bf16 %v777_v50, %v777_v50  ;;  %v706_v21 = vmul.f32 %v682_v54, %v609_v55  ;;  %1259 = verf.f32 %v638_v9  ;;  %v1569_v47 = vadd.f32 %v1387_v34, %v549_v62  ;;  %v1143_v57 = vld [vmem:[%s1411_s21 + $0x20] sm:$0xff]   ;;  %v1149_v22 = vld [vmem:[%s1411_s21 + $0x50] sm:$0xff]  }
 0x11a   : > { %v1248_v10 = vpop.eup %1247  ;;  %v1084_v11 = vpack.c.bf16 %v789_v56, %v789_v56  ;;  %v718_v3 = vmul.f32 %v694_v60, %v621_v59  ;;  %1261 = verf.f32 %v650_v61  ;;  %v1572_v25 = vadd.f32 %v1387_v34, %v597_v5  ;;  %v551_v37 = vpop.f32.mrf.mxu0 }
 0x11b   : > { %v599_v17 = vpop.f32.mrf.mxu1  ;;  %v1250_v45 = vpop.eup %1249  ;;  %898 = vst.msk [vmem:[%s1492_s24 + $0x10] sm:$0xf] %vm893_vm1, %v1072_v6  ;;  %v778_v13 = vadd.f32 %v1103_v28, %v706_v21  ;;  %v683_v26 = vadd.f32 1.0, %v1248_v10  ;;  %v639_v27 = vmul.f32 0.70710677, %v1569_v47  ;;  %v611_v44 = vmul.f32 0.5, %v1515_v53 }
 0x11c   : > { %910 = vst.msk [vmem:[%s1492_s24 + $0x40] sm:$0xf] %vm893_vm1, %v1084_v11  ;;  %v790_v2 = vadd.f32 %v1127_v29, %v718_v3  ;;  %v695_v30 = vadd.f32 1.0, %v1250_v45  ;;  %v651_v31 = vmul.f32 0.70710677, %v1572_v25  ;;  %v552_v32 = vpop.f32.mrf.mxu0  ;;  %v623_v15 = vmul.f32 0.5, %v1518_v58 }
 0x11d   : > { %v600_v33 = vpop.f32.mrf.mxu1  ;;  %v1073_v7 = vpack.c.bf16 %v778_v13, %v778_v13  ;;  %v707_v28 = vmul.f32 %v683_v26, %v610_v24  ;;  %1263 = verf.f32 %v639_v27  ;;  %v1587_v18 = vadd.f32 %v1387_v34, %v552_v32  ;;  %v1144_v17 = vld [vmem:[%s1411_s21 + $0x28] sm:$0xff]   ;;  %v1150_v24 = vld [vmem:[%s1411_s21 + $0x58] sm:$0xff]  }
 0x11e   : > { %v1252_v36 = vpop.eup %1251  ;;  %v1085_v39 = vpack.c.bf16 %v790_v2, %v790_v2  ;;  %v719_v12 = vmul.f32 %v695_v30, %v622_v46  ;;  %1265 = verf.f32 %v651_v31  ;;  %v1590_v29 = vadd.f32 %v1387_v34, %v600_v33  ;;  %v554_v4 = vpop.f32.mrf.mxu0 }
 0x11f   : > { %v602_v40 = vpop.f32.mrf.mxu1  ;;  %v1254_v41 = vpop.eup %1253  ;;  %899 = vst.msk [vmem:[%s1492_s24 + $0x14] sm:$0xf] %vm893_vm1, %v1073_v7  ;;  %v779_v42 = vadd.f32 %v1106_v35, %v707_v28  ;;  %v684_v48 = vadd.f32 1.0, %v1252_v36  ;;  %v640_v63 = vmul.f32 0.70710677, %v1587_v18  ;;  %v612_v58 = vmul.f32 0.5, %v1533_v1 }
 0x120   : > { %911 = vst.msk [vmem:[%s1492_s24 + $0x44] sm:$0xf] %vm893_vm1, %v1085_v39  ;;  %v791_v34 = vadd.f32 %v1130_v43, %v719_v12  ;;  %v696_v49 = vadd.f32 1.0, %v1254_v41  ;;  %v652_v8 = vmul.f32 0.70710677, %v1590_v29  ;;  %v1110_v9 = vunpack.c.l.bf16 %v1143_v57 }
 0x121   : > { %v1074_v16 = vpack.c.bf16 %v779_v42, %v779_v42  ;;  %v708_v35 = vmul.f32 %v684_v48, %v611_v44  ;;  %1267 = verf.f32 %v640_v63  ;;  %v624_v59 = vmul.f32 0.5, %v1536_v14 }
 0x122   : > { %v1256_v53 = vpop.eup %1255  ;;  %v1086_v38 = vpack.c.bf16 %v791_v34, %v791_v34  ;;  %v720_v50 = vmul.f32 %v696_v49, %v623_v15  ;;  %1269 = verf.f32 %v652_v8  ;;  %v1134_v61 = vunpack.c.l.bf16 %v1149_v22 }
 0x123   : > { %v1258_v55 = vpop.eup %1257  ;;  %900 = vst.msk [vmem:[%s1492_s24 + $0x18] sm:$0xf] %vm893_vm1, %v1074_v16  ;;  %v780_v43 = vadd.f32 %v1107_v51, %v708_v35  ;;  %v685_v54 = vadd.f32 1.0, %v1256_v53  ;;  %v613_v10 = vmul.f32 0.5, %v1551_v20  ;;  %v625_v11 = vmul.f32 0.5, %v1554_v0 }
 0x124   : > { %912 = vst.msk [vmem:[%s1492_s24 + $0x48] sm:$0xf] %vm893_vm1, %v1086_v38  ;;  %v792_v56 = vadd.f32 %v1131_v52, %v720_v50  ;;  %v697_v60 = vadd.f32 1.0, %v1258_v55  ;;  %v1111_v52 = vunpack.c.h.bf16 %v1143_v57  ;;  %v1135_v37 = vunpack.c.h.bf16 %v1149_v22 }
 0x125   : > { %v1075_v62 = vpack.c.bf16 %v780_v43, %v780_v43  ;;  %v709_v5 = vmul.f32 %v685_v54, %v612_v58  ;;  %v614_v30 = vmul.f32 0.5, %v1569_v47  ;;  %v1114_v32 = vunpack.c.l.bf16 %v1144_v17 }
 0x126   : > { %v1260_v19 = vpop.eup %1259  ;;  %v1087_v6 = vpack.c.bf16 %v792_v56, %v792_v56  ;;  %v721_v51 = vmul.f32 %v697_v60, %v624_v59  ;;  %v626_v33 = vmul.f32 0.5, %v1572_v25  ;;  %v1138_v28 = vunpack.c.l.bf16 %v1150_v24 }
 0x127   : > { %v1262_v1 = vpop.eup %1261  ;;  %901 = vst.msk [vmem:[%s1492_s24 + $0x1c] sm:$0xf] %vm893_vm1, %v1075_v62  ;;  %v781_v21 = vadd.f32 %v1110_v9, %v709_v5  ;;  %v686_v23 = vadd.f32 1.0, %v1260_v19  ;;  %v615_v42 = vmul.f32 0.5, %v1587_v18  ;;  %v1115_v48 = vunpack.c.h.bf16 %v1144_v17 }
 0x128   : > { %913 = vst.msk [vmem:[%s1492_s24 + $0x4c] sm:$0xf] %vm893_vm1, %v1087_v6  ;;  %v793_v14 = vadd.f32 %v1134_v61, %v721_v51  ;;  %v698_v3 = vadd.f32 1.0, %v1262_v1  ;;  %v627_v63 = vmul.f32 0.5, %v1590_v29  ;;  %v1139_v15 = vunpack.c.h.bf16 %v1150_v24 }
 0x129   : > { %v1076_v45 = vpack.c.bf16 %v781_v21, %v781_v21  ;;  %v710_v13 = vmul.f32 %v686_v23, %v613_v10 }
 0x12a   : > { %v1264_v26 = vpop.eup %1263  ;;  %v1088_v27 = vpack.c.bf16 %v793_v14, %v793_v14  ;;  %v722_v2 = vmul.f32 %v698_v3, %v625_v11 }
 0x12b   : > { %v1266_v46 = vpop.eup %1265  ;;  %902 = vst.msk [vmem:[%s1492_s24 + $0x20] sm:$0xf] %vm893_vm1, %v1076_v45  ;;  %v782_v20 = vadd.f32 %v1111_v52, %v710_v13  ;;  %v687_v31 = vadd.f32 1.0, %v1264_v26 }
 0x12c   : > { %914 = vst.msk [vmem:[%s1492_s24 + $0x50] sm:$0xf] %vm893_vm1, %v1088_v27  ;;  %v794_v0 = vadd.f32 %v1135_v37, %v722_v2  ;;  %v699_v7 = vadd.f32 1.0, %v1266_v46 }
 0x12d   : > { %v1077_v36 = vpack.c.bf16 %v782_v20, %v782_v20  ;;  %v711_v39 = vmul.f32 %v687_v31, %v614_v30 }
 0x12e   : > { %v1268_v12 = vpop.eup %1267  ;;  %v1089_v4 = vpack.c.bf16 %v794_v0, %v794_v0  ;;  %v723_v40 = vmul.f32 %v699_v7, %v626_v33 }
 0x12f   : > { %v1270_v41 = vpop.eup %1269  ;;  %903 = vst.msk [vmem:[%s1492_s24 + $0x24] sm:$0xf] %vm893_vm1, %v1077_v36  ;;  %v783_v47 = vadd.f32 %v1114_v32, %v711_v39  ;;  %v688_v44 = vadd.f32 1.0, %v1268_v12 }
 0x130   : > { %915 = vst.msk [vmem:[%s1492_s24 + $0x54] sm:$0xf] %vm893_vm1, %v1089_v4  ;;  %v795_v25 = vadd.f32 %v1138_v28, %v723_v40  ;;  %v700_v34 = vadd.f32 1.0, %v1270_v41 }
 0x131   : > { %v1078_v49 = vpack.c.bf16 %v783_v47, %v783_v47  ;;  %v712_v57 = vmul.f32 %v688_v44, %v615_v42 }
 0x132   : > { %v1090_v8 = vpack.c.bf16 %v795_v25, %v795_v25  ;;  %v724_v16 = vmul.f32 %v700_v34, %v627_v63 }
 0x133   : > { %904 = vst.msk [vmem:[%s1492_s24 + $0x28] sm:$0xf] %vm893_vm1, %v1078_v49  ;;  %v784_v35 = vadd.f32 %v1115_v48, %v712_v57 }
 0x134   : > { %916 = vst.msk [vmem:[%s1492_s24 + $0x58] sm:$0xf] %vm893_vm1, %v1090_v8  ;;  %v796_v18 = vadd.f32 %v1139_v15, %v724_v16 }
 0x135   : > { %v1079_v22 = vpack.c.bf16 %v784_v35, %v784_v35 }
 0x136   : > { %v1091_v53 = vpack.c.bf16 %v796_v18, %v796_v18 }
 0x137   : > { %905 = vst.msk [vmem:[%s1492_s24 + $0x2c] sm:$0xf] %vm893_vm1, %v1079_v22 }
 0x138   : > { %917 = vst.msk [vmem:[%s1492_s24 + $0x5c] sm:$0xf] %vm893_vm1, %v1091_v53 }
 0x139 PF: > { %s14_s15 = sadd.s32 1, %s1277_s15  }
 0x13a   : > { %p11_p4 = scmp.ge.s32.totalorder %s14_s15, 4  }
 0x13c   :  { %13 = sbr.rel (!%p11_p4) target bundleno = 1 (0x1), region = 69 }

// kernel: vsm_oiqa_forward.23
= control target key start
LH: loop header
LB: loop body
LE: loop exit
PB: predicated region body
PF: predicated region fallthrough
CT: control target
= control target key end

     0   :  { %v423_v0 = vmov 0   ;;  %vm160_vm0 = vcmask 130048   ;;  %vm308_vm1 = vcmask 257024   ;;  %s564_s1 = inlined_call_operand.vmem [shape: bf16[144,32], index: 1, kind: input, shape index: {}]   ;;  %s565_s0 = inlined_call_operand.vmem [shape: bf16[96,144], index: 0, kind: input, shape index: {}]   ;;  %s566_s2 = inlined_call_operand.vmem [shape: f32[1,32], index: 2, kind: input, shape index: {}]   ;;  %s567_s3 = inlined_call_operand.vmem [shape: bf16[96,32], index: 3, kind: output, shape index: {}]  }
   0x1   :  { %179 = vmatprep.subr.bf16.mxu0 %v423_v0  ;;  %377 = vmatprep.subr.bf16.mxu1 %v423_v0  ;;  %v396_v1 = vld [vmem:[%s564_s1 + $0x38] sm:$0xff]   ;;  %v397_v2 = vld [vmem:[%s564_s1 + $0x30] sm:$0xff]   ;;  %v398_v3 = vld [vmem:[%s564_s1 + $0x28] sm:$0xff]  }
   0x2   :  { %180 = vmatpush1.bf16.msra.mxu0 %v396_v1  ;;  %386 = vmatpush1.bf16.msra.mxu1 %v396_v1  ;;  %v399_v4 = vld [vmem:[%s564_s1 + $0x20] sm:$0xff]   ;;  %v410_v6 = vld [vmem:[%s565_s0 + $0x34] ss:$8 sps:$4 sm:$0xff]   ;;  %v402_v9 = vld [vmem:[%s564_s1 + $0x8] sm:$0xff]  }
   0x3   :  { %181 = vmatprep.subr.bf16.mxu0 %v423_v0  ;;  %378 = vmatprep.subr.bf16.mxu1 %v423_v0  ;;  %v407_v5 = vld [vmem:[%s565_s0 + $0x4] ss:$8 sps:$4 sm:$0xff]   ;;  %v400_v7 = vld [vmem:[%s564_s1 + $0x18] sm:$0xff]   ;;  %v401_v8 = vld [vmem:[%s564_s1 + $0x10] sm:$0xff]  }
   0x4   :  { %347 = vmatprep.mubr.msk.bf16.mxu0 %vm160_vm0, %v407_v5  ;;  %350 = vmatprep.mubr.msk.bf16.mxu1 %vm160_vm0, %v410_v6  ;;  %v403_v10 = vld [vmem:[%s564_s1] sm:$0xff]   ;;  %v408_v13 = vld [vmem:[%s565_s0 + $0x30] ss:$8 sps:$4 sm:$0xff]   ;;  %v411_v14 = vld [vmem:[%s565_s0 + $0x14] ss:$8 sps:$4 sm:$0xff]  }
   0x5   :  { %v404_v11 = vld [vmem:[%s564_s1 + $0x40] sm:$0xff]   ;;  %v415_v16 = vld [vmem:[%s565_s0 + $0x10] ss:$8 sps:$4 sm:$0xff]   ;;  %v419_v19 = vld [vmem:[%s565_s0 + $0x54] ss:$8 sps:$4 sm:$0xff]  }
   0x6   :  { %182 = vmatpush1.bf16.msra.mxu0 %v397_v2  ;;  %387 = vmatpush1.bf16.msra.mxu1 %v397_v2  ;;  %v405_v12 = vld [vmem:[%s565_s0] ss:$8 sps:$4 sm:$0xff]   ;;  %v413_v15 = vld [vmem:[%s565_s0 + $0x44] ss:$8 sps:$4 sm:$0xff]   ;;  %v422_v21 = vld [vmem:[%s565_s0 + $0x50] ss:$8 sps:$4 sm:$0xff]  }
   0x7   :  { %183 = vmatprep.subr.bf16.mxu0 %v423_v0  ;;  %379 = vmatprep.subr.bf16.mxu1 %v423_v0  ;;  %v416_v17 = vld [vmem:[%s565_s0 + $0x40] ss:$8 sps:$4 sm:$0xff]   ;;  %v417_v18 = vld [vmem:[%s565_s0 + $0x24] ss:$8 sps:$4 sm:$0xff]  }
   0x8   :  { %v421_v20 = vld [vmem:[%s565_s0 + $0x20] ss:$8 sps:$4 sm:$0xff]  }
   0x9   :  { %v325_v22 = vld [vmem:[%s566_s2] ss:$0 sm:$0xff] }
   0xa   :  { %184 = vmatpush1.bf16.msra.mxu0 %v398_v3  ;;  %388 = vmatpush1.bf16.msra.mxu1 %v398_v3 }
   0xb   :  { %185 = vmatprep.subr.bf16.mxu0 %v423_v0  ;;  %380 = vmatprep.subr.bf16.mxu1 %v423_v0 }
   0xe   :  { %186 = vmatpush1.bf16.msra.mxu0 %v399_v4  ;;  %389 = vmatpush1.bf16.msra.mxu1 %v399_v4 }
   0xf   :  { %187 = vmatprep.subr.bf16.mxu0 %v423_v0  ;;  %381 = vmatprep.subr.bf16.mxu1 %v423_v0 }
  0x12   :  { %188 = vmatpush1.bf16.msra.mxu0 %v400_v7  ;;  %390 = vmatpush1.bf16.msra.mxu1 %v400_v7 }
  0x13   :  { %189 = vmatprep.subr.bf16.mxu0 %v423_v0  ;;  %382 = vmatprep.subr.bf16.mxu1 %v423_v0 }
  0x16   :  { %190 = vmatpush1.bf16.msra.mxu0 %v401_v8  ;;  %391 = vmatpush1.bf16.msra.mxu1 %v401_v8 }
  0x17   :  { %191 = vmatprep.subr.bf16.mxu0 %v423_v0  ;;  %383 = vmatprep.subr.bf16.mxu1 %v423_v0 }
  0x1a   :  { %192 = vmatpush1.bf16.msra.mxu0 %v402_v9  ;;  %392 = vmatpush1.bf16.msra.mxu1 %v402_v9 }
  0x1b   :  { %193 = vmatprep.subr.bf16.mxu0 %v423_v0  ;;  %384 = vmatprep.subr.bf16.mxu1 %v423_v0 }
  0x1e   :  { %194 = vmatpush1.bf16.msra.mxu0 %v403_v10  ;;  %393 = vmatpush1.bf16.msra.mxu1 %v403_v10 }
  0x1f   :  { %209 = vmatprep.subr.bf16.mxu0 %v423_v0  ;;  %385 = vmatprep.subr.bf16.mxu1 %v423_v0 }
  0x22   :  { %210 = vmatpush2.bf16.msra.mxu0 %v404_v11  ;;  %394 = vmatpush2.bf16.msra.mxu1 %v404_v11 }
  0x25   :  { %212 = vmatmul.mubr.bf16.vlgmr.msra.gmra.mxu0 %v405_v12  ;;  %236 = vmatmul.mubr.bf16.vlgmr.msra.gmra.mxu1 %v408_v13 }
  0x26   :  { %348 = vmatprep.mubr.msk.bf16.mxu0 %vm160_vm0, %v411_v14  ;;  %351 = vmatprep.mubr.msk.bf16.mxu1 %vm160_vm0, %v413_v15 }
  0x2d   :  { %220 = vmatmul.mubr.bf16.gmra.mxu0 %v415_v16  ;;  %244 = vmatmul.mubr.bf16.gmra.mxu1 %v416_v17 }
  0x2e   :  { %349 = vmatprep.mubr.msk.bf16.mxu0 %vm160_vm0, %v417_v18  ;;  %352 = vmatprep.mubr.msk.bf16.mxu1 %vm160_vm0, %v419_v19 }
  0x35   :  { %228 = vmatmul.mubr.bf16.gmra.mxu0 %v421_v20  ;;  %252 = vmatmul.mubr.bf16.gmra.mxu1 %v422_v21 }
  0xe5   :  { %v213_v23 = vpop.f32.mrf.mxu0  ;;  %v237_v24 = vpop.f32.mrf.mxu1 }
  0xe6   :  { %v214_v25 = vadd.f32 %v325_v22, %v213_v23  ;;  %v238_v26 = vadd.f32 %v325_v22, %v237_v24 }
  0xe7   :  { %v215_v27 = vpop.f32.mrf.mxu0  ;;  %v239_v28 = vpop.f32.mrf.mxu1 }
  0xe8   :  { %v365_v29 = vpack.c.bf16 %v214_v25, %v214_v25  ;;  %v371_v30 = vpack.c.bf16 %v238_v26, %v238_v26 }
  0xe9   :  { %v216_v31 = vpop.f32.mrf.mxu0  ;;  %v240_v32 = vpop.f32.mrf.mxu1 }
  0xea   :  { %309 = vst.msk [vmem:[%s567_s3] sm:$0xf] %vm308_vm1, %v365_v29  ;;  %315 = vst.msk [vmem:[%s567_s3 + $0x18] sm:$0xf] %vm308_vm1, %v371_v30  ;;  %v217_v33 = vadd.f32 %v325_v22, %v216_v31  ;;  %v241_v34 = vadd.f32 %v325_v22, %v240_v32 }
  0xeb   :  { %v218_v35 = vpop.f32.mrf.mxu0  ;;  %v242_v36 = vpop.f32.mrf.mxu1 }
  0xec   :  { %v366_v37 = vpack.c.bf16 %v217_v33, %v217_v33  ;;  %v372_v38 = vpack.c.bf16 %v241_v34, %v241_v34 }
  0xed   :  { %v221_v39 = vpop.f32.mrf.mxu0  ;;  %v245_v40 = vpop.f32.mrf.mxu1 }
  0xee   :  { %310 = vst.msk [vmem:[%s567_s3 + $0x4] sm:$0xf] %vm308_vm1, %v366_v37  ;;  %316 = vst.msk [vmem:[%s567_s3 + $0x1c] sm:$0xf] %vm308_vm1, %v372_v38  ;;  %v222_v41 = vadd.f32 %v325_v22, %v221_v39  ;;  %v246_v42 = vadd.f32 %v325_v22, %v245_v40 }
  0xef   :  { %v223_v43 = vpop.f32.mrf.mxu0  ;;  %v247_v44 = vpop.f32.mrf.mxu1 }
  0xf0   :  { %v367_v45 = vpack.c.bf16 %v222_v41, %v222_v41  ;;  %v373_v46 = vpack.c.bf16 %v246_v42, %v246_v42 }
  0xf1   :  { %v224_v47 = vpop.f32.mrf.mxu0  ;;  %v248_v48 = vpop.f32.mrf.mxu1 }
  0xf2   :  { %311 = vst.msk [vmem:[%s567_s3 + $0x8] sm:$0xf] %vm308_vm1, %v367_v45  ;;  %317 = vst.msk [vmem:[%s567_s3 + $0x20] sm:$0xf] %vm308_vm1, %v373_v46  ;;  %v225_v49 = vadd.f32 %v325_v22, %v224_v47  ;;  %v249_v50 = vadd.f32 %v325_v22, %v248_v48 }
  0xf3   :  { %v226_v51 = vpop.f32.mrf.mxu0  ;;  %v250_v52 = vpop.f32.mrf.mxu1 }
  0xf4   :  { %v368_v53 = vpack.c.bf16 %v225_v49, %v225_v49  ;;  %v374_v54 = vpack.c.bf16 %v249_v50, %v249_v50 }
  0xf5   :  { %v229_v55 = vpop.f32.mrf.mxu0  ;;  %v253_v56 = vpop.f32.mrf.mxu1 }
  0xf6   :  { %312 = vst.msk [vmem:[%s567_s3 + $0xc] sm:$0xf] %vm308_vm1, %v368_v53  ;;  %318 = vst.msk [vmem:[%s567_s3 + $0x24] sm:$0xf] %vm308_vm1, %v374_v54  ;;  %v230_v57 = vadd.f32 %v325_v22, %v229_v55  ;;  %v254_v58 = vadd.f32 %v325_v22, %v253_v56 }
  0xf7   :  { %v231_v59 = vpop.f32.mrf.mxu0  ;;  %v255_v60 = vpop.f32.mrf.mxu1 }
  0xf8   :  { %v369_v61 = vpack.c.bf16 %v230_v57, %v230_v57  ;;  %v375_v62 = vpack.c.bf16 %v254_v58, %v254_v58 }
  0xf9   :  { %v232_v63 = vpop.f32.mrf.mxu0  ;;  %v256_v0 = vpop.f32.mrf.mxu1 }
  0xfa   :  { %313 = vst.msk [vmem:[%s567_s3 + $0x10] sm:$0xf] %vm308_vm1, %v369_v61  ;;  %319 = vst.msk [vmem:[%s567_s3 + $0x28] sm:$0xf] %vm308_vm1, %v375_v62  ;;  %v233_v1 = vadd.f32 %v325_v22, %v232_v63  ;;  %v257_v2 = vadd.f32 %v325_v22, %v256_v0 }
  0xfb   :  { %v234_v3 = vpop.f32.mrf.mxu0  ;;  %v258_v4 = vpop.f32.mrf.mxu1 }
  0xfc   :  { %v370_v5 = vpack.c.bf16 %v233_v1, %v233_v1  ;;  %v376_v6 = vpack.c.bf16 %v257_v2, %v257_v2 }
  0xfe   :  { %314 = vst.msk [vmem:[%s567_s3 + $0x14] sm:$0xf] %vm308_vm1, %v370_v5  ;;  %320 = vst.msk [vmem:[%s567_s3 + $0x2c] sm:$0xf] %vm308_vm1, %v376_v6 }

// kernel: vsm_oiqa_forward.24
= control target key start
LH: loop header
LB: loop body
LE: loop exit
PB: predicated region body
PF: predicated region fallthrough
CT: control target
= control target key end

     0   :  { %vm280_vm0 = vcmask 261120   ;;  %vm570_vm1 = vcmask 257024   ;;  %s1035_s1 = inlined_call_operand.vmem [shape: bf16[288,32], index: 1, kind: input, shape index: {}]   ;;  %s1036_s0 = inlined_call_operand.vmem [shape: bf16[96,288], index: 0, kind: input, shape index: {}]   ;;  %s1037_s2 = inlined_call_operand.vmem [shape: f32[1,32], index: 2, kind: input, shape index: {}]   ;;  %s1038_s3 = inlined_call_operand.vmem [shape: bf16[96,32], index: 3, kind: output, shape index: {}]  }
   0x1   :  { %v746_v0 = vld [vmem:[%s1035_s1 + $0x78] sm:$0xff]   ;;  %v748_v2 = vld [vmem:[%s1035_s1 + $0x70] sm:$0xff]   ;;  %v750_v4 = vld [vmem:[%s1035_s1 + $0x68] sm:$0xff]  }
   0x2   :  { %v747_v1 = vld [vmem:[%s1035_s1 + $0x38] sm:$0xff]   ;;  %654 = vmatprep.subr.bf16.mxu0 %v746_v0  ;;  %730 = vmatprep.subr.bf16.mxu1 %v746_v0  ;;  %v749_v3 = vld [vmem:[%s1035_s1 + $0x30] sm:$0xff]   ;;  %v751_v5 = vld [vmem:[%s1035_s1 + $0x28] sm:$0xff]  }
   0x3   :  { %655 = vmatpush3.bf16.msra.mxu0 %v747_v1  ;;  %738 = vmatpush3.bf16.msra.mxu1 %v747_v1  ;;  %v752_v6 = vld [vmem:[%s1035_s1 + $0x60] sm:$0xff]   ;;  %v754_v8 = vld [vmem:[%s1035_s1 + $0x58] sm:$0xff]   ;;  %v756_v10 = vld [vmem:[%s1035_s1 + $0x50] sm:$0xff]  }
   0x4   :  { %656 = vmatprep.subr.bf16.mxu0 %v748_v2  ;;  %731 = vmatprep.subr.bf16.mxu1 %v748_v2  ;;  %v753_v7 = vld [vmem:[%s1035_s1 + $0x20] sm:$0xff]   ;;  %v755_v9 = vld [vmem:[%s1035_s1 + $0x18] sm:$0xff]   ;;  %v757_v13 = vld [vmem:[%s1035_s1 + $0x10] sm:$0xff]  }
   0x5   :  { %v764_v11 = vld [vmem:[%s1036_s0 + $0x4] ss:$12 sps:$4 sm:$0xff]   ;;  %v767_v12 = vld [vmem:[%s1036_s0 + $0x7c] ss:$12 sps:$4 sm:$0xff]   ;;  %v762_v19 = vld [vmem:[%s1036_s0] ss:$12 sps:$4 sm:$0xff]  }
   0x6   :  { %v758_v14 = vld [vmem:[%s1035_s1 + $0x48] sm:$0xff]   ;;  %331 = vmatprep.mubr.bf16.mxu0 %v764_v11  ;;  %371 = vmatprep.mubr.bf16.mxu1 %v767_v12  ;;  %v760_v16 = vld [vmem:[%s1035_s1 + $0x40] sm:$0xff]   ;;  %v778_v28 = vld [vmem:[%s1036_s0 + $0x30] ss:$12 sps:$4 sm:$0xff]  }
   0x7   :  { %657 = vmatpush3.bf16.msra.mxu0 %v749_v3  ;;  %739 = vmatpush3.bf16.msra.mxu1 %v749_v3  ;;  %v759_v15 = vld [vmem:[%s1035_s1 + $0x8] sm:$0xff]   ;;  %v761_v17 = vld [vmem:[%s1035_s1] sm:$0xff]   ;;  %v779_v29 = vld [vmem:[%s1036_s0 + $0x50] ss:$12 sps:$4 sm:$0xff]  }
   0x8   :  { %658 = vmatprep.subr.bf16.mxu0 %v750_v4  ;;  %732 = vmatprep.subr.bf16.mxu1 %v750_v4  ;;  %v768_v18 = vld [vmem:[%s1035_s1 + $0x88] sm:$0xff]   ;;  %v765_v20 = vld [vmem:[%s1036_s0 + $0x78] ss:$12 sps:$4 sm:$0xff]   ;;  %v775_v26 = vld [vmem:[%s1036_s0 + $0x34] ss:$12 sps:$4 sm:$0xff]  }
   0x9   :  { %v770_v21 = vld [vmem:[%s1036_s0 + $0x1c] ss:$12 sps:$4 sm:$0xff]   ;;  %v769_v22 = vld [vmem:[%s1035_s1 + $0x80] sm:$0xff]   ;;  %v780_v30 = vld [vmem:[%s1036_s0 + $0x4c] ss:$12 sps:$4 sm:$0xff]  }
   0xa   :  { %v772_v23 = vld [vmem:[%s1036_s0 + $0x8] ss:$12 sps:$4 sm:$0xff]   ;;  %v773_v24 = vld [vmem:[%s1036_s0 + $0x18] ss:$12 sps:$4 sm:$0xff]   ;;  %v774_v25 = vld [vmem:[%s1036_s0 + $0x20] ss:$12 sps:$4 sm:$0xff]  }
   0xb   :  { %659 = vmatpush3.bf16.msra.mxu0 %v751_v5  ;;  %740 = vmatpush3.bf16.msra.mxu1 %v751_v5  ;;  %v777_v27 = vld [vmem:[%s1036_s0 + $0x38] ss:$12 sps:$4 sm:$0xff]   ;;  %v782_v31 = vld [vmem:[%s1036_s0 + $0x68] ss:$12 sps:$4 sm:$0xff]   ;;  %v784_v33 = vld [vmem:[%s1036_s0 + $0x80] ss:$12 sps:$4 sm:$0xff]  }
   0xc   :  { %660 = vmatprep.subr.bf16.mxu0 %v752_v6  ;;  %733 = vmatprep.subr.bf16.mxu1 %v752_v6  ;;  %v783_v32 = vld [vmem:[%s1036_s0 + $0x48] ss:$12 sps:$4 sm:$0xff]   ;;  %v785_v34 = vld [vmem:[%s1036_s0 + $0x64] ss:$12 sps:$4 sm:$0xff]   ;;  %v787_v35 = vld [vmem:[%s1036_s0 + $0x60] ss:$12 sps:$4 sm:$0xff]  }
   0xd   :  { %v949_v45 = vld [vmem:[%s1037_s2] ss:$0 sm:$0xff] }
   0xf   :  { %661 = vmatpush3.bf16.msra.mxu0 %v753_v7  ;;  %741 = vmatpush3.bf16.msra.mxu1 %v753_v7 }
  0x10   :  { %662 = vmatprep.subr.bf16.mxu0 %v754_v8  ;;  %734 = vmatprep.subr.bf16.mxu1 %v754_v8 }
  0x13   :  { %663 = vmatpush3.bf16.msra.mxu0 %v755_v9  ;;  %742 = vmatpush3.bf16.msra.mxu1 %v755_v9 }
  0x14   :  { %664 = vmatprep.subr.bf16.mxu0 %v756_v10  ;;  %735 = vmatprep.subr.bf16.mxu1 %v756_v10 }
  0x17   :  { %665 = vmatpush3.bf16.msra.mxu0 %v757_v13  ;;  %743 = vmatpush3.bf16.msra.mxu1 %v757_v13 }
  0x18   :  { %666 = vmatprep.subr.bf16.mxu0 %v758_v14  ;;  %736 = vmatprep.subr.bf16.mxu1 %v758_v14 }
  0x1b   :  { %667 = vmatpush3.bf16.msra.mxu0 %v759_v15  ;;  %744 = vmatpush3.bf16.msra.mxu1 %v759_v15 }
  0x1c   :  { %668 = vmatprep.subr.bf16.mxu0 %v760_v16  ;;  %737 = vmatprep.subr.bf16.mxu1 %v760_v16 }
  0x1f   :  { %669 = vmatpush3.bf16.msra.mxu0 %v761_v17  ;;  %745 = vmatpush3.bf16.msra.mxu1 %v761_v17 }
  0x20   :  { %714 = vmatprep.subr.bf16.mxu1 %v768_v18 }
  0x22   :  { %332 = vmatmul.mubr.bf16.vlgmr.msra.gmra.mxu0 %v762_v19  ;;  %372 = vmatmul.mubr.bf16.vlgmr.msra.gmra.mxu1 %v765_v20 }
  0x23   :  { %715 = vmatpush3.bf16.msra.mxu1 %v768_v18  ;;  %339 = vmatprep.mubr.bf16.mxu0 %v770_v21 }
  0x24   :  { %716 = vmatprep.subr.bf16.mxu1 %v769_v22  ;;  %718 = vmatprep.mubr.msk.bf16.mxu1 %vm280_vm0, %v772_v23 }
  0x27   :  { %717 = vmatpush3.bf16.msra.mxu1 %v769_v22 }
  0x2a   :  { %340 = vmatmul.mubr.bf16.gmra.mxu0 %v773_v24  ;;  %719 = vmatmul.mubr.msk.bf16.vlgmr.msra.gmra.mxu1 %vm280_vm0, %v774_v25 }
  0x2b   :  { %347 = vmatprep.mubr.bf16.mxu0 %v775_v26  ;;  %722 = vmatprep.mubr.msk.bf16.mxu1 %vm280_vm0, %v777_v27 }
  0x32   :  { %348 = vmatmul.mubr.bf16.gmra.mxu0 %v778_v28  ;;  %723 = vmatmul.mubr.msk.bf16.gmra.mxu1 %vm280_vm0, %v779_v29 }
  0x33   :  { %355 = vmatprep.mubr.bf16.mxu0 %v780_v30  ;;  %726 = vmatprep.mubr.msk.bf16.mxu1 %vm280_vm0, %v782_v31 }
  0x3a   :  { %356 = vmatmul.mubr.bf16.gmra.mxu0 %v783_v32  ;;  %727 = vmatmul.mubr.msk.bf16.gmra.mxu1 %vm280_vm0, %v784_v33 }
  0x3b   :  { %363 = vmatprep.mubr.bf16.mxu0 %v785_v34 }
  0x42   :  { %364 = vmatmul.mubr.bf16.gmra.mxu0 %v787_v35 }
  0xe2   :  { %v670_v36 = vpop.f32.mrf.mxu0  ;;  %v700_v37 = vpop.f32.mrf.mxu1 }
  0xe4   :  { %v671_v38 = vpop.f32.mrf.mxu0  ;;  %v701_v39 = vpop.f32.mrf.mxu1 }
  0xe5   :  { %v672_v42 = vadd.f32 %v671_v38, %v670_v36  ;;  %v702_v7 = vadd.f32 %v701_v39, %v700_v37 }
  0xe6   :  { %v673_v40 = vpop.f32.mrf.mxu0  ;;  %v703_v41 = vpop.f32.mrf.mxu1 }
  0xe7   :  { %v334_v49 = vadd.f32 %v672_v42, %v949_v45  ;;  %v374_v18 = vadd.f32 %v702_v7, %v949_v45 }
  0xe8   :  { %v674_v43 = vpop.f32.mrf.mxu0  ;;  %v704_v44 = vpop.f32.mrf.mxu1 }
  0xe9   :  { %v675_v48 = vadd.f32 %v674_v43, %v673_v40  ;;  %v705_v19 = vadd.f32 %v704_v44, %v703_v41 }
  0xea   :  { %v676_v46 = vpop.f32.mrf.mxu0  ;;  %v720_v47 = vpop.f32.mrf.mxu1 }
  0xeb   :  { %v337_v58 = vadd.f32 %v675_v48, %v949_v45  ;;  %v377_v32 = vadd.f32 %v705_v19, %v949_v45 }
  0xec   :  { %v677_v50 = vpop.f32.mrf.mxu0  ;;  %v414_v51 = vpop.f32.mrf.mxu1 }
  0xed   :  { %v678_v52 = vadd.f32 %v677_v50, %v676_v46  ;;  %v415_v53 = vadd.f32 %v414_v51, %v334_v49 }
  0xee   :  { %v679_v54 = vpop.f32.mrf.mxu0  ;;  %v721_v55 = vpop.f32.mrf.mxu1 }
  0xef   :  { %v342_v56 = vadd.f32 %v678_v52, %v949_v45  ;;  %v474_v57 = vmul.f32 0.70710677, %v415_v53  ;;  %v461_v34 = vmul.f32 0.5, %v415_v53 }
  0xf0   :  { %v680_v59 = vpop.f32.mrf.mxu0  ;;  %v417_v60 = vpop.f32.mrf.mxu1 }
  0xf1   :  { %v423_v61 = vadd.f32 %v720_v47, %v342_v56  ;;  %788 = verf.f32 %v474_v57  ;;  %v681_v62 = vadd.f32 %v680_v59, %v679_v54  ;;  %v418_v63 = vadd.f32 %v417_v60, %v337_v58 }
  0xf2   :  { %v682_v0 = vpop.f32.mrf.mxu0  ;;  %v724_v1 = vpop.f32.mrf.mxu1 }
  0xf3   :  { %v476_v2 = vmul.f32 0.70710677, %v423_v61  ;;  %v345_v3 = vadd.f32 %v681_v62, %v949_v45  ;;  %v475_v4 = vmul.f32 0.70710677, %v418_v63  ;;  %v463_v48 = vmul.f32 0.5, %v423_v61 }
  0xf4   :  { %v683_v5 = vpop.f32.mrf.mxu0  ;;  %v430_v6 = vpop.f32.mrf.mxu1  ;;  %v462_v52 = vmul.f32 0.5, %v418_v63 }
  0xf5   :  { %790 = verf.f32 %v476_v2  ;;  %v955_v8 = vadd.f32 %v721_v55, %v345_v3  ;;  %v684_v9 = vadd.f32 %v683_v5, %v682_v0 }
  0xf6   :  { %792 = verf.f32 %v475_v4  ;;  %v685_v10 = vpop.f32.mrf.mxu0  ;;  %v725_v11 = vpop.f32.mrf.mxu1 }
  0xf7   :  { %v477_v12 = vmul.f32 0.70710677, %v955_v8  ;;  %v350_v13 = vadd.f32 %v684_v9, %v949_v45  ;;  %v464_v63 = vmul.f32 0.5, %v955_v8 }
  0xf8   :  { %v686_v14 = vpop.f32.mrf.mxu0  ;;  %v433_v15 = vpop.f32.mrf.mxu1 }
  0xf9   :  { %794 = verf.f32 %v477_v12  ;;  %v959_v16 = vadd.f32 %v430_v6, %v350_v13  ;;  %v687_v17 = vadd.f32 %v686_v14, %v685_v10 }
  0xfa   :  { %v688_v20 = vpop.f32.mrf.mxu0  ;;  %v728_v21 = vpop.f32.mrf.mxu1 }
  0xfb   :  { %v478_v22 = vmul.f32 0.70710677, %v959_v16  ;;  %v353_v23 = vadd.f32 %v687_v17, %v949_v45  ;;  %v964_v24 = vadd.f32 %v728_v21, %v374_v18  ;;  %v465_v10 = vmul.f32 0.5, %v959_v16 }
  0xfc   :  { %v689_v25 = vpop.f32.mrf.mxu0  ;;  %v446_v26 = vpop.f32.mrf.mxu1 }
  0xfd   :  { %796 = verf.f32 %v478_v22  ;;  %v966_v27 = vadd.f32 %v433_v15, %v353_v23  ;;  %v484_v28 = vmul.f32 0.70710677, %v964_v24  ;;  %v690_v30 = vadd.f32 %v689_v25, %v688_v20 }
  0xfe   :  { %v789_v29 = vpop.eup %788  ;;  %v691_v31 = vpop.f32.mrf.mxu0  ;;  %v471_v18 = vmul.f32 0.5, %v964_v24 }
  0xff   :  { %v729_v33 = vpop.f32.mrf.mxu1  ;;  %v498_v35 = vadd.f32 1.0, %v789_v29  ;;  %v479_v36 = vmul.f32 0.70710677, %v966_v27  ;;  %798 = verf.f32 %v484_v28  ;;  %v358_v37 = vadd.f32 %v690_v30, %v949_v45 }
 0x100   :  { %v972_v38 = vadd.f32 %v729_v33, %v377_v32  ;;  %v692_v39 = vpop.f32.mrf.mxu0  ;;  %v466_v16 = vmul.f32 0.5, %v966_v27 }
 0x101   :  { %v510_v40 = vmul.f32 %v498_v35, %v461_v34  ;;  %800 = verf.f32 %v479_v36  ;;  %v693_v41 = vadd.f32 %v692_v39, %v691_v31  ;;  %v974_v43 = vadd.f32 %v724_v1, %v358_v37  ;;  %v449_v15 = vpop.f32.mrf.mxu1 }
 0x102   :  { %v791_v42 = vpop.eup %790  ;;  %v485_v44 = vmul.f32 0.70710677, %v972_v38  ;;  %v694_v46 = vpop.f32.mrf.mxu0  ;;  %v472_v24 = vmul.f32 0.5, %v972_v38 }
 0x103   :  { %v793_v47 = vpop.eup %792  ;;  %v500_v49 = vadd.f32 1.0, %v791_v42  ;;  %v642_v50 = vpack.c.bf16 %v510_v40, %v510_v40  ;;  %v361_v51 = vadd.f32 %v693_v41, %v949_v45  ;;  %v480_v54 = vmul.f32 0.70710677, %v974_v43 }
 0x104   :  { %v499_v53 = vadd.f32 1.0, %v793_v47  ;;  %802 = verf.f32 %v485_v44  ;;  %v695_v55 = vpop.f32.mrf.mxu0  ;;  %v467_v27 = vmul.f32 0.5, %v974_v43 }
 0x105   :  { %v512_v56 = vmul.f32 %v500_v49, %v463_v48  ;;  %571 = vst.msk [vmem:[%s1038_s3] sm:$0xf] %vm570_vm1, %v642_v50  ;;  %v442_v57 = vadd.f32 %v725_v11, %v361_v51  ;;  %v696_v58 = vadd.f32 %v695_v55, %v694_v46  ;;  %804 = verf.f32 %v480_v54 }
 0x106   :  { %v795_v59 = vpop.eup %794  ;;  %v511_v60 = vmul.f32 %v499_v53, %v462_v52  ;;  %v697_v61 = vpop.f32.mrf.mxu0 }
 0x107   :  { %v644_v62 = vpack.c.bf16 %v512_v56, %v512_v56  ;;  %v501_v0 = vadd.f32 1.0, %v795_v59  ;;  %v481_v1 = vmul.f32 0.70710677, %v442_v57  ;;  %v366_v3 = vadd.f32 %v696_v58, %v949_v45 }
 0x108   :  { %v643_v2 = vpack.c.bf16 %v511_v60, %v511_v60  ;;  %v698_v4 = vpop.f32.mrf.mxu0  ;;  %v468_v38 = vmul.f32 0.5, %v442_v57 }
 0x109   :  { %573 = vst.msk [vmem:[%s1038_s3 + $0x8] sm:$0xf] %vm570_vm1, %v644_v62  ;;  %v513_v5 = vmul.f32 %v501_v0, %v464_v63  ;;  %806 = verf.f32 %v481_v1  ;;  %v699_v6 = vadd.f32 %v698_v4, %v697_v61  ;;  %v447_v8 = vadd.f32 %v446_v26, %v366_v3 }
 0x10a   :  { %v797_v7 = vpop.eup %796  ;;  %572 = vst.msk [vmem:[%s1038_s3 + $0x4] sm:$0xf] %vm570_vm1, %v643_v2 }
 0x10b   :  { %v645_v9 = vpack.c.bf16 %v513_v5, %v513_v5  ;;  %v502_v11 = vadd.f32 1.0, %v797_v7  ;;  %v369_v12 = vadd.f32 %v699_v6, %v949_v45  ;;  %v482_v14 = vmul.f32 0.70710677, %v447_v8 }
 0x10c   :  { %v799_v13 = vpop.eup %798  ;;  %v469_v44 = vmul.f32 0.5, %v447_v8 }
 0x10d   :  { %574 = vst.msk [vmem:[%s1038_s3 + $0xc] sm:$0xf] %vm570_vm1, %v645_v9  ;;  %v514_v17 = vmul.f32 %v502_v11, %v465_v10  ;;  %v508_v19 = vadd.f32 1.0, %v799_v13  ;;  %v450_v20 = vadd.f32 %v449_v15, %v369_v12  ;;  %808 = verf.f32 %v482_v14 }
 0x10e   :  { %v801_v21 = vpop.eup %800 }
 0x10f   :  { %v646_v22 = vpack.c.bf16 %v514_v17, %v514_v17  ;;  %v503_v23 = vadd.f32 1.0, %v801_v21  ;;  %v520_v45 = vmul.f32 %v508_v19, %v471_v18  ;;  %v483_v25 = vmul.f32 0.70710677, %v450_v20 }
 0x110   :  { %v470_v50 = vmul.f32 0.5, %v450_v20 }
 0x111   :  { %v803_v26 = vpop.eup %802  ;;  %575 = vst.msk [vmem:[%s1038_s3 + $0x10] sm:$0xf] %vm570_vm1, %v646_v22  ;;  %v515_v28 = vmul.f32 %v503_v23, %v466_v16  ;;  %v652_v29 = vpack.c.bf16 %v520_v45, %v520_v45  ;;  %810 = verf.f32 %v483_v25 }
 0x112   :  { %v509_v30 = vadd.f32 1.0, %v803_v26  ;;  %v805_v31 = vpop.eup %804 }
 0x113   :  { %v647_v32 = vpack.c.bf16 %v515_v28, %v515_v28  ;;  %581 = vst.msk [vmem:[%s1038_s3 + $0x28] sm:$0xf] %vm570_vm1, %v652_v29  ;;  %v504_v33 = vadd.f32 1.0, %v805_v31 }
 0x114   :  { %v521_v34 = vmul.f32 %v509_v30, %v472_v24 }
 0x115   :  { %576 = vst.msk [vmem:[%s1038_s3 + $0x14] sm:$0xf] %vm570_vm1, %v647_v32  ;;  %v516_v36 = vmul.f32 %v504_v33, %v467_v27 }
 0x116   :  { %v807_v35 = vpop.eup %806  ;;  %v653_v37 = vpack.c.bf16 %v521_v34, %v521_v34 }
 0x117   :  { %v505_v39 = vadd.f32 1.0, %v807_v35  ;;  %v648_v40 = vpack.c.bf16 %v516_v36, %v516_v36 }
 0x118   :  { %582 = vst.msk [vmem:[%s1038_s3 + $0x2c] sm:$0xf] %vm570_vm1, %v653_v37 }
 0x119   :  { %v517_v41 = vmul.f32 %v505_v39, %v468_v38  ;;  %577 = vst.msk [vmem:[%s1038_s3 + $0x18] sm:$0xf] %vm570_vm1, %v648_v40 }
 0x11a   :  { %v809_v42 = vpop.eup %808 }
 0x11b   :  { %v649_v43 = vpack.c.bf16 %v517_v41, %v517_v41  ;;  %v506_v46 = vadd.f32 1.0, %v809_v42 }
 0x11d   :  { %578 = vst.msk [vmem:[%s1038_s3 + $0x1c] sm:$0xf] %vm570_vm1, %v649_v43  ;;  %v518_v47 = vmul.f32 %v506_v46, %v469_v44 }
 0x11e   :  { %v811_v48 = vpop.eup %810 }
 0x11f   :  { %v650_v49 = vpack.c.bf16 %v518_v47, %v518_v47  ;;  %v507_v51 = vadd.f32 1.0, %v811_v48 }
 0x121   :  { %579 = vst.msk [vmem:[%s1038_s3 + $0x20] sm:$0xf] %vm570_vm1, %v650_v49  ;;  %v519_v52 = vmul.f32 %v507_v51, %v470_v50 }
 0x123   :  { %v651_v53 = vpack.c.bf16 %v519_v52, %v519_v52 }
 0x125   :  { %580 = vst.msk [vmem:[%s1038_s3 + $0x24] sm:$0xf] %vm570_vm1, %v651_v53 }

// kernel: vsm_oiqa_forward.26
= control target key start
LH: loop header
LB: loop body
LE: loop exit
PB: predicated region body
PF: predicated region fallthrough
CT: control target
= control target key end

     0   :  { %vm283_vm0 = vcmask 261120   ;;  %vm609_vm1 = vcmask 257024   ;;  %s1145_s1 = inlined_call_operand.vmem [shape: bf16[288,32], index: 1, kind: input, shape index: {}]   ;;  %s1146_s0 = inlined_call_operand.vmem [shape: bf16[96,288], index: 0, kind: input, shape index: {}]   ;;  %s1147_s2 = inlined_call_operand.vmem [shape: f32[1,32], index: 2, kind: input, shape index: {}]   ;;  %s1148_s3 = inlined_call_operand.vmem [shape: bf16[96,32], index: 3, kind: input, shape index: {}]   ;;  %s1149_s4 = inlined_call_operand.vmem [shape: bf16[96,32], index: 4, kind: output, shape index: {}]  }
   0x1   :  { %v814_v0 = vld [vmem:[%s1145_s1 + $0x78] sm:$0xff]   ;;  %v816_v2 = vld [vmem:[%s1145_s1 + $0x70] sm:$0xff]   ;;  %v818_v4 = vld [vmem:[%s1145_s1 + $0x68] sm:$0xff]  }
   0x2   :  { %v815_v1 = vld [vmem:[%s1145_s1 + $0x38] sm:$0xff]   ;;  %722 = vmatprep.subr.bf16.mxu0 %v814_v0  ;;  %798 = vmatprep.subr.bf16.mxu1 %v814_v0  ;;  %v817_v3 = vld [vmem:[%s1145_s1 + $0x30] sm:$0xff]   ;;  %v819_v5 = vld [vmem:[%s1145_s1 + $0x28] sm:$0xff]  }
   0x3   :  { %723 = vmatpush3.bf16.msra.mxu0 %v815_v1  ;;  %806 = vmatpush3.bf16.msra.mxu1 %v815_v1  ;;  %v820_v6 = vld [vmem:[%s1145_s1 + $0x60] sm:$0xff]   ;;  %v822_v8 = vld [vmem:[%s1145_s1 + $0x58] sm:$0xff]   ;;  %v824_v10 = vld [vmem:[%s1145_s1 + $0x50] sm:$0xff]  }
   0x4   :  { %724 = vmatprep.subr.bf16.mxu0 %v816_v2  ;;  %799 = vmatprep.subr.bf16.mxu1 %v816_v2  ;;  %v821_v7 = vld [vmem:[%s1145_s1 + $0x20] sm:$0xff]   ;;  %v823_v9 = vld [vmem:[%s1145_s1 + $0x18] sm:$0xff]   ;;  %v825_v13 = vld [vmem:[%s1145_s1 + $0x10] sm:$0xff]  }
   0x5   :  { %v832_v11 = vld [vmem:[%s1146_s0 + $0x4] ss:$12 sps:$4 sm:$0xff]   ;;  %v835_v12 = vld [vmem:[%s1146_s0 + $0x7c] ss:$12 sps:$4 sm:$0xff]   ;;  %v830_v19 = vld [vmem:[%s1146_s0] ss:$12 sps:$4 sm:$0xff]  }
   0x6   :  { %v826_v14 = vld [vmem:[%s1145_s1 + $0x48] sm:$0xff]   ;;  %334 = vmatprep.mubr.bf16.mxu0 %v832_v11  ;;  %374 = vmatprep.mubr.bf16.mxu1 %v835_v12  ;;  %v828_v16 = vld [vmem:[%s1145_s1 + $0x40] sm:$0xff]   ;;  %v846_v28 = vld [vmem:[%s1146_s0 + $0x30] ss:$12 sps:$4 sm:$0xff]  }
   0x7   :  { %725 = vmatpush3.bf16.msra.mxu0 %v817_v3  ;;  %807 = vmatpush3.bf16.msra.mxu1 %v817_v3  ;;  %v827_v15 = vld [vmem:[%s1145_s1 + $0x8] sm:$0xff]   ;;  %v829_v17 = vld [vmem:[%s1145_s1] sm:$0xff]   ;;  %v847_v29 = vld [vmem:[%s1146_s0 + $0x50] ss:$12 sps:$4 sm:$0xff]  }
   0x8   :  { %726 = vmatprep.subr.bf16.mxu0 %v818_v4  ;;  %800 = vmatprep.subr.bf16.mxu1 %v818_v4  ;;  %v836_v18 = vld [vmem:[%s1145_s1 + $0x88] sm:$0xff]   ;;  %v833_v20 = vld [vmem:[%s1146_s0 + $0x78] ss:$12 sps:$4 sm:$0xff]   ;;  %v843_v26 = vld [vmem:[%s1146_s0 + $0x34] ss:$12 sps:$4 sm:$0xff]  }
   0x9   :  { %v838_v21 = vld [vmem:[%s1146_s0 + $0x1c] ss:$12 sps:$4 sm:$0xff]   ;;  %v837_v22 = vld [vmem:[%s1145_s1 + $0x80] sm:$0xff]   ;;  %v848_v30 = vld [vmem:[%s1146_s0 + $0x4c] ss:$12 sps:$4 sm:$0xff]  }
   0xa   :  { %v840_v23 = vld [vmem:[%s1146_s0 + $0x8] ss:$12 sps:$4 sm:$0xff]   ;;  %v841_v24 = vld [vmem:[%s1146_s0 + $0x18] ss:$12 sps:$4 sm:$0xff]   ;;  %v842_v25 = vld [vmem:[%s1146_s0 + $0x20] ss:$12 sps:$4 sm:$0xff]  }
   0xb   :  { %727 = vmatpush3.bf16.msra.mxu0 %v819_v5  ;;  %808 = vmatpush3.bf16.msra.mxu1 %v819_v5  ;;  %v845_v27 = vld [vmem:[%s1146_s0 + $0x38] ss:$12 sps:$4 sm:$0xff]   ;;  %v850_v31 = vld [vmem:[%s1146_s0 + $0x68] ss:$12 sps:$4 sm:$0xff]   ;;  %v852_v33 = vld [vmem:[%s1146_s0 + $0x80] ss:$12 sps:$4 sm:$0xff]  }
   0xc   :  { %728 = vmatprep.subr.bf16.mxu0 %v820_v6  ;;  %801 = vmatprep.subr.bf16.mxu1 %v820_v6  ;;  %v851_v32 = vld [vmem:[%s1146_s0 + $0x48] ss:$12 sps:$4 sm:$0xff]   ;;  %v853_v34 = vld [vmem:[%s1146_s0 + $0x64] ss:$12 sps:$4 sm:$0xff]   ;;  %v855_v35 = vld [vmem:[%s1146_s0 + $0x60] ss:$12 sps:$4 sm:$0xff]  }
   0xd   :  { %v1022_v45 = vld [vmem:[%s1147_s2] ss:$0 sm:$0xff] }
   0xf   :  { %729 = vmatpush3.bf16.msra.mxu0 %v821_v7  ;;  %809 = vmatpush3.bf16.msra.mxu1 %v821_v7 }
  0x10   :  { %730 = vmatprep.subr.bf16.mxu0 %v822_v8  ;;  %802 = vmatprep.subr.bf16.mxu1 %v822_v8 }
  0x13   :  { %731 = vmatpush3.bf16.msra.mxu0 %v823_v9  ;;  %810 = vmatpush3.bf16.msra.mxu1 %v823_v9 }
  0x14   :  { %732 = vmatprep.subr.bf16.mxu0 %v824_v10  ;;  %803 = vmatprep.subr.bf16.mxu1 %v824_v10 }
  0x17   :  { %733 = vmatpush3.bf16.msra.mxu0 %v825_v13  ;;  %811 = vmatpush3.bf16.msra.mxu1 %v825_v13 }
  0x18   :  { %734 = vmatprep.subr.bf16.mxu0 %v826_v14  ;;  %804 = vmatprep.subr.bf16.mxu1 %v826_v14 }
  0x1b   :  { %735 = vmatpush3.bf16.msra.mxu0 %v827_v15  ;;  %812 = vmatpush3.bf16.msra.mxu1 %v827_v15 }
  0x1c   :  { %736 = vmatprep.subr.bf16.mxu0 %v828_v16  ;;  %805 = vmatprep.subr.bf16.mxu1 %v828_v16 }
  0x1f   :  { %737 = vmatpush3.bf16.msra.mxu0 %v829_v17  ;;  %813 = vmatpush3.bf16.msra.mxu1 %v829_v17 }
  0x20   :  { %782 = vmatprep.subr.bf16.mxu1 %v836_v18 }
  0x22   :  { %335 = vmatmul.mubr.bf16.vlgmr.msra.gmra.mxu0 %v830_v19  ;;  %375 = vmatmul.mubr.bf16.vlgmr.msra.gmra.mxu1 %v833_v20 }
  0x23   :  { %783 = vmatpush3.bf16.msra.mxu1 %v836_v18  ;;  %342 = vmatprep.mubr.bf16.mxu0 %v838_v21 }
  0x24   :  { %784 = vmatprep.subr.bf16.mxu1 %v837_v22  ;;  %786 = vmatprep.mubr.msk.bf16.mxu1 %vm283_vm0, %v840_v23 }
  0x27   :  { %785 = vmatpush3.bf16.msra.mxu1 %v837_v22  ;;  %v694_v22 = vld [vmem:[%s1148_s3] sm:$0xff]  }
  0x2a   :  { %343 = vmatmul.mubr.bf16.gmra.mxu0 %v841_v24  ;;  %787 = vmatmul.mubr.msk.bf16.vlgmr.msra.gmra.mxu1 %vm283_vm0, %v842_v25 }
  0x2b   :  { %350 = vmatprep.mubr.bf16.mxu0 %v843_v26  ;;  %790 = vmatprep.mubr.msk.bf16.mxu1 %vm283_vm0, %v845_v27 }
  0x32   :  { %351 = vmatmul.mubr.bf16.gmra.mxu0 %v846_v28  ;;  %791 = vmatmul.mubr.msk.bf16.gmra.mxu1 %vm283_vm0, %v847_v29 }
  0x33   :  { %358 = vmatprep.mubr.bf16.mxu0 %v848_v30  ;;  %794 = vmatprep.mubr.msk.bf16.mxu1 %vm283_vm0, %v850_v31  ;;  %v1056_v31 = vld [vmem:[%s1148_s3 + $0x8] sm:$0xff]  }
  0x3a   :  { %359 = vmatmul.mubr.bf16.gmra.mxu0 %v851_v32  ;;  %795 = vmatmul.mubr.msk.bf16.gmra.mxu1 %vm283_vm0, %v852_v33  ;;  %v695_v32 = vunpack.c.l.bf16 %v694_v22 }
  0x3b   :  { %366 = vmatprep.mubr.bf16.mxu0 %v853_v34 }
  0x42   :  { %367 = vmatmul.mubr.bf16.gmra.mxu0 %v855_v35 }
  0xe2   :  { %v738_v36 = vpop.f32.mrf.mxu0  ;;  %v768_v37 = vpop.f32.mrf.mxu1 }
  0xe4   :  { %v739_v38 = vpop.f32.mrf.mxu0  ;;  %v769_v39 = vpop.f32.mrf.mxu1 }
  0xe5   :  { %v740_v42 = vadd.f32 %v739_v38, %v738_v36  ;;  %v770_v7 = vadd.f32 %v769_v39, %v768_v37 }
  0xe6   :  { %v741_v40 = vpop.f32.mrf.mxu0  ;;  %v771_v41 = vpop.f32.mrf.mxu1 }
  0xe7   :  { %v337_v49 = vadd.f32 %v740_v42, %v1022_v45  ;;  %v377_v18 = vadd.f32 %v770_v7, %v1022_v45 }
  0xe8   :  { %v742_v43 = vpop.f32.mrf.mxu0  ;;  %v772_v44 = vpop.f32.mrf.mxu1 }
  0xe9   :  { %v743_v48 = vadd.f32 %v742_v43, %v741_v40  ;;  %v773_v19 = vadd.f32 %v772_v44, %v771_v41  ;;  %v699_v43 = vunpack.c.l.bf16 %v1056_v31 }
  0xea   :  { %v744_v46 = vpop.f32.mrf.mxu0  ;;  %v788_v47 = vpop.f32.mrf.mxu1 }
  0xeb   :  { %v340_v58 = vadd.f32 %v743_v48, %v1022_v45  ;;  %v380_v35 = vadd.f32 %v773_v19, %v1022_v45  ;;  %v696_v48 = vunpack.c.h.bf16 %v694_v22 }
  0xec   :  { %v745_v50 = vpop.f32.mrf.mxu0  ;;  %v417_v51 = vpop.f32.mrf.mxu1 }
  0xed   :  { %v746_v52 = vadd.f32 %v745_v50, %v744_v46  ;;  %v418_v53 = vadd.f32 %v417_v51, %v337_v49 }
  0xee   :  { %v747_v54 = vpop.f32.mrf.mxu0  ;;  %v789_v55 = vpop.f32.mrf.mxu1 }
  0xef   :  { %v345_v56 = vadd.f32 %v746_v52, %v1022_v45  ;;  %v477_v57 = vmul.f32 0.70710677, %v418_v53  ;;  %v464_v37 = vmul.f32 0.5, %v418_v53 }
  0xf0   :  { %v748_v59 = vpop.f32.mrf.mxu0  ;;  %v420_v60 = vpop.f32.mrf.mxu1 }
  0xf1   :  { %v1027_v61 = vadd.f32 %v788_v47, %v345_v56  ;;  %856 = verf.f32 %v477_v57  ;;  %v749_v62 = vadd.f32 %v748_v59, %v747_v54  ;;  %v1029_v63 = vadd.f32 %v420_v60, %v340_v58 }
  0xf2   :  { %v750_v0 = vpop.f32.mrf.mxu0  ;;  %v792_v1 = vpop.f32.mrf.mxu1 }
  0xf3   :  { %v479_v2 = vmul.f32 0.70710677, %v1027_v61  ;;  %v348_v3 = vadd.f32 %v749_v62, %v1022_v45  ;;  %v478_v4 = vmul.f32 0.70710677, %v1029_v63  ;;  %v466_v53 = vmul.f32 0.5, %v1027_v61 }
  0xf4   :  { %v751_v5 = vpop.f32.mrf.mxu0  ;;  %v433_v6 = vpop.f32.mrf.mxu1  ;;  %v465_v57 = vmul.f32 0.5, %v1029_v63 }
  0xf5   :  { %858 = verf.f32 %v479_v2  ;;  %v1034_v8 = vadd.f32 %v789_v55, %v348_v3  ;;  %v752_v9 = vadd.f32 %v751_v5, %v750_v0 }
  0xf6   :  { %860 = verf.f32 %v478_v4  ;;  %v753_v10 = vpop.f32.mrf.mxu0  ;;  %v793_v11 = vpop.f32.mrf.mxu1  ;;  %v700_v4 = vunpack.c.h.bf16 %v1056_v31 }
  0xf7   :  { %v480_v12 = vmul.f32 0.70710677, %v1034_v8  ;;  %v353_v13 = vadd.f32 %v752_v9, %v1022_v45  ;;  %v467_v63 = vmul.f32 0.5, %v1034_v8  ;;  %v718_v9 = vld [vmem:[%s1148_s3 + $0x10] sm:$0xff]  }
  0xf8   :  { %v754_v14 = vpop.f32.mrf.mxu0  ;;  %v436_v15 = vpop.f32.mrf.mxu1 }
  0xf9   :  { %862 = verf.f32 %v480_v12  ;;  %v1038_v16 = vadd.f32 %v433_v6, %v353_v13  ;;  %v755_v17 = vadd.f32 %v754_v14, %v753_v10 }
  0xfa   :  { %v756_v20 = vpop.f32.mrf.mxu0  ;;  %v796_v21 = vpop.f32.mrf.mxu1 }
  0xfb   :  { %v481_v23 = vmul.f32 0.70710677, %v1038_v16  ;;  %v356_v24 = vadd.f32 %v755_v17, %v1022_v45  ;;  %v1046_v25 = vadd.f32 %v796_v21, %v377_v18  ;;  %v721_v17 = vld [vmem:[%s1148_s3 + $0x28] sm:$0xff]  }
  0xfc   :  { %v757_v26 = vpop.f32.mrf.mxu0  ;;  %v1048_v27 = vpop.f32.mrf.mxu1 }
  0xfd   :  { %864 = verf.f32 %v481_v23  ;;  %v1050_v28 = vadd.f32 %v436_v15, %v356_v24  ;;  %v487_v29 = vmul.f32 0.70710677, %v1046_v25  ;;  %v758_v33 = vadd.f32 %v757_v26, %v756_v20 }
  0xfe   :  { %v857_v30 = vpop.eup %856  ;;  %v759_v34 = vpop.f32.mrf.mxu0  ;;  %v703_v20 = vunpack.c.l.bf16 %v718_v9  ;;  %v468_v23 = vmul.f32 0.5, %v1038_v16  ;;  %v704_v16 = vunpack.c.h.bf16 %v718_v9 }
  0xff   :  { %v797_v36 = vpop.f32.mrf.mxu1  ;;  %v501_v38 = vadd.f32 1.0, %v857_v30  ;;  %v482_v39 = vmul.f32 0.70710677, %v1050_v28  ;;  %866 = verf.f32 %v487_v29  ;;  %v361_v40 = vadd.f32 %v758_v33, %v1022_v45 }
 0x100   :  { %v1061_v41 = vadd.f32 %v797_v36, %v380_v35  ;;  %v760_v42 = vpop.f32.mrf.mxu0  ;;  %v474_v30 = vmul.f32 0.5, %v1046_v25 }
 0x101   :  { %v513_v44 = vmul.f32 %v501_v38, %v464_v37  ;;  %868 = verf.f32 %v482_v39  ;;  %v761_v46 = vadd.f32 %v760_v42, %v759_v34  ;;  %v1064_v49 = vadd.f32 %v792_v1, %v361_v40 }
 0x102   :  { %v859_v47 = vpop.eup %858  ;;  %v488_v50 = vmul.f32 0.70710677, %v1061_v41  ;;  %v762_v51 = vpop.f32.mrf.mxu0  ;;  %v469_v38 = vmul.f32 0.5, %v1050_v28 }
 0x103   :  { %v861_v52 = vpop.eup %860  ;;  %v503_v54 = vadd.f32 1.0, %v859_v47  ;;  %v549_v55 = vadd.f32 %v695_v32, %v513_v44  ;;  %v364_v56 = vadd.f32 %v761_v46, %v1022_v45  ;;  %v483_v59 = vmul.f32 0.70710677, %v1064_v49  ;;  %v452_v32 = vpop.f32.mrf.mxu1  ;;  %v719_v47 = vld [vmem:[%s1148_s3 + $0x18] sm:$0xff]  }
 0x104   :  { %v502_v58 = vadd.f32 1.0, %v861_v52  ;;  %870 = verf.f32 %v488_v50  ;;  %v763_v60 = vpop.f32.mrf.mxu0 }
 0x105   :  { %v515_v62 = vmul.f32 %v503_v54, %v466_v53  ;;  %v681_v0 = vpack.c.bf16 %v549_v55, %v549_v55  ;;  %v1071_v1 = vadd.f32 %v793_v11, %v364_v56  ;;  %v764_v2 = vadd.f32 %v763_v60, %v762_v51 }
 0x106   :  { %v863_v3 = vpop.eup %862  ;;  %v514_v61 = vmul.f32 %v502_v58, %v465_v57  ;;  %872 = verf.f32 %v483_v59  ;;  %v765_v5 = vpop.f32.mrf.mxu0  ;;  %v716_v51 = vunpack.c.h.bf16 %v721_v17  ;;  %v470_v54 = vmul.f32 0.5, %v1064_v49 }
 0x107   :  { %v551_v6 = vadd.f32 %v699_v43, %v515_v62  ;;  %610 = vst.msk [vmem:[%s1149_s4] sm:$0xf] %vm609_vm1, %v681_v0  ;;  %v504_v7 = vadd.f32 1.0, %v863_v3  ;;  %v484_v10 = vmul.f32 0.70710677, %v1071_v1  ;;  %v369_v12 = vadd.f32 %v764_v2, %v1022_v45 }
 0x108   :  { %v550_v11 = vadd.f32 %v696_v48, %v514_v61  ;;  %v766_v13 = vpop.f32.mrf.mxu0  ;;  %v475_v48 = vmul.f32 0.5, %v1061_v41  ;;  %v707_v56 = vunpack.c.l.bf16 %v719_v47  ;;  %v471_v62 = vmul.f32 0.5, %v1071_v1  ;;  %v720_v61 = vld [vmem:[%s1148_s3 + $0x20] sm:$0xff]  }
 0x109   :  { %v683_v14 = vpack.c.bf16 %v551_v6, %v551_v6  ;;  %v516_v15 = vmul.f32 %v504_v7, %v467_v63  ;;  %874 = verf.f32 %v484_v10  ;;  %v767_v18 = vadd.f32 %v766_v13, %v765_v5 }
 0x10a   :  { %v865_v8 = vpop.eup %864  ;;  %v682_v19 = vpack.c.bf16 %v550_v11, %v550_v11  ;;  %v450_v21 = vadd.f32 %v1048_v27, %v369_v12  ;;  %v715_v27 = vunpack.c.l.bf16 %v721_v17  ;;  %v708_v0 = vunpack.c.h.bf16 %v719_v47 }
 0x10b   :  { %612 = vst.msk [vmem:[%s1149_s4 + $0x8] sm:$0xf] %vm609_vm1, %v683_v14  ;;  %v552_v22 = vadd.f32 %v700_v4, %v516_v15  ;;  %v505_v24 = vadd.f32 1.0, %v865_v8  ;;  %v372_v26 = vadd.f32 %v767_v18, %v1022_v45  ;;  %v711_v9 = vunpack.c.l.bf16 %v720_v61 }
 0x10c   :  { %v867_v29 = vpop.eup %866  ;;  %611 = vst.msk [vmem:[%s1149_s4 + $0x4] sm:$0xf] %vm609_vm1, %v682_v19  ;;  %v485_v31 = vmul.f32 0.70710677, %v450_v21  ;;  %v472_v1 = vmul.f32 0.5, %v450_v21  ;;  %v712_v17 = vunpack.c.h.bf16 %v720_v61 }
 0x10d   :  { %v684_v33 = vpack.c.bf16 %v552_v22, %v552_v22  ;;  %v517_v34 = vmul.f32 %v505_v24, %v468_v23  ;;  %v511_v35 = vadd.f32 1.0, %v867_v29  ;;  %v453_v36 = vadd.f32 %v452_v32, %v372_v26 }
 0x10e   :  { %v869_v37 = vpop.eup %868  ;;  %876 = verf.f32 %v485_v31 }
 0x10f   :  { %613 = vst.msk [vmem:[%s1149_s4 + $0xc] sm:$0xf] %vm609_vm1, %v684_v33  ;;  %v553_v45 = vadd.f32 %v703_v20, %v517_v34  ;;  %v506_v39 = vadd.f32 1.0, %v869_v37  ;;  %v523_v25 = vmul.f32 %v511_v35, %v474_v30  ;;  %v486_v40 = vmul.f32 0.70710677, %v453_v36 }
 0x110   :  { %v473_v14 = vmul.f32 0.5, %v453_v36 }
 0x111   :  { %v871_v42 = vpop.eup %870  ;;  %v685_v43 = vpack.c.bf16 %v553_v45, %v553_v45  ;;  %v518_v44 = vmul.f32 %v506_v39, %v469_v38  ;;  %v559_v46 = vadd.f32 %v715_v27, %v523_v25  ;;  %878 = verf.f32 %v486_v40 }
 0x112   :  { %v512_v50 = vadd.f32 1.0, %v871_v42 }
 0x113   :  { %v873_v52 = vpop.eup %872  ;;  %614 = vst.msk [vmem:[%s1149_s4 + $0x10] sm:$0xf] %vm609_vm1, %v685_v43  ;;  %v554_v28 = vadd.f32 %v704_v16, %v518_v44  ;;  %v691_v53 = vpack.c.bf16 %v559_v46, %v559_v46 }
 0x114   :  { %v507_v55 = vadd.f32 1.0, %v873_v52  ;;  %v524_v57 = vmul.f32 %v512_v50, %v475_v48 }
 0x115   :  { %v686_v58 = vpack.c.bf16 %v554_v28, %v554_v28  ;;  %620 = vst.msk [vmem:[%s1149_s4 + $0x28] sm:$0xf] %vm609_vm1, %v691_v53 }
 0x116   :  { %v875_v41 = vpop.eup %874  ;;  %v519_v59 = vmul.f32 %v507_v55, %v470_v54  ;;  %v560_v60 = vadd.f32 %v716_v51, %v524_v57 }
 0x117   :  { %615 = vst.msk [vmem:[%s1149_s4 + $0x14] sm:$0xf] %vm609_vm1, %v686_v58  ;;  %v508_v49 = vadd.f32 1.0, %v875_v41 }
 0x118   :  { %v555_v2 = vadd.f32 %v707_v56, %v519_v59  ;;  %v692_v3 = vpack.c.bf16 %v560_v60, %v560_v60 }
 0x119   :  { %v520_v4 = vmul.f32 %v508_v49, %v471_v62 }
 0x11a   :  { %v687_v5 = vpack.c.bf16 %v555_v2, %v555_v2  ;;  %621 = vst.msk [vmem:[%s1149_s4 + $0x2c] sm:$0xf] %vm609_vm1, %v692_v3 }
 0x11b   :  { %v877_v6 = vpop.eup %876  ;;  %v556_v63 = vadd.f32 %v708_v0, %v520_v4 }
 0x11c   :  { %616 = vst.msk [vmem:[%s1149_s4 + $0x18] sm:$0xf] %vm609_vm1, %v687_v5  ;;  %v509_v7 = vadd.f32 1.0, %v877_v6 }
 0x11d   :  { %v688_v10 = vpack.c.bf16 %v556_v63, %v556_v63 }
 0x11e   :  { %v521_v11 = vmul.f32 %v509_v7, %v472_v1  ;;  %v879_v12 = vpop.eup %878 }
 0x11f   :  { %617 = vst.msk [vmem:[%s1149_s4 + $0x1c] sm:$0xf] %vm609_vm1, %v688_v10  ;;  %v510_v15 = vadd.f32 1.0, %v879_v12 }
 0x120   :  { %v557_v13 = vadd.f32 %v711_v9, %v521_v11 }
 0x121   :  { %v522_v8 = vmul.f32 %v510_v15, %v473_v14 }
 0x122   :  { %v689_v18 = vpack.c.bf16 %v557_v13, %v557_v13 }
 0x123   :  { %v558_v19 = vadd.f32 %v712_v17, %v522_v8 }
 0x124   :  { %618 = vst.msk [vmem:[%s1149_s4 + $0x20] sm:$0xf] %vm609_vm1, %v689_v18 }
 0x125   :  { %v690_v20 = vpack.c.bf16 %v558_v19, %v558_v19 }
 0x127   :  { %619 = vst.msk [vmem:[%s1149_s4 + $0x24] sm:$0xf] %vm609_vm1, %v690_v20 }

// kernel: vsm_oiqa_forward.27
= control target key start
LH: loop header
LB: loop body
LE: loop exit
PB: predicated region body
PF: predicated region fallthrough
CT: control target
= control target key end

     0   :  { %vm197_vm0 = vcmask 261120   ;;  %vm313_vm1 = vcmask 519168   ;;  %s523_s1 = inlined_call_operand.vmem [shape: bf16[288,64], index: 1, kind: input, shape index: {}]   ;;  %s524_s0 = inlined_call_operand.vmem [shape: bf16[24,288], index: 0, kind: input, shape index: {}]   ;;  %s525_s2 = inlined_call_operand.vmem [shape: f32[1,64], index: 2, kind: input, shape index: {}]   ;;  %s526_s3 = inlined_call_operand.vmem [shape: bf16[24,64], index: 3, kind: output, shape index: {}]  }
   0x1   :  { %v394_v0 = vld [vmem:[%s523_s1 + $0x78] sm:$0xff]   ;;  %v396_v2 = vld [vmem:[%s523_s1 + $0x70] sm:$0xff]   ;;  %v398_v4 = vld [vmem:[%s523_s1 + $0x68] sm:$0xff]  }
   0x2   :  { %v395_v1 = vld [vmem:[%s523_s1 + $0x38] sm:$0xff]   ;;  %354 = vmatprep.subr.bf16.mxu0 %v394_v0  ;;  %v397_v3 = vld [vmem:[%s523_s1 + $0x30] sm:$0xff]   ;;  %v399_v5 = vld [vmem:[%s523_s1 + $0x28] sm:$0xff]  }
   0x3   :  { %355 = vmatpush3.bf16.msra.mxu0 %v395_v1  ;;  %v400_v6 = vld [vmem:[%s523_s1 + $0x60] sm:$0xff]   ;;  %v402_v8 = vld [vmem:[%s523_s1 + $0x58] sm:$0xff]   ;;  %v408_v9 = vld [vmem:[%s523_s1 + $0x88] sm:$0xff]  }
   0x4   :  { %356 = vmatprep.subr.bf16.mxu0 %v396_v2  ;;  %v401_v7 = vld [vmem:[%s523_s1 + $0x20] sm:$0xff]   ;;  %v403_v10 = vld [vmem:[%s523_s1 + $0x18] sm:$0xff]   ;;  %v404_v11 = vld [vmem:[%s523_s1 + $0x50] sm:$0xff]   ;;  %386 = vmatprep.subr.bf16.mxu1 %v408_v9 }
   0x5   :  { %v405_v12 = vld [vmem:[%s523_s1 + $0x10] sm:$0xff]   ;;  %387 = vmatpush3.bf16.msra.mxu1 %v408_v9  ;;  %v411_v13 = vld [vmem:[%s523_s1 + $0x80] sm:$0xff]   ;;  %v406_v14 = vld [vmem:[%s523_s1 + $0x48] sm:$0xff]  }
   0x6   :  { %388 = vmatprep.subr.bf16.mxu1 %v411_v13  ;;  %v414_v15 = vld [vmem:[%s524_s0 + $0x4] ss:$12 sps:$4 sm:$0xff]   ;;  %v415_v16 = vld [vmem:[%s524_s0 + $0x8] ss:$12 sps:$4 sm:$0xff]   ;;  %v416_v17 = vld [vmem:[%s524_s0 + $0x20] ss:$0 sps:$4 sm:$0xff]  }
   0x7   :  { %357 = vmatpush3.bf16.msra.mxu0 %v397_v3  ;;  %236 = vmatprep.mubr.bf16.mxu0 %v414_v15  ;;  %v407_v18 = vld [vmem:[%s523_s1 + $0x8] sm:$0xff]   ;;  %v409_v19 = vld [vmem:[%s523_s1 + $0x40] sm:$0xff]   ;;  %v19_v21 = vld [vmem:[%s524_s0 + $0x18] sm:$0xff] }
   0x8   :  { %358 = vmatprep.subr.bf16.mxu0 %v398_v4  ;;  %390 = vmatprep.mubr.msk.bf16.mxu1 %vm197_vm0, %v415_v16  ;;  %v410_v20 = vld [vmem:[%s523_s1] sm:$0xff]   ;;  %v326_v23 = vcombine.high %v19_v21, %v19_v21  ;;  %v325_v24 = vcombine.low %v19_v21, %v19_v21 }
   0x9   :  { %389 = vmatpush3.bf16.msra.mxu1 %v411_v13  ;;  %v412_v22 = vld [vmem:[%s524_s0] ss:$12 sps:$4 sm:$0xff]  }
   0xa   :  { %v321_v30 = vld [vmem:[%s525_s2] ss:$0 sm:$0xff] }
   0xb   :  { %359 = vmatpush3.bf16.msra.mxu0 %v399_v5 }
   0xc   :  { %360 = vmatprep.subr.bf16.mxu0 %v400_v6  ;;  %391 = vmatmul.mubr.msk.bf16.vlgmr.msra.gmra.mxu1 %vm197_vm0, %v416_v17 }
   0xf   :  { %361 = vmatpush3.bf16.msra.mxu0 %v401_v7 }
  0x10   :  { %362 = vmatprep.subr.bf16.mxu0 %v402_v8 }
  0x13   :  { %363 = vmatpush3.bf16.msra.mxu0 %v403_v10 }
  0x14   :  { %364 = vmatprep.subr.bf16.mxu0 %v404_v11 }
  0x17   :  { %365 = vmatpush3.bf16.msra.mxu0 %v405_v12 }
  0x18   :  { %366 = vmatprep.subr.bf16.mxu0 %v406_v14 }
  0x1b   :  { %367 = vmatpush3.bf16.msra.mxu0 %v407_v18 }
  0x1c   :  { %368 = vmatprep.subr.bf16.mxu0 %v409_v19 }
  0x1f   :  { %369 = vmatpush3.bf16.msra.mxu0 %v410_v20 }
  0x22   :  { %237 = vmatmul.mubr.bf16.vlgmr.msra.gmra.mxu0 %v412_v22 }
  0x23   :  { %244 = vmatprep.mubr.bf16.mxu0 %v326_v23 }
  0x2a   :  { %245 = vmatmul.mubr.bf16.gmra.mxu0 %v325_v24 }
  0xcc   :  { %v392_v25 = vpop.f32.mrf.mxu1 }
  0xce   :  { %v286_v26 = vpop.f32.mrf.mxu1 }
  0xd0   :  { %v393_v27 = vpop.f32.mrf.mxu1 }
  0xd2   :  { %v289_v40 = vpop.f32.mrf.mxu1 }
  0xe2   :  { %v370_v28 = vpop.f32.mrf.mxu0 }
  0xe4   :  { %v371_v29 = vpop.f32.mrf.mxu0 }
  0xe5   :  { %v372_v31 = vadd.f32 %v371_v29, %v370_v28 }
  0xe6   :  { %v373_v32 = vpop.f32.mrf.mxu0 }
  0xe7   :  { %v239_v33 = vadd.f32 %v372_v31, %v321_v30 }
  0xe8   :  { %v374_v34 = vpop.f32.mrf.mxu0 }
  0xe9   :  { %v287_v35 = vadd.f32 %v286_v26, %v239_v33  ;;  %v375_v36 = vadd.f32 %v374_v34, %v373_v32 }
  0xea   :  { %v376_v37 = vpop.f32.mrf.mxu0 }
  0xeb   :  { %v351_v38 = vpack.c.bf16 %v287_v35, %v287_v35  ;;  %v242_v39 = vadd.f32 %v375_v36, %v321_v30 }
  0xec   :  { %v377_v41 = vpop.f32.mrf.mxu0 }
  0xed   :  { %314 = vst.msk [vmem:[%s526_s3] sm:$0xf] %vm313_vm1, %v351_v38  ;;  %v290_v42 = vadd.f32 %v289_v40, %v242_v39  ;;  %v378_v43 = vadd.f32 %v377_v41, %v376_v37 }
  0xee   :  { %v379_v44 = vpop.f32.mrf.mxu0 }
  0xef   :  { %v352_v45 = vpack.c.bf16 %v290_v42, %v290_v42  ;;  %v247_v46 = vadd.f32 %v378_v43, %v321_v30 }
  0xf0   :  { %v380_v47 = vpop.f32.mrf.mxu0 }
  0xf1   :  { %315 = vst.msk [vmem:[%s526_s3 + $0x4] sm:$0xf] %vm313_vm1, %v352_v45  ;;  %v295_v48 = vadd.f32 %v392_v25, %v247_v46 }
  0xf3   :  { %v353_v49 = vpack.c.bf16 %v295_v48, %v295_v48 }
  0xf5   :  { %316 = vst.msk [vmem:[%s526_s3 + $0x8] sm:$0xf] %vm313_vm1, %v353_v49 }

// kernel: vsm_oiqa_forward.28
= control target key start
LH: loop header
LB: loop body
LE: loop exit
PB: predicated region body
PF: predicated region fallthrough
CT: control target
= control target key end

     0   :  { %vm361_vm0 = vcmask 523264   ;;  %vm541_vm1 = vcmask 519168   ;;  %s896_s1 = inlined_call_operand.vmem [shape: bf16[576,64], index: 1, kind: input, shape index: {}]   ;;  %s897_s0 = inlined_call_operand.vmem [shape: bf16[24,576], index: 0, kind: input, shape index: {}]   ;;  %s898_s2 = inlined_call_operand.vmem [shape: f32[1,64], index: 2, kind: input, shape index: {}]   ;;  %s899_s3 = inlined_call_operand.vmem [shape: bf16[24,64], index: 3, kind: output, shape index: {}]  }
   0x1   :  { %v678_v0 = vld [vmem:[%s896_s1 + $0x78] sm:$0xff]   ;;  %v682_v4 = vld [vmem:[%s896_s1 + $0x70] sm:$0xff]   ;;  %v686_v8 = vld [vmem:[%s896_s1 + $0x68] sm:$0xff]  }
   0x2   :  { %v679_v1 = vld [vmem:[%s896_s1 + $0x38] sm:$0xff]   ;;  %604 = vmatprep.subr.bf16.mxu0 %v678_v0  ;;  %v683_v5 = vld [vmem:[%s896_s1 + $0x30] sm:$0xff]   ;;  %v687_v9 = vld [vmem:[%s896_s1 + $0x28] sm:$0xff]  }
   0x3   :  { %v680_v2 = vld [vmem:[%s896_s1 + $0xf8] sm:$0xff]   ;;  %605 = vmatpush3.bf16.msra.mxu0 %v679_v1  ;;  %v684_v6 = vld [vmem:[%s896_s1 + $0xf0] sm:$0xff]   ;;  %v688_v10 = vld [vmem:[%s896_s1 + $0xe8] sm:$0xff]  }
   0x4   :  { %v681_v3 = vld [vmem:[%s896_s1 + $0xb8] sm:$0xff]   ;;  %632 = vmatprep.subr.bf16.mxu1 %v680_v2  ;;  %606 = vmatprep.subr.bf16.mxu0 %v682_v4  ;;  %v685_v7 = vld [vmem:[%s896_s1 + $0xb0] sm:$0xff]   ;;  %v689_v11 = vld [vmem:[%s896_s1 + $0xa8] sm:$0xff]  }
   0x5   :  { %633 = vmatpush3.bf16.msra.mxu1 %v681_v3  ;;  %v690_v12 = vld [vmem:[%s896_s1 + $0x60] sm:$0xff]   ;;  %v694_v16 = vld [vmem:[%s896_s1 + $0x58] sm:$0xff]   ;;  %v698_v20 = vld [vmem:[%s896_s1 + $0x50] sm:$0xff]  }
   0x6   :  { %634 = vmatprep.subr.bf16.mxu1 %v684_v6  ;;  %v691_v13 = vld [vmem:[%s896_s1 + $0x20] sm:$0xff]   ;;  %v695_v17 = vld [vmem:[%s896_s1 + $0x18] sm:$0xff]   ;;  %v699_v21 = vld [vmem:[%s896_s1 + $0x10] sm:$0xff]  }
   0x7   :  { %607 = vmatpush3.bf16.msra.mxu0 %v683_v5  ;;  %v692_v14 = vld [vmem:[%s896_s1 + $0xe0] sm:$0xff]   ;;  %v696_v18 = vld [vmem:[%s896_s1 + $0xd8] sm:$0xff]   ;;  %v700_v22 = vld [vmem:[%s896_s1 + $0xd0] sm:$0xff]  }
   0x8   :  { %608 = vmatprep.subr.bf16.mxu0 %v686_v8  ;;  %v693_v15 = vld [vmem:[%s896_s1 + $0xa0] sm:$0xff]   ;;  %v697_v19 = vld [vmem:[%s896_s1 + $0x98] sm:$0xff]   ;;  %v701_v23 = vld [vmem:[%s896_s1 + $0x90] sm:$0xff]  }
   0x9   :  { %635 = vmatpush3.bf16.msra.mxu1 %v685_v7  ;;  %v702_v24 = vld [vmem:[%s896_s1 + $0x48] sm:$0xff]   ;;  %v706_v28 = vld [vmem:[%s896_s1 + $0x40] sm:$0xff]   ;;  %v713_v34 = vld [vmem:[%s896_s1 + $0x118] sm:$0xff]  }
   0xa   :  { %636 = vmatprep.subr.bf16.mxu1 %v688_v10  ;;  %v703_v25 = vld [vmem:[%s896_s1 + $0x8] sm:$0xff]   ;;  %v707_v29 = vld [vmem:[%s896_s1] sm:$0xff]   ;;  %v717_v37 = vld [vmem:[%s896_s1 + $0x110] sm:$0xff]  }
   0xb   :  { %609 = vmatpush3.bf16.msra.mxu0 %v687_v9  ;;  %v704_v26 = vld [vmem:[%s896_s1 + $0xc8] sm:$0xff]   ;;  %v708_v30 = vld [vmem:[%s896_s1 + $0xc0] sm:$0xff]   ;;  %v22_v41 = vld [vmem:[%s897_s0 + $0x30] sm:$0xff] }
   0xc   :  { %610 = vmatprep.subr.bf16.mxu0 %v690_v12  ;;  %v705_v27 = vld [vmem:[%s896_s1 + $0x88] sm:$0xff]   ;;  %v709_v31 = vld [vmem:[%s897_s0] ss:$20 sps:$4 sm:$0xff]   ;;  %v711_v32 = vld [vmem:[%s897_s0 + $0x4] ss:$20 sps:$4 sm:$0xff]   ;;  %v558_v43 = vcombine.high %v22_v41, %v22_v41  ;;  %v557_v45 = vcombine.low %v22_v41, %v22_v41 }
   0xd   :  { %637 = vmatpush3.bf16.msra.mxu1 %v689_v11  ;;  %v712_v33 = vld [vmem:[%s896_s1 + $0x80] sm:$0xff]   ;;  %400 = vmatprep.mubr.bf16.mxu0 %v711_v32  ;;  %v714_v35 = vld [vmem:[%s897_s0 + $0x8] ss:$20 sps:$4 sm:$0xff]   ;;  %v725_v47 = vld [vmem:[%s897_s0 + $0x38] ss:$0 sps:$4 sm:$0xff]  }
   0xe   :  { %638 = vmatprep.subr.bf16.mxu1 %v692_v14  ;;  %v716_v36 = vld [vmem:[%s897_s0 + $0xc] ss:$20 sps:$4 sm:$0xff]   ;;  %v724_v44 = vld [vmem:[%s897_s0 + $0x10] ss:$20 sps:$4 sm:$0xff]  }
   0xf   :  { %611 = vmatpush3.bf16.msra.mxu0 %v691_v13  ;;  %v21_v38 = vld [vmem:[%s897_s0 + $0x28] sm:$0xff]  ;;  %448 = vmatprep.mubr.bf16.mxu1 %v716_v36  ;;  %v723_v46 = vld [vmem:[%s896_s1 + $0x100] sm:$0xff]  }
  0x10   :  { %612 = vmatprep.subr.bf16.mxu0 %v694_v16  ;;  %v556_v39 = vcombine.high %v21_v38, %v21_v38  ;;  %v720_v40 = vld [vmem:[%s896_s1 + $0x108] sm:$0xff]   ;;  %v555_v42 = vcombine.low %v21_v38, %v21_v38  ;;  %v549_v59 = vld [vmem:[%s898_s2] ss:$0 sm:$0xff] }
  0x11   :  { %639 = vmatpush3.bf16.msra.mxu1 %v693_v15 }
  0x12   :  { %640 = vmatprep.subr.bf16.mxu1 %v696_v18 }
  0x13   :  { %613 = vmatpush3.bf16.msra.mxu0 %v695_v17 }
  0x14   :  { %614 = vmatprep.subr.bf16.mxu0 %v698_v20 }
  0x15   :  { %641 = vmatpush3.bf16.msra.mxu1 %v697_v19 }
  0x16   :  { %642 = vmatprep.subr.bf16.mxu1 %v700_v22 }
  0x17   :  { %615 = vmatpush3.bf16.msra.mxu0 %v699_v21 }
  0x18   :  { %616 = vmatprep.subr.bf16.mxu0 %v702_v24 }
  0x19   :  { %643 = vmatpush3.bf16.msra.mxu1 %v701_v23 }
  0x1a   :  { %644 = vmatprep.subr.bf16.mxu1 %v704_v26 }
  0x1b   :  { %617 = vmatpush3.bf16.msra.mxu0 %v703_v25 }
  0x1c   :  { %618 = vmatprep.subr.bf16.mxu0 %v706_v28 }
  0x1d   :  { %645 = vmatpush3.bf16.msra.mxu1 %v705_v27 }
  0x1e   :  { %646 = vmatprep.subr.bf16.mxu1 %v708_v30 }
  0x1f   :  { %619 = vmatpush3.bf16.msra.mxu0 %v707_v29 }
  0x20   :  { %666 = vmatprep.subr.bf16.mxu0 %v713_v34 }
  0x21   :  { %647 = vmatpush3.bf16.msra.mxu1 %v712_v33 }
  0x22   :  { %401 = vmatmul.mubr.bf16.vlgmr.msra.gmra.mxu0 %v709_v31 }
  0x23   :  { %667 = vmatpush3.bf16.msra.mxu0 %v713_v34  ;;  %408 = vmatprep.mubr.bf16.mxu0 %v556_v39 }
  0x24   :  { %449 = vmatmul.mubr.bf16.vlgmr.msra.gmra.mxu1 %v714_v35  ;;  %668 = vmatprep.subr.bf16.mxu0 %v717_v37 }
  0x25   :  { %456 = vmatprep.mubr.bf16.mxu1 %v558_v43 }
  0x27   :  { %669 = vmatpush3.bf16.msra.mxu0 %v717_v37 }
  0x28   :  { %670 = vmatprep.subr.bf16.mxu0 %v720_v40 }
  0x2a   :  { %409 = vmatmul.mubr.bf16.gmra.mxu0 %v555_v42 }
  0x2b   :  { %674 = vmatprep.mubr.msk.bf16.mxu0 %vm361_vm0, %v724_v44  ;;  %671 = vmatpush3.bf16.msra.mxu0 %v720_v40 }
  0x2c   :  { %457 = vmatmul.mubr.bf16.gmra.mxu1 %v557_v45  ;;  %672 = vmatprep.subr.bf16.mxu0 %v723_v46 }
  0x2f   :  { %673 = vmatpush3.bf16.msra.mxu0 %v723_v46 }
  0x32   :  { %675 = vmatmul.mubr.msk.bf16.vlgmr.msra.gmra.mxu0 %vm361_vm0, %v725_v47 }
  0xe2   :  { %v620_v48 = vpop.f32.mrf.mxu0 }
  0xe4   :  { %v621_v49 = vpop.f32.mrf.mxu0  ;;  %v648_v50 = vpop.f32.mrf.mxu1 }
  0xe5   :  { %v622_v57 = vadd.f32 %v621_v49, %v620_v48 }
  0xe6   :  { %v623_v51 = vpop.f32.mrf.mxu0  ;;  %v649_v52 = vpop.f32.mrf.mxu1 }
  0xe7   :  { %v403_v1 = vadd.f32 %v622_v57, %v549_v59  ;;  %v650_v2 = vadd.f32 %v649_v52, %v648_v50 }
  0xe8   :  { %v624_v53 = vpop.f32.mrf.mxu0  ;;  %v651_v54 = vpop.f32.mrf.mxu1 }
  0xe9   :  { %v625_v3 = vadd.f32 %v624_v53, %v623_v51  ;;  %v451_v13 = vadd.f32 %v650_v2, %v403_v1 }
  0xea   :  { %v626_v55 = vpop.f32.mrf.mxu0  ;;  %v652_v56 = vpop.f32.mrf.mxu1 }
  0xeb   :  { %v406_v10 = vadd.f32 %v625_v3, %v549_v59  ;;  %v653_v11 = vadd.f32 %v652_v56, %v651_v54 }
  0xec   :  { %v627_v58 = vpop.f32.mrf.mxu0  ;;  %v654_v61 = vpop.f32.mrf.mxu1 }
  0xed   :  { %v628_v60 = vadd.f32 %v627_v58, %v626_v55  ;;  %v454_v19 = vadd.f32 %v653_v11, %v406_v10 }
  0xee   :  { %v629_v62 = vpop.f32.mrf.mxu0  ;;  %v655_v0 = vpop.f32.mrf.mxu1 }
  0xef   :  { %v411_v63 = vadd.f32 %v628_v60, %v549_v59  ;;  %v656_v4 = vadd.f32 %v655_v0, %v654_v61 }
  0xf0   :  { %v630_v5 = vpop.f32.mrf.mxu0  ;;  %v657_v6 = vpop.f32.mrf.mxu1 }
  0xf1   :  { %v459_v7 = vadd.f32 %v656_v4, %v411_v63 }
  0xf2   :  { %v676_v8 = vpop.f32.mrf.mxu0  ;;  %v658_v9 = vpop.f32.mrf.mxu1 }
  0xf3   :  { %v507_v12 = vadd.f32 %v676_v8, %v459_v7 }
  0xf4   :  { %v498_v14 = vpop.f32.mrf.mxu0 }
  0xf5   :  { %v518_v15 = vmul.f32 0.70710677, %v507_v12  ;;  %v499_v16 = vadd.f32 %v498_v14, %v451_v13  ;;  %v514_v24 = vmul.f32 0.5, %v507_v12 }
  0xf6   :  { %v677_v17 = vpop.f32.mrf.mxu0 }
  0xf7   :  { %726 = verf.f32 %v518_v15  ;;  %v516_v18 = vmul.f32 0.70710677, %v499_v16  ;;  %v512_v28 = vmul.f32 0.5, %v499_v16 }
  0xf8   :  { %v501_v20 = vpop.f32.mrf.mxu0 }
  0xf9   :  { %728 = verf.f32 %v516_v18  ;;  %v502_v21 = vadd.f32 %v501_v20, %v454_v19 }
  0xfb   :  { %v517_v22 = vmul.f32 0.70710677, %v502_v21  ;;  %v513_v34 = vmul.f32 0.5, %v502_v21 }
  0xfd   :  { %730 = verf.f32 %v517_v22 }
 0x104   :  { %v727_v23 = vpop.eup %726 }
 0x105   :  { %v524_v25 = vadd.f32 1.0, %v727_v23 }
 0x106   :  { %v729_v26 = vpop.eup %728 }
 0x107   :  { %v527_v27 = vmul.f32 %v524_v25, %v514_v24  ;;  %v522_v29 = vadd.f32 1.0, %v729_v26 }
 0x109   :  { %v603_v30 = vpack.c.bf16 %v527_v27, %v527_v27  ;;  %v525_v31 = vmul.f32 %v522_v29, %v512_v28 }
 0x10a   :  { %v731_v32 = vpop.eup %730 }
 0x10b   :  { %544 = vst.msk [vmem:[%s899_s3 + $0x8] sm:$0xf] %vm541_vm1, %v603_v30  ;;  %v601_v33 = vpack.c.bf16 %v525_v31, %v525_v31  ;;  %v523_v35 = vadd.f32 1.0, %v731_v32 }
 0x10d   :  { %542 = vst.msk [vmem:[%s899_s3] sm:$0xf] %vm541_vm1, %v601_v33  ;;  %v526_v36 = vmul.f32 %v523_v35, %v513_v34 }
 0x10f   :  { %v602_v37 = vpack.c.bf16 %v526_v36, %v526_v36 }
 0x111   :  { %543 = vst.msk [vmem:[%s899_s3 + $0x4] sm:$0xf] %vm541_vm1, %v602_v37 }

// kernel: vsm_oiqa_forward.30
= control target key start
LH: loop header
LB: loop body
LE: loop exit
PB: predicated region body
PF: predicated region fallthrough
CT: control target
= control target key end

     0   :  { %vm364_vm0 = vcmask 523264   ;;  %vm553_vm1 = vcmask 519168   ;;  %s923_s1 = inlined_call_operand.vmem [shape: bf16[576,64], index: 1, kind: input, shape index: {}]   ;;  %s924_s0 = inlined_call_operand.vmem [shape: bf16[24,576], index: 0, kind: input, shape index: {}]   ;;  %s925_s2 = inlined_call_operand.vmem [shape: f32[1,64], index: 2, kind: input, shape index: {}]   ;;  %s926_s3 = inlined_call_operand.vmem [shape: bf16[24,64], index: 3, kind: input, shape index: {}]   ;;  %s927_s4 = inlined_call_operand.vmem [shape: bf16[24,64], index: 4, kind: output, shape index: {}]  }
   0x1   :  { %v694_v0 = vld [vmem:[%s923_s1 + $0x78] sm:$0xff]   ;;  %v698_v4 = vld [vmem:[%s923_s1 + $0x70] sm:$0xff]   ;;  %v702_v8 = vld [vmem:[%s923_s1 + $0x68] sm:$0xff]  }
   0x2   :  { %v695_v1 = vld [vmem:[%s923_s1 + $0x38] sm:$0xff]   ;;  %620 = vmatprep.subr.bf16.mxu0 %v694_v0  ;;  %v699_v5 = vld [vmem:[%s923_s1 + $0x30] sm:$0xff]   ;;  %v703_v9 = vld [vmem:[%s923_s1 + $0x28] sm:$0xff]  }
   0x3   :  { %v696_v2 = vld [vmem:[%s923_s1 + $0xf8] sm:$0xff]   ;;  %621 = vmatpush3.bf16.msra.mxu0 %v695_v1  ;;  %v700_v6 = vld [vmem:[%s923_s1 + $0xf0] sm:$0xff]   ;;  %v704_v10 = vld [vmem:[%s923_s1 + $0xe8] sm:$0xff]  }
   0x4   :  { %v697_v3 = vld [vmem:[%s923_s1 + $0xb8] sm:$0xff]   ;;  %648 = vmatprep.subr.bf16.mxu1 %v696_v2  ;;  %622 = vmatprep.subr.bf16.mxu0 %v698_v4  ;;  %v701_v7 = vld [vmem:[%s923_s1 + $0xb0] sm:$0xff]   ;;  %v705_v11 = vld [vmem:[%s923_s1 + $0xa8] sm:$0xff]  }
   0x5   :  { %649 = vmatpush3.bf16.msra.mxu1 %v697_v3  ;;  %v706_v12 = vld [vmem:[%s923_s1 + $0x60] sm:$0xff]   ;;  %v710_v16 = vld [vmem:[%s923_s1 + $0x58] sm:$0xff]   ;;  %v714_v20 = vld [vmem:[%s923_s1 + $0x50] sm:$0xff]  }
   0x6   :  { %650 = vmatprep.subr.bf16.mxu1 %v700_v6  ;;  %v707_v13 = vld [vmem:[%s923_s1 + $0x20] sm:$0xff]   ;;  %v711_v17 = vld [vmem:[%s923_s1 + $0x18] sm:$0xff]   ;;  %v715_v21 = vld [vmem:[%s923_s1 + $0x10] sm:$0xff]  }
   0x7   :  { %623 = vmatpush3.bf16.msra.mxu0 %v699_v5  ;;  %v708_v14 = vld [vmem:[%s923_s1 + $0xe0] sm:$0xff]   ;;  %v712_v18 = vld [vmem:[%s923_s1 + $0xd8] sm:$0xff]   ;;  %v716_v22 = vld [vmem:[%s923_s1 + $0xd0] sm:$0xff]  }
   0x8   :  { %624 = vmatprep.subr.bf16.mxu0 %v702_v8  ;;  %v709_v15 = vld [vmem:[%s923_s1 + $0xa0] sm:$0xff]   ;;  %v713_v19 = vld [vmem:[%s923_s1 + $0x98] sm:$0xff]   ;;  %v717_v23 = vld [vmem:[%s923_s1 + $0x90] sm:$0xff]  }
   0x9   :  { %651 = vmatpush3.bf16.msra.mxu1 %v701_v7  ;;  %v718_v24 = vld [vmem:[%s923_s1 + $0x48] sm:$0xff]   ;;  %v722_v28 = vld [vmem:[%s923_s1 + $0x40] sm:$0xff]   ;;  %v729_v34 = vld [vmem:[%s923_s1 + $0x118] sm:$0xff]  }
   0xa   :  { %652 = vmatprep.subr.bf16.mxu1 %v704_v10  ;;  %v719_v25 = vld [vmem:[%s923_s1 + $0x8] sm:$0xff]   ;;  %v723_v29 = vld [vmem:[%s923_s1] sm:$0xff]   ;;  %v733_v37 = vld [vmem:[%s923_s1 + $0x110] sm:$0xff]  }
   0xb   :  { %625 = vmatpush3.bf16.msra.mxu0 %v703_v9  ;;  %v720_v26 = vld [vmem:[%s923_s1 + $0xc8] sm:$0xff]   ;;  %v724_v30 = vld [vmem:[%s923_s1 + $0xc0] sm:$0xff]   ;;  %v25_v41 = vld [vmem:[%s924_s0 + $0x30] sm:$0xff] }
   0xc   :  { %626 = vmatprep.subr.bf16.mxu0 %v706_v12  ;;  %v721_v27 = vld [vmem:[%s923_s1 + $0x88] sm:$0xff]   ;;  %v725_v31 = vld [vmem:[%s924_s0] ss:$20 sps:$4 sm:$0xff]   ;;  %v727_v32 = vld [vmem:[%s924_s0 + $0x4] ss:$20 sps:$4 sm:$0xff]   ;;  %v570_v43 = vcombine.high %v25_v41, %v25_v41  ;;  %v569_v45 = vcombine.low %v25_v41, %v25_v41 }
   0xd   :  { %653 = vmatpush3.bf16.msra.mxu1 %v705_v11  ;;  %v728_v33 = vld [vmem:[%s923_s1 + $0x80] sm:$0xff]   ;;  %403 = vmatprep.mubr.bf16.mxu0 %v727_v32  ;;  %v730_v35 = vld [vmem:[%s924_s0 + $0x8] ss:$20 sps:$4 sm:$0xff]   ;;  %v741_v47 = vld [vmem:[%s924_s0 + $0x38] ss:$0 sps:$4 sm:$0xff]  }
   0xe   :  { %654 = vmatprep.subr.bf16.mxu1 %v708_v14  ;;  %v732_v36 = vld [vmem:[%s924_s0 + $0xc] ss:$20 sps:$4 sm:$0xff]   ;;  %v740_v44 = vld [vmem:[%s924_s0 + $0x10] ss:$20 sps:$4 sm:$0xff]  }
   0xf   :  { %627 = vmatpush3.bf16.msra.mxu0 %v707_v13  ;;  %v24_v38 = vld [vmem:[%s924_s0 + $0x28] sm:$0xff]  ;;  %451 = vmatprep.mubr.bf16.mxu1 %v732_v36  ;;  %v739_v46 = vld [vmem:[%s923_s1 + $0x100] sm:$0xff]  }
  0x10   :  { %628 = vmatprep.subr.bf16.mxu0 %v710_v16  ;;  %v568_v39 = vcombine.high %v24_v38, %v24_v38  ;;  %v736_v40 = vld [vmem:[%s923_s1 + $0x108] sm:$0xff]   ;;  %v567_v42 = vcombine.low %v24_v38, %v24_v38  ;;  %v561_v59 = vld [vmem:[%s925_s2] ss:$0 sm:$0xff] }
  0x11   :  { %655 = vmatpush3.bf16.msra.mxu1 %v709_v15 }
  0x12   :  { %656 = vmatprep.subr.bf16.mxu1 %v712_v18 }
  0x13   :  { %629 = vmatpush3.bf16.msra.mxu0 %v711_v17 }
  0x14   :  { %630 = vmatprep.subr.bf16.mxu0 %v714_v20 }
  0x15   :  { %657 = vmatpush3.bf16.msra.mxu1 %v713_v19 }
  0x16   :  { %658 = vmatprep.subr.bf16.mxu1 %v716_v22 }
  0x17   :  { %631 = vmatpush3.bf16.msra.mxu0 %v715_v21 }
  0x18   :  { %632 = vmatprep.subr.bf16.mxu0 %v718_v24 }
  0x19   :  { %659 = vmatpush3.bf16.msra.mxu1 %v717_v23  ;;  %v533_v23 = vld [vmem:[%s926_s3 + $0x8] sm:$0xf] }
  0x1a   :  { %660 = vmatprep.subr.bf16.mxu1 %v720_v26 }
  0x1b   :  { %633 = vmatpush3.bf16.msra.mxu0 %v719_v25  ;;  %v617_v25 = vld [vmem:[%s926_s3] sm:$0xff]  }
  0x1c   :  { %634 = vmatprep.subr.bf16.mxu0 %v722_v28  ;;  %v536_v28 = vunpack.c.l.bf16 %v533_v23 }
  0x1d   :  { %661 = vmatpush3.bf16.msra.mxu1 %v721_v27 }
  0x1e   :  { %662 = vmatprep.subr.bf16.mxu1 %v724_v30 }
  0x1f   :  { %635 = vmatpush3.bf16.msra.mxu0 %v723_v29 }
  0x20   :  { %682 = vmatprep.subr.bf16.mxu0 %v729_v34 }
  0x21   :  { %663 = vmatpush3.bf16.msra.mxu1 %v728_v33  ;;  %v618_v33 = vunpack.c.l.bf16 %v617_v25 }
  0x22   :  { %404 = vmatmul.mubr.bf16.vlgmr.msra.gmra.mxu0 %v725_v31 }
  0x23   :  { %683 = vmatpush3.bf16.msra.mxu0 %v729_v34  ;;  %411 = vmatprep.mubr.bf16.mxu0 %v568_v39 }
  0x24   :  { %452 = vmatmul.mubr.bf16.vlgmr.msra.gmra.mxu1 %v730_v35  ;;  %684 = vmatprep.subr.bf16.mxu0 %v733_v37 }
  0x25   :  { %459 = vmatprep.mubr.bf16.mxu1 %v570_v43 }
  0x27   :  { %685 = vmatpush3.bf16.msra.mxu0 %v733_v37  ;;  %v619_v37 = vunpack.c.h.bf16 %v617_v25 }
  0x28   :  { %686 = vmatprep.subr.bf16.mxu0 %v736_v40 }
  0x2a   :  { %412 = vmatmul.mubr.bf16.gmra.mxu0 %v567_v42 }
  0x2b   :  { %690 = vmatprep.mubr.msk.bf16.mxu0 %vm364_vm0, %v740_v44  ;;  %687 = vmatpush3.bf16.msra.mxu0 %v736_v40 }
  0x2c   :  { %460 = vmatmul.mubr.bf16.gmra.mxu1 %v569_v45  ;;  %688 = vmatprep.subr.bf16.mxu0 %v739_v46 }
  0x2f   :  { %689 = vmatpush3.bf16.msra.mxu0 %v739_v46 }
  0x32   :  { %691 = vmatmul.mubr.msk.bf16.vlgmr.msra.gmra.mxu0 %vm364_vm0, %v741_v47 }
  0xe2   :  { %v636_v48 = vpop.f32.mrf.mxu0 }
  0xe4   :  { %v637_v49 = vpop.f32.mrf.mxu0  ;;  %v664_v50 = vpop.f32.mrf.mxu1 }
  0xe5   :  { %v638_v57 = vadd.f32 %v637_v49, %v636_v48 }
  0xe6   :  { %v639_v51 = vpop.f32.mrf.mxu0  ;;  %v665_v52 = vpop.f32.mrf.mxu1 }
  0xe7   :  { %v406_v1 = vadd.f32 %v638_v57, %v561_v59  ;;  %v666_v2 = vadd.f32 %v665_v52, %v664_v50 }
  0xe8   :  { %v640_v53 = vpop.f32.mrf.mxu0  ;;  %v667_v54 = vpop.f32.mrf.mxu1 }
  0xe9   :  { %v641_v3 = vadd.f32 %v640_v53, %v639_v51  ;;  %v454_v13 = vadd.f32 %v666_v2, %v406_v1 }
  0xea   :  { %v642_v55 = vpop.f32.mrf.mxu0  ;;  %v668_v56 = vpop.f32.mrf.mxu1 }
  0xeb   :  { %v409_v10 = vadd.f32 %v641_v3, %v561_v59  ;;  %v669_v11 = vadd.f32 %v668_v56, %v667_v54 }
  0xec   :  { %v643_v58 = vpop.f32.mrf.mxu0  ;;  %v670_v61 = vpop.f32.mrf.mxu1 }
  0xed   :  { %v644_v60 = vadd.f32 %v643_v58, %v642_v55  ;;  %v457_v19 = vadd.f32 %v669_v11, %v409_v10 }
  0xee   :  { %v645_v62 = vpop.f32.mrf.mxu0  ;;  %v671_v0 = vpop.f32.mrf.mxu1 }
  0xef   :  { %v414_v63 = vadd.f32 %v644_v60, %v561_v59  ;;  %v672_v4 = vadd.f32 %v671_v0, %v670_v61 }
  0xf0   :  { %v646_v5 = vpop.f32.mrf.mxu0  ;;  %v673_v6 = vpop.f32.mrf.mxu1 }
  0xf1   :  { %v462_v7 = vadd.f32 %v672_v4, %v414_v63 }
  0xf2   :  { %v692_v8 = vpop.f32.mrf.mxu0  ;;  %v674_v9 = vpop.f32.mrf.mxu1 }
  0xf3   :  { %v510_v12 = vadd.f32 %v692_v8, %v462_v7 }
  0xf4   :  { %v501_v14 = vpop.f32.mrf.mxu0 }
  0xf5   :  { %v521_v15 = vmul.f32 0.70710677, %v510_v12  ;;  %v502_v16 = vadd.f32 %v501_v14, %v454_v13  ;;  %v517_v26 = vmul.f32 0.5, %v510_v12 }
  0xf6   :  { %v693_v17 = vpop.f32.mrf.mxu0 }
  0xf7   :  { %742 = verf.f32 %v521_v15  ;;  %v519_v18 = vmul.f32 0.70710677, %v502_v16  ;;  %v515_v31 = vmul.f32 0.5, %v502_v16 }
  0xf8   :  { %v504_v20 = vpop.f32.mrf.mxu0 }
  0xf9   :  { %744 = verf.f32 %v519_v18  ;;  %v505_v21 = vadd.f32 %v504_v20, %v457_v19 }
  0xfb   :  { %v520_v22 = vmul.f32 0.70710677, %v505_v21  ;;  %v516_v40 = vmul.f32 0.5, %v505_v21 }
  0xfd   :  { %746 = verf.f32 %v520_v22 }
 0x104   :  { %v743_v24 = vpop.eup %742 }
 0x105   :  { %v527_v27 = vadd.f32 1.0, %v743_v24 }
 0x106   :  { %v745_v29 = vpop.eup %744 }
 0x107   :  { %v530_v30 = vmul.f32 %v527_v27, %v517_v26  ;;  %v525_v32 = vadd.f32 1.0, %v745_v29 }
 0x109   :  { %v539_v34 = vadd.f32 %v536_v28, %v530_v30  ;;  %v528_v35 = vmul.f32 %v525_v32, %v515_v31 }
 0x10a   :  { %v747_v36 = vpop.eup %746 }
 0x10b   :  { %v615_v38 = vpack.c.bf16 %v539_v34, %v539_v34  ;;  %v537_v39 = vadd.f32 %v618_v33, %v528_v35  ;;  %v526_v41 = vadd.f32 1.0, %v747_v36 }
 0x10d   :  { %556 = vst.msk [vmem:[%s927_s4 + $0x8] sm:$0xf] %vm553_vm1, %v615_v38  ;;  %v613_v42 = vpack.c.bf16 %v537_v39, %v537_v39  ;;  %v529_v43 = vmul.f32 %v526_v41, %v516_v40 }
 0x10f   :  { %554 = vst.msk [vmem:[%s927_s4] sm:$0xf] %vm553_vm1, %v613_v42  ;;  %v538_v44 = vadd.f32 %v619_v37, %v529_v43 }
 0x111   :  { %v614_v45 = vpack.c.bf16 %v538_v44, %v538_v44 }
 0x113   :  { %555 = vst.msk [vmem:[%s927_s4 + $0x4] sm:$0xf] %vm553_vm1, %v614_v45 }

// kernel: vsm_oiqa_forward.31
= control target key start
LH: loop header
LB: loop body
LE: loop exit
PB: predicated region body
PF: predicated region fallthrough
CT: control target
= control target key end

     0   :  { %vm361_vm0 = vcmask 523264   ;;  %s875_s1 = inlined_call_operand.vmem [shape: bf16[576,128], index: 1, kind: input, shape index: {}]   ;;  %s876_s0 = inlined_call_operand.vmem [shape: bf16[24,576], index: 0, kind: input, shape index: {}]   ;;  %s877_s2 = inlined_call_operand.vmem [shape: f32[1,128], index: 2, kind: input, shape index: {}]   ;;  %s878_s3 = inlined_call_operand.vmem [shape: bf16[24,128], index: 3, kind: output, shape index: {}]  }
   0x1   :  { %v666_v0 = vld [vmem:[%s875_s1 + $0x78] sm:$0xff]   ;;  %v670_v4 = vld [vmem:[%s875_s1 + $0x70] sm:$0xff]   ;;  %v674_v8 = vld [vmem:[%s875_s1 + $0x68] sm:$0xff]  }
   0x2   :  { %v667_v1 = vld [vmem:[%s875_s1 + $0x38] sm:$0xff]   ;;  %592 = vmatprep.subr.bf16.mxu0 %v666_v0  ;;  %v671_v5 = vld [vmem:[%s875_s1 + $0x30] sm:$0xff]   ;;  %v675_v9 = vld [vmem:[%s875_s1 + $0x28] sm:$0xff]  }
   0x3   :  { %v668_v2 = vld [vmem:[%s875_s1 + $0xf8] sm:$0xff]   ;;  %593 = vmatpush3.bf16.msra.mxu0 %v667_v1  ;;  %v672_v6 = vld [vmem:[%s875_s1 + $0xf0] sm:$0xff]   ;;  %v676_v10 = vld [vmem:[%s875_s1 + $0xe8] sm:$0xff]  }
   0x4   :  { %v669_v3 = vld [vmem:[%s875_s1 + $0xb8] sm:$0xff]   ;;  %620 = vmatprep.subr.bf16.mxu1 %v668_v2  ;;  %594 = vmatprep.subr.bf16.mxu0 %v670_v4  ;;  %v673_v7 = vld [vmem:[%s875_s1 + $0xb0] sm:$0xff]   ;;  %v677_v11 = vld [vmem:[%s875_s1 + $0xa8] sm:$0xff]  }
   0x5   :  { %621 = vmatpush3.bf16.msra.mxu1 %v669_v3  ;;  %v678_v12 = vld [vmem:[%s875_s1 + $0x60] sm:$0xff]   ;;  %v682_v16 = vld [vmem:[%s875_s1 + $0x58] sm:$0xff]   ;;  %v686_v20 = vld [vmem:[%s875_s1 + $0x50] sm:$0xff]  }
   0x6   :  { %622 = vmatprep.subr.bf16.mxu1 %v672_v6  ;;  %v679_v13 = vld [vmem:[%s875_s1 + $0x20] sm:$0xff]   ;;  %v683_v17 = vld [vmem:[%s875_s1 + $0x18] sm:$0xff]   ;;  %v687_v21 = vld [vmem:[%s875_s1 + $0x10] sm:$0xff]  }
   0x7   :  { %595 = vmatpush3.bf16.msra.mxu0 %v671_v5  ;;  %v680_v14 = vld [vmem:[%s875_s1 + $0xe0] sm:$0xff]   ;;  %v684_v18 = vld [vmem:[%s875_s1 + $0xd8] sm:$0xff]   ;;  %v688_v22 = vld [vmem:[%s875_s1 + $0xd0] sm:$0xff]  }
   0x8   :  { %596 = vmatprep.subr.bf16.mxu0 %v674_v8  ;;  %v681_v15 = vld [vmem:[%s875_s1 + $0xa0] sm:$0xff]   ;;  %v685_v19 = vld [vmem:[%s875_s1 + $0x98] sm:$0xff]   ;;  %v689_v23 = vld [vmem:[%s875_s1 + $0x90] sm:$0xff]  }
   0x9   :  { %623 = vmatpush3.bf16.msra.mxu1 %v673_v7  ;;  %v690_v24 = vld [vmem:[%s875_s1 + $0x48] sm:$0xff]   ;;  %v694_v28 = vld [vmem:[%s875_s1 + $0x40] sm:$0xff]   ;;  %v701_v34 = vld [vmem:[%s875_s1 + $0x118] sm:$0xff]  }
   0xa   :  { %624 = vmatprep.subr.bf16.mxu1 %v676_v10  ;;  %v691_v25 = vld [vmem:[%s875_s1 + $0x8] sm:$0xff]   ;;  %v695_v29 = vld [vmem:[%s875_s1] sm:$0xff]   ;;  %v705_v37 = vld [vmem:[%s875_s1 + $0x110] sm:$0xff]  }
   0xb   :  { %597 = vmatpush3.bf16.msra.mxu0 %v675_v9  ;;  %v692_v26 = vld [vmem:[%s875_s1 + $0xc8] sm:$0xff]   ;;  %v696_v30 = vld [vmem:[%s875_s1 + $0xc0] sm:$0xff]   ;;  %v22_v41 = vld [vmem:[%s876_s0 + $0x30] sm:$0xff] }
   0xc   :  { %598 = vmatprep.subr.bf16.mxu0 %v678_v12  ;;  %v693_v27 = vld [vmem:[%s875_s1 + $0x88] sm:$0xff]   ;;  %v697_v31 = vld [vmem:[%s876_s0] ss:$20 sps:$4 sm:$0xff]   ;;  %v699_v32 = vld [vmem:[%s876_s0 + $0x4] ss:$20 sps:$4 sm:$0xff]   ;;  %v541_v43 = vcombine.high %v22_v41, %v22_v41  ;;  %v540_v45 = vcombine.low %v22_v41, %v22_v41 }
   0xd   :  { %625 = vmatpush3.bf16.msra.mxu1 %v677_v11  ;;  %v700_v33 = vld [vmem:[%s875_s1 + $0x80] sm:$0xff]   ;;  %400 = vmatprep.mubr.bf16.mxu0 %v699_v32  ;;  %v702_v35 = vld [vmem:[%s876_s0 + $0x8] ss:$20 sps:$4 sm:$0xff]   ;;  %v713_v47 = vld [vmem:[%s876_s0 + $0x38] ss:$0 sps:$4 sm:$0xff]  }
   0xe   :  { %626 = vmatprep.subr.bf16.mxu1 %v680_v14  ;;  %v704_v36 = vld [vmem:[%s876_s0 + $0xc] ss:$20 sps:$4 sm:$0xff]   ;;  %v712_v44 = vld [vmem:[%s876_s0 + $0x10] ss:$20 sps:$4 sm:$0xff]  }
   0xf   :  { %599 = vmatpush3.bf16.msra.mxu0 %v679_v13  ;;  %v21_v38 = vld [vmem:[%s876_s0 + $0x28] sm:$0xff]  ;;  %448 = vmatprep.mubr.bf16.mxu1 %v704_v36  ;;  %v711_v46 = vld [vmem:[%s875_s1 + $0x100] sm:$0xff]  }
  0x10   :  { %600 = vmatprep.subr.bf16.mxu0 %v682_v16  ;;  %v539_v39 = vcombine.high %v21_v38, %v21_v38  ;;  %v708_v40 = vld [vmem:[%s875_s1 + $0x108] sm:$0xff]   ;;  %v538_v42 = vcombine.low %v21_v38, %v21_v38  ;;  %v532_v60 = vld [vmem:[%s877_s2] ss:$0 sm:$0xff] }
  0x11   :  { %627 = vmatpush3.bf16.msra.mxu1 %v681_v15 }
  0x12   :  { %628 = vmatprep.subr.bf16.mxu1 %v684_v18 }
  0x13   :  { %601 = vmatpush3.bf16.msra.mxu0 %v683_v17 }
  0x14   :  { %602 = vmatprep.subr.bf16.mxu0 %v686_v20 }
  0x15   :  { %629 = vmatpush3.bf16.msra.mxu1 %v685_v19 }
  0x16   :  { %630 = vmatprep.subr.bf16.mxu1 %v688_v22 }
  0x17   :  { %603 = vmatpush3.bf16.msra.mxu0 %v687_v21 }
  0x18   :  { %604 = vmatprep.subr.bf16.mxu0 %v690_v24 }
  0x19   :  { %631 = vmatpush3.bf16.msra.mxu1 %v689_v23 }
  0x1a   :  { %632 = vmatprep.subr.bf16.mxu1 %v692_v26 }
  0x1b   :  { %605 = vmatpush3.bf16.msra.mxu0 %v691_v25 }
  0x1c   :  { %606 = vmatprep.subr.bf16.mxu0 %v694_v28 }
  0x1d   :  { %633 = vmatpush3.bf16.msra.mxu1 %v693_v27 }
  0x1e   :  { %634 = vmatprep.subr.bf16.mxu1 %v696_v30 }
  0x1f   :  { %607 = vmatpush3.bf16.msra.mxu0 %v695_v29 }
  0x20   :  { %654 = vmatprep.subr.bf16.mxu0 %v701_v34 }
  0x21   :  { %635 = vmatpush3.bf16.msra.mxu1 %v700_v33 }
  0x22   :  { %401 = vmatmul.mubr.bf16.vlgmr.msra.gmra.mxu0 %v697_v31 }
  0x23   :  { %655 = vmatpush3.bf16.msra.mxu0 %v701_v34  ;;  %408 = vmatprep.mubr.bf16.mxu0 %v539_v39 }
  0x24   :  { %449 = vmatmul.mubr.bf16.vlgmr.msra.gmra.mxu1 %v702_v35  ;;  %656 = vmatprep.subr.bf16.mxu0 %v705_v37 }
  0x25   :  { %456 = vmatprep.mubr.bf16.mxu1 %v541_v43 }
  0x27   :  { %657 = vmatpush3.bf16.msra.mxu0 %v705_v37 }
  0x28   :  { %658 = vmatprep.subr.bf16.mxu0 %v708_v40 }
  0x2a   :  { %409 = vmatmul.mubr.bf16.gmra.mxu0 %v538_v42 }
  0x2b   :  { %662 = vmatprep.mubr.msk.bf16.mxu0 %vm361_vm0, %v712_v44  ;;  %659 = vmatpush3.bf16.msra.mxu0 %v708_v40 }
  0x2c   :  { %457 = vmatmul.mubr.bf16.gmra.mxu1 %v540_v45  ;;  %660 = vmatprep.subr.bf16.mxu0 %v711_v46 }
  0x2f   :  { %661 = vmatpush3.bf16.msra.mxu0 %v711_v46 }
  0x32   :  { %663 = vmatmul.mubr.msk.bf16.vlgmr.msra.gmra.mxu0 %vm361_vm0, %v713_v47 }
  0xe2   :  { %v608_v48 = vpop.f32.mrf.mxu0 }
  0xe4   :  { %v609_v49 = vpop.f32.mrf.mxu0  ;;  %v636_v50 = vpop.f32.mrf.mxu1 }
  0xe5   :  { %v610_v62 = vadd.f32 %v609_v49, %v608_v48 }
  0xe6   :  { %v611_v51 = vpop.f32.mrf.mxu0  ;;  %v637_v52 = vpop.f32.mrf.mxu1 }
  0xe7   :  { %v403_v6 = vadd.f32 %v610_v62, %v532_v60  ;;  %v638_v9 = vadd.f32 %v637_v52, %v636_v50 }
  0xe8   :  { %v612_v53 = vpop.f32.mrf.mxu0  ;;  %v639_v54 = vpop.f32.mrf.mxu1 }
  0xe9   :  { %v613_v1 = vadd.f32 %v612_v53, %v611_v51  ;;  %v451_v16 = vadd.f32 %v638_v9, %v403_v6 }
  0xea   :  { %v614_v55 = vpop.f32.mrf.mxu0  ;;  %v640_v56 = vpop.f32.mrf.mxu1 }
  0xeb   :  { %v406_v10 = vadd.f32 %v613_v1, %v532_v60  ;;  %v641_v11 = vadd.f32 %v640_v56, %v639_v54 }
  0xec   :  { %v615_v57 = vpop.f32.mrf.mxu0  ;;  %v642_v59 = vpop.f32.mrf.mxu1 }
  0xed   :  { %v616_v58 = vadd.f32 %v615_v57, %v614_v55  ;;  %v454_v17 = vadd.f32 %v641_v11, %v406_v10 }
  0xee   :  { %v617_v61 = vpop.f32.mrf.mxu0  ;;  %v643_v0 = vpop.f32.mrf.mxu1 }
  0xef   :  { %v411_v63 = vadd.f32 %v616_v58, %v532_v60  ;;  %v644_v2 = vadd.f32 %v643_v0, %v642_v59 }
  0xf0   :  { %v618_v3 = vpop.f32.mrf.mxu0  ;;  %v645_v4 = vpop.f32.mrf.mxu1 }
  0xf1   :  { %v459_v5 = vadd.f32 %v644_v2, %v411_v63 }
  0xf2   :  { %v664_v7 = vpop.f32.mrf.mxu0  ;;  %v646_v8 = vpop.f32.mrf.mxu1 }
  0xf3   :  { %v507_v12 = vadd.f32 %v664_v7, %v459_v5 }
  0xf4   :  { %v498_v13 = vpop.f32.mrf.mxu0 }
  0xf5   :  { %v586_v14 = vpack.c.bf16 %v507_v12, %v507_v12  ;;  %v499_v19 = vadd.f32 %v498_v13, %v451_v16 }
  0xf6   :  { %v665_v15 = vpop.f32.mrf.mxu0 }
  0xf7   :  { %527 = vst [vmem:[%s878_s3 + $0x8] sm:$0xf] %v586_v14 }
  0xf8   :  { %v501_v18 = vpop.f32.mrf.mxu0 }
  0xf9   :  { %v502_v20 = vadd.f32 %v501_v18, %v454_v17 }
  0xfb   :  { %v590_v21 = vpack.c.bf16 %v502_v20, %v499_v19 }
  0xfd   :  { %591 = vst [vmem:[%s878_s3] sm:$0xff] %v590_v21  }

// kernel: vsm_oiqa_forward.17
= control target key start
LH: loop header
LB: loop body
LE: loop exit
PB: predicated region body
PF: predicated region fallthrough
CT: control target
= control target key end

     0   :  { %s890_s12 = smov 0   ;;  %s978_s0 = inlined_call_operand.vmem [shape: bf16[384,48], index: 0, kind: input, shape index: {}]   ;;  %s979_s1 = inlined_call_operand.vmem [shape: bf16[48,128], index: 1, kind: input, shape index: {}]   ;;  %s980_s2 = inlined_call_operand.vmem [shape: f32[1,128], index: 2, kind: input, shape index: {}]   ;;  %s981_s3 = inlined_call_operand.vmem [shape: bf16[384,128], index: 3, kind: output, shape index: {}]  }
   0x1 LB: > { %s632_s13 = sadd.s32 4294967295, %s868_s12   ;;  %p636_p0 = scmp.ge.s32.totalorder %s868_s12, 1  ;;  %s868_s12 = sphi %s890_s12, %s13_s12  }
   0x2   : > { %p138_p1 = scmp.lt.s32.totalorder %s868_s12, 3 }
   0x4   : > { %p139_p2 = pnand %p636_p0, %p138_p1 }
   0x5   : > { %s162_s16 = smul.u32 (!%p139_p2), 24, %s632_s13 }
   0x6   : > { %142 = sbr.rel (%p139_p2) target bundleno = 244 (0xf4), region = 32 }
   0x7   : > { %p163_p3 = scmp.lt.s32.totalorder (!%p139_p2), %s162_s16, 47 }
   0xb   : > { %v847_v0 = vld [vmem:[%s979_s1 + $0x10] sm:$0xff]   ;;  %v848_v1 = vld [vmem:[%s979_s1 + $0x8] sm:$0xff]   ;;  %v849_v2 = vld [vmem:[%s979_s1] sm:$0xff]   ;;  %s983_s16 = smov (!%p163_p3, %s162_s16), 47  ;;  %vm290_vm0 = vcmask 392192  }
   0xc   : > { %803 = vmatprep.subr.bf16.mxu0 %v847_v0  ;;  %833 = vmatprep.subr.bf16.mxu1 %v847_v0  ;;  %s637_s21 = sshll.u32 %s983_s16, 2  ;;  %v930_v17 = vld [vmem:[%s980_s2] ss:$0 sm:$0xff] }
   0xd   : > { %804 = vmatpush3.bf16.msra.mxu0 %v847_v0  ;;  %836 = vmatpush3.bf16.msra.mxu1 %v847_v0  ;;  %s166_s24 = scalar_lea.vmem %s978_s0, %s637_s21  ;;  %s943_s29 = scalar_lea.vmem %s981_s3, %s637_s21 }
   0xe   : > { %805 = vmatprep.subr.bf16.mxu0 %v848_v1  ;;  %834 = vmatprep.subr.bf16.mxu1 %v848_v1  ;;  %v850_v3 = vld [vmem:[%s166_s24] sm:$0xff]   ;;  %v851_v4 = vld [vmem:[%s166_s24 + $0x30] sm:$0xff]   ;;  %v852_v5 = vld [vmem:[%s166_s24 + $0x8] sm:$0xff]  }
   0xf   : > { %809 = vmatprep.mubr.msk.bf16.mxu0 %vm290_vm0, %v850_v3  ;;  %v853_v6 = vld [vmem:[%s166_s24 + $0x38] sm:$0xff]   ;;  %821 = vmatprep.mubr.msk.bf16.mxu1 %vm290_vm0, %v851_v4  ;;  %v854_v7 = vld [vmem:[%s166_s24 + $0x10] sm:$0xff]   ;;  %v855_v8 = vld [vmem:[%s166_s24 + $0x40] sm:$0xff]  }
  0x10   : > { %v856_v9 = vld [vmem:[%s166_s24 + $0x18] sm:$0xff]   ;;  %v857_v10 = vld [vmem:[%s166_s24 + $0x48] sm:$0xff]   ;;  %v858_v11 = vld [vmem:[%s166_s24 + $0x20] sm:$0xff]  }
  0x11   : > { %806 = vmatpush3.bf16.msra.mxu0 %v848_v1  ;;  %837 = vmatpush3.bf16.msra.mxu1 %v848_v1  ;;  %v859_v12 = vld [vmem:[%s166_s24 + $0x50] sm:$0xff]   ;;  %v860_v13 = vld [vmem:[%s166_s24 + $0x28] sm:$0xff]   ;;  %v861_v14 = vld [vmem:[%s166_s24 + $0x58] sm:$0xff]  }
  0x12   : > { %807 = vmatprep.subr.bf16.mxu0 %v849_v2  ;;  %835 = vmatprep.subr.bf16.mxu1 %v849_v2 }
  0x15   : > { %808 = vmatpush3.bf16.msra.mxu0 %v849_v2  ;;  %838 = vmatpush3.bf16.msra.mxu1 %v849_v2 }
  0x18   : > { %810 = vmatmul.mubr.msk.bf16.vlgmr.msra.gmra.mxu0 %vm290_vm0, %v852_v5  ;;  %822 = vmatmul.mubr.msk.bf16.vlgmr.msra.gmra.mxu1 %vm290_vm0, %v853_v6 }
  0x19   : > { %813 = vmatprep.mubr.msk.bf16.mxu0 %vm290_vm0, %v854_v7  ;;  %825 = vmatprep.mubr.msk.bf16.mxu1 %vm290_vm0, %v855_v8 }
  0x20   : > { %814 = vmatmul.mubr.msk.bf16.gmra.mxu0 %vm290_vm0, %v856_v9  ;;  %826 = vmatmul.mubr.msk.bf16.gmra.mxu1 %vm290_vm0, %v857_v10 }
  0x21   : > { %817 = vmatprep.mubr.msk.bf16.mxu0 %vm290_vm0, %v858_v11  ;;  %829 = vmatprep.mubr.msk.bf16.mxu1 %vm290_vm0, %v859_v12 }
  0x28   : > { %818 = vmatmul.mubr.msk.bf16.gmra.mxu0 %vm290_vm0, %v860_v13  ;;  %830 = vmatmul.mubr.msk.bf16.gmra.mxu1 %vm290_vm0, %v861_v14 }
  0xd8   : > { %v811_v15 = vpop.f32.mrf.mxu0  ;;  %v823_v16 = vpop.f32.mrf.mxu1 }
  0xd9   : > { %v370_v22 = vadd.f32 %v811_v15, %v930_v17  ;;  %v418_v23 = vadd.f32 %v823_v16, %v930_v17 }
  0xda   : > { %v361_v18 = vpop.f32.mrf.mxu0  ;;  %v409_v19 = vpop.f32.mrf.mxu1 }
  0xdb   : > { %v362_v26 = vadd.f32 %v930_v17, %v361_v18  ;;  %v410_v27 = vadd.f32 %v930_v17, %v409_v19 }
  0xdc   : > { %v812_v20 = vpop.f32.mrf.mxu0  ;;  %v824_v21 = vpop.f32.mrf.mxu1 }
  0xdd   : > { %v373_v24 = vadd.f32 %v812_v20, %v930_v17  ;;  %v421_v25 = vadd.f32 %v824_v21, %v930_v17 }
  0xde   : > { %v364_v28 = vpop.f32.mrf.mxu0  ;;  %v412_v29 = vpop.f32.mrf.mxu1 }
  0xdf   : > { %v725_v30 = vpack.c.bf16 %v373_v24, %v370_v22  ;;  %v755_v31 = vpack.c.bf16 %v421_v25, %v418_v23  ;;  %v365_v32 = vadd.f32 %v930_v17, %v364_v28  ;;  %v413_v33 = vadd.f32 %v930_v17, %v412_v29 }
  0xe0   : > { %v815_v34 = vpop.f32.mrf.mxu0  ;;  %v827_v35 = vpop.f32.mrf.mxu1 }
  0xe1   : > { %777 = vst [vmem:[%s943_s29 + $0x8] sm:$0xff] %v725_v30   ;;  %783 = vst [vmem:[%s943_s29 + $0x38] sm:$0xff] %v755_v31   ;;  %v720_v36 = vpack.c.bf16 %v365_v32, %v362_v26  ;;  %v750_v37 = vpack.c.bf16 %v413_v33, %v410_v27  ;;  %v386_v42 = vadd.f32 %v815_v34, %v930_v17 }
  0xe2   : > { %v377_v38 = vpop.f32.mrf.mxu0  ;;  %v425_v39 = vpop.f32.mrf.mxu1  ;;  %v434_v43 = vadd.f32 %v827_v35, %v930_v17 }
  0xe3   : > { %721 = vst [vmem:[%s943_s29] sm:$0xff] %v720_v36   ;;  %782 = vst [vmem:[%s943_s29 + $0x30] sm:$0xff] %v750_v37   ;;  %v378_v46 = vadd.f32 %v930_v17, %v377_v38  ;;  %v426_v47 = vadd.f32 %v930_v17, %v425_v39 }
  0xe4   : > { %v816_v40 = vpop.f32.mrf.mxu0  ;;  %v828_v41 = vpop.f32.mrf.mxu1 }
  0xe5   : > { %v389_v44 = vadd.f32 %v816_v40, %v930_v17  ;;  %v437_v45 = vadd.f32 %v828_v41, %v930_v17 }
  0xe6   : > { %v380_v48 = vpop.f32.mrf.mxu0  ;;  %v428_v49 = vpop.f32.mrf.mxu1 }
  0xe7   : > { %v735_v50 = vpack.c.bf16 %v389_v44, %v386_v42  ;;  %v765_v51 = vpack.c.bf16 %v437_v45, %v434_v43  ;;  %v381_v52 = vadd.f32 %v930_v17, %v380_v48  ;;  %v429_v53 = vadd.f32 %v930_v17, %v428_v49 }
  0xe8   : > { %v819_v54 = vpop.f32.mrf.mxu0  ;;  %v831_v55 = vpop.f32.mrf.mxu1 }
  0xe9   : > { %779 = vst [vmem:[%s943_s29 + $0x18] sm:$0xff] %v735_v50   ;;  %785 = vst [vmem:[%s943_s29 + $0x48] sm:$0xff] %v765_v51   ;;  %v730_v56 = vpack.c.bf16 %v381_v52, %v378_v46  ;;  %v760_v57 = vpack.c.bf16 %v429_v53, %v426_v47  ;;  %v402_v62 = vadd.f32 %v819_v54, %v930_v17 }
  0xea   : > { %v393_v58 = vpop.f32.mrf.mxu0  ;;  %v441_v59 = vpop.f32.mrf.mxu1  ;;  %v450_v63 = vadd.f32 %v831_v55, %v930_v17 }
  0xeb   : > { %778 = vst [vmem:[%s943_s29 + $0x10] sm:$0xff] %v730_v56   ;;  %784 = vst [vmem:[%s943_s29 + $0x40] sm:$0xff] %v760_v57   ;;  %v394_v2 = vadd.f32 %v930_v17, %v393_v58  ;;  %v442_v3 = vadd.f32 %v930_v17, %v441_v59 }
  0xec   : > { %v820_v60 = vpop.f32.mrf.mxu0  ;;  %v832_v61 = vpop.f32.mrf.mxu1 }
  0xed   : > { %v405_v0 = vadd.f32 %v820_v60, %v930_v17  ;;  %v453_v1 = vadd.f32 %v832_v61, %v930_v17 }
  0xee   : > { %v396_v4 = vpop.f32.mrf.mxu0  ;;  %v444_v5 = vpop.f32.mrf.mxu1 }
  0xef   : > { %v745_v6 = vpack.c.bf16 %v405_v0, %v402_v62  ;;  %v775_v7 = vpack.c.bf16 %v453_v1, %v450_v63  ;;  %v397_v8 = vadd.f32 %v930_v17, %v396_v4  ;;  %v445_v9 = vadd.f32 %v930_v17, %v444_v5 }
  0xf1   : > { %781 = vst [vmem:[%s943_s29 + $0x28] sm:$0xff] %v745_v6   ;;  %787 = vst [vmem:[%s943_s29 + $0x58] sm:$0xff] %v775_v7   ;;  %v740_v10 = vpack.c.bf16 %v397_v8, %v394_v2  ;;  %v770_v11 = vpack.c.bf16 %v445_v9, %v442_v3 }
  0xf3   : > { %780 = vst [vmem:[%s943_s29 + $0x20] sm:$0xff] %v740_v10   ;;  %786 = vst [vmem:[%s943_s29 + $0x50] sm:$0xff] %v770_v11  }
  0xf4 PF: > { %s13_s12 = sadd.s32 1, %s868_s12  }
  0xf5   : > { %p10_p4 = scmp.ge.s32.totalorder %s13_s12, 4  }
  0xf7   :  { %12 = sbr.rel (!%p10_p4) target bundleno = 1 (0x1), region = 62 }

// kernel: vsm_oiqa_forward.32
= control target key start
LH: loop header
LB: loop body
LE: loop exit
PB: predicated region body
PF: predicated region fallthrough
CT: control target
= control target key end

     0   :  { %vm346_vm0 = vcmask 523264   ;;  %s679_s2 = inlined_call_operand.vmem [shape: bf16[128,128], index: 2, kind: input, shape index: {}]   ;;  %s680_s1 = inlined_call_operand.vmem [shape: bf16[24,128], index: 1, kind: input, shape index: {}]   ;;  %s681_s4 = inlined_call_operand.vmem [shape: bf16[128,64], index: 4, kind: input, shape index: {}]   ;;  %s682_s6 = inlined_call_operand.vmem [shape: bf16[64,128], index: 6, kind: input, shape index: {}]   ;;  %s683_s3 = inlined_call_operand.vmem [shape: f32[1,128], index: 3, kind: input, shape index: {}]   ;;  %s684_s0 = inlined_call_operand.vmem [shape: f32[24,128], index: 0, kind: input, shape index: {}]   ;;  %s685_s5 = inlined_call_operand.vmem [shape: f32[1,64], index: 5, kind: input, shape index: {}]   ;;  %s686_s7 = inlined_call_operand.vmem [shape: f32[1,128], index: 7, kind: input, shape index: {}]   ;;  %s687_s8 = inlined_call_operand.vmem [shape: f32[24,128], index: 8, kind: output, shape index: {}]  }
   0x1   :  { %v513_v0 = vld [vmem:[%s679_s2 + $0x38] sm:$0xff]   ;;  %v514_v1 = vld [vmem:[%s679_s2 + $0x30] sm:$0xff]   ;;  %v515_v2 = vld [vmem:[%s679_s2 + $0x28] sm:$0xff]  }
   0x2   :  { %461 = vmatprep.subr.bf16.mxu0 %v513_v0  ;;  %v516_v3 = vld [vmem:[%s679_s2 + $0x20] sm:$0xff]   ;;  %v517_v5 = vld [vmem:[%s679_s2 + $0x18] sm:$0xff]   ;;  %v518_v6 = vld [vmem:[%s679_s2 + $0x10] sm:$0xff]  }
   0x3   :  { %462 = vmatpush3.bf16.msra.mxu0 %v513_v0  ;;  %v521_v4 = vld [vmem:[%s680_s1] sm:$0xff]   ;;  %v519_v7 = vld [vmem:[%s679_s2 + $0x8] sm:$0xff]   ;;  %v523_v10 = vld [vmem:[%s681_s4 + $0x38] sm:$0xff]  }
   0x4   :  { %463 = vmatprep.subr.bf16.mxu0 %v514_v1  ;;  %477 = vmatprep.mubr.bf16.mxu0 %v521_v4  ;;  %v520_v8 = vld [vmem:[%s679_s2] sm:$0xff]   ;;  %v522_v9 = vld [vmem:[%s680_s1 + $0x8] ss:$0 sps:$4 sm:$0xff]   ;;  %v524_v11 = vld [vmem:[%s681_s4 + $0x30] sm:$0xff]  }
   0x5   :  { %481 = vmatprep.subr.bf16.mxu1 %v523_v10  ;;  %v525_v12 = vld [vmem:[%s681_s4 + $0x28] sm:$0xff]   ;;  %v526_v13 = vld [vmem:[%s681_s4 + $0x20] sm:$0xff]   ;;  %v527_v14 = vld [vmem:[%s681_s4 + $0x18] sm:$0xff]  }
   0x6   :  { %482 = vmatpush3.bf16.msra.mxu1 %v523_v10  ;;  %v528_v15 = vld [vmem:[%s681_s4 + $0x10] sm:$0xff]   ;;  %v529_v16 = vld [vmem:[%s681_s4 + $0x8] sm:$0xff]   ;;  %v530_v17 = vld [vmem:[%s681_s4] sm:$0xff]  }
   0x7   :  { %464 = vmatpush3.bf16.msra.mxu0 %v514_v1  ;;  %483 = vmatprep.subr.bf16.mxu1 %v524_v11  ;;  %v531_v18 = vld [vmem:[%s682_s6 + $0x18] sm:$0xff]   ;;  %v408_v19 = vld [vmem:[%s683_s3] ss:$0 sm:$0xff]  ;;  %v164_v41 = vld [vmem:[%s684_s0 + $0x10] sm:$0xff] }
   0x8   :  { %465 = vmatprep.subr.bf16.mxu0 %v515_v2  ;;  %v162_v42 = vld [vmem:[%s684_s0] sm:$0xff]  ;;  %v163_v43 = vld [vmem:[%s684_s0 + $0x8] sm:$0xff]  ;;  %v532_v50 = vld [vmem:[%s682_s6 + $0x10] sm:$0xff]  }
   0x9   :  { %v533_v51 = vld [vmem:[%s682_s6 + $0x8] sm:$0xff]   ;;  %v534_v52 = vld [vmem:[%s682_s6] sm:$0xff]  }
   0xa   :  { %484 = vmatpush3.bf16.msra.mxu1 %v524_v11  ;;  %v419_v55 = vld [vmem:[%s685_s5] ss:$0 sm:$0xff] }
   0xb   :  { %466 = vmatpush3.bf16.msra.mxu0 %v515_v2  ;;  %485 = vmatprep.subr.bf16.mxu1 %v525_v12  ;;  %v428_v63 = vld [vmem:[%s686_s7] ss:$0 sm:$0xff] }
   0xc   :  { %467 = vmatprep.subr.bf16.mxu0 %v516_v3 }
   0xe   :  { %486 = vmatpush3.bf16.msra.mxu1 %v525_v12 }
   0xf   :  { %468 = vmatpush3.bf16.msra.mxu0 %v516_v3  ;;  %487 = vmatprep.subr.bf16.mxu1 %v526_v13 }
  0x10   :  { %469 = vmatprep.subr.bf16.mxu0 %v517_v5 }
  0x12   :  { %488 = vmatpush3.bf16.msra.mxu1 %v526_v13 }
  0x13   :  { %470 = vmatpush3.bf16.msra.mxu0 %v517_v5  ;;  %489 = vmatprep.subr.bf16.mxu1 %v527_v14 }
  0x14   :  { %471 = vmatprep.subr.bf16.mxu0 %v518_v6 }
  0x16   :  { %490 = vmatpush3.bf16.msra.mxu1 %v527_v14 }
  0x17   :  { %472 = vmatpush3.bf16.msra.mxu0 %v518_v6  ;;  %491 = vmatprep.subr.bf16.mxu1 %v528_v15 }
  0x18   :  { %473 = vmatprep.subr.bf16.mxu0 %v519_v7 }
  0x1a   :  { %492 = vmatpush3.bf16.msra.mxu1 %v528_v15 }
  0x1b   :  { %474 = vmatpush3.bf16.msra.mxu0 %v519_v7  ;;  %493 = vmatprep.subr.bf16.mxu1 %v529_v16 }
  0x1c   :  { %475 = vmatprep.subr.bf16.mxu0 %v520_v8 }
  0x1e   :  { %494 = vmatpush3.bf16.msra.mxu1 %v529_v16 }
  0x1f   :  { %476 = vmatpush3.bf16.msra.mxu0 %v520_v8  ;;  %495 = vmatprep.subr.bf16.mxu1 %v530_v17 }
  0x20   :  { %501 = vmatprep.subr.bf16.mxu0 %v531_v18 }
  0x22   :  { %478 = vmatmul.mubr.bf16.vlgmr.msra.gmra.mxu0 %v522_v9  ;;  %496 = vmatpush3.bf16.msra.mxu1 %v530_v17 }
  0x23   :  { %502 = vmatpush3.bf16.msra.mxu0 %v531_v18 }
  0x24   :  { %503 = vmatprep.subr.bf16.mxu0 %v532_v50 }
  0x27   :  { %504 = vmatpush3.bf16.msra.mxu0 %v532_v50 }
  0x28   :  { %505 = vmatprep.subr.bf16.mxu0 %v533_v51 }
  0x2b   :  { %506 = vmatpush3.bf16.msra.mxu0 %v533_v51 }
  0x2c   :  { %507 = vmatprep.subr.bf16.mxu0 %v534_v52 }
  0x2f   :  { %508 = vmatpush3.bf16.msra.mxu0 %v534_v52 }
  0xe2   :  { %v479_v20 = vpop.f32.mrf.mxu0 }
  0xe3   :  { %v157_v21 = vadd.f32 %v479_v20, %v408_v19 }
  0xe4   :  { %v148_v22 = vpop.f32.mrf.mxu0 }
  0xe5   :  { %v171_v23 = vmul.f32 0.70710677, %v157_v21  ;;  %v149_v24 = vadd.f32 %v408_v19, %v148_v22  ;;  %v167_v34 = vmul.f32 0.5, %v157_v21 }
  0xe6   :  { %v480_v25 = vpop.f32.mrf.mxu0 }
  0xe7   :  { %535 = verf.f32 %v171_v23  ;;  %v169_v26 = vmul.f32 0.70710677, %v149_v24  ;;  %v165_v35 = vmul.f32 0.5, %v149_v24 }
  0xe8   :  { %v151_v27 = vpop.f32.mrf.mxu0 }
  0xe9   :  { %537 = verf.f32 %v169_v26  ;;  %v152_v28 = vadd.f32 %v408_v19, %v151_v27 }
  0xeb   :  { %v170_v29 = vmul.f32 0.70710677, %v152_v28  ;;  %v166_v38 = vmul.f32 0.5, %v152_v28 }
  0xed   :  { %539 = verf.f32 %v170_v29 }
  0xf4   :  { %v536_v30 = vpop.eup %535 }
  0xf5   :  { %v177_v32 = vadd.f32 1.0, %v536_v30 }
  0xf6   :  { %v538_v31 = vpop.eup %537 }
  0xf7   :  { %v175_v33 = vadd.f32 1.0, %v538_v31  ;;  %v180_v37 = vmul.f32 %v177_v32, %v167_v34 }
  0xf9   :  { %v178_v40 = vmul.f32 %v175_v33, %v165_v35  ;;  %v183_v45 = vadd.f32 %v180_v37, %v164_v41 }
  0xfa   :  { %v540_v36 = vpop.eup %539 }
  0xfb   :  { %v176_v39 = vadd.f32 1.0, %v540_v36  ;;  %v181_v46 = vadd.f32 %v178_v40, %v162_v42  ;;  %v185_v49 = vpack.c.bf16 %v183_v45, %v183_v45 }
  0xfd   :  { %v179_v44 = vmul.f32 %v176_v39, %v166_v38 }
  0xff   :  { %v182_v47 = vadd.f32 %v179_v44, %v163_v43 }
 0x101   :  { %v184_v48 = vpack.c.bf16 %v182_v47, %v181_v46 }
 0x103   :  { %497 = vmatprep.mubr.bf16.mxu1 %v184_v48 }
 0x104   :  { %498 = vmatmul.mubr.bf16.vlgmr.msra.gmra.mxu1 %v185_v49 }
 0x1c4   :  { %v499_v53 = vpop.f32.mrf.mxu1 }
 0x1c5   :  { %v300_v57 = vadd.f32 %v499_v53, %v419_v55 }
 0x1c6   :  { %v291_v54 = vpop.f32.mrf.mxu1 }
 0x1c7   :  { %v292_v59 = vadd.f32 %v419_v55, %v291_v54  ;;  %v306_v62 = vpack.c.bf16 %v300_v57, %v300_v57 }
 0x1c8   :  { %v500_v56 = vpop.f32.mrf.mxu1 }
 0x1ca   :  { %v294_v58 = vpop.f32.mrf.mxu1 }
 0x1cb   :  { %v295_v60 = vadd.f32 %v419_v55, %v294_v58 }
 0x1cd   :  { %v305_v61 = vpack.c.bf16 %v295_v60, %v292_v59 }
 0x1cf   :  { %509 = vmatprep.mubr.msk.bf16.mxu0 %vm346_vm0, %v305_v61 }
 0x1d0   :  { %510 = vmatmul.mubr.msk.bf16.vlgmr.msra.gmra.mxu0 %vm346_vm0, %v306_v62 }
 0x290   :  { %v511_v0 = vpop.f32.mrf.mxu0 }
 0x291   :  { %v396_v1 = vadd.f32 %v511_v0, %v428_v63 }
 0x292   :  { %v387_v2 = vpop.f32.mrf.mxu0 }
 0x293   :  { %403 = vst [vmem:[%s687_s8 + $0x10] sm:$0xff] %v396_v1  ;;  %v388_v3 = vadd.f32 %v428_v63, %v387_v2 }
 0x294   :  { %v512_v4 = vpop.f32.mrf.mxu0 }
 0x295   :  { %401 = vst [vmem:[%s687_s8] sm:$0xff] %v388_v3 }
 0x296   :  { %v390_v5 = vpop.f32.mrf.mxu0 }
 0x297   :  { %v391_v6 = vadd.f32 %v428_v63, %v390_v5 }
 0x299   :  { %402 = vst [vmem:[%s687_s8 + $0x8] sm:$0xff] %v391_v6 }

// kernel: vsm_oiqa_forward.33
= control target key start
LH: loop header
LB: loop body
LE: loop exit
PB: predicated region body
PF: predicated region fallthrough
CT: control target
= control target key end

     0   :  { %vm30_vm0 = vcmask 261120   ;;  %v1780_v0 = vmov 0.0   ;;  %vm1781_vm1 = vmmov 0   ;;  %s1782_s11 = smov 64   ;;  %s1783_s12 = smov 32   ;;  %s2140_s1 = inlined_call_operand.vmem [shape: bf16[32,128], index: 1, kind: input, shape index: {}]   ;;  %s2141_s0 = inlined_call_operand.vmem [shape: f32[32,128], index: 0, kind: input, shape index: {}]   ;;  %s2142_s2 = inlined_call_operand.vmem [shape: bf16[32,128], index: 2, kind: input, shape index: {}]   ;;  %s2143_s3 = inlined_call_operand.vmem [shape: bf16[32,128], index: 3, kind: input, shape index: {}]   ;;  %s2144_s4 = inlined_call_operand.vmem [shape: f32[1,128], index: 4, kind: input, shape index: {}]   ;;  %s2145_s5 = inlined_call_operand.vmem [shape: bf16[32,128], index: 5, kind: input, shape index: {}]   ;;  %s2146_s6 = inlined_call_operand.vmem [shape: bf16[32,128], index: 6, kind: input, shape index: {}]   ;;  %s2147_s7 = inlined_call_operand.vmem [shape: f32[1,128], index: 7, kind: input, shape index: {}]   ;;  %s2148_s8 = inlined_call_operand.vmem [shape: f32[32,32], index: 8, kind: output, shape index: {}]  }
   0x1   :  { %1539 = vmatprep.subr.bf16.mxu0 %v1780_v0  ;;  %v1656_v1 = vld [vmem:[%s2140_s1 + $0x8] sm:$0xff]   ;;  %1543 = vmatprep.mubr.msk.bf16.mxu0 %vm1781_vm1, %v1780_v0  ;;  %31 = vst.msk [vmem:[#allocation2] sm:$0xff] %vm30_vm0, %v1780_v0  ;;  %32 = vst.msk [vmem:[#allocation3] sm:$0xff] %vm30_vm0, %v1780_v0  ;;  %v1657_v2 = vld [vmem:[%s2140_s1] sm:$0xff]   ;;  %s1784_s13 = smov 96  }
   0x2   :  { %1547 = vmatprep.subr.bf16.mxu1 %v1780_v0  ;;  %1551 = vmatprep.mubr.msk.bf16.mxu1 %vm1781_vm1, %v1780_v0  ;;  %v33_v5 = vld [vmem:[%s2141_s0] sm:$0xff]  ;;  %v1658_v24 = vld [vmem:[%s2140_s1 + $0x8] sm:$0xff]   ;;  %v239_v63 = vld [vmem:[%s2141_s0 + $0x10] sm:$0xff] }
   0x3   :  { %1540 = vmatpush3.bf16.msra.mxu0 %v1656_v1  ;;  %1548 = vmatpush3.bf16.msra.mxu1 %v1658_v24  ;;  %v1659_v25 = vld [vmem:[%s2140_s1] sm:$0xff]   ;;  %v136_v33 = vld [vmem:[%s2141_s0 + $0x8] sm:$0xff] }
   0x4   :  { %1541 = vmatprep.subr.bf16.mxu0 %v1780_v0  ;;  %1549 = vmatprep.subr.bf16.mxu1 %v1780_v0  ;;  %v1660_v51 = vld [vmem:[%s2140_s1 + $0x8] sm:$0xff]   ;;  %v1661_v52 = vld [vmem:[%s2140_s1] sm:$0xff]  }
   0x7   :  { %1542 = vmatpush3.bf16.msra.mxu0 %v1657_v2  ;;  %1550 = vmatpush3.bf16.msra.mxu1 %v1659_v25 }
   0x8   :  { %v34_v3 = vld [vmem:[#allocation2] sm:$0xff]  ;;  %1555 = vmatprep.subr.bf16.mxu0 %v1780_v0  ;;  %v103_v12 = vld [vmem:[#allocation3] sm:$0xff]  ;;  %1563 = vmatprep.subr.bf16.mxu1 %v1780_v0 }
   0x9   :  { %v35_v4 = vpack.c.bf16 %v34_v3, %v34_v3 }
   0xb   :  { %1544 = vmatmul.mubr.msk.bf16.vlgmr.msra.gmra.mxu0 %vm30_vm0, %v35_v4 }
   0xc   :  { %1559 = vmatprep.mubr.msk.bf16.mxu0 %vm1781_vm1, %v1780_v0  ;;  %1556 = vmatpush3.bf16.msra.mxu0 %v1660_v51 }
   0xd   :  { %1557 = vmatprep.subr.bf16.mxu0 %v1780_v0 }
  0x10   :  { %1558 = vmatpush3.bf16.msra.mxu0 %v1661_v52 }
  0xcb   :  { %v89_v6 = vpop.f32.mrf.mxu0 }
  0xcc   :  { %v95_v7 = vadd.f32 %v89_v6, %v33_v5 }
  0xcd   :  { %v1545_v8 = vpop.f32.mrf.mxu0 }
  0xce   :  { %1684 = vtanh.f32 %v95_v7  ;;  %v1440_v13 = vmul.f32 -1.442695, %v95_v7 }
  0xcf   :  { %v92_v9 = vpop.f32.mrf.mxu0 }
  0xd0   :  { %1686 = vpow2.f32 %v1440_v13 }
  0xd1   :  { %v1546_v10 = vpop.f32.mrf.mxu0 }
  0xdb   :  { %v1685_v11 = vpop.eup %1684 }
  0xdc   :  { %110 = vrot.lane.b32.xlu0 %v1685_v11, %s1782_s11 }
  0xdd   :  { %v1687_v14 = vpop.eup %1686 }
  0xde   :  { %v99_v15 = vadd.f32 1.0, %v1687_v14 }
  0xe0   :  { %105 = vrot.lane.b32.xlu0 %v103_v12, %s1783_s12  ;;  %1688 = vrcp.f32 %v99_v15 }
  0xed   :  { %v1689_v16 = vpop.eup %1688 }
 0x14e   :  { %v111_v17 = vpop.permute.xlu0 %110 }
 0x14f   :  { %v113_v18 = vmul.f32 %v1689_v16, %v111_v17 }
 0x151   :  { %115 = vrot.lane.b32.xlu1 %v113_v18, %s1783_s12  ;;  %v1662_v18 = vld [vmem:[%s2140_s1 + $0x8] sm:$0xff]  }
 0x152   :  { %v106_v19 = vpop.permute.xlu0 %105 }
 0x153   :  { %v108_v20 = vmul.f32 %v1689_v16, %v106_v19  ;;  %v1663_v19 = vld [vmem:[%s2140_s1] sm:$0xff]  }
 0x1c3   :  { %v116_v21 = vpop.permute.xlu1 %115 }
 0x1c4   :  { %v118_v22 = vadd.f32 %v116_v21, %v108_v20 }
 0x1c6   :  { %1690 = vtanh.f32 %v118_v22 }
 0x1d3   :  { %v1691_v23 = vpop.eup %1690 }
 0x1d4   :  { %121 = vrot.lane.b32.xlu1 %v1691_v23, %s1782_s11 }
 0x1d8   :  { %126 = vrot.lane.b32.xlu1 %v118_v22, %s1784_s13 }
 0x246   :  { %v122_v26 = vpop.permute.xlu1 %121 }
 0x247   :  { %v124_v27 = vmul.f32 %v1689_v16, %v122_v26 }
 0x249   :  { %131 = vrot.lane.b32.xlu0 %v124_v27, %s1783_s12  ;;  %v342_v27 = vld [vmem:[%s2141_s0 + $0x18] sm:$0xff] }
 0x24a   :  { %v127_v28 = vpop.permute.xlu1 %126 }
 0x24b   :  { %129 = vst.msk [vmem:[#allocation3] sm:$0xff] %vm30_vm0, %v127_v28 }
 0x252   :  { %v206_v29 = vld [vmem:[#allocation3] sm:$0xff] }
 0x253   :  { %208 = vrot.lane.b32.xlu1 %v206_v29, %s1783_s12 }
 0x2bb   :  { %v132_v30 = vpop.permute.xlu0 %131 }
 0x2bc   :  { %134 = vst.msk [vmem:[#allocation2] sm:$0xff] %vm30_vm0, %v132_v30  ;;  %135 = vst.msk [vmem:[#allocation4] sm:$0xff] %vm30_vm0, %v132_v30 }
 0x2c3   :  { %v137_v31 = vld [vmem:[#allocation2] sm:$0xff]  ;;  %v445_v59 = vld [vmem:[#allocation4] sm:$0xff] }
 0x2c4   :  { %v138_v32 = vpack.c.bf16 %v137_v31, %v137_v31 }
 0x2c5   :  { %v209_v46 = vpop.permute.xlu1 %208 }
 0x2c6   :  { %1552 = vmatmul.mubr.msk.bf16.vlgmr.msra.gmra.mxu1 %vm30_vm0, %v138_v32 }
 0x2c7   :  { %1567 = vmatprep.mubr.msk.bf16.mxu1 %vm1781_vm1, %v1780_v0  ;;  %1564 = vmatpush3.bf16.msra.mxu1 %v1662_v18 }
 0x2c8   :  { %1565 = vmatprep.subr.bf16.mxu1 %v1780_v0 }
 0x2cb   :  { %1566 = vmatpush3.bf16.msra.mxu1 %v1663_v19 }
 0x2cc   :  { %1579 = vmatprep.subr.bf16.mxu1 %v1780_v0 }
 0x386   :  { %v192_v34 = vpop.f32.mrf.mxu1 }
 0x387   :  { %v198_v35 = vadd.f32 %v192_v34, %v136_v33 }
 0x388   :  { %v1553_v36 = vpop.f32.mrf.mxu1 }
 0x389   :  { %1692 = vtanh.f32 %v198_v35  ;;  %v1444_v40 = vmul.f32 -1.442695, %v198_v35 }
 0x38a   :  { %v195_v37 = vpop.f32.mrf.mxu1 }
 0x38b   :  { %1694 = vpow2.f32 %v1444_v40 }
 0x38c   :  { %v1554_v38 = vpop.f32.mrf.mxu1 }
 0x396   :  { %v1693_v39 = vpop.eup %1692 }
 0x397   :  { %213 = vrot.lane.b32.xlu0 %v1693_v39, %s1782_s11 }
 0x398   :  { %v1695_v41 = vpop.eup %1694 }
 0x399   :  { %v202_v42 = vadd.f32 1.0, %v1695_v41 }
 0x39b   :  { %1696 = vrcp.f32 %v202_v42 }
 0x3a8   :  { %v1697_v43 = vpop.eup %1696 }
 0x3a9   :  { %v211_v47 = vmul.f32 %v1697_v43, %v209_v46  ;;  %v1666_v46 = vld [vmem:[%s2142_s2] sm:$0xff]  }
 0x409   :  { %v214_v44 = vpop.permute.xlu0 %213 }
 0x40a   :  { %v216_v45 = vmul.f32 %v1697_v43, %v214_v44 }
 0x40c   :  { %218 = vrot.lane.b32.xlu0 %v216_v45, %s1783_s12  ;;  %v1664_v45 = vld [vmem:[%s2142_s2 + $0x8] sm:$0xff]  }
 0x40d   :  { %1571 = vmatprep.subr.bf16.mxu0 %v1664_v45 }
 0x47e   :  { %v219_v48 = vpop.permute.xlu0 %218 }
 0x47f   :  { %v221_v49 = vadd.f32 %v219_v48, %v211_v47  ;;  %v1665_v47 = vld [vmem:[%s2143_s3 + $0x8] sm:$0xff]   ;;  %v1667_v48 = vld [vmem:[%s2143_s3] sm:$0xff]  }
 0x481   :  { %1698 = vtanh.f32 %v221_v49 }
 0x48e   :  { %v1699_v50 = vpop.eup %1698 }
 0x48f   :  { %224 = vrot.lane.b32.xlu1 %v1699_v50, %s1782_s11 }
 0x493   :  { %229 = vrot.lane.b32.xlu1 %v221_v49, %s1784_s13 }
 0x501   :  { %v225_v53 = vpop.permute.xlu1 %224 }
 0x502   :  { %v227_v54 = vmul.f32 %v1697_v43, %v225_v53 }
 0x504   :  { %234 = vrot.lane.b32.xlu0 %v227_v54, %s1783_s12 }
 0x505   :  { %v230_v55 = vpop.permute.xlu1 %229 }
 0x506   :  { %232 = vst.msk [vmem:[#allocation3] sm:$0xff] %vm30_vm0, %v230_v55 }
 0x50d   :  { %v309_v56 = vld [vmem:[#allocation3] sm:$0xff] }
 0x50e   :  { %311 = vrot.lane.b32.xlu1 %v309_v56, %s1783_s12 }
 0x576   :  { %v235_v57 = vpop.permute.xlu0 %234 }
 0x577   :  { %237 = vst.msk [vmem:[#allocation2] sm:$0xff] %vm30_vm0, %v235_v57  ;;  %238 = vst.msk [vmem:[#allocation4 + $0x8] sm:$0xff] %vm30_vm0, %v235_v57 }
 0x57e   :  { %v240_v58 = vld [vmem:[#allocation2] sm:$0xff]  ;;  %v446_v60 = vld [vmem:[#allocation4 + $0x8] sm:$0xff] }
 0x57f   :  { %v241_v61 = vpack.c.bf16 %v240_v58, %v240_v58  ;;  %v449_v62 = vpack.c.bf16 %v446_v60, %v445_v59  ;;  %v1453_v59 = vld [vmem:[%s2144_s4] ss:$0 sm:$0xff] }
 0x580   :  { %v312_v13 = vpop.permute.xlu1 %311 }
 0x581   :  { %1560 = vmatmul.mubr.msk.bf16.vlgmr.msra.gmra.mxu0 %vm30_vm0, %v241_v61 }
 0x582   :  { %1575 = vmatprep.mubr.msk.bf16.mxu0 %vm30_vm0, %v449_v62  ;;  %1572 = vmatpush3.bf16.msra.mxu0 %v1664_v45 }
 0x583   :  { %1573 = vmatprep.subr.bf16.mxu0 %v1666_v46 }
 0x586   :  { %1574 = vmatpush3.bf16.msra.mxu0 %v1666_v46 }
 0x587   :  { %1587 = vmatprep.subr.bf16.mxu0 %v1780_v0 }
 0x641   :  { %v295_v1 = vpop.f32.mrf.mxu0 }
 0x642   :  { %v301_v2 = vadd.f32 %v295_v1, %v239_v63 }
 0x643   :  { %v1561_v3 = vpop.f32.mrf.mxu0 }
 0x644   :  { %1700 = vtanh.f32 %v301_v2  ;;  %v1448_v7 = vmul.f32 -1.442695, %v301_v2 }
 0x645   :  { %v298_v4 = vpop.f32.mrf.mxu0 }
 0x646   :  { %1702 = vpow2.f32 %v1448_v7 }
 0x647   :  { %v1562_v5 = vpop.f32.mrf.mxu0 }
 0x651   :  { %v1701_v6 = vpop.eup %1700 }
 0x652   :  { %316 = vrot.lane.b32.xlu0 %v1701_v6, %s1782_s11 }
 0x653   :  { %v1703_v8 = vpop.eup %1702 }
 0x654   :  { %v305_v9 = vadd.f32 1.0, %v1703_v8 }
 0x656   :  { %1704 = vrcp.f32 %v305_v9 }
 0x663   :  { %v1705_v10 = vpop.eup %1704 }
 0x664   :  { %v314_v14 = vmul.f32 %v1705_v10, %v312_v13 }
 0x6c4   :  { %v317_v11 = vpop.permute.xlu0 %316 }
 0x6c5   :  { %v319_v12 = vmul.f32 %v1705_v10, %v317_v11 }
 0x6c7   :  { %321 = vrot.lane.b32.xlu0 %v319_v12, %s1783_s12 }
 0x739   :  { %v322_v15 = vpop.permute.xlu0 %321 }
 0x73a   :  { %v324_v16 = vadd.f32 %v322_v15, %v314_v14 }
 0x73c   :  { %1706 = vtanh.f32 %v324_v16 }
 0x749   :  { %v1707_v17 = vpop.eup %1706 }
 0x74a   :  { %327 = vrot.lane.b32.xlu1 %v1707_v17, %s1782_s11 }
 0x74e   :  { %332 = vrot.lane.b32.xlu1 %v324_v16, %s1784_s13 }
 0x7bc   :  { %v328_v20 = vpop.permute.xlu1 %327 }
 0x7bd   :  { %v330_v21 = vmul.f32 %v1705_v10, %v328_v20  ;;  %v1668_v20 = vld [vmem:[%s2143_s3 + $0x8] sm:$0xff]  }
 0x7bf   :  { %337 = vrot.lane.b32.xlu0 %v330_v21, %s1783_s12  ;;  %v1669_v21 = vld [vmem:[%s2143_s3] sm:$0xff]  }
 0x7c0   :  { %v333_v22 = vpop.permute.xlu1 %332 }
 0x7c1   :  { %335 = vst.msk [vmem:[#allocation3] sm:$0xff] %vm30_vm0, %v333_v22 }
 0x7c8   :  { %v412_v23 = vld [vmem:[#allocation3] sm:$0xff] }
 0x7c9   :  { %414 = vrot.lane.b32.xlu1 %v412_v23, %s1783_s12 }
 0x831   :  { %v338_v24 = vpop.permute.xlu0 %337 }
 0x832   :  { %340 = vst.msk [vmem:[#allocation2] sm:$0xff] %vm30_vm0, %v338_v24  ;;  %341 = vst.msk [vmem:[#allocation4 + $0x10] sm:$0xff] %vm30_vm0, %v338_v24 }
 0x839   :  { %v343_v25 = vld [vmem:[#allocation2] sm:$0xff] }
 0x83a   :  { %v344_v26 = vpack.c.bf16 %v343_v25, %v343_v25  ;;  %v447_v54 = vld [vmem:[#allocation4 + $0x10] sm:$0xff] }
 0x83b   :  { %v415_v40 = vpop.permute.xlu1 %414 }
 0x83c   :  { %1568 = vmatmul.mubr.msk.bf16.vlgmr.msra.gmra.mxu1 %vm30_vm0, %v344_v26 }
 0x83d   :  { %1583 = vmatprep.mubr.msk.bf16.mxu1 %vm1781_vm1, %v1780_v0  ;;  %1580 = vmatpush3.bf16.msra.mxu1 %v1665_v47 }
 0x83e   :  { %1581 = vmatprep.subr.bf16.mxu1 %v1780_v0 }
 0x841   :  { %1582 = vmatpush3.bf16.msra.mxu1 %v1667_v48  ;;  %v1670_v48 = vld [vmem:[%s2143_s3 + $0x8] sm:$0xff]  }
 0x842   :  { %1595 = vmatprep.subr.bf16.mxu1 %v1780_v0 }
 0x8fc   :  { %v398_v28 = vpop.f32.mrf.mxu1 }
 0x8fd   :  { %v404_v29 = vadd.f32 %v398_v28, %v342_v27 }
 0x8fe   :  { %v1569_v30 = vpop.f32.mrf.mxu1 }
 0x8ff   :  { %1708 = vtanh.f32 %v404_v29  ;;  %v1452_v34 = vmul.f32 -1.442695, %v404_v29 }
 0x900   :  { %v401_v31 = vpop.f32.mrf.mxu1 }
 0x901   :  { %1710 = vpow2.f32 %v1452_v34 }
 0x902   :  { %v1570_v32 = vpop.f32.mrf.mxu1 }
 0x90c   :  { %v1709_v33 = vpop.eup %1708 }
 0x90d   :  { %419 = vrot.lane.b32.xlu0 %v1709_v33, %s1782_s11 }
 0x90e   :  { %v1711_v35 = vpop.eup %1710 }
 0x90f   :  { %v408_v36 = vadd.f32 1.0, %v1711_v35 }
 0x911   :  { %1712 = vrcp.f32 %v408_v36 }
 0x91e   :  { %v1713_v37 = vpop.eup %1712 }
 0x91f   :  { %v417_v41 = vmul.f32 %v1713_v37, %v415_v40 }
 0x97f   :  { %v420_v38 = vpop.permute.xlu0 %419 }
 0x980   :  { %v422_v39 = vmul.f32 %v1713_v37, %v420_v38 }
 0x982   :  { %424 = vrot.lane.b32.xlu0 %v422_v39, %s1783_s12 }
 0x9f4   :  { %v425_v42 = vpop.permute.xlu0 %424 }
 0x9f5   :  { %v427_v43 = vadd.f32 %v425_v42, %v417_v41 }
 0x9f7   :  { %1714 = vtanh.f32 %v427_v43 }
 0xa04   :  { %v1715_v44 = vpop.eup %1714 }
 0xa05   :  { %430 = vrot.lane.b32.xlu1 %v1715_v44, %s1782_s11 }
 0xa09   :  { %435 = vrot.lane.b32.xlu1 %v427_v43, %s1784_s13 }
 0xa77   :  { %v431_v49 = vpop.permute.xlu1 %430 }
 0xa78   :  { %v433_v50 = vmul.f32 %v1713_v37, %v431_v49  ;;  %v1671_v49 = vld [vmem:[%s2143_s3] sm:$0xff]  }
 0xa7a   :  { %440 = vrot.lane.b32.xlu0 %v433_v50, %s1783_s12 }
 0xa7b   :  { %v436_v51 = vpop.permute.xlu1 %435 }
 0xa7c   :  { %438 = vst.msk [vmem:[#allocation3] sm:$0xff] %vm30_vm0, %v436_v51 }
 0xa7d   :  { %530 = vst.msk [vmem:[#allocation3] sm:$0xff] %vm30_vm0, %v1780_v0 }
 0xa84   :  { %v600_v52 = vld [vmem:[#allocation3] sm:$0xff] }
 0xa85   :  { %602 = vrot.lane.b32.xlu1 %v600_v52, %s1783_s12 }
 0xaec   :  { %v441_v53 = vpop.permute.xlu0 %440 }
 0xaed   :  { %443 = vst.msk [vmem:[#allocation2] sm:$0xff] %vm30_vm0, %v441_v53  ;;  %444 = vst.msk [vmem:[#allocation4 + $0x18] sm:$0xff] %vm30_vm0, %v441_v53 }
 0xaee   :  { %529 = vst.msk [vmem:[#allocation2] sm:$0xff] %vm30_vm0, %v1780_v0 }
 0xaf4   :  { %v448_v55 = vld [vmem:[#allocation4 + $0x18] sm:$0xff] }
 0xaf5   :  { %v450_v56 = vpack.c.bf16 %v448_v55, %v447_v54  ;;  %v531_v57 = vld [vmem:[#allocation2] sm:$0xff] }
 0xaf6   :  { %v532_v58 = vpack.c.bf16 %v531_v57, %v531_v57 }
 0xaf7   :  { %1576 = vmatmul.mubr.msk.bf16.vlgmr.msra.gmra.mxu0 %vm30_vm0, %v450_v56  ;;  %v603_v15 = vpop.permute.xlu1 %602 }
 0xaf8   :  { %1584 = vmatmul.mubr.msk.bf16.vlgmr.msra.gmra.mxu1 %vm30_vm0, %v532_v58  ;;  %1591 = vmatprep.mubr.msk.bf16.mxu0 %vm1781_vm1, %v1780_v0 }
 0xaf9   :  { %1599 = vmatprep.mubr.msk.bf16.mxu1 %vm1781_vm1, %v1780_v0  ;;  %1588 = vmatpush3.bf16.msra.mxu0 %v1668_v20 }
 0xafa   :  { %1589 = vmatprep.subr.bf16.mxu0 %v1780_v0  ;;  %1596 = vmatpush3.bf16.msra.mxu1 %v1670_v48 }
 0xafb   :  { %1597 = vmatprep.subr.bf16.mxu1 %v1780_v0 }
 0xafd   :  { %1590 = vmatpush3.bf16.msra.mxu0 %v1669_v21 }
 0xafe   :  { %1603 = vmatprep.subr.bf16.mxu0 %v1780_v0  ;;  %1598 = vmatpush3.bf16.msra.mxu1 %v1671_v49 }
 0xbb7   :  { %v1577_v60 = vpop.f32.mrf.mxu0 }
 0xbb8   :  { %v1959_v61 = vadd.f32 %v1577_v60, %v1453_v59  ;;  %v586_v62 = vpop.f32.mrf.mxu1 }
 0xbb9   :  { %v514_v63 = vpop.f32.mrf.mxu0 }
 0xbba   :  { %v515_v1 = vadd.f32 %v1453_v59, %v514_v63  ;;  %v1585_v2 = vpop.f32.mrf.mxu1 }
 0xbbb   :  { %v1578_v3 = vpop.f32.mrf.mxu0 }
 0xbbc   :  { %v592_v4 = vadd.f32 %v586_v62, %v515_v1  ;;  %v1961_v5 = vadd.f32 %v1578_v3, %v1453_v59  ;;  %v589_v6 = vpop.f32.mrf.mxu1 }
 0xbbd   :  { %v517_v29 = vpop.f32.mrf.mxu0 }
 0xbbe   :  { %1716 = vtanh.f32 %v592_v4  ;;  %v1586_v7 = vpop.f32.mrf.mxu1  ;;  %v1461_v9 = vmul.f32 -1.442695, %v592_v4  ;;  %v518_v30 = vadd.f32 %v1453_v59, %v517_v29 }
 0xbc0   :  { %1718 = vpow2.f32 %v1461_v9 }
 0xbcb   :  { %v1717_v8 = vpop.eup %1716 }
 0xbcc   :  { %607 = vrot.lane.b32.xlu0 %v1717_v8, %s1782_s11 }
 0xbcd   :  { %v1719_v10 = vpop.eup %1718 }
 0xbce   :  { %v596_v11 = vadd.f32 1.0, %v1719_v10 }
 0xbd0   :  { %1720 = vrcp.f32 %v596_v11 }
 0xbdd   :  { %v1721_v12 = vpop.eup %1720 }
 0xbde   :  { %v605_v16 = vmul.f32 %v1721_v12, %v603_v15  ;;  %v1672_v15 = vld [vmem:[%s2143_s3 + $0x8] sm:$0xff]  }
 0xc3e   :  { %v608_v13 = vpop.permute.xlu0 %607 }
 0xc3f   :  { %v610_v14 = vmul.f32 %v1721_v12, %v608_v13 }
 0xc41   :  { %612 = vrot.lane.b32.xlu0 %v610_v14, %s1783_s12 }
 0xcb3   :  { %v613_v17 = vpop.permute.xlu0 %612 }
 0xcb4   :  { %v615_v18 = vadd.f32 %v613_v17, %v605_v16  ;;  %v1673_v16 = vld [vmem:[%s2143_s3] sm:$0xff]  }
 0xcb6   :  { %1722 = vtanh.f32 %v615_v18 }
 0xcc3   :  { %v1723_v19 = vpop.eup %1722 }
 0xcc4   :  { %618 = vrot.lane.b32.xlu1 %v1723_v19, %s1782_s11 }
 0xcc8   :  { %623 = vrot.lane.b32.xlu1 %v615_v18, %s1784_s13 }
 0xd36   :  { %v619_v22 = vpop.permute.xlu1 %618 }
 0xd37   :  { %v621_v23 = vmul.f32 %v1721_v12, %v619_v22 }
 0xd39   :  { %628 = vrot.lane.b32.xlu0 %v621_v23, %s1783_s12 }
 0xd3a   :  { %v624_v24 = vpop.permute.xlu1 %623 }
 0xd3b   :  { %626 = vst.msk [vmem:[#allocation3] sm:$0xff] %vm30_vm0, %v624_v24 }
 0xd42   :  { %v702_v25 = vld [vmem:[#allocation3] sm:$0xff] }
 0xd43   :  { %704 = vrot.lane.b32.xlu1 %v702_v25, %s1783_s12 }
 0xdab   :  { %v629_v26 = vpop.permute.xlu0 %628 }
 0xdac   :  { %631 = vst.msk [vmem:[#allocation2] sm:$0xff] %vm30_vm0, %v629_v26  ;;  %632 = vst.msk [vmem:[#allocation4] sm:$0xff] %vm30_vm0, %v629_v26 }
 0xdb3   :  { %v633_v27 = vld [vmem:[#allocation2] sm:$0xff]  ;;  %v939_v56 = vld [vmem:[#allocation4] sm:$0xff] }
 0xdb4   :  { %v634_v28 = vpack.c.bf16 %v633_v27, %v633_v27 }
 0xdb5   :  { %v705_v43 = vpop.permute.xlu1 %704 }
 0xdb6   :  { %1592 = vmatmul.mubr.msk.bf16.vlgmr.msra.gmra.mxu0 %vm30_vm0, %v634_v28 }
 0xdb7   :  { %1607 = vmatprep.mubr.msk.bf16.mxu0 %vm1781_vm1, %v1780_v0  ;;  %1604 = vmatpush3.bf16.msra.mxu0 %v1672_v15 }
 0xdb8   :  { %1605 = vmatprep.subr.bf16.mxu0 %v1780_v0 }
 0xdbb   :  { %1606 = vmatpush3.bf16.msra.mxu0 %v1673_v16  ;;  %v1678_v16 = vld [vmem:[%s2146_s6 + $0x8] sm:$0xff]  }
 0xdbc   :  { %1619 = vmatprep.subr.bf16.mxu0 %v1780_v0 }
 0xe76   :  { %v688_v31 = vpop.f32.mrf.mxu0 }
 0xe77   :  { %v694_v32 = vadd.f32 %v688_v31, %v518_v30 }
 0xe78   :  { %v1593_v33 = vpop.f32.mrf.mxu0 }
 0xe79   :  { %1724 = vtanh.f32 %v694_v32  ;;  %v1465_v37 = vmul.f32 -1.442695, %v694_v32 }
 0xe7a   :  { %v691_v34 = vpop.f32.mrf.mxu0 }
 0xe7b   :  { %1726 = vpow2.f32 %v1465_v37 }
 0xe7c   :  { %v1594_v35 = vpop.f32.mrf.mxu0 }
 0xe86   :  { %v1725_v36 = vpop.eup %1724 }
 0xe87   :  { %709 = vrot.lane.b32.xlu0 %v1725_v36, %s1782_s11 }
 0xe88   :  { %v1727_v38 = vpop.eup %1726 }
 0xe89   :  { %v698_v39 = vadd.f32 1.0, %v1727_v38 }
 0xe8b   :  { %1728 = vrcp.f32 %v698_v39 }
 0xe98   :  { %v1729_v40 = vpop.eup %1728 }
 0xe99   :  { %v707_v44 = vmul.f32 %v1729_v40, %v705_v43  ;;  %v1677_v43 = vld [vmem:[%s2146_s6] sm:$0xff]  }
 0xef9   :  { %v710_v41 = vpop.permute.xlu0 %709 }
 0xefa   :  { %v712_v42 = vmul.f32 %v1729_v40, %v710_v41  ;;  %v1676_v41 = vld [vmem:[%s2145_s5] sm:$0xff]  }
 0xefc   :  { %714 = vrot.lane.b32.xlu0 %v712_v42, %s1783_s12  ;;  %v1675_v42 = vld [vmem:[%s2146_s6 + $0x8] sm:$0xff]  }
 0xf6e   :  { %v715_v45 = vpop.permute.xlu0 %714 }
 0xf6f   :  { %v717_v46 = vadd.f32 %v715_v45, %v707_v44 }
 0xf71   :  { %1730 = vtanh.f32 %v717_v46 }
 0xf7e   :  { %v1731_v47 = vpop.eup %1730 }
 0xf7f   :  { %720 = vrot.lane.b32.xlu1 %v1731_v47, %s1782_s11 }
 0xf83   :  { %725 = vrot.lane.b32.xlu1 %v717_v46, %s1784_s13 }
 0xff1   :  { %v721_v50 = vpop.permute.xlu1 %720 }
 0xff2   :  { %v723_v51 = vmul.f32 %v1729_v40, %v721_v50  ;;  %v1674_v40 = vld [vmem:[%s2145_s5 + $0x8] sm:$0xff]  }
 0xff3   :  { %1611 = vmatprep.subr.bf16.mxu1 %v1674_v40 }
 0xff4   :  { %730 = vrot.lane.b32.xlu0 %v723_v51, %s1783_s12 }
 0xff5   :  { %v726_v52 = vpop.permute.xlu1 %725 }
 0xff6   :  { %728 = vst.msk [vmem:[#allocation3] sm:$0xff] %vm30_vm0, %v726_v52 }
 0xffd   :  { %v804_v53 = vld [vmem:[#allocation3] sm:$0xff] }
 0xffe   :  { %806 = vrot.lane.b32.xlu1 %v804_v53, %s1783_s12 }
0x1066   :  { %v731_v54 = vpop.permute.xlu0 %730 }
0x1067   :  { %733 = vst.msk [vmem:[#allocation2] sm:$0xff] %vm30_vm0, %v731_v54  ;;  %734 = vst.msk [vmem:[#allocation4 + $0x8] sm:$0xff] %vm30_vm0, %v731_v54  ;;  %v1474_v54 = vld [vmem:[%s2147_s7] ss:$0 sm:$0xff] }
0x106e   :  { %v735_v55 = vld [vmem:[#allocation2] sm:$0xff]  ;;  %v940_v57 = vld [vmem:[#allocation4 + $0x8] sm:$0xff] }
0x106f   :  { %v736_v58 = vpack.c.bf16 %v735_v55, %v735_v55  ;;  %v943_v59 = vpack.c.bf16 %v940_v57, %v939_v56 }
0x1070   :  { %v807_v11 = vpop.permute.xlu1 %806 }
0x1071   :  { %1600 = vmatmul.mubr.msk.bf16.vlgmr.msra.gmra.mxu1 %vm30_vm0, %v736_v58 }
0x1072   :  { %1615 = vmatprep.mubr.msk.bf16.mxu1 %vm30_vm0, %v943_v59  ;;  %1612 = vmatpush3.bf16.msra.mxu1 %v1674_v40 }
0x1073   :  { %1613 = vmatprep.subr.bf16.mxu1 %v1676_v41 }
0x1076   :  { %1614 = vmatpush3.bf16.msra.mxu1 %v1676_v41 }
0x1077   :  { %1627 = vmatprep.subr.bf16.mxu1 %v1780_v0 }
0x1131   :  { %v790_v60 = vpop.f32.mrf.mxu1 }
0x1132   :  { %v796_v62 = vadd.f32 %v790_v60, %v1959_v61 }
0x1133   :  { %v1601_v63 = vpop.f32.mrf.mxu1 }
0x1134   :  { %1732 = vtanh.f32 %v796_v62  ;;  %v1469_v4 = vmul.f32 -1.442695, %v796_v62 }
0x1135   :  { %v793_v1 = vpop.f32.mrf.mxu1 }
0x1136   :  { %1734 = vpow2.f32 %v1469_v4 }
0x1137   :  { %v1602_v2 = vpop.f32.mrf.mxu1 }
0x1141   :  { %v1733_v3 = vpop.eup %1732 }
0x1142   :  { %811 = vrot.lane.b32.xlu0 %v1733_v3, %s1782_s11 }
0x1143   :  { %v1735_v6 = vpop.eup %1734 }
0x1144   :  { %v800_v7 = vadd.f32 1.0, %v1735_v6 }
0x1146   :  { %1736 = vrcp.f32 %v800_v7 }
0x1153   :  { %v1737_v8 = vpop.eup %1736 }
0x1154   :  { %v809_v12 = vmul.f32 %v1737_v8, %v807_v11 }
0x11b4   :  { %v812_v9 = vpop.permute.xlu0 %811 }
0x11b5   :  { %v814_v10 = vmul.f32 %v1737_v8, %v812_v9 }
0x11b7   :  { %816 = vrot.lane.b32.xlu0 %v814_v10, %s1783_s12 }
0x1229   :  { %v817_v61 = vpop.permute.xlu0 %816 }
0x122a   :  { %v819_v13 = vadd.f32 %v817_v61, %v809_v12 }
0x122c   :  { %1738 = vtanh.f32 %v819_v13 }
0x1239   :  { %v1739_v14 = vpop.eup %1738 }
0x123a   :  { %822 = vrot.lane.b32.xlu1 %v1739_v14, %s1782_s11 }
0x123e   :  { %827 = vrot.lane.b32.xlu1 %v819_v13, %s1784_s13 }
0x12ac   :  { %v823_v17 = vpop.permute.xlu1 %822 }
0x12ad   :  { %v825_v18 = vmul.f32 %v1737_v8, %v823_v17  ;;  %v1679_v17 = vld [vmem:[%s2146_s6] sm:$0xff]  }
0x12af   :  { %832 = vrot.lane.b32.xlu0 %v825_v18, %s1783_s12 }
0x12b0   :  { %v828_v19 = vpop.permute.xlu1 %827 }
0x12b1   :  { %830 = vst.msk [vmem:[#allocation3] sm:$0xff] %vm30_vm0, %v828_v19 }
0x12b8   :  { %v906_v20 = vld [vmem:[#allocation3] sm:$0xff] }
0x12b9   :  { %908 = vrot.lane.b32.xlu1 %v906_v20, %s1783_s12 }
0x1321   :  { %v833_v21 = vpop.permute.xlu0 %832 }
0x1322   :  { %835 = vst.msk [vmem:[#allocation2] sm:$0xff] %vm30_vm0, %v833_v21  ;;  %836 = vst.msk [vmem:[#allocation4 + $0x10] sm:$0xff] %vm30_vm0, %v833_v21 }
0x1329   :  { %v837_v22 = vld [vmem:[#allocation2] sm:$0xff] }
0x132a   :  { %v838_v23 = vpack.c.bf16 %v837_v22, %v837_v22  ;;  %v941_v49 = vld [vmem:[#allocation4 + $0x10] sm:$0xff] }
0x132b   :  { %v909_v36 = vpop.permute.xlu1 %908 }
0x132c   :  { %1608 = vmatmul.mubr.msk.bf16.vlgmr.msra.gmra.mxu0 %vm30_vm0, %v838_v23 }
0x132d   :  { %1623 = vmatprep.mubr.msk.bf16.mxu0 %vm1781_vm1, %v1780_v0  ;;  %1620 = vmatpush3.bf16.msra.mxu0 %v1675_v42 }
0x132e   :  { %1621 = vmatprep.subr.bf16.mxu0 %v1780_v0 }
0x1331   :  { %1622 = vmatpush3.bf16.msra.mxu0 %v1677_v43  ;;  %v1680_v43 = vld [vmem:[%s2146_s6 + $0x8] sm:$0xff]  }
0x1332   :  { %1635 = vmatprep.subr.bf16.mxu0 %v1780_v0 }
0x13ec   :  { %v892_v24 = vpop.f32.mrf.mxu0 }
0x13ed   :  { %v898_v25 = vadd.f32 %v892_v24, %v1961_v5 }
0x13ee   :  { %v1609_v26 = vpop.f32.mrf.mxu0 }
0x13ef   :  { %1740 = vtanh.f32 %v898_v25  ;;  %v1473_v30 = vmul.f32 -1.442695, %v898_v25 }
0x13f0   :  { %v895_v27 = vpop.f32.mrf.mxu0 }
0x13f1   :  { %1742 = vpow2.f32 %v1473_v30 }
0x13f2   :  { %v1610_v28 = vpop.f32.mrf.mxu0 }
0x13fc   :  { %v1741_v29 = vpop.eup %1740 }
0x13fd   :  { %913 = vrot.lane.b32.xlu0 %v1741_v29, %s1782_s11 }
0x13fe   :  { %v1743_v31 = vpop.eup %1742 }
0x13ff   :  { %v902_v32 = vadd.f32 1.0, %v1743_v31 }
0x1401   :  { %1744 = vrcp.f32 %v902_v32 }
0x140e   :  { %v1745_v33 = vpop.eup %1744 }
0x140f   :  { %v911_v37 = vmul.f32 %v1745_v33, %v909_v36 }
0x146f   :  { %v914_v34 = vpop.permute.xlu0 %913 }
0x1470   :  { %v916_v35 = vmul.f32 %v1745_v33, %v914_v34 }
0x1472   :  { %918 = vrot.lane.b32.xlu0 %v916_v35, %s1783_s12 }
0x14e4   :  { %v919_v5 = vpop.permute.xlu0 %918 }
0x14e5   :  { %v921_v38 = vadd.f32 %v919_v5, %v911_v37 }
0x14e7   :  { %1746 = vtanh.f32 %v921_v38 }
0x14f4   :  { %v1747_v39 = vpop.eup %1746 }
0x14f5   :  { %924 = vrot.lane.b32.xlu1 %v1747_v39, %s1782_s11 }
0x14f9   :  { %929 = vrot.lane.b32.xlu1 %v921_v38, %s1784_s13 }
0x1567   :  { %v925_v44 = vpop.permute.xlu1 %924 }
0x1568   :  { %v927_v45 = vmul.f32 %v1745_v33, %v925_v44  ;;  %v1681_v44 = vld [vmem:[%s2146_s6] sm:$0xff]  }
0x156a   :  { %934 = vrot.lane.b32.xlu0 %v927_v45, %s1783_s12 }
0x156b   :  { %v930_v46 = vpop.permute.xlu1 %929 }
0x156c   :  { %932 = vst.msk [vmem:[#allocation3] sm:$0xff] %vm30_vm0, %v930_v46 }
0x156d   :  { %1024 = vst.msk [vmem:[#allocation3] sm:$0xff] %vm30_vm0, %v1780_v0 }
0x1574   :  { %v1094_v47 = vld [vmem:[#allocation3] sm:$0xff] }
0x1575   :  { %1096 = vrot.lane.b32.xlu1 %v1094_v47, %s1783_s12 }
0x15dc   :  { %v935_v48 = vpop.permute.xlu0 %934 }
0x15dd   :  { %937 = vst.msk [vmem:[#allocation2] sm:$0xff] %vm30_vm0, %v935_v48  ;;  %938 = vst.msk [vmem:[#allocation4 + $0x18] sm:$0xff] %vm30_vm0, %v935_v48 }
0x15de   :  { %1023 = vst.msk [vmem:[#allocation2] sm:$0xff] %vm30_vm0, %v1780_v0 }
0x15e4   :  { %v942_v50 = vld [vmem:[#allocation4 + $0x18] sm:$0xff] }
0x15e5   :  { %v944_v51 = vpack.c.bf16 %v942_v50, %v941_v49  ;;  %v1025_v52 = vld [vmem:[#allocation2] sm:$0xff] }
0x15e6   :  { %v1026_v53 = vpack.c.bf16 %v1025_v52, %v1025_v52 }
0x15e7   :  { %1616 = vmatmul.mubr.msk.bf16.vlgmr.msra.gmra.mxu1 %vm30_vm0, %v944_v51  ;;  %v1097_v12 = vpop.permute.xlu1 %1096 }
0x15e8   :  { %1624 = vmatmul.mubr.msk.bf16.vlgmr.msra.gmra.mxu0 %vm30_vm0, %v1026_v53  ;;  %1631 = vmatprep.mubr.msk.bf16.mxu1 %vm1781_vm1, %v1780_v0 }
0x15e9   :  { %1639 = vmatprep.mubr.msk.bf16.mxu0 %vm1781_vm1, %v1780_v0  ;;  %1628 = vmatpush3.bf16.msra.mxu1 %v1678_v16 }
0x15ea   :  { %1629 = vmatprep.subr.bf16.mxu1 %v1780_v0  ;;  %1636 = vmatpush3.bf16.msra.mxu0 %v1680_v43 }
0x15eb   :  { %1637 = vmatprep.subr.bf16.mxu0 %v1780_v0 }
0x15ed   :  { %1630 = vmatpush3.bf16.msra.mxu1 %v1679_v17 }
0x15ee   :  { %1643 = vmatprep.subr.bf16.mxu1 %v1780_v0  ;;  %1638 = vmatpush3.bf16.msra.mxu0 %v1681_v44 }
0x16a7   :  { %v1617_v55 = vpop.f32.mrf.mxu1 }
0x16a8   :  { %v2060_v56 = vadd.f32 %v1617_v55, %v1474_v54  ;;  %v1080_v57 = vpop.f32.mrf.mxu0 }
0x16a9   :  { %v1008_v58 = vpop.f32.mrf.mxu1 }
0x16aa   :  { %v1009_v59 = vadd.f32 %v1474_v54, %v1008_v58  ;;  %v1625_v60 = vpop.f32.mrf.mxu0 }
0x16ab   :  { %v1618_v62 = vpop.f32.mrf.mxu1 }
0x16ac   :  { %v1086_v63 = vadd.f32 %v1080_v57, %v1009_v59  ;;  %v2062_v1 = vadd.f32 %v1618_v62, %v1474_v54  ;;  %v1083_v2 = vpop.f32.mrf.mxu0 }
0x16ad   :  { %v1011_v25 = vpop.f32.mrf.mxu1 }
0x16ae   :  { %1748 = vtanh.f32 %v1086_v63  ;;  %v1626_v3 = vpop.f32.mrf.mxu0  ;;  %v1482_v6 = vmul.f32 -1.442695, %v1086_v63  ;;  %v1012_v26 = vadd.f32 %v1474_v54, %v1011_v25 }
0x16b0   :  { %1750 = vpow2.f32 %v1482_v6 }
0x16bb   :  { %v1749_v4 = vpop.eup %1748 }
0x16bc   :  { %1101 = vrot.lane.b32.xlu0 %v1749_v4, %s1782_s11 }
0x16bd   :  { %v1751_v7 = vpop.eup %1750 }
0x16be   :  { %v1090_v8 = vadd.f32 1.0, %v1751_v7 }
0x16c0   :  { %1752 = vrcp.f32 %v1090_v8 }
0x16cd   :  { %v1753_v9 = vpop.eup %1752 }
0x16ce   :  { %v1099_v61 = vmul.f32 %v1753_v9, %v1097_v12 }
0x172e   :  { %v1102_v10 = vpop.permute.xlu0 %1101 }
0x172f   :  { %v1104_v11 = vmul.f32 %v1753_v9, %v1102_v10  ;;  %v1683_v10 = vld [vmem:[%s2146_s6] sm:$0xff]  }
0x1731   :  { %1106 = vrot.lane.b32.xlu0 %v1104_v11, %s1783_s12 }
0x17a3   :  { %v1107_v13 = vpop.permute.xlu0 %1106 }
0x17a4   :  { %v1109_v14 = vadd.f32 %v1107_v13, %v1099_v61 }
0x17a6   :  { %1754 = vtanh.f32 %v1109_v14 }
0x17b3   :  { %v1755_v15 = vpop.eup %1754 }
0x17b4   :  { %1112 = vrot.lane.b32.xlu1 %v1755_v15, %s1782_s11 }
0x17b8   :  { %1117 = vrot.lane.b32.xlu1 %v1109_v14, %s1784_s13 }
0x1826   :  { %v1113_v18 = vpop.permute.xlu1 %1112 }
0x1827   :  { %v1115_v19 = vmul.f32 %v1753_v9, %v1113_v18  ;;  %v1682_v9 = vld [vmem:[%s2146_s6 + $0x8] sm:$0xff]  }
0x1829   :  { %1122 = vrot.lane.b32.xlu0 %v1115_v19, %s1783_s12 }
0x182a   :  { %v1118_v20 = vpop.permute.xlu1 %1117 }
0x182b   :  { %1120 = vst.msk [vmem:[#allocation3] sm:$0xff] %vm30_vm0, %v1118_v20 }
0x1832   :  { %v1196_v21 = vld [vmem:[#allocation3] sm:$0xff] }
0x1833   :  { %1198 = vrot.lane.b32.xlu1 %v1196_v21, %s1783_s12 }
0x189b   :  { %v1123_v22 = vpop.permute.xlu0 %1122 }
0x189c   :  { %1125 = vst.msk [vmem:[#allocation2] sm:$0xff] %vm30_vm0, %v1123_v22  ;;  %1126 = vst.msk [vmem:[%s2148_s8] sm:$0xff] %vm30_vm0, %v1123_v22 }
0x18a3   :  { %v1127_v23 = vld [vmem:[#allocation2] sm:$0xff] }
0x18a4   :  { %v1128_v24 = vpack.c.bf16 %v1127_v23, %v1127_v23 }
0x18a5   :  { %v1199_v38 = vpop.permute.xlu1 %1198 }
0x18a6   :  { %1632 = vmatmul.mubr.msk.bf16.vlgmr.msra.gmra.mxu1 %vm30_vm0, %v1128_v24 }
0x18a7   :  { %1647 = vmatprep.mubr.msk.bf16.mxu1 %vm1781_vm1, %v1780_v0  ;;  %1644 = vmatpush3.bf16.msra.mxu1 %v1682_v9 }
0x18a8   :  { %1645 = vmatprep.subr.bf16.mxu1 %v1780_v0 }
0x18ab   :  { %1646 = vmatpush3.bf16.msra.mxu1 %v1683_v10 }
0x1966   :  { %v1182_v27 = vpop.f32.mrf.mxu1 }
0x1967   :  { %v1188_v28 = vadd.f32 %v1182_v27, %v1012_v26 }
0x1968   :  { %v1633_v29 = vpop.f32.mrf.mxu1 }
0x1969   :  { %1756 = vtanh.f32 %v1188_v28  ;;  %v1486_v33 = vmul.f32 -1.442695, %v1188_v28 }
0x196a   :  { %v1185_v30 = vpop.f32.mrf.mxu1 }
0x196b   :  { %1758 = vpow2.f32 %v1486_v33 }
0x196c   :  { %v1634_v31 = vpop.f32.mrf.mxu1 }
0x1976   :  { %v1757_v32 = vpop.eup %1756 }
0x1977   :  { %1203 = vrot.lane.b32.xlu0 %v1757_v32, %s1782_s11 }
0x1978   :  { %v1759_v34 = vpop.eup %1758 }
0x1979   :  { %v1192_v35 = vadd.f32 1.0, %v1759_v34 }
0x197b   :  { %1760 = vrcp.f32 %v1192_v35 }
0x1988   :  { %v1761_v36 = vpop.eup %1760 }
0x1989   :  { %v1201_v39 = vmul.f32 %v1761_v36, %v1199_v38 }
0x19e9   :  { %v1204_v37 = vpop.permute.xlu0 %1203 }
0x19ea   :  { %v1206_v5 = vmul.f32 %v1761_v36, %v1204_v37 }
0x19ec   :  { %1208 = vrot.lane.b32.xlu0 %v1206_v5, %s1783_s12 }
0x1a5e   :  { %v1209_v40 = vpop.permute.xlu0 %1208 }
0x1a5f   :  { %v1211_v41 = vadd.f32 %v1209_v40, %v1201_v39 }
0x1a61   :  { %1762 = vtanh.f32 %v1211_v41 }
0x1a6e   :  { %v1763_v42 = vpop.eup %1762 }
0x1a6f   :  { %1214 = vrot.lane.b32.xlu1 %v1763_v42, %s1782_s11 }
0x1a73   :  { %1219 = vrot.lane.b32.xlu1 %v1211_v41, %s1784_s13 }
0x1ae1   :  { %v1215_v45 = vpop.permute.xlu1 %1214 }
0x1ae2   :  { %v1217_v46 = vmul.f32 %v1761_v36, %v1215_v45 }
0x1ae4   :  { %1224 = vrot.lane.b32.xlu0 %v1217_v46, %s1783_s12 }
0x1ae5   :  { %v1220_v47 = vpop.permute.xlu1 %1219 }
0x1ae6   :  { %1222 = vst.msk [vmem:[#allocation3] sm:$0xff] %vm30_vm0, %v1220_v47 }
0x1aed   :  { %v1298_v48 = vld [vmem:[#allocation3] sm:$0xff] }
0x1aee   :  { %1300 = vrot.lane.b32.xlu1 %v1298_v48, %s1783_s12 }
0x1b56   :  { %v1225_v49 = vpop.permute.xlu0 %1224 }
0x1b57   :  { %1227 = vst.msk [vmem:[#allocation2] sm:$0xff] %vm30_vm0, %v1225_v49  ;;  %1228 = vst.msk [vmem:[%s2148_s8 + $0x8] sm:$0xff] %vm30_vm0, %v1225_v49 }
0x1b5e   :  { %v1229_v50 = vld [vmem:[#allocation2] sm:$0xff] }
0x1b5f   :  { %v1230_v51 = vpack.c.bf16 %v1229_v50, %v1229_v50 }
0x1b60   :  { %v1301_v4 = vpop.permute.xlu1 %1300 }
0x1b61   :  { %1640 = vmatmul.mubr.msk.bf16.vlgmr.msra.gmra.mxu0 %vm30_vm0, %v1230_v51 }
0x1c21   :  { %v1284_v52 = vpop.f32.mrf.mxu0 }
0x1c22   :  { %v1290_v53 = vadd.f32 %v1284_v52, %v2060_v56 }
0x1c23   :  { %v1641_v54 = vpop.f32.mrf.mxu0 }
0x1c24   :  { %1764 = vtanh.f32 %v1290_v53  ;;  %v1490_v59 = vmul.f32 -1.442695, %v1290_v53 }
0x1c25   :  { %v1287_v55 = vpop.f32.mrf.mxu0 }
0x1c26   :  { %1766 = vpow2.f32 %v1490_v59 }
0x1c27   :  { %v1642_v57 = vpop.f32.mrf.mxu0 }
0x1c31   :  { %v1765_v58 = vpop.eup %1764 }
0x1c32   :  { %1305 = vrot.lane.b32.xlu0 %v1765_v58, %s1782_s11 }
0x1c33   :  { %v1767_v60 = vpop.eup %1766 }
0x1c34   :  { %v1294_v62 = vadd.f32 1.0, %v1767_v60 }
0x1c36   :  { %1768 = vrcp.f32 %v1294_v62 }
0x1c43   :  { %v1769_v63 = vpop.eup %1768 }
0x1c44   :  { %v1303_v6 = vmul.f32 %v1769_v63, %v1301_v4 }
0x1ca4   :  { %v1306_v2 = vpop.permute.xlu0 %1305 }
0x1ca5   :  { %v1308_v3 = vmul.f32 %v1769_v63, %v1306_v2 }
0x1ca7   :  { %1310 = vrot.lane.b32.xlu0 %v1308_v3, %s1783_s12 }
0x1d19   :  { %v1311_v56 = vpop.permute.xlu0 %1310 }
0x1d1a   :  { %v1313_v7 = vadd.f32 %v1311_v56, %v1303_v6 }
0x1d1c   :  { %1770 = vtanh.f32 %v1313_v7 }
0x1d29   :  { %v1771_v8 = vpop.eup %1770 }
0x1d2a   :  { %1316 = vrot.lane.b32.xlu1 %v1771_v8, %s1782_s11 }
0x1d2e   :  { %1321 = vrot.lane.b32.xlu1 %v1313_v7, %s1784_s13 }
0x1d9c   :  { %v1317_v11 = vpop.permute.xlu1 %1316 }
0x1d9d   :  { %v1319_v12 = vmul.f32 %v1769_v63, %v1317_v11 }
0x1d9f   :  { %1326 = vrot.lane.b32.xlu0 %v1319_v12, %s1783_s12 }
0x1da0   :  { %v1322_v61 = vpop.permute.xlu1 %1321 }
0x1da1   :  { %1324 = vst.msk [vmem:[#allocation3] sm:$0xff] %vm30_vm0, %v1322_v61 }
0x1da8   :  { %v1400_v13 = vld [vmem:[#allocation3] sm:$0xff] }
0x1da9   :  { %1402 = vrot.lane.b32.xlu1 %v1400_v13, %s1783_s12 }
0x1e11   :  { %v1327_v14 = vpop.permute.xlu0 %1326 }
0x1e12   :  { %1329 = vst.msk [vmem:[#allocation2] sm:$0xff] %vm30_vm0, %v1327_v14  ;;  %1330 = vst.msk [vmem:[%s2148_s8 + $0x10] sm:$0xff] %vm30_vm0, %v1327_v14 }
0x1e19   :  { %v1331_v0 = vld [vmem:[#allocation2] sm:$0xff] }
0x1e1a   :  { %v1332_v15 = vpack.c.bf16 %v1331_v0, %v1331_v0 }
0x1e1b   :  { %v1403_v28 = vpop.permute.xlu1 %1402 }
0x1e1c   :  { %1648 = vmatmul.mubr.msk.bf16.vlgmr.msra.gmra.mxu1 %vm30_vm0, %v1332_v15 }
0x1edc   :  { %v1386_v16 = vpop.f32.mrf.mxu1 }
0x1edd   :  { %v1392_v17 = vadd.f32 %v1386_v16, %v2062_v1 }
0x1ede   :  { %v1649_v18 = vpop.f32.mrf.mxu1 }
0x1edf   :  { %1772 = vtanh.f32 %v1392_v17  ;;  %v1494_v22 = vmul.f32 -1.442695, %v1392_v17 }
0x1ee0   :  { %v1389_v19 = vpop.f32.mrf.mxu1 }
0x1ee1   :  { %1774 = vpow2.f32 %v1494_v22 }
0x1ee2   :  { %v1650_v20 = vpop.f32.mrf.mxu1 }
0x1eec   :  { %v1773_v21 = vpop.eup %1772 }
0x1eed   :  { %1407 = vrot.lane.b32.xlu0 %v1773_v21, %s1782_s11 }
0x1eee   :  { %v1775_v23 = vpop.eup %1774 }
0x1eef   :  { %v1396_v24 = vadd.f32 1.0, %v1775_v23 }
0x1ef1   :  { %1776 = vrcp.f32 %v1396_v24 }
0x1efe   :  { %v1777_v25 = vpop.eup %1776 }
0x1eff   :  { %v1405_v29 = vmul.f32 %v1777_v25, %v1403_v28 }
0x1f5f   :  { %v1408_v26 = vpop.permute.xlu0 %1407 }
0x1f60   :  { %v1410_v27 = vmul.f32 %v1777_v25, %v1408_v26 }
0x1f62   :  { %1412 = vrot.lane.b32.xlu0 %v1410_v27, %s1783_s12 }
0x1fd4   :  { %v1413_v1 = vpop.permute.xlu0 %1412 }
0x1fd5   :  { %v1415_v30 = vadd.f32 %v1413_v1, %v1405_v29 }
0x1fd7   :  { %1778 = vtanh.f32 %v1415_v30  ;;  %1423 = vrot.lane.b32.xlu0 %v1415_v30, %s1784_s13 }
0x1fe4   :  { %v1779_v31 = vpop.eup %1778 }
0x1fe5   :  { %1418 = vrot.lane.b32.xlu1 %v1779_v31, %s1782_s11 }
0x2049   :  { %v1424_v32 = vpop.permute.xlu0 %1423 }
0x204a   :  { %1426 = vst.msk [vmem:[#allocation3] sm:$0xff] %vm30_vm0, %v1424_v32 }
0x2057   :  { %v1419_v33 = vpop.permute.xlu1 %1418 }
0x2058   :  { %v1421_v34 = vmul.f32 %v1777_v25, %v1419_v33 }
0x205a   :  { %1428 = vrot.lane.b32.xlu1 %v1421_v34, %s1783_s12 }
0x20cc   :  { %v1429_v35 = vpop.permute.xlu1 %1428 }
0x20cd   :  { %1431 = vst.msk [vmem:[#allocation2] sm:$0xff] %vm30_vm0, %v1429_v35  ;;  %1432 = vst.msk [vmem:[%s2148_s8 + $0x18] sm:$0xff] %vm30_vm0, %v1429_v35 }

</bundles_post_ra>
